<compile_context>
chip_gen: v7x
topology: tpu7x:2x2x1
jax: 0.10.0
libtpu: 0.0.40
codegen_flags: <defaults>
</compile_context>

<pallas_src>
import functools

import jax
import jax.numpy as jnp
from jax.experimental import pallas as pl
from jax.experimental.pallas import tpu as pltpu

KSIZE = 5
PAD = 2


def _round_up(x, m):
    return ((x + m - 1) // m) * m


# ----------------------------- Pallas kernels ------------------------------

def _fused_conv_kernel(x_ref, w1_ref, b1_ref, s1_ref, t1_ref,
                       w2_ref, b2_ref, s2_ref, t2_ref,
                       o_ref, y1pad_ref, y2_ref, *, H, W, lead):
    """Per-image fused conv1+ReLU+BN1 -> conv2+ReLU+BN2 -> 2x2 maxpool."""
    Wp = W + 2 * PAD                    # padded width
    M = H * Wp                          # conv-output rows (incl. garbage w-cols)
    C1 = w1_ref.shape[1]                # 32
    Ho, Wo = H // 2, W // 2
    Wh = Wp // 2
    R2 = y1pad_ref.shape[0]
    off = lead + PAD * Wp + PAD         # sublane-aligned start of the y1 block

    # ---- conv_1: ONE fat GEMM on the wrapper-built (K=128-padded) im2col.
    acc1 = jnp.dot(x_ref[...], w1_ref[...], preferred_element_type=jnp.float32)
    y1 = jnp.maximum(acc1 + b1_ref[...], 0.0)            # conv bias + ReLU
    y1 = y1 * s1_ref[...] + t1_ref[...]                  # BatchNorm1 (eval affine)

    # Zero the garbage w-columns so they become conv2's horizontal zero padding.
    row = jax.lax.broadcasted_iota(jnp.int32, (M, 1), 0)
    y1 = jnp.where(row % Wp < W, y1, 0.0)

    # Padded-flat bf16 scratch: zero ONLY the border rows, then one aligned
    # block copy of y1 (stored once, already bf16).
    y1pad_ref[0:off, :] = jnp.zeros((off, C1), jnp.bfloat16)
    y1pad_ref[off + M:R2, :] = jnp.zeros((R2 - off - M, C1), jnp.bfloat16)
    y1pad_ref[off:off + M, :] = y1.astype(jnp.bfloat16)

    # ---- conv_2: 5 GEMMs with K = KSIZE*C1 = 160 (kx taps fused along lanes).
    acc2 = None
    for ky in range(KSIZE):
        base = lead + ky * Wp
        lhs = jnp.concatenate(
            [y1pad_ref[base + kx:base + kx + M, :] for kx in range(KSIZE)],
            axis=1)                                      # (M, KSIZE*C1) bf16
        d = jnp.dot(lhs, w2_ref[ky], preferred_element_type=jnp.float32)
        acc2 = d if acc2 is None else acc2 + d
    y2 = jnp.maximum(acc2 + b2_ref[...], 0.0)            # conv bias + ReLU
    y2_ref[...] = y2 * s2_ref[...] + t2_ref[...]         # BatchNorm2 (eval affine)

    # ---- 2x2 / stride-2 max pool: VPU max over strided sublane views, then a
    # single full-block bf16 store.
    ev = y2_ref[pl.ds(0, M // 2, stride=2), :]           # even w columns
    od = y2_ref[pl.ds(1, M // 2, stride=2), :]           # odd  w columns
    wm = jnp.maximum(ev, od)                             # row = h*Wh + w'
    pooled = jnp.concatenate(
        [jnp.maximum(wm[(2 * i) * Wh:(2 * i) * Wh + Wh, :],
                     wm[(2 * i + 1) * Wh:(2 * i + 1) * Wh + Wh, :])[:Wo, :]
         for i in range(Ho)], axis=0)                    # (Ho*Wo, C2)
    o_ref[...] = pooled.astype(o_ref.dtype)
    # (Dropout2d is identity in eval mode.)


def _head_kernel(x_ref, wd_ref, bd_ref, wo_ref, o_ref):
    """dense + ReLU -> dense_out (no bias) -> log_softmax."""
    h = jnp.dot(x_ref[...], wd_ref[...], preferred_element_type=jnp.float32)
    h = jnp.maximum(h + bd_ref[...], 0.0)                # (Dropout is identity.)
    logits = jnp.dot(h.astype(jnp.bfloat16), wo_ref[...],
                     preferred_element_type=jnp.float32)
    m = jnp.max(logits, axis=1, keepdims=True)
    z = logits - m
    o_ref[...] = z - jnp.log(jnp.sum(jnp.exp(z), axis=1, keepdims=True))


# ------------------------------ pallas_call glue ----------------------------

def _conv_call(x_im2col, p, *, H, W):
    N, M, K1pad = x_im2col.shape
    C1 = p["w1"].shape[1]
    C2 = p["w2"].shape[2]
    Ho, Wo = H // 2, W // 2
    Hp, Wp = H + 2 * PAD, W + 2 * PAD
    lead = (-(PAD * Wp + PAD)) % 16                      # align the y1 block copy
    R2 = _round_up(lead + Hp * Wp + (KSIZE - 1), 16)     # padded-y1 scratch rows
    kernel = functools.partial(_fused_conv_kernel, H=H, W=W, lead=lead)
    return pl.pallas_call(
        kernel,
        out_shape=jax.ShapeDtypeStruct((N, Ho * Wo, C2), jnp.bfloat16),
        grid=(N,),
        in_specs=[
            pl.BlockSpec((None, M, K1pad), lambda n: (n, 0, 0)),   # conv1 im2col
            pl.BlockSpec((K1pad, C1), lambda n: (0, 0)),           # w1 (K x 32)
            pl.BlockSpec((1, C1), lambda n: (0, 0)),               # b1
            pl.BlockSpec((1, C1), lambda n: (0, 0)),               # bn1 scale
            pl.BlockSpec((1, C1), lambda n: (0, 0)),               # bn1 shift
            pl.BlockSpec((KSIZE, KSIZE * C1, C2), lambda n: (0, 0, 0)),  # w2
            pl.BlockSpec((1, C2), lambda n: (0, 0)),               # b2
            pl.BlockSpec((1, C2), lambda n: (0, 0)),               # bn2 scale
            pl.BlockSpec((1, C2), lambda n: (0, 0)),               # bn2 shift
        ],
        out_specs=pl.BlockSpec((None, Ho * Wo, C2), lambda n: (n, 0, 0)),
        scratch_shapes=[pltpu.VMEM((R2, C1), jnp.bfloat16),        # padded y1
                        pltpu.VMEM((H * Wp, C2), jnp.float32)],    # y2 (for pool)
        compiler_params=pltpu.CompilerParams(
            dimension_semantics=("parallel",)),                    # 2 TCs on v7x
    )(x_im2col, p["w1"], p["b1"], p["bn1_scale"], p["bn1_shift"],
      p["w2"], p["b2"], p["bn2_scale"], p["bn2_shift"])


def _head_call(feats, wd, bd, wo):
    N, F = feats.shape
    NC = wo.shape[1]
    return pl.pallas_call(
        _head_kernel,
        out_shape=jax.ShapeDtypeStruct((N, NC), jnp.float32),
        grid=(1,),
        in_specs=[pl.BlockSpec((N, F), lambda i: (0, 0)),
                  pl.BlockSpec(wd.shape, lambda i: (0, 0)),
                  pl.BlockSpec(bd.shape, lambda i: (0, 0)),
                  pl.BlockSpec(wo.shape, lambda i: (0, 0))],
        out_specs=pl.BlockSpec((N, NC), lambda i: (0, 0)),
        compiler_params=pltpu.CompilerParams(
            dimension_semantics=("arbitrary",)),
    )(feats, wd, bd, wo)


# ------------------------------ parameters ----------------------------------

def init_params(key, in_channels, H, W, num_classes):
    eps = 1e-5
    Ho, Wo = H // 2, W // 2
    ks = jax.random.split(key, 16)

    def u(k, shape, scale):
        return jax.random.uniform(k, shape, jnp.float32, -scale, scale)

    w1 = u(ks[0], (KSIZE, KSIZE, in_channels, 32),
           (KSIZE * KSIZE * in_channels) ** -0.5)
    b1 = u(ks[1], (1, 32), 0.1)
    w2 = u(ks[2], (KSIZE, KSIZE, 32, 64), (KSIZE * KSIZE * 32) ** -0.5)
    b2 = u(ks[3], (1, 64), 0.1)

    dense_features = 64 * H // 2 * W // 2                # matches the module
    wd_pt = u(ks[4], (dense_features, 50), dense_features ** -0.5)
    bd = u(ks[5], (1, 50), 0.1)
    wo = u(ks[6], (50, num_classes), 50 ** -0.5)

    # Fold the PyTorch NCHW flatten into the dense weight: permute rows from
    # (c, i, j) order to the kernel's NHWC (i, j, c) order (zero runtime cost).
    r = jnp.arange(dense_features)
    ij, c = r // 64, r % 64
    wd = wd_pt[c * (Ho * Wo) + ij]

    def bn_affine(kg, kb, km, kv, cdim):
        gamma = 1.0 + 0.1 * jax.random.normal(kg, (1, cdim), jnp.float32)
        beta = 0.1 * jax.random.normal(kb, (1, cdim), jnp.float32)
        mean = 0.1 * jax.random.normal(km, (1, cdim), jnp.float32)
        var = 1.0 + 0.1 * jnp.abs(jax.random.normal(kv, (1, cdim), jnp.float32))
        scale = gamma / jnp.sqrt(var + eps)
        shift = beta - mean * scale
        return scale, shift

    bn1_scale, bn1_shift = bn_affine(ks[7], ks[8], ks[9], ks[10], 32)
    bn2_scale, bn2_shift = bn_affine(ks[11], ks[12], ks[13], ks[14], 64)

    # conv1 weight as one (K, 32) GEMM operand matching the wrapper im2col lane
    # order (ky, kx, c); contraction zero-padded to a multiple of 128 lanes.
    k1 = KSIZE * KSIZE * in_channels
    k1pad = _round_up(k1, 128)
    w1k = jnp.pad(w1.reshape(k1, 32), ((0, k1pad - k1), (0, 0)))
    # conv2 weight grouped by ky with the 5 kx taps fused along the contraction.
    w2g = w2.reshape(KSIZE, KSIZE * 32, 64)

    return dict(
        w1=w1k.astype(jnp.bfloat16),
        b1=b1, bn1_scale=bn1_scale, bn1_shift=bn1_shift,
        w2=w2g.astype(jnp.bfloat16),
        b2=b2, bn2_scale=bn2_scale, bn2_shift=bn2_shift,
        wd=wd.astype(jnp.bfloat16), bd=bd, wo=wo.astype(jnp.bfloat16),
    )


# ------------------------------ forward pass ---------------------------------

def net_forward(x_nchw, params):
    N, CIN, H, W = x_nchw.shape
    Hp, Wp = H + 2 * PAD, W + 2 * PAD
    M = H * Wp
    Ho, Wo = H // 2, W // 2
    k1 = KSIZE * KSIZE * CIN
    k1pad = params["w1"].shape[0]

    # Cheap layout prep in bf16 (casts hoisted out of the kernel): NCHW -> NHWC,
    # spatial zero-pad, flatten to padded rows, then build the conv1 im2col as
    # 25 shifted row-slices concatenated along lanes (zero-padded to K=128).
    x = jnp.transpose(x_nchw, (0, 2, 3, 1)).astype(jnp.bfloat16)
    xp = jnp.pad(x, ((0, 0), (PAD, PAD), (PAD, PAD), (0, 0)))
    xflat = xp.reshape(N, Hp * Wp, CIN)
    xflat = jnp.pad(xflat, ((0, 0), (0, KSIZE - 1), (0, 0)))
    taps = [xflat[:, ky * Wp + kx:ky * Wp + kx + M, :]
            for ky in range(KSIZE) for kx in range(KSIZE)]
    x_im2col = jnp.concatenate(taps, axis=-1)            # (N, M, 25*CIN)
    x_im2col = jnp.pad(x_im2col, ((0, 0), (0, 0), (0, k1pad - k1)))

    # Fused conv1+BN1+ReLU -> conv2+BN2+ReLU -> maxpool (one image per step).
    feats3 = _conv_call(x_im2col, params, H=H, W=W)      # (N, Ho*Wo, 64) bf16
    feats = feats3.reshape(N, Ho * Wo * 64)              # free XLA reshape

    # dense -> ReLU -> dense_out -> log_softmax
    return _head_call(feats, params["wd"], params["bd"], params["wo"])


# ---------------------------------- main -------------------------------------

if __name__ == "__main__":
    N, Cin, H, W, num_classes = 2, 4, 16, 16, 10
    key = jax.random.PRNGKey(0)
    pkey, xkey = jax.random.split(key)
    params = init_params(pkey, Cin, H, W, num_classes)
    x = jax.random.normal(xkey, (N, Cin, H, W), jnp.float32)

    out = jax.jit(net_forward)(x, params)
    out = jax.block_until_ready(out)
    assert out.shape == (N, num_classes)
    assert bool(jnp.all(jnp.isfinite(out)))
    # log_softmax rows must (log-)sum to ~0
    assert bool(jnp.all(jnp.abs(jnp.sum(jnp.exp(out), axis=1) - 1.0) < 1e-4))
    print("KERNEL_OK")
</pallas_src>

<mosaic_0001>
module attributes {stable_mosaic.version = 11 : i64} {
  func.func @_fused_conv_kernel(%arg0: i32, %arg1: memref<1x320x128xbf16, #tpu.memory_space<vmem>>, %arg2: memref<128x32xbf16, #tpu.memory_space<vmem>>, %arg3: memref<1x32xf32, #tpu.memory_space<vmem>>, %arg4: memref<1x32xf32, #tpu.memory_space<vmem>>, %arg5: memref<1x32xf32, #tpu.memory_space<vmem>>, %arg6: memref<5x160x64xbf16, #tpu.memory_space<vmem>>, %arg7: memref<1x64xf32, #tpu.memory_space<vmem>>, %arg8: memref<1x64xf32, #tpu.memory_space<vmem>>, %arg9: memref<1x64xf32, #tpu.memory_space<vmem>>, %arg10: memref<1x64x64xbf16, #tpu.memory_space<vmem>>, %arg11: memref<416x32xbf16, #tpu.memory_space<vmem>>, %arg12: memref<320x64xf32, #tpu.memory_space<vmem>>) attributes {dimension_semantics = [#tpu.dimension_semantics<parallel>], iteration_bounds = array<i64: 2>, scalar_prefetch = 0 : i64, scratch_operands = 2 : i64, tpu.core_type = #tpu.core_type<tc>, window_params = [{transform_indices = @transform_0, window_bounds = array<i64: 1, 320, 128>}, {pipeline_mode = #tpu.pipeline_mode<synchronous>, transform_indices = @transform_1, window_bounds = array<i64: 128, 32>}, {pipeline_mode = #tpu.pipeline_mode<synchronous>, transform_indices = @transform_2, window_bounds = array<i64: 1, 32>}, {pipeline_mode = #tpu.pipeline_mode<synchronous>, transform_indices = @transform_3, window_bounds = array<i64: 1, 32>}, {pipeline_mode = #tpu.pipeline_mode<synchronous>, transform_indices = @transform_4, window_bounds = array<i64: 1, 32>}, {pipeline_mode = #tpu.pipeline_mode<synchronous>, transform_indices = @transform_5, window_bounds = array<i64: 5, 160, 64>}, {pipeline_mode = #tpu.pipeline_mode<synchronous>, transform_indices = @transform_6, window_bounds = array<i64: 1, 64>}, {pipeline_mode = #tpu.pipeline_mode<synchronous>, transform_indices = @transform_7, window_bounds = array<i64: 1, 64>}, {pipeline_mode = #tpu.pipeline_mode<synchronous>, transform_indices = @transform_8, window_bounds = array<i64: 1, 64>}, {transform_indices = @transform_9, window_bounds = array<i64: 1, 64, 64>}]} {
    %c0 = arith.constant 0 : index
    %c0_0 = arith.constant 0 : index
    %c0_1 = arith.constant 0 : index
    %0 = vector.load %arg1[%c0, %c0_0, %c0_1] : memref<1x320x128xbf16, #tpu.memory_space<vmem>>, vector<1x320x128xbf16>
    %1 = vector.shape_cast %0 : vector<1x320x128xbf16> to vector<320x128xbf16>
    %c0_2 = arith.constant 0 : index
    %c0_3 = arith.constant 0 : index
    %2 = vector.load %arg2[%c0_2, %c0_3] : memref<128x32xbf16, #tpu.memory_space<vmem>>, vector<128x32xbf16>
    %cst = arith.constant dense<0.000000e+00> : vector<320x32xf32>
    %3 = tpu.matmul %1, %2, %cst {dimension_numbers = #tpu.dot_dimension_numbers<[1], [0], [0], [1], [0, 0, 1, 1], [], []>} : vector<320x128xbf16>, vector<128x32xbf16>, vector<320x32xf32> -> vector<320x32xf32>
    %c0_4 = arith.constant 0 : index
    %c0_5 = arith.constant 0 : index
    %4 = vector.load %arg3[%c0_4, %c0_5] : memref<1x32xf32, #tpu.memory_space<vmem>>, vector<1x32xf32>
    %5 = vector.broadcast %4 : vector<1x32xf32> to vector<320x32xf32>
    %6 = arith.addf %3, %5 : vector<320x32xf32>
    %cst_6 = arith.constant 0.000000e+00 : f32
    %7 = vector.broadcast %cst_6 : f32 to vector<320x32xf32>
    %8 = arith.maximumf %6, %7 : vector<320x32xf32>
    %c0_7 = arith.constant 0 : index
    %c0_8 = arith.constant 0 : index
    %9 = vector.load %arg4[%c0_7, %c0_8] : memref<1x32xf32, #tpu.memory_space<vmem>>, vector<1x32xf32>
    %10 = vector.broadcast %9 : vector<1x32xf32> to vector<320x32xf32>
    %11 = arith.mulf %8, %10 : vector<320x32xf32>
    %c0_9 = arith.constant 0 : index
    %c0_10 = arith.constant 0 : index
    %12 = vector.load %arg5[%c0_9, %c0_10] : memref<1x32xf32, #tpu.memory_space<vmem>>, vector<1x32xf32>
    %13 = vector.broadcast %12 : vector<1x32xf32> to vector<320x32xf32>
    %14 = arith.addf %11, %13 : vector<320x32xf32>
    %15 = tpu.iota {dimensions = array<i32: 0>} : vector<320x1xi32>
    %c20_i32 = arith.constant 20 : i32
    %c0_i32 = arith.constant 0 : i32
    %16 = arith.cmpi eq, %c20_i32, %c0_i32 : i32
    %c1_i32 = arith.constant 1 : i32
    %17 = arith.select %16, %c1_i32, %c20_i32 : i32
    %18 = vector.broadcast %17 : i32 to vector<320x1xi32>
    %19 = arith.remsi %15, %18 : vector<320x1xi32>
    %c0_i32_11 = arith.constant 0 : i32
    %20 = vector.broadcast %c0_i32_11 : i32 to vector<320x1xi32>
    %21 = arith.cmpi ne, %19, %20 : vector<320x1xi32>
    %c0_i32_12 = arith.constant 0 : i32
    %22 = vector.broadcast %c0_i32_12 : i32 to vector<320x1xi32>
    %23 = arith.cmpi slt, %19, %22 : vector<320x1xi32>
    %c0_i32_13 = arith.constant 0 : i32
    %24 = arith.cmpi slt, %17, %c0_i32_13 : i32
    %25 = vector.broadcast %24 : i1 to vector<320x1xi1>
    %26 = vector.broadcast %25 : vector<320x1xi1> to vector<320x1xi1>
    %27 = arith.xori %23, %26 : vector<320x1xi1>
    %28 = arith.andi %27, %21 : vector<320x1xi1>
    %29 = vector.broadcast %17 : i32 to vector<320x1xi32>
    %30 = arith.addi %19, %29 : vector<320x1xi32>
    %31 = arith.select %28, %30, %19 : vector<320x1xi1>, vector<320x1xi32>
    %c16_i32 = arith.constant 16 : i32
    %32 = vector.broadcast %c16_i32 : i32 to vector<320x1xi32>
    %33 = arith.cmpi slt, %31, %32 : vector<320x1xi32>
    %cst_14 = arith.constant 0.000000e+00 : f32
    %34 = vector.shape_cast %33 : vector<320x1xi1> to vector<320x1xi1>
    %35 = vector.broadcast %34 : vector<320x1xi1> to vector<320x32xi1>
    %36 = vector.broadcast %cst_14 : f32 to vector<320x32xf32>
    %37 = arith.select %35, %14, %36 : vector<320x32xi1>, vector<320x32xf32>
    %cst_15 = arith.constant 0.000000e+00 : bf16
    %38 = vector.broadcast %cst_15 : bf16 to vector<48x32xbf16>
    %c0_16 = arith.constant 0 : index
    %c0_17 = arith.constant 0 : index
    %39 = vector.load %arg11[%c0_16, %c0_17] : memref<416x32xbf16, #tpu.memory_space<vmem>>, vector<48x32xbf16>
    tpu.vector_store %arg11[%c0_16, %c0_17], %38 {strides = array<i32>} : memref<416x32xbf16, #tpu.memory_space<vmem>>, vector<48x32xbf16>,
    %cst_18 = arith.constant 0.000000e+00 : bf16
    %40 = vector.broadcast %cst_18 : bf16 to vector<48x32xbf16>
    %c368 = arith.constant 368 : index
    %c0_19 = arith.constant 0 : index
    %41 = vector.load %arg11[%c368, %c0_19] : memref<416x32xbf16, #tpu.memory_space<vmem>>, vector<48x32xbf16>
    tpu.vector_store %arg11[%c368, %c0_19], %40 {strides = array<i32>} : memref<416x32xbf16, #tpu.memory_space<vmem>>, vector<48x32xbf16>,
    %42 = arith.truncf %37 : vector<320x32xf32> to vector<320x32xbf16>
    %c48 = arith.constant 48 : index
    %c0_20 = arith.constant 0 : index
    %43 = vector.load %arg11[%c48, %c0_20] : memref<416x32xbf16, #tpu.memory_space<vmem>>, vector<320x32xbf16>
    tpu.vector_store %arg11[%c48, %c0_20], %42 {strides = array<i32>} : memref<416x32xbf16, #tpu.memory_space<vmem>>, vector<320x32xbf16>,
    %c6 = arith.constant 6 : index
    %c0_21 = arith.constant 0 : index
    %44 = vector.load %arg11[%c6, %c0_21] : memref<416x32xbf16, #tpu.memory_space<vmem>>, vector<320x32xbf16>
    %c7 = arith.constant 7 : index
    %c0_22 = arith.constant 0 : index
    %45 = vector.load %arg11[%c7, %c0_22] : memref<416x32xbf16, #tpu.memory_space<vmem>>, vector<320x32xbf16>
    %c8 = arith.constant 8 : index
    %c0_23 = arith.constant 0 : index
    %46 = vector.load %arg11[%c8, %c0_23] : memref<416x32xbf16, #tpu.memory_space<vmem>>, vector<320x32xbf16>
    %c9 = arith.constant 9 : index
    %c0_24 = arith.constant 0 : index
    %47 = vector.load %arg11[%c9, %c0_24] : memref<416x32xbf16, #tpu.memory_space<vmem>>, vector<320x32xbf16>
    %c10 = arith.constant 10 : index
    %c0_25 = arith.constant 0 : index
    %48 = vector.load %arg11[%c10, %c0_25] : memref<416x32xbf16, #tpu.memory_space<vmem>>, vector<320x32xbf16>
    %49 = tpu.concatenate %44, %45, %46, %47, %48 in 1 : vector<320x32xbf16>, vector<320x32xbf16>, vector<320x32xbf16>, vector<320x32xbf16>, vector<320x32xbf16> -> vector<320x160xbf16>
    %c0_26 = arith.constant 0 : index
    %c0_27 = arith.constant 0 : index
    %c0_28 = arith.constant 0 : index
    %50 = vector.load %arg6[%c0_26, %c0_27, %c0_28] : memref<5x160x64xbf16, #tpu.memory_space<vmem>>, vector<1x160x64xbf16>
    %51 = vector.shape_cast %50 : vector<1x160x64xbf16> to vector<160x64xbf16>
    %cst_29 = arith.constant dense<0.000000e+00> : vector<320x64xf32>
    %52 = tpu.matmul %49, %51, %cst_29 {dimension_numbers = #tpu.dot_dimension_numbers<[1], [0], [0], [1], [0, 0, 1, 1], [], []>} : vector<320x160xbf16>, vector<160x64xbf16>, vector<320x64xf32> -> vector<320x64xf32>
    %c26 = arith.constant 26 : index
    %c0_30 = arith.constant 0 : index
    %53 = vector.load %arg11[%c26, %c0_30] : memref<416x32xbf16, #tpu.memory_space<vmem>>, vector<320x32xbf16>
    %c27 = arith.constant 27 : index
    %c0_31 = arith.constant 0 : index
    %54 = vector.load %arg11[%c27, %c0_31] : memref<416x32xbf16, #tpu.memory_space<vmem>>, vector<320x32xbf16>
    %c28 = arith.constant 28 : index
    %c0_32 = arith.constant 0 : index
    %55 = vector.load %arg11[%c28, %c0_32] : memref<416x32xbf16, #tpu.memory_space<vmem>>, vector<320x32xbf16>
    %c29 = arith.constant 29 : index
    %c0_33 = arith.constant 0 : index
    %56 = vector.load %arg11[%c29, %c0_33] : memref<416x32xbf16, #tpu.memory_space<vmem>>, vector<320x32xbf16>
    %c30 = arith.constant 30 : index
    %c0_34 = arith.constant 0 : index
    %57 = vector.load %arg11[%c30, %c0_34] : memref<416x32xbf16, #tpu.memory_space<vmem>>, vector<320x32xbf16>
    %58 = tpu.concatenate %53, %54, %55, %56, %57 in 1 : vector<320x32xbf16>, vector<320x32xbf16>, vector<320x32xbf16>, vector<320x32xbf16>, vector<320x32xbf16> -> vector<320x160xbf16>
    %c1 = arith.constant 1 : index
    %c0_35 = arith.constant 0 : index
    %c0_36 = arith.constant 0 : index
    %59 = vector.load %arg6[%c1, %c0_35, %c0_36] : memref<5x160x64xbf16, #tpu.memory_space<vmem>>, vector<1x160x64xbf16>
    %60 = vector.shape_cast %59 : vector<1x160x64xbf16> to vector<160x64xbf16>
    %cst_37 = arith.constant dense<0.000000e+00> : vector<320x64xf32>
    %61 = tpu.matmul %58, %60, %cst_37 {dimension_numbers = #tpu.dot_dimension_numbers<[1], [0], [0], [1], [0, 0, 1, 1], [], []>} : vector<320x160xbf16>, vector<160x64xbf16>, vector<320x64xf32> -> vector<320x64xf32>
    %62 = arith.addf %52, %61 : vector<320x64xf32>
    %c46 = arith.constant 46 : index
    %c0_38 = arith.constant 0 : index
    %63 = vector.load %arg11[%c46, %c0_38] : memref<416x32xbf16, #tpu.memory_space<vmem>>, vector<320x32xbf16>
    %c47 = arith.constant 47 : index
    %c0_39 = arith.constant 0 : index
    %64 = vector.load %arg11[%c47, %c0_39] : memref<416x32xbf16, #tpu.memory_space<vmem>>, vector<320x32xbf16>
    %c48_40 = arith.constant 48 : index
    %c0_41 = arith.constant 0 : index
    %65 = vector.load %arg11[%c48_40, %c0_41] : memref<416x32xbf16, #tpu.memory_space<vmem>>, vector<320x32xbf16>
    %c49 = arith.constant 49 : index
    %c0_42 = arith.constant 0 : index
    %66 = vector.load %arg11[%c49, %c0_42] : memref<416x32xbf16, #tpu.memory_space<vmem>>, vector<320x32xbf16>
    %c50 = arith.constant 50 : index
    %c0_43 = arith.constant 0 : index
    %67 = vector.load %arg11[%c50, %c0_43] : memref<416x32xbf16, #tpu.memory_space<vmem>>, vector<320x32xbf16>
    %68 = tpu.concatenate %63, %64, %65, %66, %67 in 1 : vector<320x32xbf16>, vector<320x32xbf16>, vector<320x32xbf16>, vector<320x32xbf16>, vector<320x32xbf16> -> vector<320x160xbf16>
    %c2 = arith.constant 2 : index
    %c0_44 = arith.constant 0 : index
    %c0_45 = arith.constant 0 : index
    %69 = vector.load %arg6[%c2, %c0_44, %c0_45] : memref<5x160x64xbf16, #tpu.memory_space<vmem>>, vector<1x160x64xbf16>
    %70 = vector.shape_cast %69 : vector<1x160x64xbf16> to vector<160x64xbf16>
    %cst_46 = arith.constant dense<0.000000e+00> : vector<320x64xf32>
    %71 = tpu.matmul %68, %70, %cst_46 {dimension_numbers = #tpu.dot_dimension_numbers<[1], [0], [0], [1], [0, 0, 1, 1], [], []>} : vector<320x160xbf16>, vector<160x64xbf16>, vector<320x64xf32> -> vector<320x64xf32>
    %72 = arith.addf %62, %71 : vector<320x64xf32>
    %c66 = arith.constant 66 : index
    %c0_47 = arith.constant 0 : index
    %73 = vector.load %arg11[%c66, %c0_47] : memref<416x32xbf16, #tpu.memory_space<vmem>>, vector<320x32xbf16>
    %c67 = arith.constant 67 : index
    %c0_48 = arith.constant 0 : index
    %74 = vector.load %arg11[%c67, %c0_48] : memref<416x32xbf16, #tpu.memory_space<vmem>>, vector<320x32xbf16>
    %c68 = arith.constant 68 : index
    %c0_49 = arith.constant 0 : index
    %75 = vector.load %arg11[%c68, %c0_49] : memref<416x32xbf16, #tpu.memory_space<vmem>>, vector<320x32xbf16>
    %c69 = arith.constant 69 : index
    %c0_50 = arith.constant 0 : index
    %76 = vector.load %arg11[%c69, %c0_50] : memref<416x32xbf16, #tpu.memory_space<vmem>>, vector<320x32xbf16>
    %c70 = arith.constant 70 : index
    %c0_51 = arith.constant 0 : index
    %77 = vector.load %arg11[%c70, %c0_51] : memref<416x32xbf16, #tpu.memory_space<vmem>>, vector<320x32xbf16>
    %78 = tpu.concatenate %73, %74, %75, %76, %77 in 1 : vector<320x32xbf16>, vector<320x32xbf16>, vector<320x32xbf16>, vector<320x32xbf16>, vector<320x32xbf16> -> vector<320x160xbf16>
    %c3 = arith.constant 3 : index
    %c0_52 = arith.constant 0 : index
    %c0_53 = arith.constant 0 : index
    %79 = vector.load %arg6[%c3, %c0_52, %c0_53] : memref<5x160x64xbf16, #tpu.memory_space<vmem>>, vector<1x160x64xbf16>
    %80 = vector.shape_cast %79 : vector<1x160x64xbf16> to vector<160x64xbf16>
    %cst_54 = arith.constant dense<0.000000e+00> : vector<320x64xf32>
    %81 = tpu.matmul %78, %80, %cst_54 {dimension_numbers = #tpu.dot_dimension_numbers<[1], [0], [0], [1], [0, 0, 1, 1], [], []>} : vector<320x160xbf16>, vector<160x64xbf16>, vector<320x64xf32> -> vector<320x64xf32>
    %82 = arith.addf %72, %81 : vector<320x64xf32>
    %c86 = arith.constant 86 : index
    %c0_55 = arith.constant 0 : index
    %83 = vector.load %arg11[%c86, %c0_55] : memref<416x32xbf16, #tpu.memory_space<vmem>>, vector<320x32xbf16>
    %c87 = arith.constant 87 : index
    %c0_56 = arith.constant 0 : index
    %84 = vector.load %arg11[%c87, %c0_56] : memref<416x32xbf16, #tpu.memory_space<vmem>>, vector<320x32xbf16>
    %c88 = arith.constant 88 : index
    %c0_57 = arith.constant 0 : index
    %85 = vector.load %arg11[%c88, %c0_57] : memref<416x32xbf16, #tpu.memory_space<vmem>>, vector<320x32xbf16>
    %c89 = arith.constant 89 : index
    %c0_58 = arith.constant 0 : index
    %86 = vector.load %arg11[%c89, %c0_58] : memref<416x32xbf16, #tpu.memory_space<vmem>>, vector<320x32xbf16>
    %c90 = arith.constant 90 : index
    %c0_59 = arith.constant 0 : index
    %87 = vector.load %arg11[%c90, %c0_59] : memref<416x32xbf16, #tpu.memory_space<vmem>>, vector<320x32xbf16>
    %88 = tpu.concatenate %83, %84, %85, %86, %87 in 1 : vector<320x32xbf16>, vector<320x32xbf16>, vector<320x32xbf16>, vector<320x32xbf16>, vector<320x32xbf16> -> vector<320x160xbf16>
    %c4 = arith.constant 4 : index
    %c0_60 = arith.constant 0 : index
    %c0_61 = arith.constant 0 : index
    %89 = vector.load %arg6[%c4, %c0_60, %c0_61] : memref<5x160x64xbf16, #tpu.memory_space<vmem>>, vector<1x160x64xbf16>
    %90 = vector.shape_cast %89 : vector<1x160x64xbf16> to vector<160x64xbf16>
    %cst_62 = arith.constant dense<0.000000e+00> : vector<320x64xf32>
    %91 = tpu.matmul %88, %90, %cst_62 {dimension_numbers = #tpu.dot_dimension_numbers<[1], [0], [0], [1], [0, 0, 1, 1], [], []>} : vector<320x160xbf16>, vector<160x64xbf16>, vector<320x64xf32> -> vector<320x64xf32>
    %92 = arith.addf %82, %91 : vector<320x64xf32>
    %c0_63 = arith.constant 0 : index
    %c0_64 = arith.constant 0 : index
    %93 = vector.load %arg7[%c0_63, %c0_64] : memref<1x64xf32, #tpu.memory_space<vmem>>, vector<1x64xf32>
    %94 = vector.broadcast %93 : vector<1x64xf32> to vector<320x64xf32>
    %95 = arith.addf %92, %94 : vector<320x64xf32>
    %cst_65 = arith.constant 0.000000e+00 : f32
    %96 = vector.broadcast %cst_65 : f32 to vector<320x64xf32>
    %97 = arith.maximumf %95, %96 : vector<320x64xf32>
    %c0_66 = arith.constant 0 : index
    %c0_67 = arith.constant 0 : index
    %98 = vector.load %arg8[%c0_66, %c0_67] : memref<1x64xf32, #tpu.memory_space<vmem>>, vector<1x64xf32>
    %99 = vector.broadcast %98 : vector<1x64xf32> to vector<320x64xf32>
    %100 = arith.mulf %97, %99 : vector<320x64xf32>
    %c0_68 = arith.constant 0 : index
    %c0_69 = arith.constant 0 : index
    %101 = vector.load %arg9[%c0_68, %c0_69] : memref<1x64xf32, #tpu.memory_space<vmem>>, vector<1x64xf32>
    %102 = vector.broadcast %101 : vector<1x64xf32> to vector<320x64xf32>
    %103 = arith.addf %100, %102 : vector<320x64xf32>
    %c0_70 = arith.constant 0 : index
    %c0_71 = arith.constant 0 : index
    %104 = vector.load %arg12[%c0_70, %c0_71] : memref<320x64xf32, #tpu.memory_space<vmem>>, vector<320x64xf32>
    tpu.vector_store %arg12[%c0_70, %c0_71], %103 {strides = array<i32>} : memref<320x64xf32, #tpu.memory_space<vmem>>, vector<320x64xf32>,
    %c0_72 = arith.constant 0 : index
    %c0_73 = arith.constant 0 : index
    %105 = tpu.strided_load %arg12[%c0_72, %c0_73] {strides = array<i32: 2, 1>} : memref<320x64xf32, #tpu.memory_space<vmem>>, vector<160x64xf32>
    %c1_74 = arith.constant 1 : index
    %c0_75 = arith.constant 0 : index
    %106 = tpu.strided_load %arg12[%c1_74, %c0_75] {strides = array<i32: 2, 1>} : memref<320x64xf32, #tpu.memory_space<vmem>>, vector<160x64xf32>
    %107 = arith.maximumf %105, %106 : vector<160x64xf32>
    %108 = vector.extract_strided_slice %107 {offsets = [0, 0], sizes = [10, 64], strides = [1, 1]} : vector<160x64xf32> to vector<10x64xf32>
    %109 = vector.extract_strided_slice %107 {offsets = [10, 0], sizes = [10, 64], strides = [1, 1]} : vector<160x64xf32> to vector<10x64xf32>
    %110 = arith.maximumf %108, %109 : vector<10x64xf32>
    %111 = vector.extract_strided_slice %110 {offsets = [0, 0], sizes = [8, 64], strides = [1, 1]} : vector<10x64xf32> to vector<8x64xf32>
    %112 = vector.extract_strided_slice %107 {offsets = [20, 0], sizes = [10, 64], strides = [1, 1]} : vector<160x64xf32> to vector<10x64xf32>
    %113 = vector.extract_strided_slice %107 {offsets = [30, 0], sizes = [10, 64], strides = [1, 1]} : vector<160x64xf32> to vector<10x64xf32>
    %114 = arith.maximumf %112, %113 : vector<10x64xf32>
    %115 = vector.extract_strided_slice %114 {offsets = [0, 0], sizes = [8, 64], strides = [1, 1]} : vector<10x64xf32> to vector<8x64xf32>
    %116 = vector.extract_strided_slice %107 {offsets = [40, 0], sizes = [10, 64], strides = [1, 1]} : vector<160x64xf32> to vector<10x64xf32>
    %117 = vector.extract_strided_slice %107 {offsets = [50, 0], sizes = [10, 64], strides = [1, 1]} : vector<160x64xf32> to vector<10x64xf32>
    %118 = arith.maximumf %116, %117 : vector<10x64xf32>
    %119 = vector.extract_strided_slice %118 {offsets = [0, 0], sizes = [8, 64], strides = [1, 1]} : vector<10x64xf32> to vector<8x64xf32>
    %120 = vector.extract_strided_slice %107 {offsets = [60, 0], sizes = [10, 64], strides = [1, 1]} : vector<160x64xf32> to vector<10x64xf32>
    %121 = vector.extract_strided_slice %107 {offsets = [70, 0], sizes = [10, 64], strides = [1, 1]} : vector<160x64xf32> to vector<10x64xf32>
    %122 = arith.maximumf %120, %121 : vector<10x64xf32>
    %123 = vector.extract_strided_slice %122 {offsets = [0, 0], sizes = [8, 64], strides = [1, 1]} : vector<10x64xf32> to vector<8x64xf32>
    %124 = vector.extract_strided_slice %107 {offsets = [80, 0], sizes = [10, 64], strides = [1, 1]} : vector<160x64xf32> to vector<10x64xf32>
    %125 = vector.extract_strided_slice %107 {offsets = [90, 0], sizes = [10, 64], strides = [1, 1]} : vector<160x64xf32> to vector<10x64xf32>
    %126 = arith.maximumf %124, %125 : vector<10x64xf32>
    %127 = vector.extract_strided_slice %126 {offsets = [0, 0], sizes = [8, 64], strides = [1, 1]} : vector<10x64xf32> to vector<8x64xf32>
    %128 = vector.extract_strided_slice %107 {offsets = [100, 0], sizes = [10, 64], strides = [1, 1]} : vector<160x64xf32> to vector<10x64xf32>
    %129 = vector.extract_strided_slice %107 {offsets = [110, 0], sizes = [10, 64], strides = [1, 1]} : vector<160x64xf32> to vector<10x64xf32>
    %130 = arith.maximumf %128, %129 : vector<10x64xf32>
    %131 = vector.extract_strided_slice %130 {offsets = [0, 0], sizes = [8, 64], strides = [1, 1]} : vector<10x64xf32> to vector<8x64xf32>
    %132 = vector.extract_strided_slice %107 {offsets = [120, 0], sizes = [10, 64], strides = [1, 1]} : vector<160x64xf32> to vector<10x64xf32>
    %133 = vector.extract_strided_slice %107 {offsets = [130, 0], sizes = [10, 64], strides = [1, 1]} : vector<160x64xf32> to vector<10x64xf32>
    %134 = arith.maximumf %132, %133 : vector<10x64xf32>
    %135 = vector.extract_strided_slice %134 {offsets = [0, 0], sizes = [8, 64], strides = [1, 1]} : vector<10x64xf32> to vector<8x64xf32>
    %136 = vector.extract_strided_slice %107 {offsets = [140, 0], sizes = [10, 64], strides = [1, 1]} : vector<160x64xf32> to vector<10x64xf32>
    %137 = vector.extract_strided_slice %107 {offsets = [150, 0], sizes = [10, 64], strides = [1, 1]} : vector<160x64xf32> to vector<10x64xf32>
    %138 = arith.maximumf %136, %137 : vector<10x64xf32>
    %139 = vector.extract_strided_slice %138 {offsets = [0, 0], sizes = [8, 64], strides = [1, 1]} : vector<10x64xf32> to vector<8x64xf32>
    %140 = tpu.concatenate %111, %115, %119, %123, %127, %131, %135, %139 in 0 : vector<8x64xf32>, vector<8x64xf32>, vector<8x64xf32>, vector<8x64xf32>, vector<8x64xf32>, vector<8x64xf32>, vector<8x64xf32>, vector<8x64xf32> -> vector<64x64xf32>
    %141 = arith.truncf %140 : vector<64x64xf32> to vector<64x64xbf16>
    %c0_76 = arith.constant 0 : index
    %c0_77 = arith.constant 0 : index
    %c0_78 = arith.constant 0 : index
    %142 = vector.load %arg10[%c0_76, %c0_77, %c0_78] : memref<1x64x64xbf16, #tpu.memory_space<vmem>>, vector<1x64x64xbf16>
    %143 = vector.shape_cast %142 : vector<1x64x64xbf16> to vector<64x64xbf16>
    %144 = vector.shape_cast %141 : vector<64x64xbf16> to vector<1x64x64xbf16>
    tpu.vector_store %arg10[%c0_76, %c0_77, %c0_78], %144 {strides = array<i32>} : memref<1x64x64xbf16, #tpu.memory_space<vmem>>, vector<1x64x64xbf16>,
    return
  }
  func.func @transform_0(%arg0: i32) -> (i32, i32, i32) {
    %c0_i32 = arith.constant 0 : i32
    %c0_i32_0 = arith.constant 0 : i32
    %c0_i32_1 = arith.constant 0 : i32
    return %arg0, %c0_i32, %c0_i32_0 : i32, i32, i32
  }
  func.func @transform_1(%arg0: i32) -> (i32, i32) {
    %c0_i32 = arith.constant 0 : i32
    %c0_i32_0 = arith.constant 0 : i32
    %c0_i32_1 = arith.constant 0 : i32
    return %c0_i32, %c0_i32_0 : i32, i32
  }
  func.func @transform_2(%arg0: i32) -> (i32, i32) {
    %c0_i32 = arith.constant 0 : i32
    %c0_i32_0 = arith.constant 0 : i32
    %c0_i32_1 = arith.constant 0 : i32
    return %c0_i32, %c0_i32_0 : i32, i32
  }
  func.func @transform_3(%arg0: i32) -> (i32, i32) {
    %c0_i32 = arith.constant 0 : i32
    %c0_i32_0 = arith.constant 0 : i32
    %c0_i32_1 = arith.constant 0 : i32
    return %c0_i32, %c0_i32_0 : i32, i32
  }
  func.func @transform_4(%arg0: i32) -> (i32, i32) {
    %c0_i32 = arith.constant 0 : i32
    %c0_i32_0 = arith.constant 0 : i32
    %c0_i32_1 = arith.constant 0 : i32
    return %c0_i32, %c0_i32_0 : i32, i32
  }
  func.func @transform_5(%arg0: i32) -> (i32, i32, i32) {
    %c0_i32 = arith.constant 0 : i32
    %c0_i32_0 = arith.constant 0 : i32
    %c0_i32_1 = arith.constant 0 : i32
    %c0_i32_2 = arith.constant 0 : i32
    return %c0_i32, %c0_i32_0, %c0_i32_1 : i32, i32, i32
  }
  func.func @transform_6(%arg0: i32) -> (i32, i32) {
    %c0_i32 = arith.constant 0 : i32
    %c0_i32_0 = arith.constant 0 : i32
    %c0_i32_1 = arith.constant 0 : i32
    return %c0_i32, %c0_i32_0 : i32, i32
  }
  func.func @transform_7(%arg0: i32) -> (i32, i32) {
    %c0_i32 = arith.constant 0 : i32
    %c0_i32_0 = arith.constant 0 : i32
    %c0_i32_1 = arith.constant 0 : i32
    return %c0_i32, %c0_i32_0 : i32, i32
  }
  func.func @transform_8(%arg0: i32) -> (i32, i32) {
    %c0_i32 = arith.constant 0 : i32
    %c0_i32_0 = arith.constant 0 : i32
    %c0_i32_1 = arith.constant 0 : i32
    return %c0_i32, %c0_i32_0 : i32, i32
  }
  func.func @transform_9(%arg0: i32) -> (i32, i32, i32) {
    %c0_i32 = arith.constant 0 : i32
    %c0_i32_0 = arith.constant 0 : i32
    %c0_i32_1 = arith.constant 0 : i32
    return %arg0, %c0_i32, %c0_i32_0 : i32, i32, i32
  }
}

module attributes {stable_mosaic.version = 11 : i64} {
  func.func @_head_kernel(%arg0: i32, %arg1: memref<2x4096xbf16, #tpu.memory_space<vmem>>, %arg2: memref<4096x50xbf16, #tpu.memory_space<vmem>>, %arg3: memref<1x50xf32, #tpu.memory_space<vmem>>, %arg4: memref<50x10xbf16, #tpu.memory_space<vmem>>, %arg5: memref<2x10xf32, #tpu.memory_space<vmem>>) attributes {dimension_semantics = [#tpu.dimension_semantics<arbitrary>], iteration_bounds = array<i64: 1>, scalar_prefetch = 0 : i64, scratch_operands = 0 : i64, tpu.core_type = #tpu.core_type<tc>, window_params = [{pipeline_mode = #tpu.pipeline_mode<synchronous>, transform_indices = @transform_0, window_bounds = array<i64: 2, 4096>}, {pipeline_mode = #tpu.pipeline_mode<synchronous>, transform_indices = @transform_1, window_bounds = array<i64: 4096, 50>}, {pipeline_mode = #tpu.pipeline_mode<synchronous>, transform_indices = @transform_2, window_bounds = array<i64: 1, 50>}, {pipeline_mode = #tpu.pipeline_mode<synchronous>, transform_indices = @transform_3, window_bounds = array<i64: 50, 10>}, {pipeline_mode = #tpu.pipeline_mode<synchronous>, transform_indices = @transform_4, window_bounds = array<i64: 2, 10>}]} {
    %c0 = arith.constant 0 : index
    %c0_0 = arith.constant 0 : index
    %0 = vector.load %arg1[%c0, %c0_0] : memref<2x4096xbf16, #tpu.memory_space<vmem>>, vector<2x4096xbf16>
    %c0_1 = arith.constant 0 : index
    %c0_2 = arith.constant 0 : index
    %1 = vector.load %arg2[%c0_1, %c0_2] : memref<4096x50xbf16, #tpu.memory_space<vmem>>, vector<4096x50xbf16>
    %cst = arith.constant dense<0.000000e+00> : vector<2x50xf32>
    %2 = tpu.matmul %0, %1, %cst {dimension_numbers = #tpu.dot_dimension_numbers<[1], [0], [0], [1], [0, 0, 1, 1], [], []>} : vector<2x4096xbf16>, vector<4096x50xbf16>, vector<2x50xf32> -> vector<2x50xf32>
    %c0_3 = arith.constant 0 : index
    %c0_4 = arith.constant 0 : index
    %3 = vector.load %arg3[%c0_3, %c0_4] : memref<1x50xf32, #tpu.memory_space<vmem>>, vector<1x50xf32>
    %4 = vector.broadcast %3 : vector<1x50xf32> to vector<2x50xf32>
    %5 = arith.addf %2, %4 : vector<2x50xf32>
    %cst_5 = arith.constant 0.000000e+00 : f32
    %6 = vector.broadcast %cst_5 : f32 to vector<2x50xf32>
    %7 = arith.maximumf %5, %6 : vector<2x50xf32>
    %8 = arith.truncf %7 : vector<2x50xf32> to vector<2x50xbf16>
    %c0_6 = arith.constant 0 : index
    %c0_7 = arith.constant 0 : index
    %9 = vector.load %arg4[%c0_6, %c0_7] : memref<50x10xbf16, #tpu.memory_space<vmem>>, vector<50x10xbf16>
    %cst_8 = arith.constant dense<0.000000e+00> : vector<2x10xf32>
    %10 = tpu.matmul %8, %9, %cst_8 {dimension_numbers = #tpu.dot_dimension_numbers<[1], [0], [0], [1], [0, 0, 1, 1], [], []>} : vector<2x50xbf16>, vector<50x10xbf16>, vector<2x10xf32> -> vector<2x10xf32>
    %cst_9 = arith.constant dense<0xFF800000> : vector<2xf32>
    %11 = vector.multi_reduction <maximumf>, %10, %cst_9 [1] : vector<2x10xf32> to vector<2xf32>
    %12 = vector.shape_cast %11 : vector<2xf32> to vector<2x1xf32>
    %13 = vector.broadcast %12 : vector<2x1xf32> to vector<2x10xf32>
    %14 = arith.subf %10, %13 : vector<2x10xf32>
    %15 = math.exp %14 : vector<2x10xf32>
    %cst_10 = arith.constant dense<0.000000e+00> : vector<2xf32>
    %16 = vector.multi_reduction <add>, %15, %cst_10 [1] : vector<2x10xf32> to vector<2xf32>
    %17 = vector.shape_cast %16 : vector<2xf32> to vector<2x1xf32>
    %18 = math.log %17 : vector<2x1xf32>
    %19 = vector.broadcast %18 : vector<2x1xf32> to vector<2x10xf32>
    %20 = arith.subf %14, %19 : vector<2x10xf32>
    %c0_11 = arith.constant 0 : index
    %c0_12 = arith.constant 0 : index
    %21 = vector.load %arg5[%c0_11, %c0_12] : memref<2x10xf32, #tpu.memory_space<vmem>>, vector<2x10xf32>
    tpu.vector_store %arg5[%c0_11, %c0_12], %20 {strides = array<i32>} : memref<2x10xf32, #tpu.memory_space<vmem>>, vector<2x10xf32>,
    return
  }
  func.func @transform_0(%arg0: i32) -> (i32, i32) {
    %c0_i32 = arith.constant 0 : i32
    %c0_i32_0 = arith.constant 0 : i32
    %c0_i32_1 = arith.constant 0 : i32
    return %c0_i32, %c0_i32_0 : i32, i32
  }
  func.func @transform_1(%arg0: i32) -> (i32, i32) {
    %c0_i32 = arith.constant 0 : i32
    %c0_i32_0 = arith.constant 0 : i32
    %c0_i32_1 = arith.constant 0 : i32
    return %c0_i32, %c0_i32_0 : i32, i32
  }
  func.func @transform_2(%arg0: i32) -> (i32, i32) {
    %c0_i32 = arith.constant 0 : i32
    %c0_i32_0 = arith.constant 0 : i32
    %c0_i32_1 = arith.constant 0 : i32
    return %c0_i32, %c0_i32_0 : i32, i32
  }
  func.func @transform_3(%arg0: i32) -> (i32, i32) {
    %c0_i32 = arith.constant 0 : i32
    %c0_i32_0 = arith.constant 0 : i32
    %c0_i32_1 = arith.constant 0 : i32
    return %c0_i32, %c0_i32_0 : i32, i32
  }
  func.func @transform_4(%arg0: i32) -> (i32, i32) {
    %c0_i32 = arith.constant 0 : i32
    %c0_i32_0 = arith.constant 0 : i32
    %c0_i32_1 = arith.constant 0 : i32
    return %c0_i32, %c0_i32_0 : i32, i32
  }
}

</mosaic_0001>

<bundles_post_ra>
// kernel: net_forward.3
= control target key start
LH: loop header
LB: loop body
LE: loop exit
PB: predicated region body
PF: predicated region fallthrough
CT: control target
= control target key end

     0   :  { %v550_v28 = vlaneseq  ;;  %v3983_v36 = vmov 1966171168   ;;  %s4868_s0 = inlined_call_operand.vmem [shape: bf16[2,4096], index: 0, kind: input, shape index: {}]   ;;  %s4869_s1 = inlined_call_operand.vmem [shape: bf16[4096,50], index: 1, kind: input, shape index: {}]   ;;  %s4870_s2 = inlined_call_operand.vmem [shape: f32[1,50], index: 2, kind: input, shape index: {}]   ;;  %s4871_s3 = inlined_call_operand.vmem [shape: bf16[50,10], index: 3, kind: input, shape index: {}]   ;;  %s4872_s4 = inlined_call_operand.hbm [shape: f32[2,10], index: 4, kind: output, shape index: {}]  }
   0x1   :  { %v3691_v0 = vld [vmem:[%s4869_s1 + $0x40] sm:$0xff]   ;;  %v3695_v4 = vld [vmem:[%s4869_s1 + $0x48] sm:$0xff]   ;;  %v3699_v8 = vld [vmem:[%s4869_s1 + $0x50] sm:$0xff]   ;;  %v548_v37 = vunpack.c.l.s4 %v3983_v36 }
   0x2   :  { %v3692_v1 = vld [vmem:[%s4869_s1 + $0xc0] sm:$0xff]   ;;  %3318 = vmatprep.subr.bf16.mxu0 %v3691_v0  ;;  %v3696_v5 = vld [vmem:[%s4869_s1 + $0xc8] sm:$0xff]   ;;  %v3700_v9 = vld [vmem:[%s4869_s1 + $0xd0] sm:$0xff]   ;;  %v551_v33 = vshrl.u32 %v550_v28, 7 }
   0x3   :  { %v3693_v2 = vld [vmem:[%s4869_s1] sm:$0xff]   ;;  %3340 = vmatprep.subr.bf16.mxu1 %v3692_v1  ;;  %v3697_v6 = vld [vmem:[%s4869_s1 + $0x8] sm:$0xff]   ;;  %v3701_v10 = vld [vmem:[%s4869_s1 + $0x10] sm:$0xff]   ;;  %v549_v40 = vunpack.c.0.s8 %v548_v37 }
   0x4   :  { %v3694_v3 = vld [vmem:[%s4869_s1 + $0x80] sm:$0xff]   ;;  %3319 = vmatpush3.bf16.msra.mxu0 %v3693_v2  ;;  %v3698_v7 = vld [vmem:[%s4869_s1 + $0x88] sm:$0xff]   ;;  %v3702_v11 = vld [vmem:[%s4869_s1 + $0x90] sm:$0xff]  }
   0x5   :  { %3341 = vmatpush3.bf16.msra.mxu1 %v3694_v3  ;;  %3320 = vmatprep.subr.bf16.mxu0 %v3695_v4  ;;  %v3703_v12 = vld [vmem:[%s4869_s1 + $0x58] sm:$0xff]   ;;  %v3707_v16 = vld [vmem:[%s4869_s1 + $0x60] sm:$0xff]   ;;  %v3711_v20 = vld [vmem:[%s4869_s1 + $0x68] sm:$0xff]   ;;  %v4117_v41 = vsub.s32 %v549_v40, %v551_v33 }
   0x6   :  { %3342 = vmatprep.subr.bf16.mxu1 %v3696_v5  ;;  %v3704_v13 = vld [vmem:[%s4869_s1 + $0xd8] sm:$0xff]   ;;  %v3708_v17 = vld [vmem:[%s4869_s1 + $0xe0] sm:$0xff]   ;;  %v3712_v21 = vld [vmem:[%s4869_s1 + $0xe8] sm:$0xff]  }
   0x7   :  { %v3705_v14 = vld [vmem:[%s4869_s1 + $0x18] sm:$0xff]   ;;  %v3709_v18 = vld [vmem:[%s4869_s1 + $0x20] sm:$0xff]   ;;  %v3713_v22 = vld [vmem:[%s4869_s1 + $0x28] sm:$0xff]  }
   0x8   :  { %3321 = vmatpush3.bf16.msra.mxu0 %v3697_v6  ;;  %v3706_v15 = vld [vmem:[%s4869_s1 + $0x98] sm:$0xff]   ;;  %v3710_v19 = vld [vmem:[%s4869_s1 + $0xa0] sm:$0xff]   ;;  %v3714_v23 = vld [vmem:[%s4869_s1 + $0xa8] sm:$0xff]  }
   0x9   :  { %3343 = vmatpush3.bf16.msra.mxu1 %v3698_v7  ;;  %3322 = vmatprep.subr.bf16.mxu0 %v3699_v8  ;;  %v3715_v24 = vld [vmem:[%s4869_s1 + $0x70] sm:$0xff]   ;;  %v3719_v29 = vld [vmem:[%s4869_s1 + $0x78] sm:$0xff]   ;;  %v19_v34 = vld [vmem:[%s4868_s0] sm:$0xff] }
   0xa   :  { %3344 = vmatprep.subr.bf16.mxu1 %v3700_v9  ;;  %v3716_v25 = vld [vmem:[%s4869_s1 + $0xf0] sm:$0xff]   ;;  %v3720_v30 = vld [vmem:[%s4869_s1 + $0xf8] sm:$0xff]   ;;  %v3724_v35 = vld [vmem:[%s4869_s1 + $0x140] sm:$0xff]   ;;  %v546_v39 = vcombine.high %v19_v34, %v19_v34  ;;  %v553_v42 = vrot.slane %v19_v34, %v4117_v41 }
   0xb   :  { %v3717_v26 = vld [vmem:[%s4869_s1 + $0x30] sm:$0xff]   ;;  %v3721_v31 = vld [vmem:[%s4869_s1 + $0x38] sm:$0xff]   ;;  %v3725_v38 = vld [vmem:[%s4869_s1 + $0x1c0] sm:$0xff]  }
   0xc   :  { %3323 = vmatpush3.bf16.msra.mxu0 %v3701_v10  ;;  %v3718_v27 = vld [vmem:[%s4869_s1 + $0xb0] sm:$0xff]   ;;  %v3722_v32 = vld [vmem:[%s4869_s1 + $0xb8] sm:$0xff]   ;;  %v4121_v43 = vrot.slane %v546_v39, %v4117_v41  ;;  %v561_v44 = vcombine.high %v553_v42, %v553_v42  ;;  %v569_v45 = vrot.slane %v553_v42, %v4117_v41  ;;  %v3726_v47 = vld [vmem:[%s4869_s1 + $0x100] sm:$0xff]  }
   0xd   :  { %3345 = vmatpush3.bf16.msra.mxu1 %v3702_v11  ;;  %3324 = vmatprep.subr.bf16.mxu0 %v3703_v12  ;;  %v3727_v49 = vld [vmem:[%s4869_s1 + $0x180] sm:$0xff]   ;;  %v3728_v52 = vld [vmem:[%s4869_s1 + $0x148] sm:$0xff]   ;;  %v3732_v58 = vld [vmem:[%s4869_s1 + $0x150] sm:$0xff]  }
   0xe   :  { %3346 = vmatprep.subr.bf16.mxu1 %v3704_v13  ;;  %v562_v46 = vcombine.high %v4121_v43, %v4121_v43  ;;  %v583_v48 = vrot.slane %v561_v44, %v4117_v41  ;;  %v591_v51 = vcombine.high %v569_v45, %v569_v45  ;;  %v3729_v54 = vld [vmem:[%s4869_s1 + $0x1c8] sm:$0xff]   ;;  %v3733_v59 = vld [vmem:[%s4869_s1 + $0x1d0] sm:$0xff]   ;;  %v3736_v62 = vld [vmem:[%s4869_s1 + $0x158] sm:$0xff]  }
   0xf   :  { %v3730_v55 = vld [vmem:[%s4869_s1 + $0x108] sm:$0xff]   ;;  %v3734_v60 = vld [vmem:[%s4869_s1 + $0x110] sm:$0xff]   ;;  %v3737_v63 = vld [vmem:[%s4869_s1 + $0x1d8] sm:$0xff]  }
  0x10   :  { %3325 = vmatpush3.bf16.msra.mxu0 %v3705_v14  ;;  %v590_v50 = vrot.slane %v562_v46, %v4117_v41  ;;  %2342 = vmatprep.mubr.bf16.mxu0 %v583_v48  ;;  %v593_v53 = vcombine.high %v583_v48, %v583_v48  ;;  %v3731_v57 = vld [vmem:[%s4869_s1 + $0x188] sm:$0xff]   ;;  %v3735_v61 = vld [vmem:[%s4869_s1 + $0x190] sm:$0xff]   ;;  %v3738_v0 = vld [vmem:[%s4869_s1 + $0x118] sm:$0xff]  }
  0x11   :  { %3347 = vmatpush3.bf16.msra.mxu1 %v3706_v15  ;;  %3326 = vmatprep.subr.bf16.mxu0 %v3707_v16  ;;  %v3739_v1 = vld [vmem:[%s4869_s1 + $0x198] sm:$0xff]   ;;  %v3740_v2 = vld [vmem:[%s4869_s1 + $0x160] sm:$0xff]   ;;  %v3744_v6 = vld [vmem:[%s4869_s1 + $0x168] sm:$0xff]  }
  0x12   :  { %3348 = vmatprep.subr.bf16.mxu1 %v3708_v17  ;;  %v594_v56 = vcombine.high %v590_v50, %v590_v50  ;;  %2382 = vmatprep.mubr.bf16.mxu1 %v593_v53  ;;  %v3741_v3 = vld [vmem:[%s4869_s1 + $0x1e0] sm:$0xff]   ;;  %v3745_v7 = vld [vmem:[%s4869_s1 + $0x1e8] sm:$0xff]   ;;  %v3748_v10 = vld [vmem:[%s4869_s1 + $0x170] sm:$0xff]  }
  0x13   :  { %v3742_v4 = vld [vmem:[%s4869_s1 + $0x120] sm:$0xff]   ;;  %v3746_v8 = vld [vmem:[%s4869_s1 + $0x128] sm:$0xff]   ;;  %v3749_v11 = vld [vmem:[%s4869_s1 + $0x1f0] sm:$0xff]  }
  0x14   :  { %3327 = vmatpush3.bf16.msra.mxu0 %v3709_v18  ;;  %v3743_v5 = vld [vmem:[%s4869_s1 + $0x1a0] sm:$0xff]   ;;  %v3747_v9 = vld [vmem:[%s4869_s1 + $0x1a8] sm:$0xff]   ;;  %v3750_v12 = vld [vmem:[%s4869_s1 + $0x130] sm:$0xff]   ;;  %v576_v18 = vrot.slane %v4121_v43, %v4117_v41 }
  0x15   :  { %3349 = vmatpush3.bf16.msra.mxu1 %v3710_v19  ;;  %3328 = vmatprep.subr.bf16.mxu0 %v3711_v20  ;;  %v3751_v13 = vld [vmem:[%s4869_s1 + $0x1b0] sm:$0xff]   ;;  %v3752_v14 = vld [vmem:[%s4869_s1 + $0x178] sm:$0xff]   ;;  %v3756_v19 = vld [vmem:[%s4869_s1 + $0x240] sm:$0xff]  }
  0x16   :  { %3350 = vmatprep.subr.bf16.mxu1 %v3712_v21  ;;  %v3753_v15 = vld [vmem:[%s4869_s1 + $0x1f8] sm:$0xff]   ;;  %v3757_v20 = vld [vmem:[%s4869_s1 + $0x2c0] sm:$0xff]   ;;  %v3764_v28 = vld [vmem:[%s4869_s1 + $0x250] sm:$0xff]  }
  0x17   :  { %v3754_v16 = vld [vmem:[%s4869_s1 + $0x138] sm:$0xff]   ;;  %v3758_v21 = vld [vmem:[%s4869_s1 + $0x200] sm:$0xff]   ;;  %v3776_v40 = vld [vmem:[%s4869_s1 + $0x268] sm:$0xff]  }
  0x18   :  { %3329 = vmatpush3.bf16.msra.mxu0 %v3713_v22  ;;  %v3755_v17 = vld [vmem:[%s4869_s1 + $0x1b8] sm:$0xff]   ;;  %v3759_v22 = vld [vmem:[%s4869_s1 + $0x280] sm:$0xff]   ;;  %v3777_v42 = vld [vmem:[%s4869_s1 + $0x2e8] sm:$0xff]  }
  0x19   :  { %3351 = vmatpush3.bf16.msra.mxu1 %v3714_v23  ;;  %3330 = vmatprep.subr.bf16.mxu0 %v3715_v24  ;;  %v592_v23 = vcombine.high %v576_v18, %v576_v18  ;;  %v3760_v24 = vld [vmem:[%s4869_s1 + $0x248] sm:$0xff]   ;;  %v3769_v33 = vld [vmem:[%s4869_s1 + $0x2d8] sm:$0xff]   ;;  %v3772_v36 = vld [vmem:[%s4869_s1 + $0x260] sm:$0xff]  }
  0x1a   :  { %3352 = vmatprep.subr.bf16.mxu1 %v3716_v25  ;;  %v3761_v25 = vld [vmem:[%s4869_s1 + $0x2c8] sm:$0xff]   ;;  %v3770_v34 = vld [vmem:[%s4869_s1 + $0x218] sm:$0xff]   ;;  %v3773_v37 = vld [vmem:[%s4869_s1 + $0x2e0] sm:$0xff]  }
  0x1b   :  { %v3775_v39 = vld [vmem:[%s4869_s1 + $0x2a0] sm:$0xff]   ;;  %v3778_v43 = vld [vmem:[%s4869_s1 + $0x228] sm:$0xff]  }
  0x1c   :  { %3331 = vmatpush3.bf16.msra.mxu0 %v3717_v26  ;;  %v3762_v26 = vld [vmem:[%s4869_s1 + $0x208] sm:$0xff]  }
  0x1d   :  { %3353 = vmatpush3.bf16.msra.mxu1 %v3718_v27  ;;  %3332 = vmatprep.subr.bf16.mxu0 %v3719_v29  ;;  %v3763_v27 = vld [vmem:[%s4869_s1 + $0x288] sm:$0xff]   ;;  %v3765_v29 = vld [vmem:[%s4869_s1 + $0x2d0] sm:$0xff]  }
  0x1e   :  { %3354 = vmatprep.subr.bf16.mxu1 %v3720_v30  ;;  %v3766_v30 = vld [vmem:[%s4869_s1 + $0x210] sm:$0xff]   ;;  %v3779_v44 = vld [vmem:[%s4869_s1 + $0x2a8] sm:$0xff]  }
  0x1f   :  { %v20_v46 = vld [vmem:[%s4868_s0 + $0x8] sm:$0xff] }
  0x20   :  { %3333 = vmatpush3.bf16.msra.mxu0 %v3721_v31  ;;  %v3767_v31 = vld [vmem:[%s4869_s1 + $0x290] sm:$0xff]   ;;  %v602_v48 = vrot.slane %v20_v46, %v4117_v41 }
  0x21   :  { %3355 = vmatpush3.bf16.msra.mxu1 %v3722_v32  ;;  %3362 = vmatprep.subr.bf16.mxu0 %v3724_v35  ;;  %v3768_v32 = vld [vmem:[%s4869_s1 + $0x258] sm:$0xff]  }
  0x22   :  { %3384 = vmatprep.subr.bf16.mxu1 %v3725_v38  ;;  %v3771_v35 = vld [vmem:[%s4869_s1 + $0x298] sm:$0xff]   ;;  %v3774_v38 = vld [vmem:[%s4869_s1 + $0x220] sm:$0xff]  }
  0x23   :  { %2343 = vmatmul.mubr.bf16.vlgmr.msra.gmra.mrb[0].mxu0 %v569_v45  ;;  %v3780_v45 = vld [vmem:[%s4869_s1 + $0x270] sm:$0xff]  }
  0x24   :  { %3363 = vmatpush3.bf16.msra.mxu0 %v3726_v47  ;;  %2383 = vmatmul.mubr.bf16.vlgmr.msra.gmra.mrb[0].mxu1 %v591_v51  ;;  %v3781_v47 = vld [vmem:[%s4869_s1 + $0x2f0] sm:$0xff]  }
  0x25   :  { %3364 = vmatprep.subr.bf16.mxu0 %v3728_v52  ;;  %3385 = vmatpush3.bf16.msra.mxu1 %v3727_v49  ;;  %v595_v49 = vcombine.high %v20_v46, %v20_v46  ;;  %v3783_v51 = vld [vmem:[%s4869_s1 + $0x2b0] sm:$0xff]   ;;  %v610_v52 = vcombine.high %v602_v48, %v602_v48 }
  0x26   :  { %2422 = vmatprep.mubr.bf16.mxu0 %v590_v50  ;;  %3386 = vmatprep.subr.bf16.mxu1 %v3729_v54  ;;  %v3782_v50 = vld [vmem:[%s4869_s1 + $0x230] sm:$0xff]   ;;  %v3784_v54 = vld [vmem:[%s4869_s1 + $0x278] sm:$0xff]  }
  0x27   :  { %2462 = vmatprep.mubr.bf16.mxu1 %v594_v56  ;;  %v4309_v53 = vrot.slane %v595_v49, %v4117_v41  ;;  %v632_v56 = vrot.slane %v610_v52, %v4117_v41  ;;  %v3831_v46 = vld [vmem:[%s4869_s1 + $0x410] sm:$0xff]   ;;  %v3834_v49 = vld [vmem:[%s4869_s1 + $0x4d8] sm:$0xff]   ;;  %v3837_v52 = vld [vmem:[%s4869_s1 + $0x460] sm:$0xff]  }
  0x28   :  { %3365 = vmatpush3.bf16.msra.mxu0 %v3730_v55  ;;  %v3785_v55 = vld [vmem:[%s4869_s1 + $0x2f8] sm:$0xff]  }
  0x29   :  { %3366 = vmatprep.subr.bf16.mxu0 %v3732_v58  ;;  %3387 = vmatpush3.bf16.msra.mxu1 %v3731_v57  ;;  %v611_v57 = vcombine.high %v4309_v53, %v4309_v53  ;;  %v3786_v58 = vld [vmem:[%s4869_s1 + $0x238] sm:$0xff]  }
  0x2a   :  { %3388 = vmatprep.subr.bf16.mxu1 %v3733_v59  ;;  %v3787_v59 = vld [vmem:[%s4869_s1 + $0x2b8] sm:$0xff]  }
  0x2c   :  { %3367 = vmatpush3.bf16.msra.mxu0 %v3734_v60  ;;  %v642_v60 = vcombine.high %v632_v56, %v632_v56 }
  0x2d   :  { %3368 = vmatprep.subr.bf16.mxu0 %v3736_v62  ;;  %3389 = vmatpush3.bf16.msra.mxu1 %v3735_v61  ;;  %v618_v61 = vrot.slane %v602_v48, %v4117_v41  ;;  %v3788_v62 = vld [vmem:[%s4869_s1 + $0x340] sm:$0xff]   ;;  %v3833_v48 = vld [vmem:[%s4869_s1 + $0x458] sm:$0xff]  }
  0x2e   :  { %3390 = vmatprep.subr.bf16.mxu1 %v3737_v63  ;;  %v3789_v63 = vld [vmem:[%s4869_s1 + $0x3c0] sm:$0xff]  }
  0x30   :  { %3369 = vmatpush3.bf16.msra.mxu0 %v3738_v0  ;;  %v639_v0 = vrot.slane %v611_v57, %v4117_v41  ;;  %v3842_v57 = vld [vmem:[%s4869_s1 + $0x4e8] sm:$0xff]  }
  0x31   :  { %3370 = vmatprep.subr.bf16.mxu0 %v3740_v2  ;;  %3391 = vmatpush3.bf16.msra.mxu1 %v3739_v1  ;;  %v3790_v1 = vld [vmem:[%s4869_s1 + $0x300] sm:$0xff]  }
  0x32   :  { %3392 = vmatprep.subr.bf16.mxu1 %v3741_v3  ;;  %v3791_v2 = vld [vmem:[%s4869_s1 + $0x380] sm:$0xff]   ;;  %v640_v3 = vcombine.high %v618_v61, %v618_v61 }
  0x34   :  { %3371 = vmatpush3.bf16.msra.mxu0 %v3742_v4  ;;  %v3792_v4 = vld [vmem:[%s4869_s1 + $0x348] sm:$0xff]  }
  0x35   :  { %3372 = vmatprep.subr.bf16.mxu0 %v3744_v6  ;;  %3393 = vmatpush3.bf16.msra.mxu1 %v3743_v5  ;;  %v3793_v5 = vld [vmem:[%s4869_s1 + $0x3c8] sm:$0xff]   ;;  %v643_v6 = vcombine.high %v639_v0, %v639_v0 }
  0x36   :  { %3394 = vmatprep.subr.bf16.mxu1 %v3745_v7  ;;  %v3794_v7 = vld [vmem:[%s4869_s1 + $0x308] sm:$0xff]  }
  0x38   :  { %3373 = vmatpush3.bf16.msra.mxu0 %v3746_v8  ;;  %v3795_v8 = vld [vmem:[%s4869_s1 + $0x388] sm:$0xff]  }
  0x39   :  { %3374 = vmatprep.subr.bf16.mxu0 %v3748_v10  ;;  %3395 = vmatpush3.bf16.msra.mxu1 %v3747_v9  ;;  %v3796_v9 = vld [vmem:[%s4869_s1 + $0x350] sm:$0xff]  }
  0x3a   :  { %3396 = vmatprep.subr.bf16.mxu1 %v3749_v11  ;;  %v3797_v10 = vld [vmem:[%s4869_s1 + $0x3d0] sm:$0xff]  }
  0x3b   :  { %v3798_v11 = vld [vmem:[%s4869_s1 + $0x310] sm:$0xff]  }
  0x3c   :  { %3375 = vmatpush3.bf16.msra.mxu0 %v3750_v12  ;;  %v3799_v12 = vld [vmem:[%s4869_s1 + $0x390] sm:$0xff]  }
  0x3d   :  { %3376 = vmatprep.subr.bf16.mxu0 %v3752_v14  ;;  %3397 = vmatpush3.bf16.msra.mxu1 %v3751_v13  ;;  %v3800_v13 = vld [vmem:[%s4869_s1 + $0x358] sm:$0xff]  }
  0x3e   :  { %3398 = vmatprep.subr.bf16.mxu1 %v3753_v15  ;;  %v3801_v14 = vld [vmem:[%s4869_s1 + $0x3d8] sm:$0xff]  }
  0x3f   :  { %v3802_v15 = vld [vmem:[%s4869_s1 + $0x318] sm:$0xff]  }
  0x40   :  { %3377 = vmatpush3.bf16.msra.mxu0 %v3754_v16  ;;  %v3803_v16 = vld [vmem:[%s4869_s1 + $0x398] sm:$0xff]  }
  0x41   :  { %3406 = vmatprep.subr.bf16.mxu0 %v3756_v19  ;;  %3399 = vmatpush3.bf16.msra.mxu1 %v3755_v17  ;;  %v3804_v17 = vld [vmem:[%s4869_s1 + $0x360] sm:$0xff]  }
  0x42   :  { %3428 = vmatprep.subr.bf16.mxu1 %v3757_v20  ;;  %v3806_v19 = vld [vmem:[%s4869_s1 + $0x320] sm:$0xff]  }
  0x43   :  { %2423 = vmatmul.mubr.bf16.vlgmr.msra.gmra.mrb[4].mxu0 %v576_v18  ;;  %v3805_v18 = vld [vmem:[%s4869_s1 + $0x3e0] sm:$0xff]  }
  0x44   :  { %3407 = vmatpush3.bf16.msra.mxu0 %v3758_v21  ;;  %2463 = vmatmul.mubr.bf16.vlgmr.msra.gmra.mrb[4].mxu1 %v592_v23  ;;  %v3807_v20 = vld [vmem:[%s4869_s1 + $0x3a0] sm:$0xff]   ;;  %v3808_v21 = vld [vmem:[%s4869_s1 + $0x368] sm:$0xff]  }
  0x45   :  { %3408 = vmatprep.subr.bf16.mxu0 %v3760_v24  ;;  %3429 = vmatpush3.bf16.msra.mxu1 %v3759_v22  ;;  %v3809_v22 = vld [vmem:[%s4869_s1 + $0x3e8] sm:$0xff]  }
  0x46   :  { %3430 = vmatprep.subr.bf16.mxu1 %v3761_v25  ;;  %2502 = vmatprep.mubr.bf16.mxu0 %v632_v56  ;;  %v3810_v23 = vld [vmem:[%s4869_s1 + $0x328] sm:$0xff]   ;;  %v3812_v25 = vld [vmem:[%s4869_s1 + $0x370] sm:$0xff]  }
  0x47   :  { %2542 = vmatprep.mubr.bf16.mxu1 %v642_v60  ;;  %v3811_v24 = vld [vmem:[%s4869_s1 + $0x3a8] sm:$0xff]   ;;  %v3845_v60 = vld [vmem:[%s4869_s1 + $0x470] sm:$0xff]  }
  0x48   :  { %3409 = vmatpush3.bf16.msra.mxu0 %v3762_v26  ;;  %v3813_v26 = vld [vmem:[%s4869_s1 + $0x3f0] sm:$0xff]   ;;  %v3841_v56 = vld [vmem:[%s4869_s1 + $0x468] sm:$0xff]  }
  0x49   :  { %3410 = vmatprep.subr.bf16.mxu0 %v3764_v28  ;;  %3431 = vmatpush3.bf16.msra.mxu1 %v3763_v27  ;;  %v3814_v27 = vld [vmem:[%s4869_s1 + $0x330] sm:$0xff]  }
  0x4a   :  { %3432 = vmatprep.subr.bf16.mxu1 %v3765_v29  ;;  %v3815_v28 = vld [vmem:[%s4869_s1 + $0x3b0] sm:$0xff]   ;;  %v3816_v29 = vld [vmem:[%s4869_s1 + $0x378] sm:$0xff]  }
  0x4c   :  { %3411 = vmatpush3.bf16.msra.mxu0 %v3766_v30  ;;  %v3817_v30 = vld [vmem:[%s4869_s1 + $0x3f8] sm:$0xff]  }
  0x4d   :  { %3412 = vmatprep.subr.bf16.mxu0 %v3768_v32  ;;  %3433 = vmatpush3.bf16.msra.mxu1 %v3767_v31  ;;  %v3818_v31 = vld [vmem:[%s4869_s1 + $0x338] sm:$0xff]  }
  0x4e   :  { %3434 = vmatprep.subr.bf16.mxu1 %v3769_v33  ;;  %v3819_v32 = vld [vmem:[%s4869_s1 + $0x3b8] sm:$0xff]   ;;  %v625_v33 = vrot.slane %v4309_v53, %v4117_v41  ;;  %v3838_v53 = vld [vmem:[%s4869_s1 + $0x4e0] sm:$0xff]  }
  0x50   :  { %3413 = vmatpush3.bf16.msra.mxu0 %v3770_v34  ;;  %v3821_v34 = vld [vmem:[%s4869_s1 + $0x440] sm:$0xff]  }
  0x51   :  { %3414 = vmatprep.subr.bf16.mxu0 %v3772_v36  ;;  %3435 = vmatpush3.bf16.msra.mxu1 %v3771_v35  ;;  %v3822_v35 = vld [vmem:[%s4869_s1 + $0x4c0] sm:$0xff]  }
  0x52   :  { %3436 = vmatprep.subr.bf16.mxu1 %v3773_v37  ;;  %v3823_v36 = vld [vmem:[%s4869_s1 + $0x400] sm:$0xff]  }
  0x53   :  { %v3824_v37 = vld [vmem:[%s4869_s1 + $0x480] sm:$0xff]  }
  0x54   :  { %3415 = vmatpush3.bf16.msra.mxu0 %v3774_v38  ;;  %v641_v38 = vcombine.high %v625_v33, %v625_v33 }
  0x55   :  { %3416 = vmatprep.subr.bf16.mxu0 %v3776_v40  ;;  %3437 = vmatpush3.bf16.msra.mxu1 %v3775_v39  ;;  %v3825_v39 = vld [vmem:[%s4869_s1 + $0x448] sm:$0xff]  }
  0x56   :  { %3438 = vmatprep.subr.bf16.mxu1 %v3777_v42  ;;  %v3826_v40 = vld [vmem:[%s4869_s1 + $0x4c8] sm:$0xff]  }
  0x57   :  { %v3827_v42 = vld [vmem:[%s4869_s1 + $0x408] sm:$0xff]  }
  0x58   :  { %3417 = vmatpush3.bf16.msra.mxu0 %v3778_v43  ;;  %v3828_v43 = vld [vmem:[%s4869_s1 + $0x488] sm:$0xff]  }
  0x59   :  { %3418 = vmatprep.subr.bf16.mxu0 %v3780_v45  ;;  %3439 = vmatpush3.bf16.msra.mxu1 %v3779_v44  ;;  %v3829_v44 = vld [vmem:[%s4869_s1 + $0x450] sm:$0xff]  }
  0x5a   :  { %3440 = vmatprep.subr.bf16.mxu1 %v3781_v47  ;;  %v3830_v45 = vld [vmem:[%s4869_s1 + $0x4d0] sm:$0xff]  }
  0x5b   :  { %v3832_v47 = vld [vmem:[%s4869_s1 + $0x490] sm:$0xff]  }
  0x5c   :  { %3419 = vmatpush3.bf16.msra.mxu0 %v3782_v50  ;;  %v3835_v50 = vld [vmem:[%s4869_s1 + $0x418] sm:$0xff]  }
  0x5d   :  { %3420 = vmatprep.subr.bf16.mxu0 %v3784_v54  ;;  %3441 = vmatpush3.bf16.msra.mxu1 %v3783_v51  ;;  %v3836_v51 = vld [vmem:[%s4869_s1 + $0x498] sm:$0xff]   ;;  %v3839_v54 = vld [vmem:[%s4869_s1 + $0x420] sm:$0xff]  }
  0x5e   :  { %3442 = vmatprep.subr.bf16.mxu1 %v3785_v55  ;;  %v3840_v55 = vld [vmem:[%s4869_s1 + $0x4a0] sm:$0xff]  }
  0x60   :  { %3421 = vmatpush3.bf16.msra.mxu0 %v3786_v58  ;;  %v3843_v58 = vld [vmem:[%s4869_s1 + $0x428] sm:$0xff]  }
  0x61   :  { %3450 = vmatprep.subr.bf16.mxu0 %v3788_v62  ;;  %3443 = vmatpush3.bf16.msra.mxu1 %v3787_v59  ;;  %v3844_v59 = vld [vmem:[%s4869_s1 + $0x4a8] sm:$0xff]   ;;  %v3846_v62 = vld [vmem:[%s4869_s1 + $0x4f0] sm:$0xff]  }
  0x62   :  { %3472 = vmatprep.subr.bf16.mxu1 %v3789_v63 }
  0x63   :  { %2503 = vmatmul.mubr.bf16.vlgmr.msra.gmra.mrb[8].mxu0 %v618_v61  ;;  %v21_v61 = vld [vmem:[%s4868_s0 + $0x10] sm:$0xff] }
  0x64   :  { %3451 = vmatpush3.bf16.msra.mxu0 %v3790_v1  ;;  %2582 = vmatprep.mubr.bf16.mxu0 %v639_v0  ;;  %v651_v63 = vrot.slane %v21_v61, %v4117_v41  ;;  %v644_v0 = vcombine.high %v21_v61, %v21_v61  ;;  %v3847_v1 = vld [vmem:[%s4869_s1 + $0x430] sm:$0xff]  }
  0x65   :  { %2543 = vmatmul.mubr.bf16.vlgmr.msra.gmra.mrb[8].mxu1 %v640_v3  ;;  %3452 = vmatprep.subr.bf16.mxu0 %v3792_v4  ;;  %v3896_v61 = vld [vmem:[%s4869_s1 + $0x610] sm:$0xff]  }
  0x66   :  { %3473 = vmatpush3.bf16.msra.mxu1 %v3791_v2  ;;  %2622 = vmatprep.mubr.bf16.mxu1 %v643_v6  ;;  %v3848_v2 = vld [vmem:[%s4869_s1 + $0x4b0] sm:$0xff]   ;;  %v659_v3 = vcombine.high %v651_v63, %v651_v63  ;;  %v4515_v4 = vrot.slane %v644_v0, %v4117_v41  ;;  %v3850_v6 = vld [vmem:[%s4869_s1 + $0x4f8] sm:$0xff]  }
  0x67   :  { %3474 = vmatprep.subr.bf16.mxu1 %v3793_v5  ;;  %v3849_v5 = vld [vmem:[%s4869_s1 + $0x478] sm:$0xff]  }
  0x68   :  { %3453 = vmatpush3.bf16.msra.mxu0 %v3794_v7  ;;  %v681_v7 = vrot.slane %v659_v3, %v4117_v41  ;;  %v3899_v0 = vld [vmem:[%s4869_s1 + $0x6d8] sm:$0xff]   ;;  %v3902_v3 = vld [vmem:[%s4869_s1 + $0x660] sm:$0xff]  }
  0x69   :  { %3454 = vmatprep.subr.bf16.mxu0 %v3796_v9  ;;  %v3851_v9 = vld [vmem:[%s4869_s1 + $0x438] sm:$0xff]  }
  0x6a   :  { %3475 = vmatpush3.bf16.msra.mxu1 %v3795_v8  ;;  %v660_v8 = vcombine.high %v4515_v4, %v4515_v4 }
  0x6b   :  { %3476 = vmatprep.subr.bf16.mxu1 %v3797_v10  ;;  %v3852_v10 = vld [vmem:[%s4869_s1 + $0x4b8] sm:$0xff]  }
  0x6c   :  { %3455 = vmatpush3.bf16.msra.mxu0 %v3798_v11  ;;  %v691_v11 = vcombine.high %v681_v7, %v681_v7 }
  0x6d   :  { %3456 = vmatprep.subr.bf16.mxu0 %v3800_v13  ;;  %v3853_v13 = vld [vmem:[%s4869_s1 + $0x540] sm:$0xff]  }
  0x6e   :  { %3477 = vmatpush3.bf16.msra.mxu1 %v3799_v12  ;;  %v667_v12 = vrot.slane %v651_v63, %v4117_v41  ;;  %v3898_v63 = vld [vmem:[%s4869_s1 + $0x658] sm:$0xff]  }
  0x6f   :  { %3478 = vmatprep.subr.bf16.mxu1 %v3801_v14  ;;  %v3854_v14 = vld [vmem:[%s4869_s1 + $0x5c0] sm:$0xff]  }
  0x70   :  { %3457 = vmatpush3.bf16.msra.mxu0 %v3802_v15  ;;  %v688_v15 = vrot.slane %v660_v8, %v4117_v41  ;;  %v3907_v8 = vld [vmem:[%s4869_s1 + $0x6e8] sm:$0xff]  }
  0x71   :  { %3458 = vmatprep.subr.bf16.mxu0 %v3804_v17  ;;  %v3856_v17 = vld [vmem:[%s4869_s1 + $0x580] sm:$0xff]  }
  0x72   :  { %3479 = vmatpush3.bf16.msra.mxu1 %v3803_v16  ;;  %v3855_v16 = vld [vmem:[%s4869_s1 + $0x500] sm:$0xff]  }
  0x73   :  { %3480 = vmatprep.subr.bf16.mxu1 %v3805_v18  ;;  %v689_v18 = vcombine.high %v667_v12, %v667_v12 }
  0x74   :  { %3459 = vmatpush3.bf16.msra.mxu0 %v3806_v19  ;;  %v3857_v19 = vld [vmem:[%s4869_s1 + $0x548] sm:$0xff]  }
  0x75   :  { %3460 = vmatprep.subr.bf16.mxu0 %v3808_v21  ;;  %v692_v21 = vcombine.high %v688_v15, %v688_v15 }
  0x76   :  { %3481 = vmatpush3.bf16.msra.mxu1 %v3807_v20  ;;  %v3858_v20 = vld [vmem:[%s4869_s1 + $0x5c8] sm:$0xff]  }
  0x77   :  { %3482 = vmatprep.subr.bf16.mxu1 %v3809_v22  ;;  %v3859_v22 = vld [vmem:[%s4869_s1 + $0x508] sm:$0xff]  }
  0x78   :  { %3461 = vmatpush3.bf16.msra.mxu0 %v3810_v23  ;;  %v3860_v23 = vld [vmem:[%s4869_s1 + $0x588] sm:$0xff]  }
  0x79   :  { %3462 = vmatprep.subr.bf16.mxu0 %v3812_v25  ;;  %v3862_v25 = vld [vmem:[%s4869_s1 + $0x5d0] sm:$0xff]  }
  0x7a   :  { %3483 = vmatpush3.bf16.msra.mxu1 %v3811_v24  ;;  %v3861_v24 = vld [vmem:[%s4869_s1 + $0x550] sm:$0xff]  }
  0x7b   :  { %3484 = vmatprep.subr.bf16.mxu1 %v3813_v26  ;;  %v3863_v26 = vld [vmem:[%s4869_s1 + $0x510] sm:$0xff]  }
  0x7c   :  { %3463 = vmatpush3.bf16.msra.mxu0 %v3814_v27  ;;  %v3864_v27 = vld [vmem:[%s4869_s1 + $0x590] sm:$0xff]  }
  0x7d   :  { %3464 = vmatprep.subr.bf16.mxu0 %v3816_v29  ;;  %v3866_v29 = vld [vmem:[%s4869_s1 + $0x5d8] sm:$0xff]  }
  0x7e   :  { %3485 = vmatpush3.bf16.msra.mxu1 %v3815_v28  ;;  %v3865_v28 = vld [vmem:[%s4869_s1 + $0x558] sm:$0xff]  }
  0x7f   :  { %3486 = vmatprep.subr.bf16.mxu1 %v3817_v30  ;;  %v3867_v30 = vld [vmem:[%s4869_s1 + $0x518] sm:$0xff]  }
  0x80   :  { %3465 = vmatpush3.bf16.msra.mxu0 %v3818_v31  ;;  %v3868_v31 = vld [vmem:[%s4869_s1 + $0x598] sm:$0xff]  }
  0x81   :  { %3494 = vmatprep.subr.bf16.mxu0 %v3821_v34  ;;  %v3871_v34 = vld [vmem:[%s4869_s1 + $0x520] sm:$0xff]  }
  0x82   :  { %3487 = vmatpush3.bf16.msra.mxu1 %v3819_v32  ;;  %v3869_v32 = vld [vmem:[%s4869_s1 + $0x560] sm:$0xff]  }
  0x83   :  { %2583 = vmatmul.mubr.bf16.vlgmr.msra.gmra.mrb[12].mxu0 %v625_v33  ;;  %3516 = vmatprep.subr.bf16.mxu1 %v3822_v35  ;;  %v3870_v33 = vld [vmem:[%s4869_s1 + $0x5e0] sm:$0xff]  }
  0x84   :  { %3495 = vmatpush3.bf16.msra.mxu0 %v3823_v36  ;;  %2662 = vmatprep.mubr.bf16.mxu0 %v681_v7  ;;  %v3872_v35 = vld [vmem:[%s4869_s1 + $0x5a0] sm:$0xff]   ;;  %v3873_v36 = vld [vmem:[%s4869_s1 + $0x568] sm:$0xff]  }
  0x85   :  { %2623 = vmatmul.mubr.bf16.vlgmr.msra.gmra.mrb[12].mxu1 %v641_v38  ;;  %3496 = vmatprep.subr.bf16.mxu0 %v3825_v39  ;;  %v3875_v38 = vld [vmem:[%s4869_s1 + $0x528] sm:$0xff]  }
  0x86   :  { %3517 = vmatpush3.bf16.msra.mxu1 %v3824_v37  ;;  %2702 = vmatprep.mubr.bf16.mxu1 %v691_v11  ;;  %v3874_v37 = vld [vmem:[%s4869_s1 + $0x5e8] sm:$0xff]   ;;  %v3910_v11 = vld [vmem:[%s4869_s1 + $0x670] sm:$0xff]  }
  0x87   :  { %3518 = vmatprep.subr.bf16.mxu1 %v3826_v40  ;;  %v3876_v39 = vld [vmem:[%s4869_s1 + $0x5a8] sm:$0xff]   ;;  %v3877_v40 = vld [vmem:[%s4869_s1 + $0x570] sm:$0xff]  }
  0x88   :  { %3497 = vmatpush3.bf16.msra.mxu0 %v3827_v42  ;;  %v3878_v42 = vld [vmem:[%s4869_s1 + $0x5f0] sm:$0xff]   ;;  %v3906_v7 = vld [vmem:[%s4869_s1 + $0x668] sm:$0xff]  }
  0x89   :  { %3498 = vmatprep.subr.bf16.mxu0 %v3829_v44  ;;  %v3880_v44 = vld [vmem:[%s4869_s1 + $0x5b0] sm:$0xff]  }
  0x8a   :  { %3519 = vmatpush3.bf16.msra.mxu1 %v3828_v43  ;;  %v3879_v43 = vld [vmem:[%s4869_s1 + $0x530] sm:$0xff]  }
  0x8b   :  { %3520 = vmatprep.subr.bf16.mxu1 %v3830_v45  ;;  %v3881_v45 = vld [vmem:[%s4869_s1 + $0x578] sm:$0xff]  }
  0x8c   :  { %3499 = vmatpush3.bf16.msra.mxu0 %v3831_v46  ;;  %v3882_v46 = vld [vmem:[%s4869_s1 + $0x5f8] sm:$0xff]  }
  0x8d   :  { %3500 = vmatprep.subr.bf16.mxu0 %v3833_v48  ;;  %v3884_v48 = vld [vmem:[%s4869_s1 + $0x5b8] sm:$0xff]  }
  0x8e   :  { %3521 = vmatpush3.bf16.msra.mxu1 %v3832_v47  ;;  %v3883_v47 = vld [vmem:[%s4869_s1 + $0x538] sm:$0xff]  }
  0x8f   :  { %3522 = vmatprep.subr.bf16.mxu1 %v3834_v49  ;;  %v674_v49 = vrot.slane %v4515_v4, %v4117_v41  ;;  %v3903_v4 = vld [vmem:[%s4869_s1 + $0x6e0] sm:$0xff]  }
  0x90   :  { %3501 = vmatpush3.bf16.msra.mxu0 %v3835_v50  ;;  %v3886_v50 = vld [vmem:[%s4869_s1 + $0x640] sm:$0xff]  }
  0x91   :  { %3502 = vmatprep.subr.bf16.mxu0 %v3837_v52  ;;  %v3888_v52 = vld [vmem:[%s4869_s1 + $0x600] sm:$0xff]  }
  0x92   :  { %3523 = vmatpush3.bf16.msra.mxu1 %v3836_v51  ;;  %v3887_v51 = vld [vmem:[%s4869_s1 + $0x6c0] sm:$0xff]  }
  0x93   :  { %3524 = vmatprep.subr.bf16.mxu1 %v3838_v53  ;;  %v3889_v53 = vld [vmem:[%s4869_s1 + $0x680] sm:$0xff]  }
  0x94   :  { %3503 = vmatpush3.bf16.msra.mxu0 %v3839_v54  ;;  %v690_v54 = vcombine.high %v674_v49, %v674_v49 }
  0x95   :  { %3504 = vmatprep.subr.bf16.mxu0 %v3841_v56  ;;  %v3891_v56 = vld [vmem:[%s4869_s1 + $0x6c8] sm:$0xff]  }
  0x96   :  { %3525 = vmatpush3.bf16.msra.mxu1 %v3840_v55  ;;  %v3890_v55 = vld [vmem:[%s4869_s1 + $0x648] sm:$0xff]  }
  0x97   :  { %3526 = vmatprep.subr.bf16.mxu1 %v3842_v57  ;;  %v3892_v57 = vld [vmem:[%s4869_s1 + $0x608] sm:$0xff]  }
  0x98   :  { %3505 = vmatpush3.bf16.msra.mxu0 %v3843_v58  ;;  %v3893_v58 = vld [vmem:[%s4869_s1 + $0x688] sm:$0xff]  }
  0x99   :  { %3506 = vmatprep.subr.bf16.mxu0 %v3845_v60  ;;  %v3895_v60 = vld [vmem:[%s4869_s1 + $0x6d0] sm:$0xff]  }
  0x9a   :  { %3527 = vmatpush3.bf16.msra.mxu1 %v3844_v59  ;;  %v3894_v59 = vld [vmem:[%s4869_s1 + $0x650] sm:$0xff]  }
  0x9b   :  { %3528 = vmatprep.subr.bf16.mxu1 %v3846_v62  ;;  %v3897_v62 = vld [vmem:[%s4869_s1 + $0x690] sm:$0xff]  }
  0x9c   :  { %3507 = vmatpush3.bf16.msra.mxu0 %v3847_v1  ;;  %v3900_v1 = vld [vmem:[%s4869_s1 + $0x618] sm:$0xff]  }
  0x9d   :  { %3508 = vmatprep.subr.bf16.mxu0 %v3849_v5  ;;  %v3904_v5 = vld [vmem:[%s4869_s1 + $0x620] sm:$0xff]  }
  0x9e   :  { %3529 = vmatpush3.bf16.msra.mxu1 %v3848_v2  ;;  %v3901_v2 = vld [vmem:[%s4869_s1 + $0x698] sm:$0xff]  }
  0x9f   :  { %3530 = vmatprep.subr.bf16.mxu1 %v3850_v6  ;;  %v3905_v6 = vld [vmem:[%s4869_s1 + $0x6a0] sm:$0xff]  }
  0xa0   :  { %3509 = vmatpush3.bf16.msra.mxu0 %v3851_v9  ;;  %v3908_v9 = vld [vmem:[%s4869_s1 + $0x628] sm:$0xff]  }
  0xa1   :  { %3538 = vmatprep.subr.bf16.mxu0 %v3853_v13  ;;  %v3911_v13 = vld [vmem:[%s4869_s1 + $0x6f0] sm:$0xff]  }
  0xa2   :  { %3531 = vmatpush3.bf16.msra.mxu1 %v3852_v10  ;;  %v3909_v10 = vld [vmem:[%s4869_s1 + $0x6a8] sm:$0xff]  }
  0xa3   :  { %2663 = vmatmul.mubr.bf16.vlgmr.msra.gmra.mrb[16].mxu0 %v667_v12  ;;  %3560 = vmatprep.subr.bf16.mxu1 %v3854_v14  ;;  %v22_v12 = vld [vmem:[%s4868_s0 + $0x18] sm:$0xff] }
  0xa4   :  { %3539 = vmatpush3.bf16.msra.mxu0 %v3855_v16  ;;  %2742 = vmatprep.mubr.bf16.mxu0 %v688_v15  ;;  %v700_v14 = vrot.slane %v22_v12, %v4117_v41  ;;  %v693_v15 = vcombine.high %v22_v12, %v22_v12  ;;  %v3912_v16 = vld [vmem:[%s4869_s1 + $0x630] sm:$0xff]  }
  0xa5   :  { %2703 = vmatmul.mubr.bf16.vlgmr.msra.gmra.mrb[16].mxu1 %v689_v18  ;;  %3540 = vmatprep.subr.bf16.mxu0 %v3857_v19 }
  0xa6   :  { %3561 = vmatpush3.bf16.msra.mxu1 %v3856_v17  ;;  %2782 = vmatprep.mubr.bf16.mxu1 %v692_v21  ;;  %v3914_v17 = vld [vmem:[%s4869_s1 + $0x678] sm:$0xff]   ;;  %v708_v18 = vcombine.high %v700_v14, %v700_v14  ;;  %v4721_v19 = vrot.slane %v693_v15, %v4117_v41 }
  0xa7   :  { %3562 = vmatprep.subr.bf16.mxu1 %v3858_v20  ;;  %v3913_v20 = vld [vmem:[%s4869_s1 + $0x6b0] sm:$0xff]   ;;  %v3915_v21 = vld [vmem:[%s4869_s1 + $0x6f8] sm:$0xff]  }
  0xa8   :  { %3541 = vmatpush3.bf16.msra.mxu0 %v3859_v22  ;;  %v730_v22 = vrot.slane %v708_v18, %v4117_v41 }
  0xa9   :  { %3542 = vmatprep.subr.bf16.mxu0 %v3861_v24  ;;  %v3916_v24 = vld [vmem:[%s4869_s1 + $0x638] sm:$0xff]  }
  0xaa   :  { %3563 = vmatpush3.bf16.msra.mxu1 %v3860_v23  ;;  %v709_v23 = vcombine.high %v4721_v19, %v4721_v19 }
  0xab   :  { %3564 = vmatprep.subr.bf16.mxu1 %v3862_v25  ;;  %v740_v25 = vcombine.high %v730_v22, %v730_v22 }
  0xac   :  { %3543 = vmatpush3.bf16.msra.mxu0 %v3863_v26  ;;  %v716_v26 = vrot.slane %v700_v14, %v4117_v41 }
  0xad   :  { %3544 = vmatprep.subr.bf16.mxu0 %v3865_v28  ;;  %v3917_v28 = vld [vmem:[%s4869_s1 + $0x6b8] sm:$0xff]  }
  0xae   :  { %3565 = vmatpush3.bf16.msra.mxu1 %v3864_v27  ;;  %v3918_v27 = vld [vmem:[%s4869_s1 + $0x740] sm:$0xff]  }
  0xaf   :  { %3566 = vmatprep.subr.bf16.mxu1 %v3866_v29  ;;  %v737_v29 = vrot.slane %v709_v23, %v4117_v41 }
  0xb0   :  { %3545 = vmatpush3.bf16.msra.mxu0 %v3867_v30  ;;  %v3919_v30 = vld [vmem:[%s4869_s1 + $0x7c0] sm:$0xff]  }
  0xb1   :  { %3546 = vmatprep.subr.bf16.mxu0 %v3869_v32  ;;  %v738_v32 = vcombine.high %v716_v26, %v716_v26 }
  0xb2   :  { %3567 = vmatpush3.bf16.msra.mxu1 %v3868_v31  ;;  %v3920_v31 = vld [vmem:[%s4869_s1 + $0x700] sm:$0xff]  }
  0xb3   :  { %3568 = vmatprep.subr.bf16.mxu1 %v3870_v33  ;;  %v3922_v33 = vld [vmem:[%s4869_s1 + $0x748] sm:$0xff]  }
  0xb4   :  { %3547 = vmatpush3.bf16.msra.mxu0 %v3871_v34  ;;  %v3921_v34 = vld [vmem:[%s4869_s1 + $0x780] sm:$0xff]  }
  0xb5   :  { %3548 = vmatprep.subr.bf16.mxu0 %v3873_v36  ;;  %v3923_v36 = vld [vmem:[%s4869_s1 + $0x7c8] sm:$0xff]  }
  0xb6   :  { %3569 = vmatpush3.bf16.msra.mxu1 %v3872_v35  ;;  %v741_v35 = vcombine.high %v737_v29, %v737_v29 }
  0xb7   :  { %3570 = vmatprep.subr.bf16.mxu1 %v3874_v37  ;;  %v3924_v37 = vld [vmem:[%s4869_s1 + $0x708] sm:$0xff]  }
  0xb8   :  { %3549 = vmatpush3.bf16.msra.mxu0 %v3875_v38  ;;  %v3926_v38 = vld [vmem:[%s4869_s1 + $0x750] sm:$0xff]  }
  0xb9   :  { %3550 = vmatprep.subr.bf16.mxu0 %v3877_v40  ;;  %v3927_v40 = vld [vmem:[%s4869_s1 + $0x7d0] sm:$0xff]  }
  0xba   :  { %3571 = vmatpush3.bf16.msra.mxu1 %v3876_v39  ;;  %v3925_v39 = vld [vmem:[%s4869_s1 + $0x788] sm:$0xff]  }
  0xbb   :  { %3572 = vmatprep.subr.bf16.mxu1 %v3878_v42  ;;  %v3928_v42 = vld [vmem:[%s4869_s1 + $0x710] sm:$0xff]  }
  0xbc   :  { %3551 = vmatpush3.bf16.msra.mxu0 %v3879_v43  ;;  %v3930_v43 = vld [vmem:[%s4869_s1 + $0x758] sm:$0xff]  }
  0xbd   :  { %3552 = vmatprep.subr.bf16.mxu0 %v3881_v45  ;;  %v3931_v45 = vld [vmem:[%s4869_s1 + $0x7d8] sm:$0xff]  }
  0xbe   :  { %3573 = vmatpush3.bf16.msra.mxu1 %v3880_v44  ;;  %v3929_v44 = vld [vmem:[%s4869_s1 + $0x790] sm:$0xff]  }
  0xbf   :  { %3574 = vmatprep.subr.bf16.mxu1 %v3882_v46  ;;  %v3932_v46 = vld [vmem:[%s4869_s1 + $0x718] sm:$0xff]  }
  0xc0   :  { %3553 = vmatpush3.bf16.msra.mxu0 %v3883_v47  ;;  %v3933_v47 = vld [vmem:[%s4869_s1 + $0x798] sm:$0xff]  }
  0xc1   :  { %3582 = vmatprep.subr.bf16.mxu0 %v3886_v50  ;;  %v3936_v50 = vld [vmem:[%s4869_s1 + $0x720] sm:$0xff]  }
  0xc2   :  { %3575 = vmatpush3.bf16.msra.mxu1 %v3884_v48  ;;  %v3934_v48 = vld [vmem:[%s4869_s1 + $0x760] sm:$0xff]  }
  0xc3   :  { %2743 = vmatmul.mubr.bf16.vlgmr.msra.gmra.mrb[20].mxu0 %v674_v49  ;;  %3604 = vmatprep.subr.bf16.mxu1 %v3887_v51  ;;  %v3935_v49 = vld [vmem:[%s4869_s1 + $0x7e0] sm:$0xff]  }
  0xc4   :  { %3583 = vmatpush3.bf16.msra.mxu0 %v3888_v52  ;;  %2822 = vmatprep.mubr.bf16.mxu0 %v730_v22  ;;  %v3937_v51 = vld [vmem:[%s4869_s1 + $0x7a0] sm:$0xff]   ;;  %v3938_v52 = vld [vmem:[%s4869_s1 + $0x768] sm:$0xff]  }
  0xc5   :  { %2783 = vmatmul.mubr.bf16.vlgmr.msra.gmra.mrb[20].mxu1 %v690_v54  ;;  %3584 = vmatprep.subr.bf16.mxu0 %v3890_v55  ;;  %v3940_v54 = vld [vmem:[%s4869_s1 + $0x728] sm:$0xff]  }
  0xc6   :  { %3605 = vmatpush3.bf16.msra.mxu1 %v3889_v53  ;;  %2862 = vmatprep.mubr.bf16.mxu1 %v740_v25  ;;  %v3939_v53 = vld [vmem:[%s4869_s1 + $0x7e8] sm:$0xff]  }
  0xc7   :  { %3606 = vmatprep.subr.bf16.mxu1 %v3891_v56  ;;  %v3941_v55 = vld [vmem:[%s4869_s1 + $0x7a8] sm:$0xff]   ;;  %v3942_v56 = vld [vmem:[%s4869_s1 + $0x770] sm:$0xff]  }
  0xc8   :  { %3585 = vmatpush3.bf16.msra.mxu0 %v3892_v57  ;;  %v3056_v57 = vld [vmem:[%s4870_s2] ss:$0 sm:$0xff] }
  0xc9   :  { %3586 = vmatprep.subr.bf16.mxu0 %v3894_v59 }
  0xca   :  { %3607 = vmatpush3.bf16.msra.mxu1 %v3893_v58  ;;  %v3943_v58 = vld [vmem:[%s4869_s1 + $0x7f0] sm:$0xff]  }
  0xcb   :  { %3608 = vmatprep.subr.bf16.mxu1 %v3895_v60  ;;  %v3944_v60 = vld [vmem:[%s4869_s1 + $0x730] sm:$0xff]  }
  0xcc   :  { %3587 = vmatpush3.bf16.msra.mxu0 %v3896_v61 }
  0xcd   :  { %3588 = vmatprep.subr.bf16.mxu0 %v3898_v63 }
  0xce   :  { %3609 = vmatpush3.bf16.msra.mxu1 %v3897_v62  ;;  %v3946_v62 = vld [vmem:[%s4869_s1 + $0x778] sm:$0xff]  }
  0xcf   :  { %3610 = vmatprep.subr.bf16.mxu1 %v3899_v0 }
  0xd0   :  { %3589 = vmatpush3.bf16.msra.mxu0 %v3900_v1 }
  0xd1   :  { %3590 = vmatprep.subr.bf16.mxu0 %v3902_v3 }
  0xd2   :  { %3611 = vmatpush3.bf16.msra.mxu1 %v3901_v2 }
  0xd3   :  { %3612 = vmatprep.subr.bf16.mxu1 %v3903_v4 }
  0xd4   :  { %3591 = vmatpush3.bf16.msra.mxu0 %v3904_v5 }
  0xd5   :  { %3592 = vmatprep.subr.bf16.mxu0 %v3906_v7  ;;  %v3945_v7 = vld [vmem:[%s4869_s1 + $0x7b0] sm:$0xff]  }
  0xd6   :  { %3613 = vmatpush3.bf16.msra.mxu1 %v3905_v6 }
  0xd7   :  { %3614 = vmatprep.subr.bf16.mxu1 %v3907_v8 }
  0xd8   :  { %3593 = vmatpush3.bf16.msra.mxu0 %v3908_v9 }
  0xd9   :  { %3594 = vmatprep.subr.bf16.mxu0 %v3910_v11 }
  0xda   :  { %3615 = vmatpush3.bf16.msra.mxu1 %v3909_v10 }
  0xdb   :  { %3616 = vmatprep.subr.bf16.mxu1 %v3911_v13 }
  0xdc   :  { %3595 = vmatpush3.bf16.msra.mxu0 %v3912_v16 }
  0xdd   :  { %3596 = vmatprep.subr.bf16.mxu0 %v3914_v17 }
  0xde   :  { %3617 = vmatpush3.bf16.msra.mxu1 %v3913_v20 }
  0xdf   :  { %3618 = vmatprep.subr.bf16.mxu1 %v3915_v21 }
  0xe0   :  { %3597 = vmatpush3.bf16.msra.mxu0 %v3916_v24 }
  0xe1   :  { %3626 = vmatprep.subr.bf16.mxu0 %v3918_v27 }
  0xe2   :  { %3619 = vmatpush3.bf16.msra.mxu1 %v3917_v28 }
  0xe3   :  { %2823 = vmatmul.mubr.bf16.vlgmr.msra.gmra.mrb[24].mxu0 %v716_v26  ;;  %3648 = vmatprep.subr.bf16.mxu1 %v3919_v30 }
  0xe4   :  { %3627 = vmatpush3.bf16.msra.mxu0 %v3920_v31  ;;  %2902 = vmatprep.mubr.bf16.mxu0 %v737_v29 }
  0xe5   :  { %2863 = vmatmul.mubr.bf16.vlgmr.msra.gmra.mrb[24].mxu1 %v738_v32  ;;  %3628 = vmatprep.subr.bf16.mxu0 %v3922_v33 }
  0xe6   :  { %3649 = vmatpush3.bf16.msra.mxu1 %v3921_v34  ;;  %2942 = vmatprep.mubr.bf16.mxu1 %v741_v35 }
  0xe7   :  { %3650 = vmatprep.subr.bf16.mxu1 %v3923_v36 }
  0xe8   :  { %3629 = vmatpush3.bf16.msra.mxu0 %v3924_v37 }
  0xe9   :  { %3630 = vmatprep.subr.bf16.mxu0 %v3926_v38 }
  0xea   :  { %3651 = vmatpush3.bf16.msra.mxu1 %v3925_v39 }
  0xeb   :  { %3652 = vmatprep.subr.bf16.mxu1 %v3927_v40 }
  0xec   :  { %3631 = vmatpush3.bf16.msra.mxu0 %v3928_v42 }
  0xed   :  { %3632 = vmatprep.subr.bf16.mxu0 %v3930_v43 }
  0xee   :  { %3653 = vmatpush3.bf16.msra.mxu1 %v3929_v44 }
  0xef   :  { %3654 = vmatprep.subr.bf16.mxu1 %v3931_v45 }
  0xf0   :  { %3633 = vmatpush3.bf16.msra.mxu0 %v3932_v46 }
  0xf1   :  { %3634 = vmatprep.subr.bf16.mxu0 %v3934_v48 }
  0xf2   :  { %3655 = vmatpush3.bf16.msra.mxu1 %v3933_v47 }
  0xf3   :  { %3656 = vmatprep.subr.bf16.mxu1 %v3935_v49 }
  0xf4   :  { %3635 = vmatpush3.bf16.msra.mxu0 %v3936_v50 }
  0xf5   :  { %3636 = vmatprep.subr.bf16.mxu0 %v3938_v52 }
  0xf6   :  { %3657 = vmatpush3.bf16.msra.mxu1 %v3937_v51  ;;  %v3334_v59 = vpop.f32.mrb[0].mxu0 }
  0xf7   :  { %v3335_v61 = vpop.f32.mrb[1].mxu0  ;;  %3658 = vmatprep.subr.bf16.mxu1 %v3939_v53  ;;  %v3356_v63 = vpop.f32.mrb[0].mxu1 }
  0xf8   :  { %v3336_v0 = vadd.f32 %v3335_v61, %v3334_v59  ;;  %v3337_v1 = vpop.f32.mrb[2].mxu0  ;;  %3637 = vmatpush3.bf16.msra.mxu0 %v3940_v54  ;;  %v3357_v2 = vpop.f32.mrb[1].mxu1 }
  0xf9   :  { %v3338_v3 = vpop.f32.mrb[3].mxu0  ;;  %3638 = vmatprep.subr.bf16.mxu0 %v3942_v56  ;;  %v3358_v5 = vadd.f32 %v3357_v2, %v3356_v63  ;;  %v3359_v6 = vpop.f32.mrb[2].mxu1 }
  0xfa   :  { %v2345_v4 = vadd.f32 %v3336_v0, %v3056_v57  ;;  %3659 = vmatpush3.bf16.msra.mxu1 %v3941_v55 }
  0xfb   :  { %9 = vsyncpa [#allocation3], 0  ;;  %v3360_v8 = vpop.f32.mrb[3].mxu1  ;;  %3660 = vmatprep.subr.bf16.mxu1 %v3943_v58  ;;  %v3947_v9 = vld [vmem:[%s4869_s1 + $0x7f8] sm:$0xff]   ;;  %v723_v12 = vrot.slane %v4721_v19, %v4117_v41  ;;  %v3951_v38 = vld [vmem:[%s4871_s3] sm:$0xff]   ;;  %v3984_v39 = vmov 0.0  }
  0xfc   :  { %v2385_v10 = vadd.f32 %v3358_v5, %v2345_v4  ;;  %3639 = vmatpush3.bf16.msra.mxu0 %v3944_v60  ;;  %v3948_v11 = vld [vmem:[%s4869_s1 + $0x738] sm:$0xff]   ;;  %v3952_v43 = vld [vmem:[%s4871_s3 + $0x8] sm:$0xff]   ;;  %v3953_v53 = vld [vmem:[%s4871_s3 + $0x10] sm:$0xff]   ;;  %vm2984_vm0 = vcmask 1040384   ;;  %vm3985_vm1 = vmmov 0   ;;  %vm2980_vm2 = vcmask 408576  }
  0xfd   :  { %3640 = vmatprep.subr.bf16.mxu0 %v3946_v62  ;;  %v3949_v13 = vld [vmem:[%s4869_s1 + $0x7b8] sm:$0xff]   ;;  %v739_v14 = vcombine.high %v723_v12, %v723_v12  ;;  %vm3028_vm3 = vcmask 74752  }
  0xfe   :  { %3661 = vmatpush3.bf16.msra.mxu1 %v3945_v7  ;;  %v3954_v55 = vld [vmem:[%s4871_s3 + $0x18] ss:$0 sps:$4 sm:$0x11]   ;;  %s3986_s3 = smov [#allocation2]  }
  0xff   :  { %3662 = vmatprep.subr.bf16.mxu1 %v3947_v9  ;;  %v2986_v56 = vsel %vm2984_vm0, %v3954_v55, 0  ;;  %s3048_s20 = sshll.u32 %s3986_s3, 4  ;;  %s3049_s20 = int_to_ptr.vmem [resolvable:$true] %s3048_s20 }
 0x100   :  { %3641 = vmatpush3.bf16.msra.mxu0 %v3948_v11  ;;  %s3959_s0 = scalar_lea.vmem %s3049_s20, 32  ;;  %p3964_p1 = scmp.lt.s32.totalorder %s3049_s20, %s3049_s20 }
 0x101   :  { %3675 = vmatprep.subr.bf16.mxu0 %v3984_v39  ;;  %p3960_p0 = scmp.ne.s32.totalorder %s3049_s20, %s3959_s0  ;;  %p3965_p2 = scmp.lt.s32.totalorder %s3959_s0, %s3959_s0 }
 0x102   :  { %3663 = vmatpush3.bf16.msra.mxu1 %v3949_v13 }
 0x103   :  { %2903 = vmatmul.mubr.bf16.vlgmr.msra.gmra.mrb[28].mxu0 %v723_v12  ;;  %p3966_p3 = por %p3965_p2, %p3964_p1 }
 0x104   :  { %3676 = vmatpush3.bf16.msra.mxu0 %v3951_v38  ;;  %3683 = vmatprep.mubr.msk.bf16.mxu0 %vm3985_vm1, %v3984_v39 }
 0x105   :  { %2943 = vmatmul.mubr.bf16.vlgmr.msra.gmra.mrb[28].mxu1 %v739_v14  ;;  %3677 = vmatprep.subr.bf16.mxu0 %v3984_v39  ;;  %p3967_p4 = pnand %p3966_p3, %p3960_p0 }
 0x108   :  { %3678 = vmatpush3.bf16.msra.mxu0 %v3952_v43 }
 0x109   :  { %3679 = vmatprep.subr.bf16.mxu0 %v3984_v39 }
 0x10c   :  { %3680 = vmatpush3.bf16.msra.mxu0 %v3953_v53 }
 0x10d   :  { %3681 = vmatprep.subr.bf16.mxu0 %v3984_v39 }
 0x110   :  { %3682 = vmatpush3.bf16.msra.mxu0 %v2986_v56 }
 0x116   :  { %v3378_v15 = vpop.f32.mrb[4].mxu0 }
 0x117   :  { %v3379_v16 = vpop.f32.mrb[5].mxu0  ;;  %v3400_v17 = vpop.f32.mrb[4].mxu1 }
 0x118   :  { %v3380_v18 = vadd.f32 %v3379_v16, %v3378_v15  ;;  %v3381_v20 = vpop.f32.mrb[6].mxu0  ;;  %v3401_v21 = vpop.f32.mrb[5].mxu1 }
 0x119   :  { %v3382_v22 = vpop.f32.mrb[7].mxu0  ;;  %v3402_v41 = vadd.f32 %v3401_v21, %v3400_v17  ;;  %v3403_v19 = vpop.f32.mrb[6].mxu1 }
 0x11a   :  { %v2425_v23 = vadd.f32 %v3380_v18, %v2385_v10  ;;  %v3404_v24 = vpop.f32.mrb[7].mxu1 }
 0x11c   :  { %v2465_v25 = vadd.f32 %v3402_v41, %v2425_v23 }
 0x136   :  { %v3422_v26 = vpop.f32.mrb[8].mxu0 }
 0x137   :  { %v3423_v27 = vpop.f32.mrb[9].mxu0 }
 0x138   :  { %v3444_v28 = vpop.f32.mrb[8].mxu1  ;;  %v3424_v29 = vadd.f32 %v3423_v27, %v3422_v26  ;;  %v3425_v30 = vpop.f32.mrb[10].mxu0 }
 0x139   :  { %v3445_v31 = vpop.f32.mrb[9].mxu1  ;;  %v3426_v32 = vpop.f32.mrb[11].mxu0 }
 0x13a   :  { %v2505_v33 = vadd.f32 %v3424_v29, %v2465_v25  ;;  %v3446_v34 = vadd.f32 %v3445_v31, %v3444_v28  ;;  %v3447_v35 = vpop.f32.mrb[10].mxu1 }
 0x13b   :  { %v3448_v36 = vpop.f32.mrb[11].mxu1 }
 0x13c   :  { %v2545_v37 = vadd.f32 %v3446_v34, %v2505_v33 }
 0x156   :  { %v3466_v40 = vpop.f32.mrb[12].mxu0 }
 0x157   :  { %v3467_v42 = vpop.f32.mrb[13].mxu0 }
 0x158   :  { %v3488_v44 = vpop.f32.mrb[12].mxu1  ;;  %v3468_v45 = vadd.f32 %v3467_v42, %v3466_v40  ;;  %v3469_v46 = vpop.f32.mrb[14].mxu0 }
 0x159   :  { %v3489_v47 = vpop.f32.mrb[13].mxu1  ;;  %v3470_v48 = vpop.f32.mrb[15].mxu0 }
 0x15a   :  { %v2585_v49 = vadd.f32 %v3468_v45, %v2545_v37  ;;  %v3490_v50 = vadd.f32 %v3489_v47, %v3488_v44  ;;  %v3491_v51 = vpop.f32.mrb[14].mxu1 }
 0x15b   :  { %v3492_v52 = vpop.f32.mrb[15].mxu1 }
 0x15c   :  { %v2625_v54 = vadd.f32 %v3490_v50, %v2585_v49 }
 0x176   :  { %v3510_v57 = vpop.f32.mrb[16].mxu0 }
 0x177   :  { %v3511_v58 = vpop.f32.mrb[17].mxu0 }
 0x178   :  { %v3532_v59 = vpop.f32.mrb[16].mxu1  ;;  %v3512_v60 = vadd.f32 %v3511_v58, %v3510_v57  ;;  %v3513_v61 = vpop.f32.mrb[18].mxu0 }
 0x179   :  { %v3533_v62 = vpop.f32.mrb[17].mxu1  ;;  %v3514_v63 = vpop.f32.mrb[19].mxu0 }
 0x17a   :  { %v2665_v0 = vadd.f32 %v3512_v60, %v2625_v54  ;;  %v3534_v1 = vadd.f32 %v3533_v62, %v3532_v59  ;;  %v3535_v2 = vpop.f32.mrb[18].mxu1 }
 0x17b   :  { %v3536_v3 = vpop.f32.mrb[19].mxu1 }
 0x17c   :  { %v2705_v4 = vadd.f32 %v3534_v1, %v2665_v0 }
 0x196   :  { %v3554_v5 = vpop.f32.mrb[20].mxu0 }
 0x197   :  { %v3555_v6 = vpop.f32.mrb[21].mxu0 }
 0x198   :  { %v3576_v7 = vpop.f32.mrb[20].mxu1  ;;  %v3556_v8 = vadd.f32 %v3555_v6, %v3554_v5  ;;  %v3557_v9 = vpop.f32.mrb[22].mxu0 }
 0x199   :  { %v3577_v10 = vpop.f32.mrb[21].mxu1  ;;  %v3558_v11 = vpop.f32.mrb[23].mxu0 }
 0x19a   :  { %v2745_v12 = vadd.f32 %v3556_v8, %v2705_v4  ;;  %v3578_v13 = vadd.f32 %v3577_v10, %v3576_v7  ;;  %v3579_v14 = vpop.f32.mrb[22].mxu1 }
 0x19b   :  { %v3580_v15 = vpop.f32.mrb[23].mxu1 }
 0x19c   :  { %v2785_v16 = vadd.f32 %v3578_v13, %v2745_v12 }
 0x1b6   :  { %v3598_v17 = vpop.f32.mrb[24].mxu0 }
 0x1b7   :  { %v3599_v18 = vpop.f32.mrb[25].mxu0 }
 0x1b8   :  { %v3620_v20 = vpop.f32.mrb[24].mxu1  ;;  %v3600_v21 = vadd.f32 %v3599_v18, %v3598_v17  ;;  %v3601_v22 = vpop.f32.mrb[26].mxu0 }
 0x1b9   :  { %v3621_v23 = vpop.f32.mrb[25].mxu1  ;;  %v3602_v41 = vpop.f32.mrb[27].mxu0 }
 0x1ba   :  { %v2825_v19 = vadd.f32 %v3600_v21, %v2785_v16  ;;  %v3622_v24 = vadd.f32 %v3621_v23, %v3620_v20  ;;  %v3623_v25 = vpop.f32.mrb[26].mxu1 }
 0x1bb   :  { %v3624_v26 = vpop.f32.mrb[27].mxu1 }
 0x1bc   :  { %v2865_v27 = vadd.f32 %v3622_v24, %v2825_v19 }
 0x1d6   :  { %v3642_v28 = vpop.f32.mrb[28].mxu0 }
 0x1d7   :  { %v3643_v29 = vpop.f32.mrb[29].mxu0 }
 0x1d8   :  { %v3664_v30 = vpop.f32.mrb[28].mxu1  ;;  %v3644_v31 = vadd.f32 %v3643_v29, %v3642_v28  ;;  %v3645_v32 = vpop.f32.mrb[30].mxu0 }
 0x1d9   :  { %v3665_v33 = vpop.f32.mrb[29].mxu1  ;;  %v3646_v34 = vpop.f32.mrb[31].mxu0 }
 0x1da   :  { %v2905_v35 = vadd.f32 %v3644_v31, %v2865_v27  ;;  %v3666_v36 = vadd.f32 %v3665_v33, %v3664_v30  ;;  %v3667_v37 = vpop.f32.mrb[30].mxu1 }
 0x1db   :  { %v3668_v38 = vpop.f32.mrb[31].mxu1 }
 0x1dc   :  { %v2945_v39 = vadd.f32 %v3666_v36, %v2905_v35 }
 0x1de   :  { %v2950_v40 = vmax.f32 %v2945_v39, 0.0 }
 0x1e0   :  { %v2951_v42 = vpack.c.bf16 %v2950_v40, %v2950_v40 }
 0x1e2   :  { %3684 = vmatmul.mubr.msk.bf16.vlgmr.msra.gmra.mrb[32].mxu0 %vm2980_vm2, %v2951_v42 }
 0x2b5   :  { %v3022_v43 = vpop.f32.mrb[32].mxu0 }
 0x2b6   :  { %v3685_v44 = vpop.f32.mrb[33].mxu0  ;;  %v3029_v45 = vsel %vm3028_vm3, %v3022_v43, -inf }
 0x2b7   :  { %3030 = vmax.xlane.f32.xlu0 %v3029_v45  ;;  %v3025_v46 = vpop.f32.mrb[34].mxu0 }
 0x2b8   :  { %v3686_v47 = vpop.f32.mrb[35].mxu0 }
 0x344   :  { %v3031_v48 = vpop.xlane.xlu0 %3030 }
 0x345   :  { %v3032_v49 = vsub.f32 %v3022_v43, %v3031_v48 }
 0x347   :  { %v3033_v50 = vmul.f32 1.442695, %v3032_v49 }
 0x349   :  { %3955 = vpow2.f32 %v3033_v50 }
 0x353   :  { %v3956_v51 = vpop.eup %3955 }
 0x354   :  { %v3035_v52 = vsel %vm3028_vm3, %v3956_v51, 0.0 }
 0x355   :  { %3036 = vadd.xlane.f32.xlu0 %v3035_v52 }
 0x3e2   :  { %v3037_v53 = vpop.xlane.xlu0 %3036 }
 0x3e3   :  { %3957 = vlog2.f32 %v3037_v53 }
 0x3ed   :  { %v3958_v54 = vpop.eup %3957 }
 0x3ee   :  { %v3039_v55 = vmul.f32 0.6931472, %v3958_v54 }
 0x3f0   :  { %v3040_v56 = vsub.f32 %v3032_v49, %v3039_v55 }
 0x3f2   :  { %3041 = vst.msk [vmem:[#allocation2] sm:$0x3] %vm3028_vm3, %v3040_v56 }
 0x3f3   :  { %3970 = shalt.err (!%p3967_p4)
}
 0x3f4   :  { %s3971_s23 = scalar_lea.hbm %s4872_s4, 32 }
 0x3f5   :  { %p3972_p5 = scmp.ne.s32.totalorder %s4872_s4, %s3971_s23  ;;  %p3975_p6 = scmp.lt.u32.totalorder %s3971_s23, %s4872_s4 }
 0x3f7   :  { %p3977_p7 = pnand %p3975_p6, %p3972_p5 }
 0x3f9   :  { %3980 = shalt.err (!%p3977_p7)
}
 0x3fa   :  { %3051 = dma.vmem_to_hbm [thread:$0]  %s3049_s20, 32, %s4872_s4, [#allocation3]  }
 0x3fb   :  { %3981 = dma.done.wait [#allocation3], 32  }
 0x3fc   :  { %3982 = vsyncadd [#allocation3], 4294967264 }
 0x3fd   :  { %3055 = vsyncpa [#allocation3], 1 }

// kernel: net_forward.2
= control target key start
LH: loop header
LB: loop body
LE: loop exit
PB: predicated region body
PF: predicated region fallthrough
CT: control target
= control target key end

     0   :  { %s8056_s30 = smov 0   ;;  %s14020_s0 = inlined_call_operand.vmem [shape: bf16[2,320,128], index: 0, kind: input, shape index: {}]   ;;  %s14021_s1 = inlined_call_operand.vmem [shape: bf16[128,32], index: 1, kind: input, shape index: {}]   ;;  %s14022_s2 = inlined_call_operand.vmem [shape: f32[1,32], index: 2, kind: input, shape index: {}]   ;;  %s14023_s3 = inlined_call_operand.vmem [shape: f32[1,32], index: 3, kind: input, shape index: {}]   ;;  %s14024_s4 = inlined_call_operand.vmem [shape: f32[1,32], index: 4, kind: input, shape index: {}]   ;;  %s14025_s5 = inlined_call_operand.vmem [shape: bf16[5,160,64], index: 5, kind: input, shape index: {}]   ;;  %s14026_s6 = inlined_call_operand.vmem [shape: f32[1,64], index: 6, kind: input, shape index: {}]   ;;  %s14027_s7 = inlined_call_operand.vmem [shape: f32[1,64], index: 7, kind: input, shape index: {}]   ;;  %s14028_s8 = inlined_call_operand.vmem [shape: f32[1,64], index: 8, kind: input, shape index: {}]   ;;  %s14029_s9 = inlined_call_operand.vmem [shape: bf16[2,64,64], index: 9, kind: output, shape index: {}]  }
   0x1 LB: > { %s7356_s10 = sadd.s32 4294967295, %s8000_s30   ;;  %p7360_p0 = scmp.ge.s32.totalorder %s8000_s30, 1  ;;  %s8000_s30 = sphi %s8056_s30, %s19_s30  }
   0x2   : > { %p287_p1 = scmp.lt.s32.totalorder %s8000_s30, 3 }
   0x4   : > { %p288_p2 = pnand %p7360_p0, %p287_p1 }
   0x6   : > { %291 = sbr.rel (%p288_p2) target bundleno = 1178 (0x49a), region = 56 }
   0xd   : > { %v7844_v0 = vld [vmem:[%s14021_s1] sm:$0xff]   ;;  %p323_p3 = scmp.lt.s32.totalorder %s7356_s10, 1  ;;  %v7845_v1 = vld [vmem:[%s14021_s1 + $0x8] sm:$0xff]   ;;  %vm14034_vm0 = vcmask 261120   ;;  %v7846_v2 = vld [vmem:[%s14021_s1 + $0x10] sm:$0xff]   ;;  %v14035_v3 = vmov 0  }
   0xe   : > { %7675 = vmatprep.subr.bf16.mxu0 %v7844_v0  ;;  %1735 = vst.msk [vmem:[#allocation2 + $0x8] sm:$0xff] %vm14034_vm0, %v14035_v3  ;;  %1736 = vst.msk [vmem:[#allocation2 + $0x10] sm:$0xff] %vm14034_vm0, %v14035_v3  ;;  %7731 = vmatprep.subr.bf16.mxu1 %v14035_v3  ;;  %v7847_v4 = vld [vmem:[%s14021_s1 + $0x18] sm:$0xff]   ;;  %v7848_v6 = vld [vmem:[%s14021_s1 + $0x20] sm:$0xff]   ;;  %vm14033_vm1 = vcmask 1046528   ;;  %s8003_s12 = smov 64  }
   0xf   : > { %s15246_s10 = smov (!%p323_p3, %s7356_s10), 1  ;;  %7676 = vmatpush3.bf16.msra.mxu0 %v7844_v0  ;;  %1734 = vst.msk [vmem:[#allocation2] sm:$0xff] %vm14034_vm0, %v14035_v3  ;;  %1737 = vst.msk [vmem:[#allocation2 + $0xb8] sm:$0xff] %vm14034_vm0, %v14035_v3  ;;  %v7849_v7 = vld [vmem:[%s14021_s1 + $0x28] sm:$0xff]   ;;  %v7850_v8 = vld [vmem:[%s14021_s1 + $0x30] sm:$0xff]   ;;  %s8004_s13 = smov 32  }
  0x10   : > { %7677 = vmatprep.subr.bf16.mxu0 %v7845_v1  ;;  %s7751_s17 = smul.u32 160, %s15246_s10  ;;  %1738 = vst.msk [vmem:[#allocation2 + $0xc0] sm:$0xff] %vm14034_vm0, %v14035_v3  ;;  %1739 = vst.msk [vmem:[#allocation2 + $0xc8] sm:$0xff] %vm14034_vm0, %v14035_v3  ;;  %v7851_v9 = vld [vmem:[%s14021_s1 + $0x38] sm:$0xff]   ;;  %vm14030_vm2 = vsmask.f32 7424 }
  0x11   : > { %vm14031_vm3 = vsmask.f32 6400  ;;  %s8005_s14 = smov 96   ;;  %s7638_s18 = sshll.u32 %s15246_s10, 5 }
  0x12   : > { %s8092_s20 = scalar_lea.vmem %s14020_s0, %s7751_s17  ;;  %s13794_s10 = scalar_lea.vmem %s14029_s9, %s7638_s18 }
  0x13   : > { %7678 = vmatpush3.bf16.msra.mxu0 %v7845_v1  ;;  %v7852_v5 = vld [vmem:[%s8092_s20] sm:$0xff]   ;;  %v7853_v13 = vld [vmem:[%s8092_s20 + $0x8] sm:$0xff]   ;;  %v7854_v18 = vld [vmem:[%s8092_s20 + $0x10] sm:$0xff]  }
  0x14   : > { %7679 = vmatprep.subr.bf16.mxu0 %v7846_v2  ;;  %7691 = vmatprep.mubr.bf16.mxu0 %v7852_v5  ;;  %v7855_v23 = vld [vmem:[%s8092_s20 + $0x18] sm:$0xff]   ;;  %v7856_v24 = vld [vmem:[%s8092_s20 + $0x20] sm:$0xff]   ;;  %v7857_v25 = vld [vmem:[%s8092_s20 + $0x28] sm:$0xff]  }
  0x15   : > { %v8110_v10 = vld [vmem:[#allocation2 + $0x10] sm:$0xff]  ;;  %v8112_v11 = vld [vmem:[#allocation2 + $0x8] sm:$0xc0]  ;;  %v7859_v27 = vld [vmem:[%s8092_s20 + $0x38] sm:$0xff]  }
  0x16   : > { %v8114_v12 = vld [vmem:[#allocation2 + $0x8] sm:$0xff]  ;;  %v8118_v14 = vrot.slane %v8110_v10, 1  ;;  %v2491_v15 = vrot.slane %v8112_v11, 1  ;;  %v8122_v17 = vld [vmem:[#allocation2] sm:$0xf0]  ;;  %v7858_v26 = vld [vmem:[%s8092_s20 + $0x30] sm:$0xff]  }
  0x17   : > { %7680 = vmatpush3.bf16.msra.mxu0 %v7846_v2  ;;  %v2038_v16 = vrot.slane %v8114_v12, 1  ;;  %v2037_v19 = vrot.slane %v8122_v17, 1  ;;  %v7860_v28 = vld [vmem:[%s8092_s20 + $0x40] sm:$0xff]   ;;  %v7861_v29 = vld [vmem:[%s8092_s20 + $0x48] sm:$0xff]   ;;  %v7862_v30 = vld [vmem:[%s8092_s20 + $0x50] sm:$0xff]   ;;  %v1822_v41 = vshll.u32 %v8110_v10, 16 }
  0x18   : > { %7681 = vmatprep.subr.bf16.mxu0 %v7847_v4  ;;  %14197 = vst [vmem:[#allocation4_spill] sm:$0xff] %v8118_v14  ;;  %v2492_v20 = vsel %vm14033_vm1, %v2491_v15, %v8118_v14  ;;  %v7863_v31 = vld [vmem:[%s8092_s20 + $0x58] sm:$0xff]   ;;  %v7864_v32 = vld [vmem:[%s8092_s20 + $0x60] sm:$0xff]   ;;  %v7865_v33 = vld [vmem:[%s8092_s20 + $0x68] sm:$0xff]   ;;  %v1826_v43 = vshrl.u32 %v8110_v10, 16  ;;  %v2506_v44 = vshrl.u32 %v8112_v11, 16 }
  0x19   : > { %2497 = vrot.lane.b32.xlu0 %v2492_v20, %s8003_s12  ;;  %v2039_v21 = vsel %vm14033_vm1, %v2037_v19, %v2038_v16  ;;  %v2041_v22 = vsel %vm14033_vm1, %v2038_v16, %v8118_v14  ;;  %v7866_v34 = vld [vmem:[%s8092_s20 + $0x70] sm:$0xff]   ;;  %v7867_v35 = vld [vmem:[%s8092_s20 + $0x78] sm:$0xff]   ;;  %v7868_v36 = vld [vmem:[%s8092_s20 + $0x80] sm:$0xff]   ;;  %v2134_v47 = vrot.slane %v1822_v41, 2  ;;  %v2509_v48 = vshll.u32 %v8112_v11, 16 }
  0x1a   : > { %2078 = vrot.lane.b32.xlu1 %v2039_v21, %s8003_s12  ;;  %v7869_v37 = vld [vmem:[%s8092_s20 + $0x88] sm:$0xff]   ;;  %v7870_v38 = vld [vmem:[%s8092_s20 + $0x90] sm:$0xff]   ;;  %v7871_v39 = vld [vmem:[%s8092_s20 + $0x98] sm:$0xff]   ;;  %v2133_v49 = vrot.slane %v1826_v43, 1  ;;  %v2508_v50 = vrot.slane %v2506_v44, 1  ;;  %v1824_v51 = vrot.slane %v1822_v41, 1  ;;  %v892_v20 = vlaneseq }
  0x1b   : > { %7682 = vmatpush3.bf16.msra.mxu0 %v7847_v4  ;;  %v2449_v40 = vld [vmem:[#allocation2 + $0x8] sm:$0xe0]  ;;  %v2511_v53 = vrot.slane %v2509_v48, 2  ;;  %v1814_v55 = vshll.u32 %v8114_v12, 16  ;;  %v1780_v58 = vld [vmem:[#allocation2] sm:$0xf8] }
  0x1c   : > { %7683 = vmatprep.subr.bf16.mxu0 %v7848_v6  ;;  %v2459_v42 = vshll.u32 %v2449_v40, 16  ;;  %v2457_v45 = vshrl.u32 %v2449_v40, 16  ;;  %v8156_v54 = vor.u32 %v2134_v47, %v2133_v49  ;;  %v1818_v61 = vshrl.u32 %v8114_v12, 16 }
  0x1d   : > { %2080 = vrot.lane.b32.xlu0 %v2041_v22, %s8003_s12  ;;  %v2512_v57 = vor.u32 %v2511_v53, %v2508_v50  ;;  %v1816_v60 = vrot.slane %v1814_v55, 1  ;;  %v1809_v62 = vshll.u32 %v1780_v58, 16  ;;  %v1807_v63 = vshrl.u32 %v1780_v58, 16 }
  0x1e   : > { %v2461_v46 = vrot.slane %v2459_v42, 1  ;;  %14198 = vst [vmem:[#allocation5_spill] sm:$0xff] %v8156_v54  ;;  %v2129_v5 = vrot.slane %v1818_v61, 1  ;;  %v2125_v11 = vshll.u32 %v8122_v17, 16  ;;  %v8176_v19 = vor.u32 %v1826_v43, %v1824_v51 }
  0x1f   : > { %7684 = vmatpush3.bf16.msra.mxu0 %v7848_v6  ;;  %v2513_v59 = vsel %vm14031_vm3, %v2512_v57, %v8156_v54  ;;  %v1820_v0 = vor.u32 %v1818_v61, %v1816_v60  ;;  %v1811_v1 = vrot.slane %v1809_v62, 1  ;;  %v8178_v21 = vshrl.u32 %v892_v20, 7 }
  0x20   : > { %7685 = vmatprep.subr.bf16.mxu0 %v7849_v7  ;;  %v2462_v52 = vor.u32 %v2461_v46, %v2457_v45  ;;  %2527 = vrot.lane.b32.xlu1 %v2513_v59, %s8005_s14  ;;  %v2127_v15 = vrot.slane %v2125_v11, 2  ;;  %14199 = vst [vmem:[#allocation6_spill] sm:$0xff] %v8176_v19  ;;  %v14292_v11 = vmov 0 }
  0x21   : > { %v1825_v2 = vsel %vm14030_vm2, %v1820_v0, %v1824_v51  ;;  %v1812_v4 = vor.u32 %v1811_v1, %v1807_v63  ;;  %14200 = vst [vmem:[#allocation7_spill] sm:$0xff] %v8178_v21  ;;  %v895_v22 = vadd.s32 16, %v8178_v21  ;;  %v8211_v43 = vadd.s32 40, %v8178_v21 }
  0x22   : > { %v2463_v56 = vsel %vm14030_vm2, %v2462_v52, %v1824_v51  ;;  %v8227_v57 = vadd.s32 80, %v8178_v21  ;;  %v8243_v1 = vadd.s32 64, %v8178_v21 }
  0x23   : > { %7686 = vmatpush3.bf16.msra.mxu0 %v7849_v7  ;;  %2480 = vrot.lane.b32.xlu0 %v2463_v56, %s8004_s13  ;;  %v1817_v6 = vsel %vm14030_vm2, %v1812_v4, %v1816_v60  ;;  %v2130_v7 = vrot.slane %v1814_v55, 2  ;;  %v8216_v48 = vmul.u32.u64.low 3435973837, %v8211_v43  ;;  %v8217_v49 = vmul.u32.u64.high 3435973837, %v8211_v43, %v8216_v48 }
  0x24   : > { %7687 = vmatprep.subr.bf16.mxu0 %v7850_v8  ;;  %1973 = vrot.lane.b32.xlu1 %v1817_v6, %s8004_s13  ;;  %v8239_v63 = vmul.u32.u64.low 3435973837, %v8227_v57  ;;  %v8240_v0 = vmul.u32.u64.high 3435973837, %v8227_v57, %v8239_v63  ;;  %v8250_v6 = vadd.s32 72, %v8178_v21 }
  0x27   : > { %7688 = vmatpush3.bf16.msra.mxu0 %v7850_v8  ;;  %1975 = vrot.lane.b32.xlu0 %v1825_v2, %s8004_s13  ;;  %v2122_v8 = vshrl.u32 %v8122_v17, 16  ;;  %v8246_v2 = vadd.s32 88, %v8178_v21 }
  0x28   : > { %7689 = vmatprep.subr.bf16.mxu0 %v7851_v9 }
  0x29   : > { %v2124_v12 = vrot.slane %v2122_v8, 1 }
  0x2b   : > { %7690 = vmatpush3.bf16.msra.mxu0 %v7851_v9  ;;  %v2131_v9 = vor.u32 %v2130_v7, %v2129_v5  ;;  %v2128_v16 = vor.u32 %v2127_v15, %v2124_v12  ;;  %v994_v5 = vshrl.u32 %v8217_v49, 4  ;;  %v14216_v49 = vmov 0 }
  0x2c   : > { %2833 = vmatprep.subr.bf16.mxu0 %v14035_v3 }
  0x2e   : > { %7692 = vmatmul.mubr.bf16.vlgmr.msra.gmra.mrb[0].mxu0 %v7853_v13  ;;  %v2136_v13 = vsel %vm14031_vm3, %v2131_v9, %v8156_v54 }
  0x2f   : > { %7695 = vmatprep.mubr.bf16.mxu0 %v7854_v18  ;;  %2216 = vrot.lane.b32.xlu0 %v2136_v13, %s8005_s14  ;;  %v2132_v18 = vsel %vm14031_vm3, %v2128_v16, %v2131_v9  ;;  %v8279_v15 = vmul.u32.u64.low 3435973837, %v8243_v1  ;;  %v8280_v16 = vmul.u32.u64.high 3435973837, %v8243_v1, %v8279_v15 }
  0x30   : > { %2214 = vrot.lane.b32.xlu1 %v2132_v18, %s8005_s14  ;;  %v8283_v18 = vmul.u32.u64.low 3435973837, %v8246_v2  ;;  %v8284_v20 = vmul.u32.u64.high 3435973837, %v8246_v2, %v8283_v18 }
  0x36   : > { %7696 = vmatmul.mubr.bf16.gmra.mrb[4].mxu0 %v7855_v23  ;;  %v8181_v17 = vmul.u32.u64.low 3435973837, %v895_v22  ;;  %v8182_v23 = vmul.u32.u64.high 3435973837, %v895_v22, %v8181_v17 }
  0x37   : > { %7699 = vmatprep.mubr.bf16.mxu0 %v7856_v24  ;;  %v995_v17 = vmul.u32 20, %v994_v5 }
  0x3e   : > { %7700 = vmatmul.mubr.bf16.gmra.mrb[8].mxu0 %v7857_v25  ;;  %v8185_v24 = vmul.u32.u64.low 3435973837, %v8178_v21  ;;  %v8186_v25 = vmul.u32.u64.high 3435973837, %v8178_v21, %v8185_v24 }
  0x3f   : > { %7703 = vmatprep.mubr.bf16.mxu0 %v7858_v26  ;;  %v896_v26 = vadd.s32 24, %v8178_v21 }
  0x46   : > { %7704 = vmatmul.mubr.bf16.gmra.mrb[12].mxu0 %v7859_v27  ;;  %v894_v27 = vadd.s32 8, %v8178_v21 }
  0x47   : > { %7707 = vmatprep.mubr.bf16.mxu0 %v7860_v28 }
  0x4e   : > { %7708 = vmatmul.mubr.bf16.gmra.mrb[16].mxu0 %v7861_v29  ;;  %v8190_v28 = vmul.u32.u64.low 3435973837, %v896_v26  ;;  %v8191_v29 = vmul.u32.u64.high 3435973837, %v896_v26, %v8190_v28 }
  0x4f   : > { %7711 = vmatprep.mubr.bf16.mxu0 %v7862_v30  ;;  %v8301_v28 = vadd.s32 112, %v8178_v21 }
  0x50   : > { %v972_v46 = vshrl.u32 %v8191_v29, 4 }
  0x52   : > { %v973_v52 = vmul.u32 20, %v972_v46 }
  0x54   : > { %v8233_v59 = vsub.s32 %v896_v26, %v973_v52  ;;  %v1060_v52 = vshrl.u32 %v8284_v20, 4  ;;  %v14218_v20 = vmov 0 }
  0x56   : > { %7712 = vmatmul.mubr.bf16.gmra.mrb[20].mxu0 %v7863_v31  ;;  %v8193_v30 = vmul.u32.u64.low 3435973837, %v894_v27  ;;  %v8194_v31 = vmul.u32.u64.high 3435973837, %v894_v27, %v8193_v30  ;;  %vm1376_vm9 = vcmp.ne.s32.totalorder %v8233_v59, 0  ;;  %vm1416_vm10 = vcmp.lt.s32.totalorder %v8233_v59, 0 }
  0x57   : > { %7715 = vmatprep.mubr.bf16.mxu0 %v7864_v32  ;;  %v899_v32 = vadd.s32 48, %v8178_v21  ;;  %vm8307_vm14 = vmand %vm1416_vm10, %vm1376_vm9  ;;  %v8312_v30 = vadd.s32 20, %v8233_v59  ;;  %vm14032_vm10 = vcmask 1045504  }
  0x58   : > { %v950_v47 = vshrl.u32 %v8194_v31, 4 }
  0x5a   : > { %v951_v53 = vmul.u32 20, %v950_v47  ;;  %v1027_v47 = vshrl.u32 %v8280_v16, 4 }
  0x5c   : > { %v8236_v60 = vsub.s32 %v894_v27, %v951_v53  ;;  %v1028_v18 = vmul.u32 20, %v1027_v47  ;;  %v14227_v27 = vmov 0 }
  0x5e   : > { %7716 = vmatmul.mubr.bf16.gmra.mrb[24].mxu0 %v7865_v33  ;;  %v897_v33 = vadd.s32 32, %v8178_v21  ;;  %vm1374_vm12 = vcmp.ne.s32.totalorder %v8236_v60, 0  ;;  %vm1414_vm13 = vcmp.lt.s32.totalorder %v8236_v60, 0  ;;  %v8315_v31 = vadd.s32 20, %v8236_v60 }
  0x5f   : > { %7719 = vmatprep.mubr.bf16.mxu0 %v7866_v34  ;;  %v900_v34 = vadd.s32 56, %v8178_v21 }
  0x61   : > { %v8207_v41 = vmul.u32.u64.low 3435973837, %v900_v34  ;;  %v8208_v42 = vmul.u32.u64.high 3435973837, %v900_v34, %v8207_v41 }
  0x63   : > { %v1016_v58 = vshrl.u32 %v8208_v42, 4 }
  0x65   : > { %v1017_v4 = vmul.u32 20, %v1016_v58 }
  0x66   : > { %7720 = vmatmul.mubr.bf16.gmra.mrb[28].mxu0 %v7867_v35  ;;  %v961_v35 = vshrl.u32 %v8182_v23, 4  ;;  %v8289_v23 = vmul.u32.u64.low 3435973837, %v8250_v6  ;;  %v8290_v24 = vmul.u32.u64.high 3435973837, %v8250_v6, %v8289_v23 }
  0x67   : > { %7723 = vmatprep.mubr.bf16.mxu0 %v7868_v36  ;;  %v939_v36 = vshrl.u32 %v8186_v25, 4  ;;  %v2455_v25 = vld [vmem:[#allocation2 + $0x8] sm:$0x80]  ;;  %v8429_v23 = vld [vmem:[#allocation2 + $0x10] sm:$0x80] }
  0x68   : > { %v962_v44 = vmul.u32 20, %v961_v35  ;;  %v2537_v35 = vrot.slane %v2455_v25, 2  ;;  %v1038_v53 = vshrl.u32 %v8290_v24, 4  ;;  %14220 = vst [vmem:[#allocation11_spill] sm:$0xff] %v8429_v23 }
  0x69   : > { %v940_v45 = vmul.u32 20, %v939_v36  ;;  %v8335_v36 = vsub.s32 %v8211_v43, %v995_v17  ;;  %v1061_v17 = vmul.u32 20, %v1060_v52  ;;  %v8448_v52 = vadd.s32 152, %v8178_v21 }
  0x6a   : > { %v8219_v50 = vsub.s32 %v895_v22, %v962_v44  ;;  %v8286_v22 = vsub.s32 %v900_v34, %v1017_v4  ;;  %v8330_v34 = vrot.slane %v8110_v10, 2  ;;  %v14213_v44 = vmov 0 }
  0x6b   : > { %v8222_v51 = vsub.s32 %v8178_v21, %v940_v45  ;;  %14210 = vst [vmem:[#allocation9_spill] sm:$0xff] %v8335_v36  ;;  %v8411_v4 = vadd.s32 144, %v8178_v21  ;;  %v8418_v15 = vadd.s32 20, %v8335_v36 }
  0x6c   : > { %vm1375_vm4 = vcmp.ne.s32.totalorder %v8219_v50, 0  ;;  %vm1415_vm5 = vcmp.lt.s32.totalorder %v8219_v50, 0  ;;  %v8257_v8 = vadd.s32 20, %v8219_v50  ;;  %14209 = vst [vmem:[#allocation8_spill] sm:$0xff] %v8330_v34  ;;  %vm1380_vm9 = vcmp.ne.s32.totalorder %v8286_v22, 0 }
  0x6d   : > { %vm1373_vm6 = vcmp.ne.s32.totalorder %v8222_v51, 0  ;;  %vm1413_vm7 = vcmp.lt.s32.totalorder %v8222_v51, 0  ;;  %vm8252_vm8 = vmand %vm1415_vm5, %vm1375_vm4  ;;  %v8260_v9 = vadd.s32 20, %v8222_v51  ;;  %v8374_v45 = vadd.s32 20, %v8286_v22 }
  0x6e   : > { %7724 = vmatmul.mubr.bf16.gmra.mrb[32].mxu0 %v7869_v37  ;;  %vm8268_vm11 = vmand %vm1413_vm7, %vm1373_vm6  ;;  %v8379_v48 = vsel %vm14032_vm10, %v2537_v35, %v8330_v34  ;;  %v1039_v35 = vmul.u32 20, %v1038_v53 }
  0x6f   : > { %7727 = vmatprep.mubr.bf16.mxu0 %v7870_v38  ;;  %v8201_v37 = vmul.u32.u64.low 3435973837, %v899_v32  ;;  %v8202_v38 = vmul.u32.u64.high 3435973837, %v899_v32, %v8201_v37  ;;  %vm8323_vm5 = vmand %vm1414_vm13, %vm1374_vm12  ;;  %vm1420_vm12 = vcmp.lt.s32.totalorder %v8286_v22, 0  ;;  %14215 = vst [vmem:[#allocation10_spill] sm:$0xff] %v8379_v48 }
  0x70   : > { %v8474_v53 = vsub.s32 %v8250_v6, %v1039_v35  ;;  %v8493_v6 = vadd.s32 184, %v8178_v21 }
  0x71   : > { %v1005_v55 = vshrl.u32 %v8202_v38, 4  ;;  %v8339_v37 = vmul.u32.u64.low 3435973837, %v8301_v28  ;;  %v8340_v38 = vmul.u32.u64.high 3435973837, %v8301_v28, %v8339_v37 }
  0x72   : > { %14223 = vst [vmem:[#allocation14_spill] sm:$0xff] %v8474_v53  ;;  %vm1382_vm1 = vcmp.ne.s32.totalorder %v8474_v53, 0  ;;  %v8553_v19 = vadd.s32 20, %v8474_v53 }
  0x73   : > { %v1006_v61 = vmul.u32 20, %v1005_v55  ;;  %v8391_v55 = vadd.s32 120, %v8178_v21 }
  0x74   : > { %14235 = vst [vmem:[#allocation19_spill] sm:$0xff] %v8553_v19 }
  0x75   : > { %v8274_v12 = vsub.s32 %v899_v32, %v1006_v61  ;;  %v8399_v61 = vadd.s32 104, %v8178_v21  ;;  %v8432_v24 = vmul.u32.u64.low 3435973837, %v8391_v55  ;;  %v8433_v25 = vmul.u32.u64.high 3435973837, %v8391_v55, %v8432_v24  ;;  %v8851_v32 = vld [vmem:[%s14023_s3] ss:$0 sm:$0xff] }
  0x76   : > { %7728 = vmatmul.mubr.bf16.gmra.mrb[36].mxu0 %v7871_v39  ;;  %v8204_v39 = vmul.u32.u64.low 3435973837, %v897_v33  ;;  %v8205_v40 = vmul.u32.u64.high 3435973837, %v897_v33, %v8204_v39 }
  0x77   : > { %vm1379_vm15 = vcmp.ne.s32.totalorder %v8274_v12, 0  ;;  %vm1419_vm4 = vcmp.lt.s32.totalorder %v8274_v12, 0  ;;  %v8343_v39 = vadd.s32 96, %v8178_v21  ;;  %v8362_v42 = vadd.s32 20, %v8274_v12 }
  0x78   : > { %v983_v56 = vshrl.u32 %v8205_v40, 4  ;;  %vm8357_vm13 = vmand %vm1419_vm4, %vm1379_vm15  ;;  %vm1378_vm4 = vcmp.ne.s32.totalorder %v8335_v36, 0 }
  0x79   : > { %vm8383_vm15 = vmand %vm1420_vm12, %vm1380_vm9 }
  0x7a   : > { %v984_v62 = vmul.u32 20, %v983_v56  ;;  %v14217_v49 = vsel %vm8383_vm15, 4294967295, %v14216_v49  ;;  %v8395_v56 = vmul.u32.u64.low 3435973837, %v8343_v39  ;;  %v8396_v58 = vmul.u32.u64.high 3435973837, %v8343_v39, %v8395_v56 }
  0x7b   : > { %v8444_v47 = vmul.u32.u64.low 3435973837, %v8411_v4  ;;  %v8445_v56 = vmul.u32.u64.high 3435973837, %v8411_v4, %v8444_v47 }
  0x7c   : > { %v8276_v13 = vsub.s32 %v897_v33, %v984_v62  ;;  %v1049_v33 = vshrl.u32 %v8240_v0, 4  ;;  %v8451_v0 = vadd.s32 136, %v8178_v21  ;;  %v8466_v47 = vsub.s32 %v8246_v2, %v1061_v17 }
  0x7d   : > { %v8478_v24 = vmul.u32.u64.low 3435973837, %v8448_v52  ;;  %v8479_v62 = vmul.u32.u64.high 3435973837, %v8448_v52, %v8478_v24 }
  0x7e   : > { %vm1377_vm6 = vcmp.ne.s32.totalorder %v8276_v13, 0  ;;  %vm1417_vm7 = vcmp.lt.s32.totalorder %v8276_v13, 0  ;;  %v8365_v43 = vadd.s32 20, %v8276_v13  ;;  %v1050_v46 = vmul.u32 20, %v1049_v33  ;;  %14222 = vst [vmem:[#allocation13_spill] sm:$0xff] %v8466_v47 }
  0x7f   : > { %vm8369_vm2 = vmand %vm1417_vm7, %vm1377_vm6  ;;  %vm1418_vm6 = vcmp.lt.s32.totalorder %v8335_v36, 0  ;;  %v8436_v33 = vadd.s32 128, %v8178_v21  ;;  %v8482_v40 = vmul.u32.u64.low 3435973837, %v8451_v0  ;;  %v8483_v2 = vmul.u32.u64.high 3435973837, %v8451_v0, %v8482_v40 }
  0x80   : > { %v14214_v44 = vsel %vm8369_vm2, 4294967295, %v14213_v44  ;;  %v8421_v16 = vsub.s32 %v8227_v57, %v1050_v46  ;;  %vm8425_vm7 = vmand %vm1418_vm6, %vm1378_vm4  ;;  %v1093_v57 = vshrl.u32 %v8340_v38, 4  ;;  %v8458_v38 = vsub.s32 %v8243_v1, %v1028_v18 }
  0x81   : > { %v14219_v20 = vsel %vm8425_vm7, 4294967295, %v14218_v20  ;;  %v8440_v37 = vmul.u32.u64.low 3435973837, %v8399_v61  ;;  %v8441_v46 = vmul.u32.u64.high 3435973837, %v8399_v61, %v8440_v37  ;;  %v1071_v18 = vshrl.u32 %v8396_v58, 4 }
  0x82   : > { %14221 = vst [vmem:[#allocation12_spill] sm:$0xff] %v8458_v38  ;;  %v8462_v37 = vadd.s32 176, %v8178_v21  ;;  %vm1383_vm9 = vcmp.ne.s32.totalorder %v8421_v16, 0  ;;  %v8469_v5 = vmul.u32.u64.low 3435973837, %v8436_v33  ;;  %v8470_v63 = vmul.u32.u64.high 3435973837, %v8436_v33, %v8469_v5 }
  0x83   : > { %vm1423_vm12 = vcmp.lt.s32.totalorder %v8421_v16, 0  ;;  %v1094_v1 = vmul.u32 20, %v1093_v57  ;;  %v8490_v5 = vadd.s32 160, %v8178_v21  ;;  %vm1381_vm4 = vcmp.ne.s32.totalorder %v8458_v38, 0 }
  0x84   : > { %v8486_v17 = vmul.u32.u64.low 3435973837, %v8462_v37  ;;  %v8487_v10 = vmul.u32.u64.high 3435973837, %v8462_v37, %v8486_v17  ;;  %vm1421_vm6 = vcmp.lt.s32.totalorder %v8458_v38, 0  ;;  %vm1384_vm3 = vcmp.ne.s32.totalorder %v8466_v47, 0  ;;  %vm8514_vm10 = vmand %vm1423_vm12, %vm1383_vm9 }
  0x85   : > { %v1104_v58 = vshrl.u32 %v8433_v25, 4  ;;  %v1072_v40 = vmul.u32 20, %v1071_v18  ;;  %v1082_v35 = vshrl.u32 %v8441_v46, 4  ;;  %v8504_v57 = vsub.s32 %v8301_v28, %v1094_v1  ;;  %vm8533_vm0 = vmand %vm1421_vm6, %vm1381_vm4 }
  0x86   : > { %v1137_v24 = vshrl.u32 %v8445_v56, 4  ;;  %v8508_v17 = vadd.s32 168, %v8178_v21  ;;  %v14225_v25 = vmov 0  ;;  %v8527_v56 = vadd.s32 20, %v8421_v16 }
  0x87   : > { %14224 = vst [vmem:[#allocation15_spill] sm:$0xff] %v8504_v57  ;;  %v14226_v25 = vsel %vm8514_vm10, 4294967295, %v14225_v25  ;;  %v8519_v46 = vmul.u32.u64.low 3435973837, %v8490_v5  ;;  %v8520_v18 = vmul.u32.u64.high 3435973837, %v8490_v5, %v8519_v46  ;;  %v14228_v27 = vsel %vm8533_vm0, 4294967295, %v14227_v27 }
  0x88   : > { %v8523_v28 = vmul.u32.u64.low 3435973837, %v8493_v6  ;;  %v8524_v1 = vmul.u32.u64.high 3435973837, %v8493_v6, %v8523_v28  ;;  %14229 = vst [vmem:[#allocation16_spill] sm:$0xff] %v14228_v27  ;;  %v8538_v26 = vadd.s32 20, %v8458_v38  ;;  %v1105_v3 = vmul.u32 20, %v1104_v58 }
  0x89   : > { %v1115_v46 = vshrl.u32 %v8470_v63, 4  ;;  %vm14230_vm9 = vcmp.lt.s32.totalorder %v8466_v47, 0  ;;  %v14231_v28 = vmov 0  ;;  %v8550_v23 = vadd.s32 20, %v8466_v47 }
  0x8a   : > { %vm8545_vm12 = vmand %vm14230_vm9, %vm1384_vm3  ;;  %v8556_v54 = vsub.s32 %v8343_v39, %v1072_v40  ;;  %v1083_v58 = vmul.u32 20, %v1082_v35  ;;  %vm14236_vm4 = vcmp.lt.s32.totalorder %v8474_v53, 0  ;;  %v14237_v63 = vmov 0 }
  0x8b   : > { %v14232_v28 = vsel %vm8545_vm12, 4294967295, %v14231_v28  ;;  %14234 = vst [vmem:[#allocation18_spill] sm:$0xff] %v8550_v23  ;;  %vm8562_vm6 = vmand %vm14236_vm4, %vm1382_vm1  ;;  %vm1387_vm3 = vcmp.ne.s32.totalorder %v8504_v57, 0  ;;  %v1138_v14 = vmul.u32 20, %v1137_v24  ;;  %v1148_v48 = vshrl.u32 %v8479_v62, 4 }
  0x8c   : > { %14233 = vst [vmem:[#allocation17_spill] sm:$0xff] %v14232_v28  ;;  %v14238_v63 = vsel %vm8562_vm6, 4294967295, %v14237_v63  ;;  %v1126_v34 = vshrl.u32 %v8483_v2, 4  ;;  %vm1427_vm9 = vcmp.lt.s32.totalorder %v8504_v57, 0  ;;  %v1181_v39 = vshrl.u32 %v8487_v10, 4 }
  0x8d   : > { %14239 = vst [vmem:[#allocation20_spill] sm:$0xff] %v14238_v63  ;;  %v8572_v40 = vmul.u32.u64.low 3435973837, %v8508_v17  ;;  %v8573_v35 = vmul.u32.u64.high 3435973837, %v8508_v17, %v8572_v40  ;;  %v8584_v2 = vsub.s32 %v8391_v55, %v1105_v3  ;;  %v1116_v24 = vmul.u32 20, %v1115_v46  ;;  %vm8602_vm1 = vmand %vm1427_vm9, %vm1387_vm3  ;;  %v8740_v23 = vld [vmem:[%s14022_s2] ss:$0 sm:$0xff] }
  0x8e   : > { %v8595_v36 = vadd.s32 20, %v8504_v57  ;;  %v8598_v27 = vsub.s32 %v8399_v61, %v1083_v58  ;;  %v14242_v3 = vmov 0  ;;  %v8608_v55 = vsub.s32 %v8411_v4, %v1138_v14 }
  0x8f   : > { %14240 = vst [vmem:[#allocation21_spill] sm:$0xff] %v8584_v2  ;;  %v14243_v3 = vsel %vm8602_vm1, 4294967295, %v14242_v3  ;;  %v1149_v46 = vmul.u32 20, %v1148_v48  ;;  %v1127_v10 = vmul.u32 20, %v1126_v34  ;;  %v1159_v62 = vshrl.u32 %v8520_v18, 4 }
  0x90   : > { %14241 = vst [vmem:[#allocation22_spill] sm:$0xff] %v8595_v36  ;;  %14244 = vst [vmem:[#allocation23_spill] sm:$0xff] %v14243_v3  ;;  %v1182_v40 = vmul.u32 20, %v1181_v39  ;;  %v1192_v61 = vshrl.u32 %v8524_v1, 4  ;;  %v8614_v58 = vadd.s32 20, %v8556_v54  ;;  %v8619_v53 = vsub.s32 %v8436_v33, %v1116_v24 }
  0x91   : > { %v8626_v34 = vadd.s32 20, %v8584_v2  ;;  %v8631_v48 = vadd.s32 20, %v8598_v27  ;;  %v8635_v4 = vsub.s32 %v8448_v52, %v1149_v46  ;;  %v8638_v33 = vsub.s32 %v8451_v0, %v1127_v10  ;;  %v7872_v0 = vld [vmem:[%s14025_s5 + $0x50] sm:$0xff]  }
  0x92   : > { %14245 = vst [vmem:[#allocation24_spill] sm:$0xff] %v8619_v53  ;;  %v8641_v18 = vsub.s32 %v8462_v37, %v1182_v40  ;;  %v1160_v1 = vmul.u32 20, %v1159_v62  ;;  %v1193_v39 = vmul.u32 20, %v1192_v61  ;;  %v1170_v24 = vshrl.u32 %v8573_v35, 4  ;;  %2834 = vmatpush1.bf16.msra.mxu0 %v7872_v0  ;;  %7741 = vmatpush1.bf16.msra.mxu1 %v7872_v0 }
  0x93   : > { %14246 = vst [vmem:[#allocation25_spill] sm:$0xff] %v8626_v34  ;;  %14247 = vst [vmem:[#allocation26_spill] sm:$0xff] %v8635_v4  ;;  %v8646_v14 = vadd.s32 20, %v8608_v55  ;;  %v8650_v52 = vadd.s32 208, %v8178_v21  ;;  %vm14250_vm6 = vcmp.ne.s32.totalorder %v8556_v54, 0  ;;  %vm14251_vm3 = vcmp.lt.s32.totalorder %v8556_v54, 0 }
  0x94   : > { %14248 = vst [vmem:[#allocation27_spill] sm:$0xff] %v8638_v33  ;;  %14249 = vst [vmem:[#allocation28_spill] sm:$0xff] %v8641_v18  ;;  %v8665_v35 = vadd.s32 20, %v8619_v53  ;;  %v8668_v62 = vadd.s32 192, %v8178_v21  ;;  %v8671_v10 = vadd.s32 216, %v8178_v21  ;;  %vm14255_vm9 = vcmp.ne.s32.totalorder %v8584_v2, 0 }
  0x95   : > { %vm8659_vm1 = vmand %vm14251_vm3, %vm14250_vm6  ;;  %vm14256_vm12 = vcmp.lt.s32.totalorder %v8584_v2, 0  ;;  %vm1392_vm6 = vcmp.ne.s32.totalorder %v8635_v4, 0  ;;  %vm1432_vm3 = vcmp.lt.s32.totalorder %v8635_v4, 0  ;;  %vm1390_vm4 = vcmp.ne.s32.totalorder %v8638_v33, 0 }
  0x96   : > { %14254 = vst [vmem:[#allocation29_spill] sm:$0xff] %v8671_v10  ;;  %vm8677_vm0 = vmand %vm14256_vm12, %vm14255_vm9  ;;  %vm14259_vm7 = vcmp.ne.s32.totalorder %v8598_v27, 0  ;;  %vm14260_vm15 = vcmp.lt.s32.totalorder %v8598_v27, 0  ;;  %v14261_v46 = vmov 0  ;;  %v8695_v61 = vsub.s32 %v8490_v5, %v1160_v1 }
  0x97   : > { %vm8689_vm2 = vmand %vm14260_vm15, %vm14259_vm7  ;;  %v8698_v57 = vsub.s32 %v8493_v6, %v1193_v39  ;;  %v1171_v36 = vmul.u32 20, %v1170_v24  ;;  %v14263_v3 = vmov 0   ;;  %vm14264_vm9 = vcmp.ne.s32.totalorder %v8608_v55, 0  ;;  %v7873_v39 = vld [vmem:[%s14025_s5 + $0x58] sm:$0xff]  }
  0x98   : > { %v14262_v46 = vsel %vm8689_vm2, 4294967295, %v14261_v46  ;;  %2835 = vmatprep.subr.bf16.mxu0 %v14263_v3  ;;  %7732 = vmatprep.subr.bf16.mxu1 %v14263_v3  ;;  %vm14265_vm15 = vcmp.lt.s32.totalorder %v8608_v55, 0  ;;  %v14266_v0 = vmov 0  ;;  %vm1435_vm12 = vcmp.lt.s32.totalorder %v8641_v18, 0 }
  0x99   : > { %vm8706_vm7 = vmand %vm14265_vm15, %vm14264_vm9  ;;  %v8712_v5 = vmul.u32.u64.low 3435973837, %v8650_v52  ;;  %v8713_v1 = vmul.u32.u64.high 3435973837, %v8650_v52, %v8712_v5  ;;  %v8716_v6 = vadd.s32 200, %v8178_v21  ;;  %vm14268_vm10 = vcmp.ne.s32.totalorder %v8619_v53, 0  ;;  %2836 = vmatpush1.bf16.msra.mxu0 %v7873_v39  ;;  %7742 = vmatpush1.bf16.msra.mxu1 %v7873_v39 }
  0x9a   : > { %v14267_v0 = vsel %vm8706_vm7, 4294967295, %v14266_v0  ;;  %vm14269_vm9 = vcmp.lt.s32.totalorder %v8619_v53, 0  ;;  %v8730_v19 = vmul.u32.u64.low 3435973837, %v8668_v62  ;;  %v8731_v63 = vmul.u32.u64.high 3435973837, %v8668_v62, %v8730_v19  ;;  %2837 = vmatprep.subr.bf16.mxu0 %v14263_v3  ;;  %7733 = vmatprep.subr.bf16.mxu1 %v14263_v3  ;;  %v14373_v37 = vld [vmem:[#allocation25_spill] sm:$0xff] }
  0x9b   : > { %vm8725_vm15 = vmand %vm14269_vm9, %vm14268_vm10  ;;  %v8734_v5 = vmul.u32.u64.low 3435973837, %v8671_v10  ;;  %v8735_v47 = vmul.u32.u64.high 3435973837, %v8671_v10, %v8734_v5  ;;  %v14272_v19 = vmov 0  ;;  %v8762_v10 = vadd.s32 20, %v8638_v33 }
  0x9c   : > { %vm8754_vm10 = vmand %vm1432_vm3, %vm1392_vm6  ;;  %v8759_v5 = vadd.s32 20, %v8635_v4  ;;  %v14276_v38 = vsel %vm8252_vm8, %v8257_v8, %v8219_v50  ;;  %vm14279_vm6 = vcmp.lt.s32.totalorder %v8638_v33, 0  ;;  %v14280_v50 = vmov 0 }
  0x9d   : > { %v14273_v19 = vsel %vm8754_vm10, 4294967295, %v14272_v19  ;;  %14275 = vst [vmem:[#allocation31_spill] sm:$0xff] %v8762_v10  ;;  %vm8769_vm9 = vcmp.lt.s32.totalorder %v14276_v38, 16  ;;  %vm8785_vm3 = vmand %vm14279_vm6, %vm1390_vm4  ;;  %v8790_v7 = vadd.s32 20, %v8641_v18  ;;  %v8793_v8 = vsub.s32 %v8508_v17, %v1171_v36 }
  0x9e   : > { %14274 = vst [vmem:[#allocation30_spill] sm:$0xff] %v14273_v19  ;;  %v14281_v50 = vsel %vm8785_vm3, 4294967295, %v14280_v50  ;;  %v14285_v39 = vsel %vm8268_vm11, %v8260_v9, %v8222_v51  ;;  %v14288_v36 = vsel %vm8307_vm14, %v8312_v30, %v8233_v59  ;;  %vm14291_vm6 = vcmp.ne.s32.totalorder %v8641_v18, 0  ;;  %v7874_v59 = vld [vmem:[%s14025_s5 + $0x60] sm:$0xff]  }
  0x9f   : > { %14282 = vst [vmem:[#allocation32_spill] sm:$0xff] %v14281_v50  ;;  %14283 = vst [vmem:[#allocation33_spill] sm:$0xff] %v8790_v7  ;;  %vm8802_vm8 = vcmp.lt.s32.totalorder %v14285_v39, 16  ;;  %vm8811_vm4 = vcmp.lt.s32.totalorder %v14288_v36, 16  ;;  %vm1393_vm11 = vcmp.ne.s32.totalorder %v8695_v61, 0  ;;  %vm1433_vm2 = vcmp.lt.s32.totalorder %v8695_v61, 0  ;;  %2838 = vmatpush1.bf16.msra.mxu0 %v7874_v59  ;;  %7743 = vmatpush1.bf16.msra.mxu1 %v7874_v59 }
  0xa0   : > { %14284 = vst [vmem:[#allocation34_spill] sm:$0xff] %v8793_v8  ;;  %vm8819_vm7 = vmand %vm1435_vm12, %vm14291_vm6  ;;  %v8826_v51 = vmul.u32.u64.low 3435973837, %v8716_v6  ;;  %v8827_v9 = vmul.u32.u64.high 3435973837, %v8716_v6, %v8826_v51  ;;  %v14295_v39 = vsel %vm8323_vm5, %v8315_v31, %v8236_v60  ;;  %vm1396_vm12 = vcmp.ne.s32.totalorder %v8698_v57, 0  ;;  %2839 = vmatprep.subr.bf16.mxu0 %v14263_v3  ;;  %7734 = vmatprep.subr.bf16.mxu1 %v14263_v3  ;;  %v8886_v59 = vld [vmem:[%s14024_s4] ss:$0 sm:$0xff] }
  0xa1   : > { %v14293_v11 = vsel %vm8819_vm7, 4294967295, %v14292_v11  ;;  %vm8838_vm14 = vcmp.lt.s32.totalorder %v14295_v39, 16  ;;  %vm1436_vm6 = vcmp.lt.s32.totalorder %v8698_v57, 0  ;;  %v8863_v51 = vadd.s32 20, %v8695_v61  ;;  %vm8874_vm5 = vmand %vm1433_vm2, %vm1393_vm11  ;;  %v7875_v7 = vld [vmem:[%s14025_s5 + $0x68] sm:$0xff]  }
  0xa2   : > { %14294 = vst [vmem:[#allocation35_spill] sm:$0xff] %v14293_v11  ;;  %v14298_v39 = vmov 0  ;;  %vm8893_vm2 = vmand %vm1436_vm6, %vm1396_vm12  ;;  %v14300_v19 = vmov 0  ;;  %v1225_v18 = vshrl.u32 %v8713_v1, 4  ;;  %v1236_v33 = vshrl.u32 %v8735_v47, 4 }
  0xa3   : > { %v14299_v39 = vsel %vm8874_vm5, 4294967295, %v14298_v39  ;;  %v14301_v19 = vsel %vm8893_vm2, 4294967295, %v14300_v19  ;;  %v14302_v4 = vsel %vm8357_vm13, %v8362_v42, %v8274_v12  ;;  %2840 = vmatpush1.bf16.msra.mxu0 %v7875_v7  ;;  %7744 = vmatpush1.bf16.msra.mxu1 %v7875_v7  ;;  %vm14305_vm11 = vnez %v14214_v44  ;;  %v7879_v7 = vld [vmem:[%s14025_s5 + $0x88] sm:$0xff]  }
  0xa4   : > { %vm8911_vm12 = vcmp.lt.s32.totalorder %v14302_v4, 16  ;;  %v14306_v12 = vsel %vm14305_vm11, %v8365_v43, %v8276_v13  ;;  %2841 = vmatprep.subr.bf16.mxu0 %v14263_v3  ;;  %7735 = vmatprep.subr.bf16.mxu1 %v14263_v3  ;;  %vm14309_vm11 = vnez %v14217_v49  ;;  %vm14313_vm2 = vnez %v14219_v20 }
  0xa5   : > { %vm8927_vm13 = vcmp.lt.s32.totalorder %v14306_v12, 16  ;;  %v14310_v4 = vsel %vm14309_vm11, %v8374_v45, %v8286_v22  ;;  %v14314_v22 = vld [vmem:[#allocation9_spill] sm:$0xff] }
  0xa6   : > { %vm8947_vm6 = vcmp.lt.s32.totalorder %v14310_v4, 16  ;;  %v14315_v45 = vsel %vm14313_vm2, %v8418_v15, %v14314_v22  ;;  %vm14319_vm2 = vcmp.lt.s32.totalorder %v8793_v8, 0 }
  0xa7   : > { %vm8962_vm11 = vcmp.lt.s32.totalorder %v14315_v45, 16 }
 0x101   : > { %v7693_v38 = vpop.f32.mrb[0].mxu0 }
 0x102   : > { %v608_v29 = vadd.f32 %v7693_v38, %v8740_v23  ;;  %v599_v30 = vpop.f32.mrb[1].mxu0  ;;  %v8879_v38 = vadd.s32 20, %v8698_v57 }
 0x103   : > { %v600_v60 = vadd.f32 %v8740_v23, %v599_v30  ;;  %v7694_v31 = vpop.f32.mrb[2].mxu0 }
 0x104   : > { %v760_v2 = vmax.f32 %v608_v29, 0.0  ;;  %v611_v53 = vadd.f32 %v7694_v31, %v8740_v23  ;;  %v602_v30 = vpop.f32.mrb[3].mxu0 }
 0x105   : > { %v758_v29 = vmax.f32 %v600_v60, 0.0  ;;  %v603_v31 = vadd.f32 %v8740_v23, %v602_v30  ;;  %v1203_v30 = vshrl.u32 %v8731_v63, 4  ;;  %v8971_v63 = vadd.s32 240, %v8178_v21 }
 0x106   : > { %v807_v60 = vmul.f32 %v8851_v32, %v760_v2  ;;  %v761_v11 = vmax.f32 %v611_v53, 0.0  ;;  %v8936_v2 = vadd.s32 20, %v8793_v8 }
 0x107   : > { %v805_v10 = vmul.f32 %v8851_v32, %v758_v29  ;;  %v759_v50 = vmax.f32 %v603_v31, 0.0  ;;  %v1214_v29 = vshrl.u32 %v8827_v9, 4  ;;  %v7876_v31 = vld [vmem:[%s14025_s5 + $0x70] sm:$0xff]   ;;  %v1237_v9 = vmul.u32 20, %v1236_v33 }
 0x108   : > { %v854_v47 = vadd.f32 %v8886_v59, %v807_v60  ;;  %v808_v41 = vmul.f32 %v8851_v32, %v761_v11  ;;  %v1226_v11 = vmul.u32 20, %v1225_v18  ;;  %v1204_v18 = vmul.u32 20, %v1203_v30  ;;  %2842 = vmatpush1.bf16.msra.mxu0 %v7876_v31  ;;  %7745 = vmatpush1.bf16.msra.mxu1 %v7876_v31  ;;  %v7877_v31 = vld [vmem:[%s14025_s5 + $0x78] sm:$0xff]  }
 0x109   : > { %v852_v44 = vadd.f32 %v8886_v59, %v805_v10  ;;  %v806_v13 = vmul.f32 %v8851_v32, %v759_v50  ;;  %v7697_v43 = vpop.f32.mrb[4].mxu0  ;;  %2843 = vmatprep.subr.bf16.mxu0 %v14263_v3  ;;  %7736 = vmatprep.subr.bf16.mxu1 %v14263_v3 }
 0x10a   : > { %v855_v10 = vadd.f32 %v8886_v59, %v808_v41  ;;  %v624_v50 = vadd.f32 %v7697_v43, %v8740_v23  ;;  %v615_v60 = vpop.f32.mrb[5].mxu0  ;;  %v1695_v12 = vsel %vm8769_vm9, %v854_v47, 0.0  ;;  %vm14318_vm9 = vcmp.ne.s32.totalorder %v8793_v8, 0 }
 0x10b   : > { %v853_v4 = vadd.f32 %v8886_v59, %v806_v13  ;;  %v616_v41 = vadd.f32 %v8740_v23, %v615_v60  ;;  %v7698_v43 = vpop.f32.mrb[6].mxu0  ;;  %v1693_v15 = vsel %vm8802_vm8, %v852_v44, 0.0  ;;  %vm8982_vm5 = vmand %vm14319_vm2, %vm14318_vm9  ;;  %v14320_v47 = vmov 0 }
 0x10c   : > { %v1696_v20 = vsel %vm8811_vm4, %v855_v10, 0.0  ;;  %v764_v33 = vmax.f32 %v624_v50, 0.0  ;;  %v627_v28 = vadd.f32 %v7698_v43, %v8740_v23  ;;  %v618_v30 = vpop.f32.mrb[7].mxu0  ;;  %v14321_v47 = vsel %vm8982_vm5, 4294967295, %v14320_v47  ;;  %2844 = vmatpush1.bf16.msra.mxu0 %v7877_v31  ;;  %7746 = vmatpush1.bf16.msra.mxu1 %v7877_v31  ;;  %v7878_v31 = vld [vmem:[%s14025_s5 + $0x80] sm:$0xff]  }
 0x10d   : > { %v1741_v34 = vpack.c.bf16 %v1696_v20, %v1695_v12  ;;  %v1694_v17 = vsel %vm8838_vm14, %v853_v4, 0.0  ;;  %v762_v44 = vmax.f32 %v616_v41, 0.0  ;;  %v619_v13 = vadd.f32 %v8740_v23, %v618_v30  ;;  %v14330_v41 = vld [vmem:[#allocation12_spill] sm:$0xff]  ;;  %v14334_v20 = vld [vmem:[#allocation29_spill] sm:$0xff]  ;;  %2845 = vmatprep.subr.bf16.mxu0 %v14263_v3  ;;  %7737 = vmatprep.subr.bf16.mxu1 %v14263_v3 }
 0x10e   : > { %v1740_v10 = vpack.c.bf16 %v1694_v17, %v1693_v15  ;;  %v811_v50 = vmul.f32 %v8851_v32, %v764_v33  ;;  %v765_v60 = vmax.f32 %v627_v28, 0.0  ;;  %v8996_v22 = vsub.s32 %v8650_v52, %v1226_v11  ;;  %v14338_v17 = vld [vmem:[#allocation13_spill] sm:$0xff]  ;;  %v14356_v15 = vld [vmem:[#allocation23_spill] sm:$0xff] }
 0x10f   : > { %vm14322_vm8 = vcmask 261120   ;;  %v809_v45 = vmul.f32 %v8851_v32, %v762_v44  ;;  %v763_v36 = vmax.f32 %v619_v13, 0.0  ;;  %vm14323_vm4 = vnez %v14226_v25 }
 0x110   : > { %1761 = vst.msk [vmem:[#allocation2 + $0x20] sm:$0xff] %vm14322_vm8, %v1741_v34  ;;  %v14324_v12 = vsel %vm14323_vm4, %v8527_v56, %v8421_v16  ;;  %v9014_v11 = vsub.s32 %v8668_v62, %v1204_v18  ;;  %vm14327_vm9 = vmmov %vm14322_vm8  ;;  %v858_v25 = vadd.f32 %v8886_v59, %v811_v50  ;;  %v812_v16 = vmul.f32 %v8851_v32, %v765_v60  ;;  %v14328_v56 = vld [vmem:[#allocation16_spill] sm:$0xff]  ;;  %v14335_v34 = vld [vmem:[#allocation17_spill] sm:$0xff] }
 0x111   : > { %vm9005_vm14 = vcmp.lt.s32.totalorder %v14324_v12, 16  ;;  %1760 = vst.msk [vmem:[#allocation2 + $0x18] sm:$0xff] %vm14327_vm9, %v1740_v10  ;;  %vm14329_vm2 = vnez %v14328_v56  ;;  %v9029_v62 = vsub.s32 %v14334_v20, %v1237_v9  ;;  %v1215_v18 = vmul.u32 20, %v1214_v29  ;;  %v7701_v30 = vpop.f32.mrb[8].mxu0  ;;  %v14344_v12 = vld [vmem:[#allocation19_spill] sm:$0xff]  ;;  %v14345_v56 = vld [vmem:[#allocation14_spill] sm:$0xff]  ;;  %2846 = vmatpush1.bf16.msra.mxu0 %v7878_v31  ;;  %7747 = vmatpush1.bf16.msra.mxu1 %v7878_v31 }
 0x112   : > { %v14331_v43 = vsel %vm14329_vm2, %v8538_v26, %v14330_v41  ;;  %v856_v33 = vadd.f32 %v8886_v59, %v809_v45  ;;  %v810_v28 = vmul.f32 %v8851_v32, %v763_v36  ;;  %vm14336_vm4 = vnez %v14335_v34  ;;  %v14337_v26 = vld [vmem:[#allocation18_spill] sm:$0xff]  ;;  %v631_v45 = vpop.f32.mrb[9].mxu0  ;;  %v14342_v36 = vld [vmem:[#allocation20_spill] sm:$0xff]  ;;  %2847 = vmatprep.subr.bf16.mxu0 %v14263_v3 }
 0x113   : > { %vm9024_vm8 = vcmp.lt.s32.totalorder %v14331_v43, 16  ;;  %v14339_v44 = vsel %vm14336_vm4, %v14337_v26, %v14338_v17  ;;  %v9045_v29 = vmul.u32.u64.low 3435973837, %v8971_v63  ;;  %v9046_v9 = vmul.u32.u64.high 3435973837, %v8971_v63, %v9045_v29  ;;  %v7702_v20 = vpop.f32.mrb[10].mxu0  ;;  %7738 = vmatprep.subr.bf16.mxu1 %v14263_v3  ;;  %v7881_v43 = vld [vmem:[%s14025_s5 + $0x98] sm:$0xff]  }
 0x114   : > { %vm9040_vm9 = vcmp.lt.s32.totalorder %v14339_v44, 16  ;;  %v1699_v10 = vsel %vm8911_vm12, %v858_v25, 0.0  ;;  %v859_v50 = vadd.f32 %v8886_v59, %v812_v16  ;;  %v640_v60 = vadd.f32 %v7701_v30, %v8740_v23  ;;  %v634_v17 = vpop.f32.mrb[11].mxu0 }
 0x115   : > { %vm14343_vm2 = vnez %v14342_v36  ;;  %vm2610_vm5 = vcmask 1042432   ;;  %vm1399_vm7 = vcmp.ne.s32.totalorder %v8996_v22, 0  ;;  %v1697_v1 = vsel %vm8927_vm13, %v856_v33, 0.0  ;;  %2848 = vmatpush1.bf16.msra.mxu0 %v7879_v7  ;;  %7748 = vmatpush1.bf16.msra.mxu1 %v7879_v7 }
 0x116   : > { %v14346_v41 = vsel %vm14343_vm2, %v14344_v12, %v14345_v56  ;;  %v857_v25 = vadd.f32 %v8886_v59, %v810_v28  ;;  %v632_v16 = vadd.f32 %v8740_v23, %v631_v45  ;;  %vm1439_vm12 = vcmp.lt.s32.totalorder %v8996_v22, 0  ;;  %2849 = vmatprep.subr.bf16.mxu0 %v14263_v3  ;;  %7739 = vmatprep.subr.bf16.mxu1 %v14263_v3 }
 0x117   : > { %vm9061_vm4 = vcmp.lt.s32.totalorder %v14346_v41, 16  ;;  %v1700_v30 = vsel %vm8947_vm6, %v859_v50, 0.0  ;;  %v768_v34 = vmax.f32 %v640_v60, 0.0  ;;  %v643_v26 = vadd.f32 %v7702_v20, %v8740_v23  ;;  %v9086_v45 = vld [vmem:[#allocation2 + $0x20] sm:$0xff] }
 0x118   : > { %v9075_v44 = vadd.s32 20, %v8996_v22  ;;  %v1743_v42 = vpack.c.bf16 %v1700_v30, %v1699_v10  ;;  %v1698_v33 = vsel %vm8962_vm11, %v857_v25, 0.0  ;;  %v766_v28 = vmax.f32 %v632_v16, 0.0  ;;  %v9093_v12 = vld [vmem:[#allocation2 + $0x18] sm:$0xff] }
 0x119   : > { %v635_v29 = vadd.f32 %v8740_v23, %v634_v17  ;;  %v1742_v31 = vpack.c.bf16 %v1698_v33, %v1697_v1  ;;  %v815_v50 = vmul.f32 %v8851_v32, %v768_v34  ;;  %v769_v60 = vmax.f32 %v643_v26, 0.0  ;;  %14350 = vst [vmem:[#allocation9_spill] sm:$0xff] %v9093_v12  ;;  %v7705_v26 = vpop.f32.mrb[12].mxu0  ;;  %v7880_v17 = vld [vmem:[%s14025_s5 + $0x90] sm:$0xff]  }
 0x11a   : > { %v9089_v36 = vsub.s32 %v8716_v6, %v1215_v18  ;;  %vm14349_vm6 = vcmask 261120   ;;  %v813_v49 = vmul.f32 %v8851_v32, %v766_v28  ;;  %v14082_v56 = vrot.slane %v9086_v45, 1  ;;  %2850 = vmatpush1.bf16.msra.mxu0 %v7880_v17  ;;  %7749 = vmatpush1.bf16.msra.mxu1 %v7880_v17 }
 0x11b   : > { %1763 = vst.msk [vmem:[#allocation2 + $0x30] sm:$0xff] %vm14349_vm6, %v1743_v42  ;;  %v767_v10 = vmax.f32 %v635_v29, 0.0  ;;  %v9097_v41 = vadd.s32 20, %v9014_v11  ;;  %vm14351_vm13 = vmmov %vm14349_vm6  ;;  %v862_v1 = vadd.f32 %v8886_v59, %v815_v50  ;;  %v816_v6 = vmul.f32 %v8851_v32, %v769_v60  ;;  %v14353_v29 = vld [vmem:[#allocation8_spill] sm:$0xff]  ;;  %2851 = vmatprep.subr.bf16.mxu0 %v14263_v3  ;;  %7740 = vmatprep.subr.bf16.mxu1 %v14263_v3 }
 0x11c   : > { %1762 = vst.msk [vmem:[#allocation2 + $0x28] sm:$0xff] %vm14351_vm13, %v1742_v31  ;;  %v3695_v18 = vrot.slane %v9093_v12, 1  ;;  %v14081_v25 = vrot.slane %v9093_v12, 2  ;;  %v860_v16 = vadd.f32 %v8886_v59, %v813_v49  ;;  %v1830_v30 = vshll.u32 %v9093_v12, 16  ;;  %v647_v31 = vpop.f32.mrb[13].mxu0  ;;  %vm9151_vm6 = vmand %vm1439_vm12, %vm1399_vm7 }
 0x11d   : > { %v814_v20 = vmul.f32 %v8851_v32, %v767_v10  ;;  %v1834_v34 = vshrl.u32 %v9093_v12, 16  ;;  %v1703_v42 = vsel %vm9005_vm14, %v862_v1, 0.0  ;;  %v863_v33 = vadd.f32 %v8886_v59, %v816_v6  ;;  %v7706_v49 = vpop.f32.mrb[14].mxu0 }
 0x11e   : > { %3734 = vrot.lane.b32.xlu1 %v3695_v18, %s8003_s12  ;;  %vm14352_vm11 = vcmask 1046528   ;;  %vm14354_vm2 = vcmask 1045504   ;;  %v1701_v50 = vsel %vm9024_vm8, %v860_v16, 0.0  ;;  %v9132_v10 = vadd.s32 224, %v8178_v21  ;;  %v14358_v16 = vld [vmem:[#allocation22_spill] sm:$0xff]  ;;  %v650_v60 = vpop.f32.mrb[15].mxu0  ;;  %2852 = vmatpush1.bf16.msra.mxu0 %v7881_v43 }
 0x11f   : > { %v3697_v28 = vsel %vm14352_vm11, %v3695_v18, %v14082_v56  ;;  %v9124_v7 = vsel %vm14354_vm2, %v14353_v29, %v14081_v25  ;;  %v861_v4 = vadd.f32 %v8886_v59, %v814_v20  ;;  %v1704_v1 = vsel %vm9040_vm9, %v863_v33, 0.0  ;;  %v14359_v20 = vld [vmem:[#allocation15_spill] sm:$0xff]  ;;  %v14368_v29 = vld [vmem:[#allocation4_spill] sm:$0xff]  ;;  %vm14369_vm9 = vmmov %vm14352_vm11  ;;  %3253 = vmatprep.subr.bf16.mxu0 %v14263_v3  ;;  %7750 = vmatpush1.bf16.msra.mxu1 %v7881_v43 }
 0x120   : > { %14355 = vst [vmem:[#allocation16_spill] sm:$0xff] %v9124_v7  ;;  %3736 = vrot.lane.b32.xlu0 %v3697_v28, %s8003_s12  ;;  %v2137_v6 = vrot.slane %v1834_v34, 1  ;;  %v2138_v25 = vrot.slane %v1830_v30, 2  ;;  %v9136_v52 = vrot.slane %v1830_v30, 1  ;;  %vm14357_vm14 = vnez %v14356_v15  ;;  %v14366_v15 = vld [vmem:[#allocation10_spill] sm:$0xff]  ;;  %4337 = vmatprep.subr.bf16.mxu1 %v14263_v3 }
 0x121   : > { %v14360_v53 = vsel %vm14357_vm14, %v14358_v16, %v14359_v20  ;;  %v1745_v30 = vpack.c.bf16 %v1704_v1, %v1703_v42  ;;  %v1702_v33 = vsel %vm9061_vm4, %v861_v4, 0.0  ;;  %v14367_v16 = vrot.slane %v14366_v15, 5  ;;  %vm14382_vm14 = vmmov %vm14351_vm13 }
 0x122   : > { %vm9143_vm8 = vcmp.lt.s32.totalorder %v14360_v53, 16  ;;  %v14365_v53 = vrot.slane %v9124_v7, 5  ;;  %v2043_v12 = vsel %vm14369_vm9, %v14368_v29, %v3695_v18  ;;  %v14370_v8 = vsel %vm8659_vm1, %v8614_v58, %v8556_v54 }
 0x123   : > { %vm9170_vm7 = vcmp.lt.s32.totalorder %v14370_v8, 16  ;;  %vm1397_vm4 = vcmp.ne.s32.totalorder %v9014_v11, 0  ;;  %vm1437_vm12 = vcmp.lt.s32.totalorder %v9014_v11, 0  ;;  %v1744_v18 = vpack.c.bf16 %v1702_v33, %v1701_v50  ;;  %2082 = vrot.lane.b32.xlu1 %v2043_v12, %s8003_s12  ;;  %v14374_v8 = vld [vmem:[#allocation21_spill] sm:$0xff]  ;;  %1765 = vst.msk [vmem:[#allocation2 + $0x40] sm:$0xff] %vm14382_vm14, %v1745_v30  ;;  %v9288_v7 = vld [vmem:[#allocation2 + $0x28] sm:$0xff] }
 0x124   : > { %v2616_v20 = vsel %vm2610_vm5, %v14367_v16, %v14365_v53  ;;  %v9182_v54 = vor.u32 %v2138_v25, %v2137_v6  ;;  %v1838_v58 = vshll.u32 %v9086_v45, 16  ;;  %v14375_v42 = vsel %vm8677_vm0, %v14373_v37, %v14374_v8  ;;  %vm14383_vm0 = vmmov %vm14351_vm13  ;;  %v9230_v16 = vpop.f32.mrb[16].mxu0 }
 0x125   : > { %7425 = vmatprep.mubr.msk.bf16.mxu0 %vm14351_vm13, %v2616_v20  ;;  %vm9190_vm1 = vcmp.lt.s32.totalorder %v14375_v42, 16  ;;  %vm14378_vm11 = vnez %v14262_v46  ;;  %v9204_v25 = vadd.s32 248, %v8178_v21  ;;  %v656_v40 = vadd.f32 %v7705_v26, %v8740_v23  ;;  %1764 = vst.msk [vmem:[#allocation2 + $0x38] sm:$0xff] %vm14383_vm0, %v1744_v18  ;;  %v9239_v43 = vpop.f32.mrb[17].mxu0 }
 0x126   : > { %v14379_v50 = vsel %vm14378_vm11, %v8631_v48, %v8598_v27  ;;  %v9213_v46 = vmul.u32.u64.low 3435973837, %v9132_v10  ;;  %v9214_v1 = vmul.u32.u64.high 3435973837, %v9132_v10, %v9213_v46  ;;  %v14384_v27 = vld [vmem:[#allocation5_spill] sm:$0xff]  ;;  %vm14385_vm9 = vsmask.f32 6400  ;;  %v9246_v42 = vpop.f32.mrb[18].mxu0 }
 0x127   : > { %vm9199_vm2 = vcmp.lt.s32.totalorder %v14379_v50, 16  ;;  %v2140_v48 = vsel %vm14385_vm9, %v14384_v27, %v9182_v54  ;;  %v1836_v6 = vor.u32 %v1834_v34, %v9136_v52  ;;  %v14085_v26 = vshrl.u32 %v9086_v45, 16  ;;  %2084 = vrot.lane.b32.xlu1 %v3697_v28, %s8003_s12 }
 0x128   : > { %v648_v30 = vadd.f32 %v8740_v23, %v647_v31  ;;  %vm1400_vm13 = vcmp.ne.s32.totalorder %v9029_v62, 0  ;;  %vm1440_vm11 = vcmp.lt.s32.totalorder %v9029_v62, 0  ;;  %2218 = vrot.lane.b32.xlu0 %v2140_v48, %s8005_s14  ;;  %v772_v33 = vmax.f32 %v656_v40, 0.0  ;;  %v9256_v48 = vpop.f32.mrb[19].mxu0 }
 0x129   : > { %v659_v53 = vadd.f32 %v7706_v49, %v8740_v23  ;;  %v651_v15 = vadd.f32 %v8740_v23, %v650_v60  ;;  %v9233_v34 = vadd.s32 232, %v8178_v21  ;;  %v9237_v31 = vrot.slane %v1838_v58, 1 }
 0x12a   : > { %v770_v20 = vmax.f32 %v648_v30, 0.0  ;;  %v9242_v18 = vmul.u32.u64.low 3435973837, %v9204_v25  ;;  %v9243_v37 = vmul.u32.u64.high 3435973837, %v9204_v25, %v9242_v18  ;;  %v819_v60 = vmul.f32 %v8851_v32, %v772_v33  ;;  %v14388_v30 = vld [vmem:[#allocation6_spill] sm:$0xff] }
 0x12b   : > { %14386 = vst [vmem:[#allocation12_spill] sm:$0xff] %v9233_v34  ;;  %v773_v49 = vmax.f32 %v659_v53, 0.0  ;;  %v771_v8 = vmax.f32 %v651_v15, 0.0  ;;  %v9249_v50 = vadd.s32 20, %v9029_v62  ;;  %vm14387_vm14 = vsmask.f32 7424 }
 0x12c   : > { %v1841_v28 = vsel %vm14387_vm14, %v1836_v6, %v9237_v31  ;;  %v3779_v40 = vrot.slane %v14085_v26, 1  ;;  %v3780_v46 = vrot.slane %v1838_v58, 2  ;;  %v817_v27 = vmul.f32 %v8851_v32, %v770_v20  ;;  %vm14389_vm0 = vmmov %vm14387_vm14  ;;  %v9265_v18 = vld [vmem:[#allocation2 + $0x30] sm:$0xff]  ;;  %v9269_v20 = vld [vmem:[#allocation2 + $0x40] sm:$0xff] }
 0x12d   : > { %1979 = vrot.lane.b32.xlu0 %v1841_v28, %s8004_s13  ;;  %v1833_v33 = vsel %vm14389_vm0, %v14388_v30, %v9136_v52  ;;  %v866_v53 = vadd.f32 %v8886_v59, %v819_v60  ;;  %v820_v15 = vmul.f32 %v8851_v32, %v773_v49  ;;  %v818_v6 = vmul.f32 %v8851_v32, %v771_v8  ;;  %v9281_v30 = vld [vmem:[#allocation2 + $0x38] sm:$0xff]  ;;  %vm9355_vm14 = vmand %vm1440_vm11, %vm1400_vm13 }
 0x12e   : > { %1977 = vrot.lane.b32.xlu1 %v1833_v33, %s8004_s13  ;;  %v864_v58 = vadd.f32 %v8886_v59, %v817_v27  ;;  %14390 = vst [vmem:[#allocation29_spill] sm:$0xff] %v9269_v20  ;;  %v1269_v4 = vshrl.u32 %v9046_v9, 4  ;;  %v9273_v26 = vmul.u32.u64.low 3435973837, %v9233_v34  ;;  %v9274_v3 = vmul.u32.u64.high 3435973837, %v9233_v34, %v9273_v26 }
 0x12f   : > { %v1707_v60 = vsel %vm9143_vm8, %v866_v53, 0.0  ;;  %v867_v49 = vadd.f32 %v8886_v59, %v820_v15  ;;  %v865_v8 = vadd.f32 %v8886_v59, %v818_v6  ;;  %v9284_v33 = vor.u32 %v3780_v46, %v3779_v40  ;;  %vm9296_vm8 = vmand %vm1437_vm12, %vm1397_vm4  ;;  %v14393_v40 = vld [vmem:[#allocation11_spill] sm:$0xff] }
 0x130   : > { %v1705_v9 = vsel %vm9170_vm7, %v864_v58, 0.0  ;;  %v2272_v56 = vrot.slane %v9281_v30, 2  ;;  %v14394_v17 = vshrl.u32 %v14393_v40, 16  ;;  %vm14395_vm7 = vmmov %vm14389_vm0  ;;  %v9309_v58 = vpop.f32.mrb[20].mxu0  ;;  %v14396_v21 = vrot.slane %v9265_v18, 2 }
 0x131   : > { %3635 = vrot.lane.b32.xlu0 %v1841_v28, %s8004_s13  ;;  %v1708_v15 = vsel %vm9190_vm1, %v867_v49, 0.0  ;;  %v1706_v6 = vsel %vm9199_vm2, %v865_v8, 0.0  ;;  %vm14397_vm4 = vcmask 1045504   ;;  %v14399_v40 = vrot.slane %v9269_v20, 2 }
 0x132   : > { %v3477_v46 = vsel %vm14395_vm7, %v14394_v17, %v9136_v52  ;;  %v1747_v27 = vpack.c.bf16 %v1708_v15, %v1707_v60  ;;  %v1746_v26 = vpack.c.bf16 %v1706_v6, %v1705_v9  ;;  %v9315_v28 = vsel %vm14397_vm4, %v14396_v21, %v2272_v56  ;;  %vm14400_vm12 = vmmov %vm14397_vm4  ;;  %v9331_v60 = vpop.f32.mrb[21].mxu0  ;;  %v14406_v9 = vld [vmem:[#allocation24_spill] sm:$0xff]  ;;  %v14416_v6 = vld [vmem:[#allocation26_spill] sm:$0xff] }
 0x133   : > { %3633 = vrot.lane.b32.xlu1 %v3477_v46, %s8004_s13  ;;  %14398 = vst [vmem:[#allocation17_spill] sm:$0xff] %v9315_v28  ;;  %v9320_v52 = vsel %vm14400_vm12, %v2272_v56, %v14399_v40  ;;  %vm14402_vm1 = vnez %v14267_v0  ;;  %v14097_v49 = vrot.slane %v9288_v7, 1  ;;  %v14092_v21 = vrot.slane %v9315_v28, 5 }
 0x134   : > { %14401 = vst [vmem:[#allocation18_spill] sm:$0xff] %v9320_v52  ;;  %v14403_v29 = vsel %vm14402_vm1, %v8646_v14, %v8608_v55  ;;  %v14091_v8 = vrot.slane %v9320_v52, 5  ;;  %v14407_v0 = vsel %vm8725_vm15, %v8665_v35, %v14406_v9  ;;  %v9345_v55 = vpop.f32.mrb[22].mxu0  ;;  %vm14412_vm15 = vsmask.f32 6400 }
 0x135   : > { %vm9327_vm2 = vcmp.lt.s32.totalorder %v14403_v29, 16  ;;  %vm9341_vm9 = vcmp.lt.s32.totalorder %v14407_v0, 16  ;;  %v3782_v35 = vsel %vm14412_vm15, %v9182_v54, %v9284_v33  ;;  %vm14413_vm0 = vcmask 261120   ;;  %v9375_v9 = vpop.f32.mrb[23].mxu0 }
 0x136   : > { %1767 = vst.msk [vmem:[#allocation2 + $0x50] sm:$0xff] %vm14413_vm0, %v1747_v27  ;;  %vm14414_vm7 = vmmov %vm14413_vm0  ;;  %v1846_v17 = vshll.u32 %v9288_v7, 16  ;;  %v14417_v40 = vsel %vm8754_vm10, %v8759_v5, %v14416_v6  ;;  %v9378_v0 = vadd.s32 20, %v9089_v36  ;;  %3862 = vrot.lane.b32.xlu0 %v3782_v35, %s8005_s14  ;;  %v2636_v27 = vsel %vm2610_vm5, %v14092_v21, %v14091_v8  ;;  %v14421_v6 = vld [vmem:[#allocation31_spill] sm:$0xff] }
 0x137   : > { %1766 = vst.msk [vmem:[#allocation2 + $0x48] sm:$0xff] %vm14414_vm7, %v1746_v26  ;;  %vm9371_vm13 = vcmp.lt.s32.totalorder %v14417_v40, 16  ;;  %v672_v5 = vadd.f32 %v9230_v16, %v8740_v23  ;;  %v664_v26 = vadd.f32 %v8740_v23, %v9239_v43  ;;  %v14422_v40 = vld [vmem:[#allocation27_spill] sm:$0xff]  ;;  %3860 = vrot.lane.b32.xlu1 %v9182_v54, %s8005_s14  ;;  %vm14426_vm11 = vmmov %vm14413_vm0  ;;  %vm1398_vm4 = vcmp.ne.s32.totalorder %v9089_v36, 0 }
 0x138   : > { %v14423_v14 = vsel %vm8785_vm3, %v14421_v6, %v14422_v40  ;;  %7430 = vmatprep.mubr.msk.bf16.mxu1 %vm14426_vm11, %v2636_v27  ;;  %vm1438_vm12 = vcmp.lt.s32.totalorder %v9089_v36, 0  ;;  %v1270_v43 = vmul.u32 20, %v1269_v4  ;;  %v1280_v15 = vshrl.u32 %v9243_v37, 4 }
 0x139   : > { %vm9395_vm10 = vcmp.lt.s32.totalorder %v14423_v14, 16  ;;  %v1247_v14 = vshrl.u32 %v9214_v1, 4  ;;  %v14427_v54 = vrot.slane %v9086_v45, 1  ;;  %vm14428_vm3 = vcmask 1046528  }
 0x13a   : > { %v776_v6 = vmax.f32 %v672_v5, 0.0  ;;  %v774_v40 = vmax.f32 %v664_v26, 0.0  ;;  %v675_v8 = vadd.f32 %v9246_v42, %v8740_v23  ;;  %v1848_v21 = vrot.slane %v1846_v17, 1  ;;  %v9424_v5 = vpop.f32.mrb[24].mxu0 }
 0x13b   : > { %v3699_v27 = vsel %vm14428_vm3, %v14427_v54, %v14097_v49  ;;  %v14429_v16 = vshrl.u32 %v9288_v7, 16  ;;  %v2146_v4 = vrot.slane %v1846_v17, 2  ;;  %v667_v1 = vadd.f32 %v8740_v23, %v9256_v48  ;;  %2220 = vrot.lane.b32.xlu1 %v3782_v35, %s8005_s14  ;;  %v9430_v17 = vpop.f32.mrb[25].mxu0 }
 0x13c   : > { %3738 = vrot.lane.b32.xlu0 %v3699_v27, %s8003_s12  ;;  %v823_v37 = vmul.f32 %v8851_v32, %v776_v6  ;;  %v821_v28 = vmul.f32 %v8851_v32, %v774_v40  ;;  %v777_v54 = vmax.f32 %v675_v8, 0.0  ;;  %v14430_v42 = vshrl.u32 %v9086_v45, 16  ;;  %v9436_v20 = vpop.f32.mrb[26].mxu0 }
 0x13d   : > { %v2145_v52 = vrot.slane %v14429_v16, 1  ;;  %v775_v16 = vmax.f32 %v667_v1, 0.0  ;;  %v1248_v49 = vmul.u32 20, %v1247_v14  ;;  %v1281_v48 = vmul.u32 20, %v1280_v15  ;;  %v9445_v15 = vpop.f32.mrb[27].mxu0 }
 0x13e   : > { %v1844_v26 = vor.u32 %v14430_v42, %v9237_v31  ;;  %v1858_v34 = vshrl.u32 %v9265_v18, 16  ;;  %v870_v6 = vadd.f32 %v8886_v59, %v823_v37  ;;  %v868_v40 = vadd.f32 %v8886_v59, %v821_v28  ;;  %v14435_v42 = vld [vmem:[#allocation28_spill] sm:$0xff] }
 0x13f   : > { %v824_v8 = vmul.f32 %v8851_v32, %v777_v54  ;;  %vm14431_vm1 = vsmask.f32 7424  ;;  %v9441_v45 = vor.u32 %v2146_v4, %v2145_v52  ;;  %v1854_v31 = vshll.u32 %v9265_v18, 16  ;;  %v14432_v4 = vld [vmem:[#allocation35_spill] sm:$0xff]  ;;  %v14434_v54 = vld [vmem:[#allocation33_spill] sm:$0xff]  ;;  %2086 = vrot.lane.b32.xlu1 %v3699_v27, %s8003_s12 }
 0x140   : > { %v9439_v35 = vsel %vm14431_vm1, %v1844_v26, %v1848_v21  ;;  %v822_v14 = vmul.f32 %v8851_v32, %v775_v16  ;;  %v1711_v1 = vsel %vm9327_vm2, %v870_v6, 0.0  ;;  %v688_v52 = vadd.f32 %v9309_v58, %v8740_v23 }
 0x141   : > { %1981 = vrot.lane.b32.xlu0 %v9439_v35, %s8004_s13  ;;  %v871_v37 = vadd.f32 %v8886_v59, %v824_v8  ;;  %vm14433_vm15 = vnez %v14432_v4  ;;  %v2150_v28 = vrot.slane %v1854_v31, 2  ;;  %v1709_v12 = vsel %vm9341_vm9, %v868_v40, 0.0 }
 0x142   : > { %v14436_v26 = vsel %vm14433_vm15, %v14434_v54, %v14435_v42  ;;  %v869_v6 = vadd.f32 %v8886_v59, %v822_v14  ;;  %vm14439_vm2 = vnez %v14299_v39  ;;  %v9478_v4 = vsub.s32 %v8971_v63, %v1270_v43 }
 0x143   : > { %vm9460_vm0 = vcmp.lt.s32.totalorder %v14436_v26, 16  ;;  %v14440_v58 = vsel %vm14439_vm2, %v8863_v51, %v8695_v61  ;;  %v2149_v27 = vrot.slane %v1858_v34, 1  ;;  %v1712_v56 = vsel %vm9371_vm13, %v871_v37, 0.0 }
 0x144   : > { %vm9473_vm7 = vcmp.lt.s32.totalorder %v14440_v58, 16  ;;  %v780_v40 = vmax.f32 %v688_v52, 0.0  ;;  %v680_v39 = vadd.f32 %v8740_v23, %v9331_v60  ;;  %vm14443_vm9 = vnez %v14301_v19  ;;  %v9529_v52 = vpop.f32.mrb[28].mxu0 }
 0x145   : > { %v14444_v61 = vsel %vm14443_vm9, %v8879_v38, %v8698_v57  ;;  %vm14447_vm3 = vsmask.f32 6400  ;;  %v14448_v29 = vshrl.u32 %v9288_v7, 16  ;;  %v1749_v14 = vpack.c.bf16 %v1712_v56, %v1711_v1  ;;  %v14450_v57 = vld [vmem:[#allocation34_spill] sm:$0xff]  ;;  %v9537_v42 = vpop.f32.mrb[29].mxu0 }
 0x146   : > { %vm9491_vm11 = vcmp.lt.s32.totalorder %v14444_v61, 16  ;;  %v9498_v63 = vsel %vm14447_vm3, %v9284_v33, %v9441_v45  ;;  %v1710_v60 = vsel %vm9395_vm10, %v869_v6, 0.0  ;;  %vm14449_vm13 = vnez %v14321_v47  ;;  %vm9525_vm10 = vmand %vm1438_vm12, %vm1398_vm4  ;;  %v9549_v56 = vpop.f32.mrb[30].mxu0 }
 0x147   : > { %v1852_v43 = vor.u32 %v14448_v29, %v1848_v21  ;;  %v14451_v19 = vsel %vm14449_vm13, %v8936_v2, %v14450_v57  ;;  %2222 = vrot.lane.b32.xlu0 %v9498_v63, %s8005_s14  ;;  %v14454_v33 = vrot.slane %v9265_v18, 1  ;;  %v14455_v21 = vrot.slane %v9288_v7, 1 }
 0x148   : > { %vm9509_vm1 = vcmp.lt.s32.totalorder %v14451_v19, 16  ;;  %vm14456_vm15 = vcmask 1046528   ;;  %v1748_v46 = vpack.c.bf16 %v1710_v60, %v1709_v12  ;;  %v827_v37 = vmul.f32 %v8851_v32, %v780_v40 }
 0x149   : > { %v2049_v1 = vsel %vm14456_vm15, %v14455_v21, %v14454_v33  ;;  %v778_v47 = vmax.f32 %v680_v39, 0.0  ;;  %v9532_v54 = vrot.slane %v1854_v31, 1  ;;  %vm14459_vm2 = vcmask 261120  }
 0x14a   : > { %2088 = vrot.lane.b32.xlu1 %v2049_v1, %s8003_s12  ;;  %1769 = vst.msk [vmem:[#allocation2 + $0x60] sm:$0xff] %vm14459_vm2, %v1749_v14  ;;  %v691_v7 = vadd.f32 %v9345_v55, %v8740_v23  ;;  %v9540_v26 = vsub.s32 %v9132_v10, %v1248_v49  ;;  %v1258_v12 = vshrl.u32 %v9274_v3, 4  ;;  %v9543_v6 = vor.u32 %v2150_v28, %v2149_v27  ;;  %vm14460_vm4 = vmmov %vm14459_vm2  ;;  %v9561_v27 = vpop.f32.mrb[31].mxu0 }
 0x14b   : > { %1768 = vst.msk [vmem:[#allocation2 + $0x58] sm:$0xff] %vm14460_vm4, %v1748_v46  ;;  %v825_v58 = vmul.f32 %v8851_v32, %v778_v47  ;;  %v683_v31 = vadd.f32 %v8740_v23, %v9375_v9  ;;  %v9552_v55 = vsub.s32 %v9204_v25, %v1281_v48  ;;  %vm14461_vm12 = vsmask.f32 7424 }
 0x14c   : > { %v1857_v10 = vsel %vm14461_vm12, %v1852_v43, %v9532_v54  ;;  %v874_v49 = vadd.f32 %v8886_v59, %v827_v37  ;;  %v781_v3 = vmax.f32 %v691_v7, 0.0  ;;  %v1558_v28 = vsel %vm9525_vm10, %v9378_v0, %v9089_v36 }
 0x14d   : > { %1983 = vrot.lane.b32.xlu0 %v1857_v10, %s8004_s13  ;;  %v872_v9 = vadd.f32 %v8886_v59, %v825_v58  ;;  %v779_v40 = vmax.f32 %v683_v31, 0.0  ;;  %v14462_v25 = vsel %vm9151_vm6, %v9075_v44, %v8996_v22  ;;  %vm1403_vm3 = vcmp.ne.s32.totalorder %v9478_v4, 0  ;;  %v14481_v31 = vld [vmem:[#allocation29_spill] sm:$0xff] }
 0x14e   : > { %vm9570_vm9 = vcmp.lt.s32.totalorder %v14462_v25, 16  ;;  %vm1443_vm13 = vcmp.lt.s32.totalorder %v9478_v4, 0  ;;  %3740 = vrot.lane.b32.xlu1 %v2049_v1, %s8003_s12  ;;  %v828_v36 = vmul.f32 %v8851_v32, %v781_v3  ;;  %v9579_v0 = vadd.s32 20, %v9478_v4 }
 0x14f   : > { %vm1401_vm15 = vcmp.ne.s32.totalorder %v9540_v26, 0  ;;  %v1259_v13 = vmul.u32 20, %v1258_v12  ;;  %vm14465_vm6 = vsmask.f32 6400  ;;  %v826_v44 = vmul.f32 %v8851_v32, %v779_v40 }
 0x150   : > { %v2152_v22 = vsel %vm14465_vm6, %v9441_v45, %v9543_v6  ;;  %v14466_v39 = vsel %vm9355_vm14, %v9249_v50, %v9029_v62  ;;  %vm1441_vm2 = vcmp.lt.s32.totalorder %v9540_v26, 0  ;;  %vm1404_vm4 = vcmp.ne.s32.totalorder %v9552_v55, 0 }
 0x151   : > { %vm9591_vm10 = vcmp.lt.s32.totalorder %v14466_v39, 16  ;;  %v1715_v29 = vsel %vm9460_vm0, %v874_v49, 0.0  ;;  %v875_v45 = vadd.f32 %v8886_v59, %v828_v36  ;;  %v704_v43 = vadd.f32 %v9424_v5, %v8740_v23  ;;  %vm9617_vm0 = vmand %vm1443_vm13, %vm1403_vm3  ;;  %2224 = vrot.lane.b32.xlu0 %v2152_v22, %s8005_s14 }
 0x152   : > { %v696_v24 = vadd.f32 %v8740_v23, %v9430_v17  ;;  %v14469_v62 = vsel %vm9296_vm8, %v9097_v41, %v9014_v11  ;;  %v1713_v53 = vsel %vm9473_vm7, %v872_v9, 0.0  ;;  %v873_v5 = vadd.f32 %v8886_v59, %v826_v44  ;;  %v9628_v41 = vpop.f32.mrb[32].mxu0  ;;  %3637 = vrot.lane.b32.xlu1 %v9439_v35, %s8004_s13  ;;  %vm9651_vm7 = vmand %vm1441_vm2, %vm1401_vm15 }
 0x153   : > { %vm9609_vm14 = vcmp.lt.s32.totalorder %v14469_v62, 16  ;;  %v707_v11 = vadd.f32 %v9436_v20, %v8740_v23  ;;  %vm1444_vm8 = vcmp.lt.s32.totalorder %v9552_v55, 0  ;;  %v1716_v17 = vsel %vm9491_vm11, %v875_v45, 0.0  ;;  %v9639_v19 = vpop.f32.mrb[33].mxu0 }
 0x154   : > { %v784_v14 = vmax.f32 %v704_v43, 0.0  ;;  %v782_v60 = vmax.f32 %v696_v24, 0.0  ;;  %vm9634_vm12 = vcmp.lt.s32.totalorder %v1558_v28, 16  ;;  %v1521_v57 = vadd.s32 20, %v9540_v26  ;;  %v9656_v1 = vpop.f32.mrb[34].mxu0  ;;  %vm9664_vm11 = vmand %vm1444_vm8, %vm1404_vm4  ;;  %v14483_v28 = vld [vmem:[#allocation12_spill] sm:$0xff] }
 0x155   : > { %v1751_v20 = vpack.c.bf16 %v1716_v17, %v1715_v29  ;;  %v1714_v33 = vsel %vm9509_vm1, %v873_v5, 0.0  ;;  %v1563_v35 = vsel %vm9617_vm0, %v9579_v0, %v9478_v4  ;;  %v1524_v21 = vadd.s32 20, %v9552_v55  ;;  %v9668_v2 = vpop.f32.mrb[35].mxu0  ;;  %3639 = vrot.lane.b32.xlu0 %v1857_v10, %s8004_s13 }
 0x156   : > { %v1750_v46 = vpack.c.bf16 %v1714_v33, %v1713_v53  ;;  %v831_v38 = vmul.f32 %v8851_v32, %v784_v14  ;;  %v829_v37 = vmul.f32 %v8851_v32, %v782_v60  ;;  %v785_v47 = vmax.f32 %v707_v11, 0.0  ;;  %3864 = vrot.lane.b32.xlu1 %v9498_v63, %s8005_s14  ;;  %v9709_v48 = vpop.f32.mrb[36].mxu0  ;;  %v1789_v33 = vld [vmem:[#allocation2 + $0x48] sm:$0xff] }
 0x157   : > { %v2050_v7 = vrot.slane %v9281_v30, 1  ;;  %v1862_v12 = vshll.u32 %v9281_v30, 16  ;;  %vm14480_vm1 = vcmask 261120   ;;  %v699_v58 = vadd.f32 %v8740_v23, %v9445_v15 }
 0x158   : > { %1771 = vst.msk [vmem:[#allocation2 + $0x70] sm:$0xff] %vm14480_vm1, %v1751_v20  ;;  %v2052_v49 = vrot.slane %v14481_v31, 1  ;;  %vm14482_vm3 = vmmov %vm14480_vm1  ;;  %v878_v3 = vadd.f32 %v8886_v59, %v831_v38  ;;  %v832_v10 = vmul.f32 %v8851_v32, %v785_v47  ;;  %v9683_v9 = vsub.s32 %v14483_v28, %v1259_v13 }
 0x159   : > { %1770 = vst.msk [vmem:[#allocation2 + $0x68] sm:$0xff] %vm14482_vm3, %v1750_v46  ;;  %v876_v40 = vadd.f32 %v8886_v59, %v829_v37  ;;  %v783_v25 = vmax.f32 %v699_v58, 0.0  ;;  %v1561_v15 = vsel %vm9651_vm7, %v1521_v57, %v9540_v26  ;;  %v1564_v63 = vsel %vm9664_vm11, %v1524_v21, %v9552_v55  ;;  %3866 = vrot.lane.b32.xlu0 %v2152_v22, %s8005_s14 }
 0x15a   : > { %v1866_v36 = vshrl.u32 %v9281_v30, 16  ;;  %v1870_v0 = vshll.u32 %v14481_v31, 16  ;;  %v1719_v44 = vsel %vm9570_vm9, %v878_v3, 0.0  ;;  %v879_v13 = vadd.f32 %v8886_v59, %v832_v10  ;;  %v9769_v10 = vld [vmem:[#allocation2 + $0x50] sm:$0xff] }
 0x15b   : > { %v14484_v39 = vrot.slane %v9265_v18, 1  ;;  %vm14485_vm13 = vcmask 1046528   ;;  %v1860_v26 = vor.u32 %v1858_v34, %v9532_v54  ;;  %v1864_v55 = vrot.slane %v1862_v12, 1  ;;  %v9723_v54 = vpop.f32.mrb[37].mxu0 }
 0x15c   : > { %v830_v30 = vmul.f32 %v8851_v32, %v783_v25  ;;  %vm9705_vm15 = vcmp.lt.s32.totalorder %v1563_v35, 16  ;;  %vm14488_vm9 = vmmov %vm14485_vm13  ;;  %v1720_v43 = vsel %vm9591_vm10, %v879_v13, 0.0  ;;  %vm9717_vm6 = vcmp.lt.s32.totalorder %v1561_v15, 16  ;;  %v9733_v5 = vpop.f32.mrb[38].mxu0 }
 0x15d   : > { %v2051_v29 = vsel %vm14485_vm13, %v14484_v39, %v2050_v7  ;;  %v2053_v22 = vsel %vm14488_vm9, %v2050_v7, %v2052_v49  ;;  %vm1402_vm2 = vcmp.ne.s32.totalorder %v9683_v9, 0  ;;  %vm1442_vm4 = vcmp.lt.s32.totalorder %v9683_v9, 0  ;;  %v9737_v57 = vpop.f32.mrb[39].mxu0  ;;  %vm14500_vm3 = vmmov %vm14488_vm9 }
 0x15e   : > { %2090 = vrot.lane.b32.xlu1 %v2051_v29, %s8003_s12  ;;  %v1874_v24 = vshrl.u32 %v14481_v31, 16  ;;  %v1717_v62 = vsel %vm9609_vm14, %v876_v40, 0.0  ;;  %v1753_v16 = vpack.c.bf16 %v1720_v43, %v1719_v44  ;;  %v877_v53 = vadd.f32 %v8886_v59, %v830_v30  ;;  %3742 = vrot.lane.b32.xlu0 %v2051_v29, %s8003_s12  ;;  %vm14494_vm14 = vmmov %vm14480_vm1 }
 0x15f   : > { %vm9729_vm0 = vcmp.lt.s32.totalorder %v1564_v63, 16  ;;  %v1872_v11 = vrot.slane %v1870_v0, 1  ;;  %v2153_v17 = vrot.slane %v1866_v36, 1  ;;  %v2154_v14 = vrot.slane %v1862_v12, 2  ;;  %vm9753_vm8 = vmand %vm1442_vm4, %vm1402_vm2 }
 0x160   : > { %v720_v60 = vadd.f32 %v9529_v52, %v8740_v23  ;;  %vm14493_vm10 = vsmask.f32 7424  ;;  %v1868_v20 = vor.u32 %v1866_v36, %v1864_v55  ;;  %1773 = vst.msk [vmem:[#allocation2 + $0x80] sm:$0xff] %vm14494_vm14, %v1753_v16  ;;  %v1718_v35 = vsel %vm9634_vm12, %v877_v53, 0.0  ;;  %vm14497_vm12 = vmmov %vm14480_vm1 }
 0x161   : > { %v1865_v50 = vsel %vm14493_vm10, %v1860_v26, %v1864_v55  ;;  %v712_v51 = vadd.f32 %v8740_v23, %v9537_v42  ;;  %v2158_v21 = vrot.slane %v1870_v0, 2  ;;  %v1752_v52 = vpack.c.bf16 %v1718_v35, %v1717_v62  ;;  %v9760_v42 = vld [vmem:[%s14022_s2] ss:$0 sm:$0xff]  ;;  %vm14498_vm7 = vmmov %vm14493_vm10 }
 0x162   : > { %2092 = vrot.lane.b32.xlu1 %v2053_v22, %s8003_s12  ;;  %v788_v46 = vmax.f32 %v720_v60, 0.0  ;;  %v723_v38 = vadd.f32 %v9549_v56, %v8740_v23  ;;  %v2157_v8 = vrot.slane %v1874_v24, 1  ;;  %v715_v4 = vadd.f32 %v9760_v42, %v9561_v27  ;;  %1985 = vrot.lane.b32.xlu0 %v1865_v50, %s8004_s13  ;;  %vm14503_vm9 = vmmov %vm14498_vm7  ;;  %v14506_v60 = vld [vmem:[#allocation7_spill] sm:$0xff] }
 0x163   : > { %v786_v47 = vmax.f32 %v712_v51, 0.0  ;;  %v1522_v23 = vadd.s32 20, %v9683_v9  ;;  %v2155_v56 = vor.u32 %v2154_v14, %v2153_v17  ;;  %v3522_v7 = vshll.u32 %v1789_v33, 16  ;;  %1772 = vst.msk [vmem:[#allocation2 + $0x78] sm:$0xff] %vm14497_vm12, %v1752_v52  ;;  %vm14507_vm4 = vmmov %vm14498_vm7 }
 0x164   : > { %v835_v12 = vmul.f32 %v8851_v32, %v788_v46  ;;  %v789_v58 = vmax.f32 %v723_v38, 0.0  ;;  %v1873_v3 = vsel %vm14498_vm7, %v1868_v20, %v1872_v11  ;;  %v787_v40 = vmax.f32 %v715_v4, 0.0 }
 0x165   : > { %v833_v28 = vmul.f32 %v8851_v32, %v786_v47  ;;  %v1562_v27 = vsel %vm9753_vm8, %v1522_v23, %v9683_v9  ;;  %v2054_v25 = vrot.slane %v1789_v33, 1  ;;  %v2056_v15 = vrot.slane %v9769_v10, 1 }
 0x166   : > { %3744 = vrot.lane.b32.xlu1 %v2053_v22, %s8003_s12  ;;  %v882_v63 = vadd.f32 %v8886_v59, %v835_v12  ;;  %v836_v36 = vmul.f32 %v8851_v32, %v789_v58  ;;  %v9779_v0 = vor.u32 %v2158_v21, %v2157_v8  ;;  %v3520_v44 = vor.u32 %v1874_v24, %v1872_v11  ;;  %v9827_v21 = vld [vmem:[#allocation2 + $0x58] sm:$0xff] }
 0x167   : > { %v880_v13 = vadd.f32 %v8886_v59, %v833_v28  ;;  %v834_v39 = vmul.f32 %v8851_v32, %v787_v40  ;;  %v3524_v29 = vrot.slane %v3522_v7, 1  ;;  %vm1602_vm11 = vcmp.lt.s32.totalorder %v1562_v27, 16  ;;  %1987 = vrot.lane.b32.xlu0 %v1873_v3, %s8004_s13  ;;  %v9857_v28 = vld [vmem:[%s14023_s3] ss:$0 sm:$0xff] }
 0x168   : > { %v1723_v9 = vsel %vm9705_vm15, %v882_v63, 0.0  ;;  %v883_v26 = vadd.f32 %v8886_v59, %v836_v36  ;;  %v1882_v55 = vshrl.u32 %v1789_v33, 16  ;;  %vm14499_vm1 = vsmask.f32 6400  ;;  %vm14502_vm15 = vmmov %vm14500_vm3  ;;  %v9863_v36 = vld [vmem:[#allocation2 + $0x60] sm:$0xff] }
 0x169   : > { %v1721_v30 = vsel %vm9717_vm6, %v880_v13, 0.0  ;;  %v881_v22 = vadd.f32 %v8886_v59, %v834_v39  ;;  %v2156_v32 = vsel %vm14499_vm1, %v9543_v6, %v2155_v56  ;;  %v9796_v45 = vsel %vm14500_vm3, %v2052_v49, %v2054_v25  ;;  %vm14501_vm13 = vmmov %vm14499_vm1 }
 0x16a   : > { %3641 = vrot.lane.b32.xlu1 %v1865_v50, %s8004_s13  ;;  %v1724_v43 = vsel %vm9729_vm0, %v883_v26, 0.0  ;;  %v1886_v24 = vshll.u32 %v9769_v10, 16  ;;  %v2160_v59 = vsel %vm14501_vm13, %v2155_v56, %v9779_v0  ;;  %v9806_v16 = vsel %vm14502_vm15, %v2054_v25, %v2056_v15  ;;  %vm14504_vm6 = vmmov %vm14497_vm12 }
 0x16b   : > { %v1755_v62 = vpack.c.bf16 %v1724_v43, %v1723_v9  ;;  %v1722_v34 = vsel %vm1602_vm11, %v881_v22, 0.0  ;;  %v9809_v6 = vsel %vm14503_vm9, %v3520_v44, %v3524_v29  ;;  %2226 = vrot.lane.b32.xlu0 %v2156_v32, %s8005_s14  ;;  %v1884_v53 = vor.u32 %v3524_v29, %v1882_v55  ;;  %vm14505_vm2 = vmmov %vm14504_vm6 }
 0x16c   : > { %v1754_v49 = vpack.c.bf16 %v1722_v34, %v1721_v30  ;;  %v2161_v61 = vrot.slane %v1882_v55, 1  ;;  %v2162_v11 = vrot.slane %v3522_v7, 2  ;;  %v736_v17 = vadd.f32 %v9760_v42, %v9628_v41  ;;  %vm14508_vm0 = vmmov %vm14499_vm1 }
 0x16d   : > { %1775 = vst.msk [vmem:[#allocation2 + $0x90] sm:$0xff] %vm14504_vm6, %v1755_v62  ;;  %v1890_v14 = vshrl.u32 %v9769_v10, 16  ;;  %v927_v50 = vadd.s32 272, %v14506_v60  ;;  %v925_v20 = vadd.s32 256, %v14506_v60  ;;  %v739_v33 = vadd.f32 %v9760_v42, %v9656_v1 }
 0x16e   : > { %2228 = vrot.lane.b32.xlu1 %v2160_v59, %s8005_s14  ;;  %1774 = vst.msk [vmem:[#allocation2 + $0x88] sm:$0xff] %vm14505_vm2, %v1754_v49  ;;  %v9822_v35 = vrot.slane %v1886_v24, 1  ;;  %v728_v51 = vadd.f32 %v9760_v42, %v9639_v19  ;;  %v928_v41 = vadd.s32 280, %v14506_v60  ;;  %v792_v52 = vmax.f32 %v736_v17, 0.0 }
 0x16f   : > { %v9829_v46 = vmul.u32.u64.low 3435973837, %v927_v50  ;;  %v9830_v38 = vmul.u32.u64.high 3435973837, %v927_v50, %v9829_v46  ;;  %v793_v37 = vmax.f32 %v739_v33, 0.0  ;;  %3643 = vrot.lane.b32.xlu0 %v1873_v3, %s8004_s13  ;;  %v2166_v1 = vrot.slane %v1886_v24, 2  ;;  %v9885_v24 = vld [vmem:[%s14024_s4] ss:$0 sm:$0xff] }
 0x170   : > { %v9835_v8 = vsel %vm14507_vm4, %v1884_v53, %v9822_v35  ;;  %v9837_v47 = vmul.u32.u64.low 3435973837, %v925_v20  ;;  %v9838_v4 = vmul.u32.u64.high 3435973837, %v925_v20, %v9837_v47  ;;  %v9841_v19 = vor.u32 %v2162_v11, %v2161_v61 }
 0x171   : > { %v2165_v23 = vrot.slane %v1890_v14, 1  ;;  %v9845_v56 = vmul.u32.u64.low 3435973837, %v928_v41  ;;  %v9846_v7 = vmul.u32.u64.high 3435973837, %v928_v41, %v9845_v56  ;;  %v9849_v12 = vrot.slane %v9827_v21, 1 }
 0x172   : > { %3868 = vrot.lane.b32.xlu1 %v2156_v32, %s8005_s14  ;;  %v731_v58 = vadd.f32 %v9760_v42, %v9668_v2  ;;  %v926_v3 = vadd.s32 264, %v14506_v60  ;;  %v839_v40 = vmul.f32 %v9857_v28, %v792_v52  ;;  %v1313_v27 = vshrl.u32 %v9830_v38, 4 }
 0x173   : > { %v790_v25 = vmax.f32 %v728_v51, 0.0  ;;  %v840_v63 = vmul.f32 %v9857_v28, %v793_v37  ;;  %3870 = vrot.lane.b32.xlu0 %v2160_v59, %s8005_s14  ;;  %v1291_v2 = vshrl.u32 %v9838_v4, 4  ;;  %v9874_v29 = vsel %vm14508_vm0, %v9779_v0, %v9841_v19 }
 0x174   : > { %v791_v44 = vmax.f32 %v731_v58, 0.0  ;;  %v9866_v13 = vmul.u32.u64.low 3435973837, %v926_v3  ;;  %v9867_v39 = vmul.u32.u64.high 3435973837, %v926_v3, %v9866_v13  ;;  %v2060_v9 = vrot.slane %v9863_v36, 1 }
 0x175   : > { %v1314_v26 = vmul.u32 20, %v1313_v27  ;;  %v1324_v55 = vshrl.u32 %v9846_v7, 4  ;;  %v9878_v30 = vor.u32 %v2166_v1, %v2165_v23  ;;  %v1894_v22 = vshll.u32 %v9827_v21, 16 }
 0x176   : > { %2094 = vrot.lane.b32.xlu1 %v9796_v45, %s8003_s12  ;;  %v1898_v32 = vshrl.u32 %v9827_v21, 16  ;;  %v1292_v43 = vmul.u32 20, %v1291_v2  ;;  %v886_v0 = vadd.f32 %v9885_v24, %v839_v40  ;;  %v837_v34 = vmul.f32 %v9857_v28, %v790_v25 }
 0x177   : > { %v1315_v62 = vsub.s32 %v927_v50, %v1314_v26  ;;  %v1325_v59 = vmul.u32 20, %v1324_v55  ;;  %2096 = vrot.lane.b32.xlu0 %v9806_v16, %s8003_s12  ;;  %v887_v53 = vadd.f32 %v9885_v24, %v840_v63  ;;  %v838_v61 = vmul.f32 %v9857_v28, %v791_v44 }
 0x178   : > { %v1293_v49 = vsub.s32 %v925_v20, %v1292_v43  ;;  %v1302_v11 = vshrl.u32 %v9867_v39, 4  ;;  %v2170_v46 = vrot.slane %v1894_v22, 2  ;;  %v2169_v1 = vrot.slane %v1898_v32, 1 }
 0x179   : > { %vm1407_vm10 = vcmp.ne.s32.totalorder %v1315_v62, 0  ;;  %vm1447_vm14 = vcmp.lt.s32.totalorder %v1315_v62, 0  ;;  %v1527_v17 = vadd.s32 20, %v1315_v62  ;;  %v1326_v50 = vsub.s32 %v928_v41, %v1325_v59 }
 0x17a   : > { %3645 = vrot.lane.b32.xlu1 %v9809_v6, %s8004_s13  ;;  %vm1487_vm8 = vmand %vm1447_vm14, %vm1407_vm10  ;;  %vm1405_vm12 = vcmp.ne.s32.totalorder %v1293_v49, 0  ;;  %vm1445_vm7 = vcmp.lt.s32.totalorder %v1293_v49, 0  ;;  %v1525_v33 = vadd.s32 20, %v1293_v49  ;;  %v1303_v51 = vmul.u32 20, %v1302_v11 }
 0x17b   : > { %v1567_v52 = vsel %vm1487_vm8, %v1527_v17, %v1315_v62  ;;  %vm1485_vm11 = vmand %vm1445_vm7, %vm1405_vm12  ;;  %vm1408_vm1 = vcmp.ne.s32.totalorder %v1326_v50, 0  ;;  %vm1448_vm3 = vcmp.lt.s32.totalorder %v1326_v50, 0  ;;  %v1528_v20 = vadd.s32 20, %v1326_v50  ;;  %1989 = vrot.lane.b32.xlu0 %v9809_v6, %s8004_s13 }
 0x17c   : > { %vm9898_vm13 = vcmp.lt.s32.totalorder %v1567_v52, 16  ;;  %v1565_v37 = vsel %vm1485_vm11, %v1525_v33, %v1293_v49  ;;  %vm1488_vm15 = vmand %vm1448_vm3, %vm1408_vm1  ;;  %v1304_v41 = vsub.s32 %v926_v3, %v1303_v51  ;;  %v884_v4 = vadd.f32 %v9885_v24, %v837_v34  ;;  %v9991_v33 = vpop.permute.xlu1 %2078 }
 0x17d   : > { %v1727_v47 = vsel %vm9898_vm13, %v886_v0, 0.0  ;;  %v1568_v6 = vsel %vm1488_vm15, %v1528_v20, %v1326_v50  ;;  %vm9909_vm9 = vcmp.lt.s32.totalorder %v1565_v37, 16  ;;  %v885_v7 = vadd.f32 %v9885_v24, %v838_v61  ;;  %v10004_v37 = vld [vmem:[#allocation2 + $0x70] sm:$0xff] }
 0x17e   : > { %1991 = vrot.lane.b32.xlu1 %v9835_v8, %s8004_s13  ;;  %vm1608_vm6 = vcmp.lt.s32.totalorder %v1568_v6, 16  ;;  %vm1406_vm2 = vcmp.ne.s32.totalorder %v1304_v41, 0  ;;  %vm1446_vm4 = vcmp.lt.s32.totalorder %v1304_v41, 0  ;;  %v1526_v58 = vadd.s32 20, %v1304_v41 }
 0x17f   : > { %v1728_v56 = vsel %vm1608_vm6, %v887_v53, 0.0  ;;  %vm1486_vm0 = vmand %vm1446_vm4, %vm1406_vm2  ;;  %2230 = vrot.lane.b32.xlu0 %v9874_v29, %s8005_s14  ;;  %vm14513_vm10 = vsmask.f32 6400  ;;  %v1892_v40 = vor.u32 %v1890_v14, %v9822_v35  ;;  %v1896_v27 = vrot.slane %v1894_v22, 1  ;;  %v9946_v22 = vpop.permute.xlu0 %2497 }
 0x180   : > { %v9919_v3 = vsel %vm14513_vm10, %v9841_v19, %v9878_v30  ;;  %v1757_v25 = vpack.c.bf16 %v1728_v56, %v1727_v47  ;;  %vm14514_vm14 = vcmask 1046528   ;;  %v1725_v2 = vsel %vm9909_vm9, %v884_v4, 0.0  ;;  %vm14518_vm1 = vmmov %vm14513_vm10 }
 0x181   : > { %v2061_v63 = vsel %vm14514_vm14, %v9849_v12, %v2060_v9  ;;  %v1566_v44 = vsel %vm1486_vm0, %v1526_v58, %v1304_v41  ;;  %v931_v19 = vadd.s32 304, %v14506_v60  ;;  %vm14515_vm8 = vmmov %vm14514_vm14  ;;  %v9939_v35 = vor.u32 %v2170_v46, %v2169_v1 }
 0x182   : > { %2232 = vrot.lane.b32.xlu1 %v9919_v3, %s8005_s14  ;;  %v9937_v14 = vsel %vm14515_vm8, %v2056_v15, %v9849_v12  ;;  %vm14516_vm12 = vcmask 261120   ;;  %vm1606_vm7 = vcmp.lt.s32.totalorder %v1566_v44, 16  ;;  %v929_v13 = vadd.s32 288, %v14506_v60  ;;  %vm14525_vm10 = vmmov %vm14515_vm8 }
 0x183   : > { %1777 = vst.msk [vmem:[#allocation2 + $0xa0] sm:$0xff] %vm14516_vm12, %v1757_v25  ;;  %v1726_v39 = vsel %vm1606_vm7, %v885_v7, 0.0  ;;  %v9943_v26 = vmul.u32.u64.low 3435973837, %v931_v19  ;;  %v9944_v55 = vmul.u32.u64.high 3435973837, %v931_v19, %v9943_v26  ;;  %3746 = vrot.lane.b32.xlu0 %v9796_v45, %s8003_s12  ;;  %vm14517_vm11 = vsmask.f32 7424  ;;  %vm14519_vm3 = vmmov %vm14516_vm12  ;;  %v10000_v46 = vpop.permute.xlu0 %2080 }
 0x184   : > { %v9951_v10 = vsel %vm14517_vm11, %v1892_v40, %v1896_v27  ;;  %v1906_v15 = vshrl.u32 %v9863_v36, 16  ;;  %v1756_v43 = vpack.c.bf16 %v1726_v39, %v1725_v2  ;;  %v752_v0 = vadd.f32 %v9760_v42, %v9709_v48  ;;  %vm14520_vm13 = vmmov %vm14517_vm11  ;;  %v10028_v39 = vpop.permute.xlu1 %2527 }
 0x185   : > { %v9960_v62 = vor.u32 %v1898_v32, %v1896_v27  ;;  %v9962_v34 = vmul.u32.u64.low 3435973837, %v929_v13  ;;  %v9963_v59 = vmul.u32.u64.high 3435973837, %v929_v13, %v9962_v34  ;;  %v932_v45 = vadd.s32 312, %v14506_v60  ;;  %vm14528_vm7 = vmmov %vm14518_vm1 }
 0x186   : > { %3872 = vrot.lane.b32.xlu1 %v9874_v29, %s8005_s14  ;;  %v9969_v49 = vsel %vm14518_vm1, %v9878_v30, %v9939_v35  ;;  %v1902_v53 = vshll.u32 %v9863_v36, 16  ;;  %1776 = vst.msk [vmem:[#allocation2 + $0x98] sm:$0xff] %vm14519_vm3, %v1756_v43  ;;  %v744_v48 = vadd.f32 %v9760_v42, %v9723_v54  ;;  %v755_v21 = vadd.f32 %v9760_v42, %v9733_v5  ;;  %v9977_v29 = vld [vmem:[#allocation2 + $0x68] sm:$0xff] }
 0x187   : > { %v1357_v32 = vshrl.u32 %v9944_v55, 4  ;;  %v9980_v61 = vmul.u32.u64.low 3435973837, %v932_v45  ;;  %v9981_v11 = vmul.u32.u64.high 3435973837, %v932_v45, %v9980_v61  ;;  %v9984_v30 = vadd.s32 296, %v14506_v60  ;;  %2100 = vrot.lane.b32.xlu0 %v2061_v63, %s8003_s12 }
 0x188   : > { %v2173_v17 = vrot.slane %v1906_v15, 1  ;;  %v2174_v50 = vrot.slane %v1902_v53, 2  ;;  %v796_v54 = vmax.f32 %v752_v0, 0.0  ;;  %v747_v5 = vadd.f32 %v9760_v42, %v9737_v57 }
 0x189   : > { %v1358_v51 = vmul.u32 20, %v1357_v32  ;;  %v1335_v52 = vshrl.u32 %v9963_v59, 4  ;;  %v9997_v60 = vmul.u32.u64.low 3435973837, %v9984_v30  ;;  %v9998_v20 = vmul.u32.u64.high 3435973837, %v9984_v30, %v9997_v60 }
 0x18a   : > { %2098 = vrot.lane.b32.xlu1 %v9937_v14, %s8003_s12  ;;  %v10002_v38 = vrot.slane %v1902_v53, 1  ;;  %v10007_v57 = vrot.slane %v9977_v29, 1  ;;  %v794_v42 = vmax.f32 %v744_v48, 0.0  ;;  %v797_v41 = vmax.f32 %v755_v21, 0.0  ;;  %v10070_v60 = vpop.permute.xlu1 %1973 }
 0x18b   : > { %v2064_v1 = vrot.slane %v10004_v37, 1  ;;  %v1359_v47 = vsub.s32 %v931_v19, %v1358_v51  ;;  %v1336_v4 = vmul.u32 20, %v1335_v52  ;;  %v1368_v6 = vshrl.u32 %v9981_v11, 4  ;;  %1993 = vrot.lane.b32.xlu0 %v9951_v10, %s8004_s13 }
 0x18c   : > { %v1905_v23 = vsel %vm14520_vm13, %v9960_v62, %v10002_v38  ;;  %v10016_v56 = vor.u32 %v2174_v50, %v2173_v17  ;;  %v843_v7 = vmul.f32 %v9857_v28, %v796_v54  ;;  %v795_v58 = vmax.f32 %v747_v5, 0.0  ;;  %v10144_v5 = vld [vmem:[#allocation2 + $0x20] sm:$0xff] }
 0x18d   : > { %vm1411_vm15 = vcmp.ne.s32.totalorder %v1359_v47, 0  ;;  %vm1451_vm9 = vcmp.lt.s32.totalorder %v1359_v47, 0  ;;  %v1531_v40 = vadd.s32 20, %v1359_v47  ;;  %v1337_v27 = vsub.s32 %v929_v13, %v1336_v4  ;;  %v10032_v13 = vpop.permute.xlu0 %2480 }
 0x18e   : > { %3748 = vrot.lane.b32.xlu1 %v9806_v16, %s8003_s12  ;;  %vm10021_vm6 = vmand %vm1451_vm9, %vm1411_vm15  ;;  %v841_v63 = vmul.f32 %v9857_v28, %v794_v42  ;;  %v844_v2 = vmul.f32 %v9857_v28, %v797_v41  ;;  %v1369_v44 = vmul.u32 20, %v1368_v6  ;;  %v1346_v19 = vshrl.u32 %v9998_v20, 4 }
 0x18f   : > { %v1571_v16 = vsel %vm10021_vm6, %v1531_v40, %v1359_v47  ;;  %vm1409_vm2 = vcmp.ne.s32.totalorder %v1337_v27, 0  ;;  %vm1449_vm4 = vcmp.lt.s32.totalorder %v1337_v27, 0  ;;  %v1529_v26 = vadd.s32 20, %v1337_v27  ;;  %2234 = vrot.lane.b32.xlu0 %v9969_v49, %s8005_s14  ;;  %vm14531_vm6 = vmmov %vm14525_vm10  ;;  %v10091_v40 = vpop.permute.xlu1 %2214 }
 0x190   : > { %v890_v55 = vadd.f32 %v9885_v24, %v843_v7  ;;  %vm10037_vm0 = vmand %vm1449_vm4, %vm1409_vm2  ;;  %v1370_v0 = vsub.s32 %v932_v45, %v1369_v44  ;;  %v842_v34 = vmul.f32 %v9857_v28, %v795_v58  ;;  %v1347_v59 = vmul.u32 20, %v1346_v19 }
 0x191   : > { %v2065_v53 = vsel %vm14525_vm10, %v10007_v57, %v2064_v1  ;;  %v1910_v48 = vshll.u32 %v9977_v29, 16  ;;  %vm10048_vm14 = vcmp.lt.s32.totalorder %v1571_v16, 16  ;;  %v1569_v32 = vsel %vm10037_vm0, %v1529_v26, %v1337_v27 }
 0x192   : > { %1995 = vrot.lane.b32.xlu1 %v1905_v23, %s8004_s13  ;;  %v891_v45 = vadd.f32 %v9885_v24, %v844_v2  ;;  %vm1412_vm8 = vcmp.ne.s32.totalorder %v1370_v0, 0  ;;  %vm1452_vm12 = vcmp.lt.s32.totalorder %v1370_v0, 0  ;;  %v1532_v28 = vadd.s32 20, %v1370_v0 }
 0x193   : > { %v2176_v61 = vsel %vm14528_vm7, %v9939_v35, %v10016_v56  ;;  %v1914_v11 = vshrl.u32 %v9977_v29, 16  ;;  %v888_v17 = vadd.f32 %v9885_v24, %v841_v63  ;;  %vm1492_vm11 = vmand %vm1452_vm12, %vm1412_vm8  ;;  %v1348_v50 = vsub.s32 %v9984_v30, %v1347_v59  ;;  %3647 = vrot.lane.b32.xlu0 %v9835_v8, %s8004_s13  ;;  %v10073_v30 = vpop.permute.xlu0 %1975  ;;  %v10109_v16 = vpop.permute.xlu1 %3734 }
 0x194   : > { %v1731_v54 = vsel %vm10048_vm14, %v890_v55, 0.0  ;;  %vm10065_vm1 = vcmp.lt.s32.totalorder %v1569_v32, 16  ;;  %v1572_v51 = vsel %vm1492_vm11, %v1532_v28, %v1370_v0  ;;  %v889_v52 = vadd.f32 %v9885_v24, %v842_v34  ;;  %vm14535_vm14 = vmmov %vm14528_vm7  ;;  %14536 = vst [vmem:[#allocation13_spill] sm:$0xff] %v10109_v16  ;;  %v10116_v0 = vld [vmem:[#allocation2 + $0x78] sm:$0xff]  ;;  %v10118_v34 = vld [vmem:[#allocation2 + $0x80] sm:$0xff] }
 0x195   : > { %vm1612_vm3 = vcmp.lt.s32.totalorder %v1572_v51, 16  ;;  %vm1410_vm13 = vcmp.ne.s32.totalorder %v1348_v50, 0  ;;  %vm1450_vm15 = vcmp.lt.s32.totalorder %v1348_v50, 0  ;;  %v1530_v29 = vadd.s32 20, %v1348_v50  ;;  %14539 = vst [vmem:[#allocation19_spill] sm:$0xff] %v10116_v0  ;;  %vm14540_vm12 = vmmov %vm14528_vm7 }
 0x196   : > { %2236 = vrot.lane.b32.xlu1 %v2176_v61, %s8005_s14  ;;  %v1908_v8 = vor.u32 %v1906_v15, %v10002_v38  ;;  %v10078_v20 = vrot.slane %v1910_v48, 1  ;;  %v2178_v42 = vrot.slane %v1910_v48, 2  ;;  %v1732_v41 = vsel %vm1612_vm3, %v891_v45, 0.0  ;;  %vm1490_vm9 = vmand %vm1450_vm15, %vm1410_vm13  ;;  %v7925_v32 = vld [vmem:[#allocation2 + $0x8] sm:$0xe0] }
 0x197   : > { %v2177_v24 = vrot.slane %v1914_v11, 1  ;;  %v1729_v47 = vsel %vm10065_vm1, %v888_v17, 0.0  ;;  %v1759_v4 = vpack.c.bf16 %v1732_v41, %v1731_v54  ;;  %v1570_v6 = vsel %vm1490_vm9, %v1530_v29, %v1348_v50  ;;  %2104 = vrot.lane.b32.xlu0 %v2065_v53, %s8003_s12  ;;  %v10097_v36 = vpop.permute.xlu0 %2216  ;;  %v2083_v59 = vpop.permute.xlu1 %2082  ;;  %vm14542_vm1 = vmmov %vm14531_vm6 }
 0x198   : > { %v2063_v23 = vsel %vm14531_vm6, %v2060_v9, %v10007_v57  ;;  %v1922_v15 = vshrl.u32 %v10004_v37, 16  ;;  %vm1610_vm2 = vcmp.lt.s32.totalorder %v1570_v6, 16  ;;  %vm14532_vm4 = vcmask 261120   ;;  %vm14543_vm13 = vmmov %vm14542_vm1  ;;  %v7927_v6 = vld [vmem:[#allocation2 + $0x10] sm:$0xff] }
 0x199   : > { %1779 = vst.msk [vmem:[#allocation2 + $0xb0] sm:$0xff] %vm14532_vm4, %v1759_v4  ;;  %v1730_v38 = vsel %vm1610_vm2, %v889_v52, 0.0  ;;  %v1918_v7 = vshll.u32 %v10004_v37, 16  ;;  %vm14533_vm0 = vsmask.f32 7424  ;;  %v10095_v25 = vor.u32 %v2178_v42, %v2177_v24  ;;  %vm14534_vm10 = vmmov %vm14532_vm4  ;;  %v14545_v4 = vld [vmem:[#allocation9_spill] sm:$0xff] }
 0x19a   : > { %2102 = vrot.lane.b32.xlu1 %v2063_v23, %s8003_s12  ;;  %v1758_v58 = vpack.c.bf16 %v1730_v38, %v1729_v47  ;;  %v1913_v27 = vsel %vm14533_vm0, %v1908_v8, %v10078_v20  ;;  %v10101_v9 = vor.u32 %v1914_v11, %v10078_v20  ;;  %v2181_v63 = vrot.slane %v1922_v15, 1  ;;  %vm14538_vm8 = vmmov %vm14533_vm0 }
 0x19b   : > { %1997 = vrot.lane.b32.xlu0 %v1913_v27, %s8004_s13  ;;  %v2182_v2 = vrot.slane %v1918_v7, 2  ;;  %v1920_v44 = vrot.slane %v1918_v7, 1  ;;  %v2180_v19 = vsel %vm14535_vm14, %v10016_v56, %v10095_v25  ;;  %v10112_v26 = vpop.permute.xlu0 %3736  ;;  %v10123_v56 = vrot.slane %v10116_v0, 1  ;;  %vm14541_vm7 = vmmov %vm14532_vm4  ;;  %v10140_v17 = vpop.permute.xlu1 %2084 }
 0x19c   : > { %1778 = vst.msk [vmem:[#allocation2 + $0xa8] sm:$0xff] %vm14534_vm10, %v1758_v58  ;;  %14537 = vst [vmem:[#allocation20_spill] sm:$0xff] %v10112_v26  ;;  %v1926_v53 = vshll.u32 %v10116_v0, 16  ;;  %v1930_v48 = vshrl.u32 %v10116_v0, 16  ;;  %v2544_v45 = vsel %vm14541_vm7, %v7925_v32, %v10032_v13  ;;  %vm2343_vm11 = vcmask 523264   ;;  %v10195_v32 = vld [vmem:[#allocation2 + $0x90] sm:$0xff] }
 0x19d   : > { %v1921_v55 = vsel %vm14538_vm8, %v10101_v9, %v1920_v44  ;;  %v2183_v43 = vor.u32 %v2182_v2, %v2181_v63  ;;  %v1924_v11 = vor.u32 %v1922_v15, %v1920_v44  ;;  %v2266_v13 = vrot.slane %v10144_v5, 2  ;;  %vm14544_vm15 = vmmov %vm14533_vm0  ;;  %v1797_v44 = vld [vmem:[#allocation2 + $0x88] sm:$0xff]  ;;  %v10346_v26 = vld [vmem:[#allocation2 + $0xa0] sm:$0xff] }
 0x19e   : > { %3649 = vrot.lane.b32.xlu1 %v9951_v10, %s8004_s13  ;;  %v2068_v10 = vrot.slane %v10118_v34, 1  ;;  %v2185_v50 = vrot.slane %v1930_v48, 1  ;;  %v2186_v54 = vrot.slane %v1926_v53, 2  ;;  %vm2386_vm3 = vcmask 785408   ;;  %vm14548_vm6 = vmmov %vm14532_vm4 }
 0x19f   : > { %2238 = vrot.lane.b32.xlu0 %v2180_v19, %s8005_s14  ;;  %v2184_v21 = vsel %vm14540_vm12, %v10095_v25, %v2183_v43  ;;  %v2219_v61 = vpop.permute.xlu0 %2218  ;;  %v2553_v51 = vsel %vm2343_vm11, %v2544_v45, %v9946_v22  ;;  %v2067_v52 = vsel %vm14543_vm13, %v2064_v1, %v10123_v56  ;;  %v1938_v29 = vshrl.u32 %v10118_v34, 16  ;;  %vm14550_vm2 = vmmov %vm14540_vm12 }
 0x1a0   : > { %v10138_v28 = vsel %vm14542_vm1, %v10123_v56, %v2068_v10  ;;  %v1934_v42 = vshll.u32 %v10118_v34, 16  ;;  %v2561_v41 = vsel %vm2386_vm3, %v2553_v51, %v10028_v39  ;;  %v1978_v24 = vpop.permute.xlu1 %1977  ;;  %v10162_v47 = vor.u32 %v2186_v54, %v2185_v50  ;;  %vm14552_vm4 = vmmov %vm14533_vm0  ;;  %v14554_v51 = vld [vmem:[#allocation16_spill] sm:$0xff] }
 0x1a1   : > { %v14546_v37 = vrot.slane %v14545_v4, 2  ;;  %vm14547_vm9 = vcmask 1045504   ;;  %v2305_v23 = vsel %vm14548_vm6, %v7927_v6, %v1978_v24  ;;  %v2189_v38 = vrot.slane %v1938_v29, 1  ;;  %vm14556_vm0 = vmmov %vm14548_vm6  ;;  %v7883_v4 = vld [vmem:[%s14025_s5 + $0x8] sm:$0xff]  }
 0x1a2   : > { %1999 = vrot.lane.b32.xlu1 %v1921_v55, %s8004_s13  ;;  %v2190_v39 = vrot.slane %v1934_v42, 2  ;;  %v2349_v7 = vsel %vm2343_vm11, %v2305_v23, %v2083_v59  ;;  %v1936_v63 = vrot.slane %v1934_v42, 1  ;;  %v2611_v19 = vrot.slane %v2561_v41, 5  ;;  %vm14558_vm10 = vmmov %vm14556_vm0 }
 0x1a3   : > { %3874 = vrot.lane.b32.xlu0 %v9919_v3, %s8005_s14  ;;  %v10142_v3 = vrot.slane %v1926_v53, 1  ;;  %v1980_v8 = vpop.permute.xlu0 %1979  ;;  %v10167_v1 = vsel %vm14547_vm9, %v14546_v37, %v2266_v13  ;;  %v10176_v58 = vsel %vm2386_vm3, %v2349_v7, %v2219_v61  ;;  %v2188_v53 = vsel %vm14550_vm2, %v2183_v43, %v10162_v47  ;;  %v7929_v37 = vld [vmem:[#allocation2 + $0x18] sm:$0xff]  ;;  %vm14559_vm14 = vmmov %vm14550_vm2 }
 0x1a4   : > { %v14103_v2 = vrot.slane %v10167_v1, 5  ;;  %v2612_v55 = vrot.slane %v10176_v58, 5  ;;  %v14101_v45 = vrot.slane %v10195_v32, 1  ;;  %v1942_v61 = vshll.u32 %v1797_v44, 16  ;;  %vm14561_vm8 = vmmov %vm14542_vm1 }
 0x1a5   : > { %v1929_v22 = vsel %vm14544_vm15, %v1924_v11, %v10142_v3  ;;  %v1932_v15 = vor.u32 %v1930_v48, %v10142_v3  ;;  %v10184_v48 = vpop.permute.xlu1 %3633  ;;  %v10201_v11 = vld [vmem:[#allocation2 + $0x28] sm:$0xff]  ;;  %v1946_v41 = vshrl.u32 %v1797_v44, 16  ;;  %v2070_v24 = vrot.slane %v1797_v44, 1  ;;  %vm14562_vm12 = vmmov %vm14547_vm9 }
 0x1a6   : > { %2240 = vrot.lane.b32.xlu1 %v2184_v21, %s8005_s14  ;;  %14551 = vst [vmem:[#allocation23_spill] sm:$0xff] %v10184_v48  ;;  %v10193_v21 = vor.u32 %v2190_v39, %v2189_v38  ;;  %v2613_v43 = vsel %vm2610_vm5, %v2611_v19, %v2612_v55  ;;  %v2268_v50 = vrot.slane %v10201_v11, 2  ;;  %v2307_v6 = vsel %vm14558_vm10, %v7929_v37, %v1980_v8  ;;  %vm14564_vm7 = vmmov %vm14542_vm1 }
 0x1a7   : > { %2108 = vrot.lane.b32.xlu0 %v10138_v28, %s8003_s12  ;;  %v10178_v27 = vpop.permute.xlu0 %3635  ;;  %v10191_v59 = vsel %vm14552_vm4, %v1932_v15, %v1936_v63  ;;  %2866 = vmatmul.mubr.bf16.vlgmr.msra.gmra.mrb[40].mxu0 %v2613_v43  ;;  %v14102_v15 = vshrl.u32 %v10195_v32, 16  ;;  %v14560_v38 = vmov 0   ;;  %v10232_v39 = vsel %vm14561_vm8, %v2070_v24, %v14101_v45  ;;  %vm14567_vm1 = vmmov %vm14552_vm4 }
 0x1a8   : > { %14549 = vst [vmem:[#allocation14_spill] sm:$0xff] %v10178_v27  ;;  %v10223_v23 = vsel %vm14559_vm14, %v10162_v47, %v10193_v21  ;;  %v1944_v8 = vrot.slane %v1942_v61, 1  ;;  %v10236_v7 = vsel %vm14562_vm12, %v2266_v13, %v2268_v50  ;;  %v1940_v19 = vor.u32 %v1938_v29, %v1936_v63  ;;  %v7884_v13 = vld [vmem:[%s14025_s5 + $0x10] sm:$0xff]   ;;  %vm14568_vm13 = vmmov %vm14556_vm0 }
 0x1a9   : > { %v2351_v43 = vsel %vm2343_vm11, %v2307_v6, %v10140_v17  ;;  %v2197_v34 = vrot.slane %v14102_v15, 1  ;;  %vm14569_vm15 = vmmov %vm14567_vm1  ;;  %v14570_v6 = vrot.slane %v9265_v18, 2  ;;  %vm3030_vm2 = vcmask 1044480  }
 0x1aa   : > { %2106 = vrot.lane.b32.xlu1 %v2067_v52, %s8003_s12  ;;  %v14555_v52 = vrot.slane %v14554_v51, 5  ;;  %v1948_v37 = vor.u32 %v1946_v41, %v1944_v8  ;;  %vm14573_vm6 = vmmov %vm14556_vm0  ;;  %v10358_v16 = vrot.slane %v10346_v26, 1 }
 0x1ab   : > { %2001 = vrot.lane.b32.xlu0 %v1929_v22, %s8004_s13  ;;  %v10204_v54 = vpop.permute.xlu0 %3862  ;;  %v10212_v22 = vpop.permute.xlu1 %3860  ;;  %vm14574_vm4 = vmmov %vm14559_vm14 }
 0x1ac   : > { %14553 = vst [vmem:[#allocation22_spill] sm:$0xff] %v10204_v54  ;;  %v2620_v42 = vsel %vm2610_vm5, %v14555_v52, %v14103_v2  ;;  %14557 = vst [vmem:[#allocation15_spill] sm:$0xff] %v10212_v22 }
 0x1ad   : > { %7426 = vmatprep.mubr.msk.bf16.mxu0 %vm14556_vm0, %v2620_v42  ;;  %v10245_v42 = vsel %vm14564_vm7, %v2068_v10, %v2070_v24  ;;  %v10278_v24 = vld [vmem:[#allocation2 + $0x60] sm:$0xff]  ;;  %vm14579_vm0 = vmmov %vm14574_vm4 }
 0x1ae   : > { %3876 = vrot.lane.b32.xlu1 %v9969_v49, %s8005_s14  ;;  %v7882_v49 = vld [vmem:[%s14025_s5] sm:$0xff]   ;;  %vm14581_vm10 = vmmov %vm14564_vm7  ;;  %v14584_v22 = vrot.slane %v10278_v24, 1 }
 0x1af   : > { %2242 = vrot.lane.b32.xlu0 %v2188_v53, %s8005_s14  ;;  %3254 = vmatpush1.bf16.msra.mxu0 %v7882_v49  ;;  %v10238_v44 = vpop.permute.xlu0 %3738  ;;  %v2193_v53 = vrot.slane %v1946_v41, 1  ;;  %v2194_v49 = vrot.slane %v1942_v61, 2  ;;  %v2221_v52 = vpop.permute.xlu1 %2220  ;;  %v14565_v41 = vld [vmem:[#allocation17_spill] sm:$0xff]  ;;  %vm14582_vm14 = vmmov %vm14573_vm6 }
 0x1b0   : > { %3255 = vmatprep.subr.bf16.mxu0 %v14560_v38  ;;  %14563 = vst [vmem:[#allocation10_spill] sm:$0xff] %v10238_v44  ;;  %v10253_v29 = vsel %vm2386_vm3, %v2351_v43, %v2221_v52  ;;  %v10267_v52 = vsel %vm14567_vm1, %v1940_v19, %v1944_v8  ;;  %v10283_v8 = vsel %vm14547_vm9, %v2268_v50, %v14570_v6  ;;  %v14571_v19 = vrot.slane %v10236_v7, 5  ;;  %vm14585_vm8 = vmmov %vm14564_vm7 }
 0x1b1   : > { %v2617_v10 = vrot.slane %v10253_v29, 5  ;;  %v2195_v45 = vor.u32 %v2194_v49, %v2193_v53  ;;  %v14572_v53 = vrot.slane %v10167_v1, 5  ;;  %v14104_v50 = vshll.u32 %v10278_v24, 16  ;;  %vm14587_vm12 = vmmov %vm14573_vm6 }
 0x1b2   : > { %2003 = vrot.lane.b32.xlu1 %v10191_v59, %s8004_s13  ;;  %v3713_v27 = vsel %vm14585_vm8, %v9849_v12, %v14584_v22  ;;  %vm14599_vm9 = vmmov %vm14573_vm6 }
 0x1b3   : > { %3750 = vrot.lane.b32.xlu0 %v9937_v14, %s8003_s12  ;;  %v1950_v14 = vshll.u32 %v10195_v32, 16  ;;  %3256 = vmatpush1.bf16.msra.mxu0 %v7883_v4  ;;  %v14566_v4 = vld [vmem:[#allocation18_spill] sm:$0xff]  ;;  %v1982_v43 = vpop.permute.xlu0 %1981  ;;  %v2087_v2 = vpop.permute.xlu1 %2086  ;;  %v2618_v17 = vsel %vm2610_vm5, %v2612_v55, %v2617_v10  ;;  %v2624_v18 = vsel %vm2610_vm5, %v14572_v53, %v14571_v19  ;;  %v3550_v19 = vshrl.u32 %v10278_v24, 16  ;;  %vm14610_vm8 = vmmov %vm14599_vm9 }
 0x1b4   : > { %3257 = vmatprep.subr.bf16.mxu0 %v14560_v38  ;;  %v2309_v15 = vsel %vm14568_vm13, %v10144_v5, %v1982_v43  ;;  %v7885_v5 = vld [vmem:[%s14025_s5 + $0x18] sm:$0xff]   ;;  %2874 = vmatmul.mubr.bf16.gmra.mrb[44].mxu0 %v2618_v17  ;;  %v14576_v17 = vrot.slane %v14566_v4, 3  ;;  %vm14594_vm13 = vmmov %vm14567_vm1 }
 0x1b5   : > { %v2198_v63 = vrot.slane %v1950_v14, 2  ;;  %v10262_v61 = vrot.slane %v1950_v14, 1  ;;  %v10276_v14 = vld [vmem:[#allocation2 + $0x98] sm:$0xff]  ;;  %v2353_v55 = vsel %vm2343_vm11, %v2309_v15, %v2087_v2  ;;  %7427 = vmatprep.mubr.msk.bf16.mxu0 %vm14573_vm6, %v2624_v18  ;;  %v10304_v2 = vsel %vm14574_vm4, %v10193_v21, %v2195_v45  ;;  %v7886_v18 = vld [vmem:[%s14025_s5 + $0x20] sm:$0xff]   ;;  %vm14601_vm6 = vmmov %vm14567_vm1 }
 0x1b6   : > { %2244 = vrot.lane.b32.xlu1 %v10223_v23, %s8005_s14  ;;  %v10307_v15 = vrot.slane %v10276_v14, 1  ;;  %v2627_v21 = vrot.slane %v10283_v8, 5  ;;  %v1958_v53 = vshll.u32 %v10276_v14, 16  ;;  %vm14602_vm4 = vmmov %vm14567_vm1 }
 0x1b7   : > { %2112 = vrot.lane.b32.xlu0 %v10232_v39, %s8003_s12  ;;  %v10274_v44 = vsel %vm14569_vm15, %v1948_v37, %v10262_v61  ;;  %3258 = vmatpush1.bf16.msra.mxu0 %v7884_v13  ;;  %v10296_v49 = vor.u32 %v2198_v63, %v2197_v34  ;;  %v14577_v34 = vrot.slane %v14565_v41, 3  ;;  %vm14597_vm15 = vmmov %vm14579_vm0 }
 0x1b8   : > { %14575 = vst [vmem:[#allocation4_spill] sm:$0xff] %v10307_v15  ;;  %3259 = vmatprep.subr.bf16.mxu0 %v14560_v38  ;;  %v2202_v48 = vrot.slane %v1958_v53, 2 }
 0x1b9   : > { %v2223_v37 = vpop.permute.xlu0 %2222  ;;  %v10316_v63 = vsel %vm3030_vm2, %v14577_v34, %v14576_v17  ;;  %v1962_v17 = vshrl.u32 %v10276_v14, 16  ;;  %v14580_v34 = vrot.slane %v10195_v32, 1 }
 0x1ba   : > { %2110 = vrot.lane.b32.xlu1 %v10245_v42, %s8003_s12  ;;  %14578 = vst [vmem:[#allocation25_spill] sm:$0xff] %v10316_v63  ;;  %v10319_v6 = vsel %vm2386_vm3, %v2353_v55, %v2223_v37  ;;  %v10332_v55 = vsel %vm14579_vm0, %v2195_v45, %v10296_v49  ;;  %v3548_v37 = vrot.slane %v14104_v50, 1 }
 0x1bb   : > { %2005 = vrot.lane.b32.xlu0 %v10267_v52, %s8004_s13  ;;  %3260 = vmatpush1.bf16.msra.mxu0 %v7885_v5  ;;  %v2621_v13 = vrot.slane %v10319_v6, 5  ;;  %v10344_v54 = vsel %vm14581_vm10, %v14580_v34, %v10307_v15  ;;  %v7887_v34 = vld [vmem:[%s14025_s5 + $0x28] sm:$0xff]   ;;  %vm14605_vm10 = vmmov %vm14579_vm0 }
 0x1bc   : > { %v2089_v43 = vpop.permute.xlu1 %2088  ;;  %3261 = vmatprep.subr.bf16.mxu0 %v14560_v38 }
 0x1bd   : > { %v2622_v14 = vsel %vm2610_vm5, %v2617_v10, %v2621_v13 }
 0x1be   : > { %2007 = vrot.lane.b32.xlu1 %v10274_v44, %s8004_s13  ;;  %2882 = vmatmul.mubr.bf16.gmra.mrb[48].mxu0 %v2622_v14  ;;  %v10378_v14 = vsel %vm14564_vm7, %v10307_v15, %v10358_v16 }
 0x1bf   : > { %2246 = vrot.lane.b32.xlu0 %v10304_v2, %s8005_s14  ;;  %v1984_v5 = vpop.permute.xlu0 %1983  ;;  %3262 = vmatpush1.bf16.msra.mxu0 %v7886_v18  ;;  %14588 = vst [vmem:[#allocation5_spill] sm:$0xff] %v10378_v14 }
 0x1c0   : > { %v2311_v45 = vsel %vm14582_vm14, %v10201_v11, %v1984_v5  ;;  %v10350_v50 = vpop.permute.xlu1 %3740  ;;  %v14586_v11 = vrot.slane %v10236_v7, 5  ;;  %v3552_v5 = vor.u32 %v3550_v19, %v3548_v37  ;;  %3263 = vmatprep.subr.bf16.mxu0 %v14560_v38  ;;  %vm14608_vm14 = vmmov %vm14564_vm7 }
 0x1c1   : > { %14583 = vst [vmem:[#allocation21_spill] sm:$0xff] %v10350_v50  ;;  %v2201_v50 = vrot.slane %v1962_v17, 1  ;;  %v2355_v22 = vsel %vm2343_vm11, %v2311_v45, %v2089_v43  ;;  %v7888_v43 = vld [vmem:[%s14025_s5 + $0x30] sm:$0xff]   ;;  %vm14612_vm7 = vmmov %vm14610_vm8 }
 0x1c2   : > { %2248 = vrot.lane.b32.xlu1 %v10332_v55, %s8005_s14  ;;  %v2628_v10 = vsel %vm2610_vm5, %v14586_v11, %v2627_v21 }
 0x1c3   : > { %2114 = vrot.lane.b32.xlu0 %v10344_v54, %s8003_s12  ;;  %7428 = vmatprep.mubr.msk.bf16.mxu0 %vm14587_vm12, %v2628_v10  ;;  %v2225_v12 = vpop.permute.xlu0 %2224  ;;  %v1960_v10 = vrot.slane %v1958_v53, 1  ;;  %vm14611_vm12 = vmmov %vm14610_vm8 }
 0x1c4   : > { %v10373_v18 = vsel %vm2386_vm3, %v2355_v22, %v2225_v12  ;;  %v10380_v11 = vpop.permute.xlu1 %3637  ;;  %3264 = vmatpush1.bf16.msra.mxu0 %v7887_v34  ;;  %v3557_v12 = vsel %vm14567_vm1, %v3552_v5, %v10078_v20  ;;  %v10393_v22 = vor.u32 %v2202_v48, %v2201_v50  ;;  %v2465_v34 = vshll.u32 %v10346_v26, 16  ;;  %vm14613_vm1 = vmmov %vm14608_vm14 }
 0x1c5   : > { %14589 = vst [vmem:[#allocation6_spill] sm:$0xff] %v10380_v11  ;;  %v14105_v45 = vrot.slane %v10373_v18, 5  ;;  %v2469_v11 = vshrl.u32 %v10346_v26, 16  ;;  %3265 = vmatprep.subr.bf16.mxu0 %v14560_v38  ;;  %v3811_v50 = vrot.slane %v3550_v19, 1  ;;  %v14596_v5 = vshll.u32 %v10278_v24, 16 }
 0x1c6   : > { %3752 = vrot.lane.b32.xlu1 %v3713_v27, %s8003_s12  ;;  %v14590_v27 = vshrl.u32 %v10195_v32, 16  ;;  %14591 = vst [vmem:[#allocation11_spill] sm:$0xff] %v10393_v22  ;;  %v10422_v26 = vsel %vm14597_vm15, %v10296_v49, %v10393_v22  ;;  %v2515_v19 = vrot.slane %v2465_v34, 2  ;;  %vm14617_vm15 = vmmov %vm14612_vm7 }
 0x1c7   : > { %2499 = vrot.lane.b32.xlu0 %v10378_v14, %s8003_s12  ;;  %v10398_v32 = vpop.permute.xlu0 %3639  ;;  %v2626_v48 = vsel %vm2610_vm5, %v2621_v13, %v14105_v45  ;;  %v2514_v13 = vrot.slane %v2469_v11, 1  ;;  %v14615_v14 = vrot.slane %v14481_v31, 2 }
 0x1c8   : > { %v1956_v63 = vor.u32 %v14590_v27, %v10262_v61  ;;  %14592 = vst [vmem:[#allocation24_spill] sm:$0xff] %v10398_v32  ;;  %v14593_v61 = vrot.slane %v14565_v41, 5  ;;  %v10407_v20 = vpop.permute.xlu1 %3864  ;;  %3266 = vmatpush1.bf16.msra.mxu0 %v7888_v43 }
 0x1c9   : > { %14595 = vst [vmem:[#allocation30_spill] sm:$0xff] %v10407_v20  ;;  %2890 = vmatmul.mubr.bf16.gmra.mrb[52].mxu0 %v2626_v48  ;;  %3267 = vmatprep.subr.bf16.mxu0 %v14560_v38  ;;  %v3549_v48 = vsel %vm14601_vm6, %v9960_v62, %v3548_v37  ;;  %v2452_v62 = vld [vmem:[#allocation2 + $0xa8] sm:$0x3f] }
 0x1ca   : > { %3653 = vrot.lane.b32.xlu1 %v3557_v12, %s8004_s13  ;;  %v2632_v53 = vsel %vm2610_vm5, %v2627_v21, %v14593_v61  ;;  %v10405_v27 = vsel %vm14594_vm13, %v1956_v63, %v1960_v10  ;;  %v3812_v12 = vrot.slane %v14596_v5, 2  ;;  %v7889_v21 = vld [vmem:[%s14025_s5 + $0x38] sm:$0xff]   ;;  %v10424_v63 = vor.u32 %v1962_v17, %v1960_v10  ;;  %v7890_v17 = vld [vmem:[%s14025_s5 + $0x40] sm:$0xff]   ;;  %v2454_v37 = vld [vmem:[#allocation2 + $0xa8] sm:$0x7f] }
 0x1cb   : > { %2009 = vrot.lane.b32.xlu0 %v10405_v27, %s8004_s13  ;;  %7429 = vmatprep.mubr.msk.bf16.mxu0 %vm14599_vm9, %v2632_v53  ;;  %v10429_v43 = vpop.permute.xlu0 %3866  ;;  %v2467_v61 = vrot.slane %v2465_v34, 1  ;;  %v10444_v53 = vor.u32 %v2515_v19, %v2514_v13  ;;  %v2473_v19 = vshll.u32 %v2452_v62, 16  ;;  %v2522_v45 = vshll.u32 %v2454_v37, 16  ;;  %vm14618_vm9 = vmmov %vm14602_vm4 }
 0x1cc   : > { %14598 = vst [vmem:[#allocation26_spill] sm:$0xff] %v10424_v63  ;;  %14600 = vst [vmem:[#allocation32_spill] sm:$0xff] %v10429_v43  ;;  %v10434_v49 = vor.u32 %v3812_v12, %v3811_v50  ;;  %3268 = vmatpush1.bf16.msra.mxu0 %v7889_v21  ;;  %v7891_v21 = vld [vmem:[%s14025_s5 + $0x48] sm:$0xff]   ;;  %v2495_v32 = vrot.slane %v2452_v62, 1  ;;  %vm14616_vm13 = vcmask 1045504  }
 0x1cd   : > { %v10442_v10 = vsel %vm14602_vm4, %v10424_v63, %v2467_v61  ;;  %3269 = vmatprep.subr.bf16.mxu0 %v14560_v38  ;;  %v10461_v13 = vsel %vm14605_vm10, %v10393_v22, %v10444_v53  ;;  %v10472_v20 = vor.u32 %v2469_v11, %v2467_v61  ;;  %v10474_v22 = vld [vmem:[#allocation2 + $0x48] sm:$0xff]  ;;  %v2475_v63 = vrot.slane %v2473_v19, 1  ;;  %v7932_v61 = vld [vmem:[#allocation2] sm:$0xf8]  ;;  %vm14619_vm6 = vmmov %vm14616_vm13 }
 0x1ce   : > { %2250 = vrot.lane.b32.xlu1 %v10422_v26, %s8005_s14  ;;  %14603 = vst [vmem:[#allocation31_spill] sm:$0xff] %v10442_v10  ;;  %v3814_v50 = vsel %vm14579_vm0, %v9939_v35, %v10434_v49  ;;  %14606 = vst [vmem:[#allocation35_spill] sm:$0xff] %v10461_v13  ;;  %v1804_v35 = vld [vmem:[#allocation2] sm:$0xe0]  ;;  %v2524_v15 = vrot.slane %v2522_v45, 2  ;;  %v2496_v45 = vsel %vm14613_vm1, %v10358_v16, %v2495_v32 }
 0x1cf   : > { %3651 = vrot.lane.b32.xlu0 %v3549_v48, %s8004_s13  ;;  %v2519_v48 = vshrl.u32 %v2454_v37, 16  ;;  %vm14621_vm4 = vmmov %vm14619_vm6 }
 0x1d0   : > { %v2091_v5 = vpop.permute.xlu1 %2090  ;;  %v10449_v34 = vpop.permute.xlu0 %3742  ;;  %3270 = vmatpush1.bf16.msra.mxu0 %v7890_v17  ;;  %vm14623_vm10 = vmmov %vm14579_vm0 }
 0x1d1   : > { %14604 = vst [vmem:[#allocation27_spill] sm:$0xff] %v10449_v34  ;;  %3271 = vmatprep.subr.bf16.mxu0 %v14560_v38  ;;  %v14607_v34 = vrot.slane %v10278_v24, 1  ;;  %v2521_v0 = vrot.slane %v2519_v48, 1  ;;  %v7931_v24 = vld [vmem:[#allocation2 + $0x8] sm:$0xff] }
 0x1d2   : > { %2482 = vrot.lane.b32.xlu1 %v10442_v10, %s8004_s13  ;;  %v2303_v11 = vsel %vm14610_vm8, %v7931_v24, %v10073_v30  ;;  %v7934_v10 = vld [vmem:[#allocation2 + $0x38] sm:$0xff]  ;;  %vm14626_vm8 = vmmov %vm14612_vm7 }
 0x1d3   : > { %3878 = vrot.lane.b32.xlu0 %v3814_v50, %s8005_s14  ;;  %v3715_v50 = vsel %vm14608_vm14, %v14607_v34, %v10007_v57  ;;  %v2301_v34 = vsel %vm14611_vm12, %v7932_v61, %v10070_v60  ;;  %vm14625_vm14 = vmmov %vm14612_vm7 }
 0x1d4   : > { %v2093_v12 = vpop.permute.xlu1 %2092  ;;  %v1986_v17 = vpop.permute.xlu0 %1985  ;;  %3272 = vmatpush1.bf16.msra.mxu0 %v7891_v21  ;;  %v2477_v21 = vshrl.u32 %v2452_v62, 16  ;;  %v2476_v62 = vsel %vm14618_vm9, %v10472_v20, %v2475_v63  ;;  %v2345_v31 = vsel %vm2343_vm11, %v2301_v34, %v9991_v33  ;;  %vm14627_vm12 = vmmov %vm14618_vm9 }
 0x1d5   : > { %5477 = vmatprep.subr.bf16.mxu0 %v14560_v38 }
 0x1d6   : > { %2529 = vrot.lane.b32.xlu1 %v10461_v13, %s8005_s14  ;;  %v2259_v13 = vrot.slane %v1804_v35, 2  ;;  %v14614_v35 = vrot.slane %v10474_v22, 2 }
 0x1d7   : > { %3754 = vrot.lane.b32.xlu0 %v3715_v50, %s8003_s12  ;;  %v7933_v50 = vld [vmem:[#allocation2 + $0x30] sm:$0xff] }
 0x1d8   : > { %v10470_v43 = vpop.permute.xlu1 %3744  ;;  %v2313_v19 = vsel %vm14612_vm7, %v7933_v50, %v1986_v17  ;;  %v10494_v30 = vsel %vm14616_vm13, %v14615_v14, %v14614_v35  ;;  %v2525_v17 = vor.u32 %v2524_v15, %v2521_v0  ;;  %v10508_v50 = vld [vmem:[#allocation2 + $0x70] sm:$0xff]  ;;  %v2388_v35 = vsel %vm2386_vm3, %v2345_v31, %v10091_v40  ;;  %vm14628_vm7 = vmmov %vm14613_vm1 }
 0x1d9   : > { %14609 = vst [vmem:[#allocation33_spill] sm:$0xff] %v10470_v43  ;;  %v1988_v37 = vpop.permute.xlu0 %1987  ;;  %v2260_v43 = vrot.slane %v7931_v24, 2  ;;  %v2347_v24 = vsel %vm2343_vm11, %v2303_v11, %v10000_v46  ;;  %v2357_v61 = vsel %vm2343_vm11, %v2313_v19, %v2091_v5  ;;  %v3566_v11 = vshrl.u32 %v10508_v50, 16  ;;  %vm14629_vm1 = vmmov %vm14579_vm0 }
 0x1da   : > { %2503 = vrot.lane.b32.xlu1 %v2495_v32, %s8003_s12  ;;  %v2315_v60 = vsel %vm14617_vm15, %v7934_v10, %v1988_v37  ;;  %v2479_v10 = vor.u32 %v2477_v21, %v2475_v63  ;;  %v2639_v37 = vrot.slane %v10494_v30, 5  ;;  %v2526_v5 = vsel %vm14579_vm0, %v10444_v53, %v2525_v17  ;;  %vm14630_vm13 = vmmov %vm14626_vm8 }
 0x1db   : > { %2501 = vrot.lane.b32.xlu0 %v2496_v45, %s8003_s12  ;;  %v2261_v32 = vsel %vm14619_vm6, %v2259_v13, %v2260_v43  ;;  %v14620_v45 = vld [vmem:[#allocation8_spill] sm:$0xff]  ;;  %v2359_v46 = vsel %vm2343_vm11, %v2315_v60, %v2093_v12  ;;  %v10529_v19 = vsel %vm2386_vm3, %v2347_v24, %v10097_v36  ;;  %v3819_v40 = vrot.slane %v3566_v11, 1  ;;  %vm14631_vm15 = vmmov %vm14618_vm9 }
 0x1dc   : > { %v10487_v48 = vpop.permute.xlu1 %3641  ;;  %v2263_v0 = vsel %vm14621_vm4, %v2260_v43, %v14620_v45  ;;  %v3034_v33 = vrot.slane %v2261_v32, 3  ;;  %v3562_v43 = vshll.u32 %v10508_v50, 16  ;;  %v14624_v45 = vrot.slane %v14566_v4, 5  ;;  %vm14632_vm9 = vmmov %vm14626_vm8 }
 0x1dd   : > { %v2227_v14 = vpop.permute.xlu0 %2226  ;;  %v3035_v12 = vrot.slane %v2263_v0, 3  ;;  %vm14633_vm6 = vmmov %vm14628_vm7 }
 0x1de   : > { %2484 = vrot.lane.b32.xlu1 %v2476_v62, %s8004_s13  ;;  %v10513_v15 = vsel %vm2386_vm3, %v2357_v61, %v2227_v14  ;;  %v14622_v62 = vrot.slane %v10373_v18, 5  ;;  %v7892_v14 = vld [vmem:[%s14025_s5 + $0xa0] sm:$0xff]   ;;  %v3820_v31 = vrot.slane %v3562_v43, 2  ;;  %v2640_v0 = vsel %vm2610_vm5, %v14624_v45, %v2639_v37  ;;  %vm14634_vm4 = vmmov %vm14579_vm0 }
 0x1df   : > { %v2629_v34 = vrot.slane %v10513_v15, 5  ;;  %2486 = vrot.lane.b32.xlu0 %v2479_v10, %s8004_s13  ;;  %v3036_v24 = vsel %vm3030_vm2, %v3034_v33, %v3035_v12  ;;  %v3818_v10 = vsel %vm14623_vm10, %v10434_v49, %v10095_v25  ;;  %v3031_v33 = vrot.slane %v2388_v35, 3  ;;  %v7893_v49 = vld [vmem:[%s14025_s5 + $0xa8] sm:$0xff]   ;;  %v7936_v45 = vld [vmem:[#allocation2 + $0x40] sm:$0xff]  ;;  %vm14637_vm10 = vmmov %vm14626_vm8 }
 0x1e0   : > { %v2229_v13 = vpop.permute.xlu1 %2228  ;;  %vm14636_vm0 = vcmask 1045504  }
 0x1e1   : > { %v10520_v63 = vsel %vm2386_vm3, %v2359_v46, %v2229_v13  ;;  %v10533_v60 = vpop.permute.xlu0 %3643  ;;  %v2630_v32 = vsel %vm2610_vm5, %v14622_v62, %v2629_v34  ;;  %v3564_v46 = vrot.slane %v3562_v43, 1  ;;  %v3716_v13 = vrot.slane %v10508_v50, 1 }
 0x1e2   : > { %v2633_v21 = vrot.slane %v10520_v63, 5  ;;  %2531 = vrot.lane.b32.xlu1 %v2526_v5, %s8005_s14  ;;  %2898 = vmatmul.mubr.bf16.gmra.mrb[56].mxu0 %v2630_v32  ;;  %v3821_v43 = vor.u32 %v3820_v31, %v3819_v40  ;;  %v3039_v62 = vrot.slane %v14554_v51, 3  ;;  %v7902_v32 = vld [vmem:[%s14025_s5 + $0xf0] sm:$0xff]  }
 0x1e3   : > { %2533 = vrot.lane.b32.xlu0 %v2525_v17, %s8005_s14  ;;  %v3032_v17 = vrot.slane %v10529_v19, 3  ;;  %7455 = vmatprep.mubr.msk.bf16.mxu0 %vm14626_vm8, %v3036_v24  ;;  %v3565_v5 = vsel %vm14627_vm12, %v10101_v9, %v3564_v46  ;;  %v3717_v19 = vsel %vm14628_vm7, %v10007_v57, %v3716_v13  ;;  %v3568_v35 = vor.u32 %v3566_v11, %v3564_v46  ;;  %v7894_v51 = vld [vmem:[%s14025_s5 + $0xb0] sm:$0xff]   ;;  %vm14639_vm12 = vmmov %vm14636_vm0 }
 0x1e4   : > { %v10541_v61 = vpop.permute.xlu1 %3868  ;;  %v2634_v36 = vsel %vm2610_vm5, %v2629_v34, %v2633_v21  ;;  %v3040_v57 = vsel %vm3030_vm2, %v3035_v12, %v3039_v62  ;;  %v10591_v40 = vld [vmem:[#allocation2 + $0x50] sm:$0xff]  ;;  %v3037_v12 = vrot.slane %v10176_v58, 3  ;;  %v3826_v58 = vsel %vm14634_vm4, %v3821_v43, %v10162_v47  ;;  %vm14640_vm7 = vmmov %vm14626_vm8 }
 0x1e5   : > { %2906 = vmatmul.mubr.bf16.vlgmr.msra.gmra.mrb[0].mxu1 %v2634_v36  ;;  %v10560_v34 = vpop.permute.xlu0 %3870  ;;  %v3033_v9 = vsel %vm3030_vm2, %v3031_v33, %v3032_v17  ;;  %v3822_v36 = vsel %vm14629_vm1, %v10095_v25, %v3821_v43  ;;  %v3573_v24 = vsel %vm14631_vm15, %v3568_v35, %v10142_v3  ;;  %v2278_v31 = vrot.slane %v10591_v40, 2  ;;  %vm14641_vm1 = vmmov %vm14640_vm7 }
 0x1e6   : > { %3880 = vrot.lane.b32.xlu1 %v3818_v10, %s8005_s14  ;;  %7431 = vmatprep.mubr.msk.bf16.mxu1 %vm14625_vm14, %v2640_v0  ;;  %v7895_v10 = vld [vmem:[%s14025_s5 + $0xb8] sm:$0xff]   ;;  %v3719_v0 = vsel %vm14633_vm6, %v3716_v13, %v10123_v56  ;;  %v3043_v33 = vrot.slane %v10167_v1, 3  ;;  %v3038_v13 = vsel %vm3030_vm2, %v3032_v17, %v3037_v12  ;;  %v7896_v1 = vld [vmem:[%s14025_s5 + $0xc0] sm:$0xff]   ;;  %vm14638_vm14 = vmmov %vm14626_vm8 }
 0x1e7   : > { %4338 = vmatpush1.bf16.msra.mxu1 %v7892_v14  ;;  %3655 = vrot.lane.b32.xlu0 %v3565_v5, %s8004_s13  ;;  %vm14644_vm15 = vmmov %vm14636_vm0 }
 0x1e8   : > { %v2095_v50 = vpop.permute.xlu1 %2094  ;;  %4339 = vmatprep.subr.bf16.mxu1 %v14560_v38  ;;  %v3044_v35 = vsel %vm3030_vm2, %v3039_v62, %v3043_v33  ;;  %v3041_v62 = vrot.slane %v10253_v29, 3  ;;  %vm14646_vm6 = vmmov %vm14641_vm1 }
 0x1e9   : > { %v2097_v14 = vpop.permute.xlu0 %2096  ;;  %vm14647_vm4 = vmmov %vm14636_vm0 }
 0x1ea   : > { %3756 = vrot.lane.b32.xlu1 %v3717_v19, %s8003_s12  ;;  %3286 = vmatmul.mubr.bf16.vlgmr.msra.gmra.mrb[60].mxu0 %v3033_v9 }
 0x1eb   : > { %4340 = vmatpush1.bf16.msra.mxu1 %v7893_v49  ;;  %3882 = vrot.lane.b32.xlu0 %v3822_v36, %s8005_s14  ;;  %v14635_v49 = vrot.slane %v10474_v22, 2 }
 0x1ec   : > { %v10584_v11 = vpop.permute.xlu1 %3645  ;;  %4341 = vmatprep.subr.bf16.mxu1 %v14560_v38  ;;  %7456 = vmatprep.mubr.msk.bf16.mxu0 %vm14630_vm13, %v3040_v57  ;;  %vm14643_vm13 = vmmov %vm14641_vm1 }
 0x1ed   : > { %5478 = vmatpush1.bf16.msra.mxu0 %v7902_v32  ;;  %v1990_v25 = vpop.permute.xlu0 %1989  ;;  %v10611_v5 = vsel %vm14636_vm0, %v14635_v49, %v2278_v31  ;;  %vm14648_vm0 = vmmov %vm14641_vm1 }
 0x1ee   : > { %3657 = vrot.lane.b32.xlu1 %v3573_v24, %s8004_s13  ;;  %5479 = vmatprep.subr.bf16.mxu0 %v14560_v38  ;;  %v2317_v3 = vsel %vm14632_vm9, %v7936_v45, %v1990_v25  ;;  %v2643_v9 = vrot.slane %v10611_v5, 5  ;;  %v7904_v25 = vld [vmem:[%s14025_s5 + $0xf8] sm:$0xff]   ;;  %vm14645_vm9 = vmmov %vm14641_vm1 }
 0x1ef   : > { %4342 = vmatpush1.bf16.msra.mxu1 %v7894_v51  ;;  %3758 = vrot.lane.b32.xlu0 %v3719_v0, %s8003_s12  ;;  %v2361_v56 = vsel %vm2343_vm11, %v2317_v3, %v2095_v50  ;;  %v10631_v50 = vld [vmem:[#allocation2 + $0x58] sm:$0xff]  ;;  %v3045_v0 = vrot.slane %v10319_v6, 3 }
 0x1f0   : > { %v1992_v46 = vpop.permute.xlu1 %1991  ;;  %4343 = vmatprep.subr.bf16.mxu1 %v14560_v38 }
 0x1f1   : > { %v2231_v19 = vpop.permute.xlu0 %2230  ;;  %v2319_v47 = vsel %vm14637_vm10, %v10474_v22, %v1992_v46  ;;  %v2280_v22 = vrot.slane %v10631_v50, 2  ;;  %5480 = vmatpush1.bf16.msra.mxu0 %v7904_v25  ;;  %v7906_v25 = vld [vmem:[%s14025_s5 + $0x100] sm:$0xff]   ;;  %vm14651_vm10 = vmmov %vm14648_vm0 }
 0x1f2   : > { %3884 = vrot.lane.b32.xlu1 %v3826_v58, %s8005_s14  ;;  %v10622_v43 = vsel %vm2386_vm3, %v2361_v56, %v2231_v19  ;;  %3294 = vmatmul.mubr.bf16.gmra.mrb[64].mxu0 %v3038_v13  ;;  %v2363_v51 = vsel %vm2343_vm11, %v2319_v47, %v2097_v14  ;;  %v3047_v14 = vrot.slane %v10236_v7, 3  ;;  %v3046_v13 = vsel %vm3030_vm2, %v3041_v62, %v3045_v0 }
 0x1f3   : > { %4344 = vmatpush1.bf16.msra.mxu1 %v7895_v10  ;;  %v2637_v17 = vrot.slane %v10622_v43, 5  ;;  %3659 = vrot.lane.b32.xlu0 %v10191_v59, %s8004_s13  ;;  %v7897_v59 = vld [vmem:[%s14025_s5 + $0xc8] sm:$0xff]   ;;  %v3042_v10 = vsel %vm3030_vm2, %v3037_v12, %v3041_v62  ;;  %v3049_v62 = vrot.slane %v10373_v18, 3 }
 0x1f4   : > { %v2233_v32 = vpop.permute.xlu1 %2232  ;;  %4345 = vmatprep.subr.bf16.mxu1 %v14560_v38  ;;  %7457 = vmatprep.mubr.msk.bf16.mxu0 %vm14638_vm14, %v3044_v35  ;;  %vm14653_vm14 = vmmov %vm14648_vm0 }
 0x1f5   : > { %v10638_v36 = vpop.permute.xlu0 %3746  ;;  %v2638_v57 = vsel %vm2610_vm5, %v2633_v21, %v2637_v17  ;;  %v10647_v24 = vsel %vm2386_vm3, %v2363_v51, %v2233_v32  ;;  %v10660_v21 = vsel %vm14639_vm12, %v2278_v31, %v2280_v22  ;;  %v3048_v31 = vsel %vm3030_vm2, %v3043_v33, %v3047_v14  ;;  %5481 = vmatprep.subr.bf16.mxu0 %v14560_v38  ;;  %vm14657_vm12 = vmmov %vm14648_vm0 }
 0x1f6   : > { %3760 = vrot.lane.b32.xlu1 %v10138_v28, %s8003_s12  ;;  %2914 = vmatmul.mubr.bf16.gmra.mrb[4].mxu1 %v2638_v57  ;;  %v2644_v28 = vsel %vm2610_vm5, %v2639_v37, %v2643_v9  ;;  %v2641_v37 = vrot.slane %v10647_v24, 5  ;;  %v2647_v3 = vrot.slane %v10660_v21, 5 }
 0x1f7   : > { %4346 = vmatpush1.bf16.msra.mxu1 %v7896_v1  ;;  %3886 = vrot.lane.b32.xlu0 %v10223_v23, %s8005_s14  ;;  %v7898_v23 = vld [vmem:[%s14025_s5 + $0xd0] sm:$0xff]  }
 0x1f8   : > { %v10652_v29 = vpop.permute.xlu1 %3872  ;;  %4347 = vmatprep.subr.bf16.mxu1 %v14560_v38  ;;  %7432 = vmatprep.mubr.msk.bf16.mxu1 %vm14626_vm8, %v2644_v28  ;;  %v2642_v33 = vsel %vm2610_vm5, %v2637_v17, %v2641_v37  ;;  %v2648_v49 = vsel %vm2610_vm5, %v2643_v9, %v2647_v3  ;;  %vm14655_vm8 = vmmov %vm14647_vm4 }
 0x1f9   : > { %v2101_v7 = vpop.permute.xlu0 %2100  ;;  %5482 = vmatpush1.bf16.msra.mxu0 %v7906_v25 }
 0x1fa   : > { %3661 = vrot.lane.b32.xlu1 %v10267_v52, %s8004_s13  ;;  %3302 = vmatmul.mubr.bf16.gmra.mrb[68].mxu0 %v3042_v10  ;;  %v10678_v52 = vld [vmem:[#allocation2 + $0x60] sm:$0xff] }
 0x1fb   : > { %4348 = vmatpush1.bf16.msra.mxu1 %v7897_v59  ;;  %3762 = vrot.lane.b32.xlu0 %v10245_v42, %s8003_s12  ;;  %v2282_v12 = vrot.slane %v10678_v52, 2  ;;  %v7899_v42 = vld [vmem:[%s14025_s5 + $0xd8] sm:$0xff]  }
 0x1fc   : > { %v2099_v45 = vpop.permute.xlu1 %2098  ;;  %4349 = vmatprep.subr.bf16.mxu1 %v14560_v38  ;;  %7458 = vmatprep.mubr.msk.bf16.mxu0 %vm14640_vm7, %v3048_v31  ;;  %vm14658_vm7 = vsmask.f32 7424 }
 0x1fd   : > { %v1994_v46 = vpop.permute.xlu0 %1993  ;;  %v10700_v6 = vsel %vm14644_vm15, %v2280_v22, %v2282_v12  ;;  %v10726_v22 = vld [vmem:[#allocation2 + $0xa8] sm:$0xff]  ;;  %5483 = vmatprep.subr.bf16.mxu0 %v14560_v38  ;;  %vm14664_vm15 = vmmov %vm14648_vm0 }
 0x1fe   : > { %3888 = vrot.lane.b32.xlu1 %v10304_v2, %s8005_s14  ;;  %v2321_v58 = vsel %vm14641_vm1, %v10591_v40, %v1994_v46  ;;  %2922 = vmatmul.mubr.bf16.gmra.mrb[8].mxu1 %v2642_v33  ;;  %v3051_v2 = vrot.slane %v10283_v8, 3  ;;  %v7900_v8 = vld [vmem:[%s14025_s5 + $0xe0] sm:$0xff]   ;;  %v2651_v35 = vrot.slane %v10700_v6, 5  ;;  %v14652_v33 = vld [vmem:[#allocation5_spill] sm:$0xff]  ;;  %vm14659_vm1 = vcmask 1046528  }
 0x1ff   : > { %4350 = vmatpush1.bf16.msra.mxu1 %v7898_v23  ;;  %3663 = vrot.lane.b32.xlu0 %v10274_v44, %s8004_s13  ;;  %v2365_v56 = vsel %vm2343_vm11, %v2321_v58, %v2099_v45  ;;  %v14649_v23 = vrot.slane %v14565_v41, 3  ;;  %v10775_v46 = vld [vmem:[#allocation2 + $0xa0] sm:$0xf] }
 0x200   : > { %v10692_v19 = vpop.permute.xlu1 %3748  ;;  %4351 = vmatprep.subr.bf16.mxu1 %v14560_v38  ;;  %7433 = vmatprep.mubr.msk.bf16.mxu1 %vm14643_vm13, %v2648_v49  ;;  %v3052_v1 = vsel %vm3030_vm2, %v3047_v14, %v3051_v2  ;;  %v2652_v59 = vsel %vm2610_vm5, %v2647_v3, %v2651_v35  ;;  %v14114_v14 = vshll.u32 %v10726_v22, 16  ;;  %v10761_v3 = vld [vmem:[#allocation2 + $0x70] sm:$0xff]  ;;  %v2076_v58 = vrot.slane %v10775_v46, 1  ;;  %vm14661_vm13 = vmmov %vm14659_vm1 }
 0x201   : > { %14642 = vst [vmem:[#allocation28_spill] sm:$0xff] %v10692_v19  ;;  %v2235_v40 = vpop.permute.xlu0 %2234  ;;  %v3056_v31 = vsel %vm3030_vm2, %v3051_v2, %v14649_v23  ;;  %v3053_v49 = vrot.slane %v10513_v15, 3  ;;  %v11196_v19 = vld [vmem:[#allocation2 + $0xa0] sm:$0xff] }
 0x202   : > { %3764 = vrot.lane.b32.xlu1 %v10232_v39, %s8003_s12  ;;  %v10710_v44 = vsel %vm2386_vm3, %v2365_v56, %v2235_v40  ;;  %3310 = vmatmul.mubr.bf16.gmra.mrb[72].mxu0 %v3046_v13  ;;  %v10714_v39 = vld [vmem:[#allocation2 + $0x68] sm:$0xff]  ;;  %v10773_v41 = vrot.slane %v14114_v14, 1  ;;  %v10784_v56 = vld [vmem:[#allocation2 + $0xa0] sm:$0x1f] }
 0x203   : > { %4352 = vmatpush1.bf16.msra.mxu1 %v7899_v42  ;;  %v2284_v32 = vrot.slane %v10714_v39, 2  ;;  %v2645_v9 = vrot.slane %v10710_v44, 5  ;;  %3890 = vrot.lane.b32.xlu0 %v10332_v55, %s8005_s14  ;;  %v7901_v55 = vld [vmem:[%s14025_s5 + $0xe8] sm:$0xff]   ;;  %v3730_v42 = vrot.slane %v10726_v22, 1 }
 0x204   : > { %v1996_v47 = vpop.permute.xlu1 %1995  ;;  %4353 = vmatprep.subr.bf16.mxu1 %v14560_v38  ;;  %7459 = vmatprep.mubr.msk.bf16.mxu0 %vm14645_vm9, %v3052_v1  ;;  %vm14665_vm9 = vmmov %vm14648_vm0 }
 0x205   : > { %v2323_v17 = vsel %vm14646_vm6, %v10631_v50, %v1996_v47  ;;  %v10729_v51 = vpop.permute.xlu0 %3647  ;;  %v2646_v57 = vsel %vm2610_vm5, %v2641_v37, %v2645_v9  ;;  %v2206_v47 = vshrl.u32 %v10784_v56, 16  ;;  %vm14668_vm6 = vmmov %vm14658_vm7 }
 0x206   : > { %3665 = vrot.lane.b32.xlu1 %v10405_v27, %s8004_s13  ;;  %2930 = vmatmul.mubr.bf16.gmra.mrb[12].mxu1 %v2646_v57  ;;  %v2367_v50 = vsel %vm2343_vm11, %v2323_v17, %v2101_v7  ;;  %v10738_v27 = vsel %vm14647_vm4, %v2282_v12, %v2284_v32  ;;  %v2286_v12 = vrot.slane %v10761_v3, 2  ;;  %v14656_v17 = vld [vmem:[#allocation35_spill] sm:$0xff]  ;;  %v14660_v57 = vld [vmem:[#allocation4_spill] sm:$0xff] }
 0x207   : > { %4354 = vmatpush1.bf16.msra.mxu1 %v7900_v8  ;;  %3766 = vrot.lane.b32.xlu0 %v10344_v54, %s8003_s12  ;;  %v3050_v54 = vsel %vm3030_vm2, %v3045_v0, %v3049_v62  ;;  %v2655_v10 = vrot.slane %v10738_v27, 5 }
 0x208   : > { %v2237_v28 = vpop.permute.xlu1 %2236  ;;  %4355 = vmatprep.subr.bf16.mxu1 %v14560_v38  ;;  %7434 = vmatprep.mubr.msk.bf16.mxu1 %vm14648_vm0, %v2652_v59  ;;  %v10791_v1 = vsel %vm14655_vm8, %v2284_v32, %v2286_v12  ;;  %v3731_v32 = vsel %vm14659_vm1, %v10358_v16, %v3730_v42  ;;  %v10809_v59 = vld [vmem:[#allocation2 + $0xb0] sm:$0xff]  ;;  %vm14673_vm8 = vmmov %vm14659_vm1 }
 0x209   : > { %v10745_v18 = vsel %vm2386_vm3, %v2367_v50, %v2237_v28  ;;  %v10754_v7 = vpop.permute.xlu0 %2104  ;;  %v2656_v40 = vsel %vm2610_vm5, %v2651_v35, %v2655_v10  ;;  %v3621_v35 = vsel %vm14658_vm7, %v10472_v20, %v10773_v41  ;;  %v3054_v20 = vsel %vm3030_vm2, %v3049_v62, %v3053_v49  ;;  %vm14676_vm7 = vmmov %vm14647_vm4 }
 0x20a   : > { %v2649_v37 = vrot.slane %v10745_v18, 5  ;;  %3892 = vrot.lane.b32.xlu1 %v10422_v26, %s8005_s14  ;;  %3318 = vmatmul.mubr.bf16.gmra.mrb[76].mxu0 %v3050_v54  ;;  %v14650_v26 = vld [vmem:[#allocation31_spill] sm:$0xff]  ;;  %v2659_v25 = vrot.slane %v10791_v1, 5  ;;  %v3626_v54 = vshll.u32 %v10809_v59, 16  ;;  %vm14677_vm1 = vmmov %vm14648_vm0 }
 0x20b   : > { %4356 = vmatpush1.bf16.msra.mxu1 %v7901_v55  ;;  %3667 = vrot.lane.b32.xlu0 %v14650_v26, %s8004_s13  ;;  %v2077_v55 = vsel %vm14661_vm13, %v14660_v57, %v2076_v58 }
 0x20c   : > { %v2103_v45 = vpop.permute.xlu1 %2102  ;;  %6617 = vmatprep.subr.bf16.mxu1 %v14560_v38  ;;  %7460 = vmatprep.mubr.msk.bf16.mxu0 %vm14651_vm10, %v3056_v31  ;;  %v2650_v0 = vsel %vm2610_vm5, %v2645_v9, %v2649_v37  ;;  %v2209_v9 = vshll.u32 %v10784_v56, 16  ;;  %v2208_v31 = vrot.slane %v2206_v47, 1  ;;  %v7908_v47 = vld [vmem:[%s14025_s5 + $0x108] sm:$0xff]   ;;  %v2660_v57 = vsel %vm2610_vm5, %v2655_v10, %v2659_v25 }
 0x20d   : > { %v1998_v2 = vpop.permute.xlu0 %1997  ;;  %5484 = vmatpush1.bf16.msra.mxu0 %v7908_v47  ;;  %v14115_v47 = vrot.slane %v10809_v59, 1  ;;  %vm14671_vm10 = vsmask.f32 6400 }
 0x20e   : > { %3768 = vrot.lane.b32.xlu1 %v14652_v33, %s8003_s12  ;;  %v2325_v13 = vsel %vm14653_vm14, %v10678_v52, %v1998_v2  ;;  %2938 = vmatmul.mubr.bf16.gmra.mrb[16].mxu1 %v2650_v0  ;;  %v1966_v52 = vshll.u32 %v10775_v46, 16  ;;  %v2211_v26 = vrot.slane %v2209_v9, 2  ;;  %v14662_v0 = vld [vmem:[#allocation19_spill] sm:$0xff]  ;;  %v3063_v9 = vrot.slane %v10494_v30, 3  ;;  %vm14672_vm14 = vmmov %vm14648_vm0  ;;  %v10963_v30 = vld [vmem:[#allocation2 + $0x20] sm:$0xfe] }
 0x20f   : > { %3894 = vrot.lane.b32.xlu0 %v14656_v17, %s8005_s14  ;;  %7435 = vmatprep.mubr.msk.bf16.mxu1 %vm14657_vm12, %v2656_v40  ;;  %v2369_v28 = vsel %vm2343_vm11, %v2325_v13, %v2103_v45  ;;  %v2288_v33 = vrot.slane %v14662_v0, 2  ;;  %v14663_v45 = vld [vmem:[#allocation25_spill] sm:$0xff]  ;;  %v3630_v13 = vshrl.u32 %v10809_v59, 16  ;;  %v3057_v17 = vrot.slane %v10520_v63, 3  ;;  %vm14674_vm12 = vmmov %vm14648_vm0 }
 0x210   : > { %v10788_v8 = vpop.permute.xlu1 %3649  ;;  %v10827_v40 = vrot.slane %v1966_v52, 1  ;;  %v14667_v52 = vld [vmem:[#allocation26_spill] sm:$0xff]  ;;  %5485 = vmatprep.subr.bf16.mxu0 %v14560_v38  ;;  %vm14678_vm13 = vmmov %vm14671_vm10 }
 0x211   : > { %14654 = vst [vmem:[#allocation34_spill] sm:$0xff] %v10788_v8  ;;  %v2239_v50 = vpop.permute.xlu0 %2238  ;;  %v3851_v10 = vrot.slane %v3630_v13, 1 }
 0x212   : > { %3669 = vrot.lane.b32.xlu1 %v3621_v35, %s8004_s13  ;;  %v10818_v23 = vsel %vm2386_vm3, %v2369_v28, %v2239_v50  ;;  %3326 = vmatmul.mubr.bf16.gmra.mrb[80].mxu0 %v3054_v20  ;;  %v10849_v28 = vor.u32 %v2211_v26, %v2208_v31  ;;  %v10851_v20 = vrot.slane %v3626_v54, 1  ;;  %v3852_v31 = vrot.slane %v3626_v54, 2 }
 0x213   : > { %v2653_v2 = vrot.slane %v10818_v23, 5  ;;  %3770 = vrot.lane.b32.xlu0 %v3731_v32, %s8003_s12  ;;  %7461 = vmatprep.mubr.msk.bf16.mxu0 %vm14664_vm15, %v14663_v45  ;;  %v1969_v32 = vsel %vm14668_vm6, %v14667_v52, %v10827_v40  ;;  %v10858_v45 = vld [vmem:[#allocation2 + $0x28] sm:$0xff]  ;;  %v3058_v52 = vsel %vm3030_vm2, %v3053_v49, %v3057_v17  ;;  %v14669_v54 = vrot.slane %v14566_v4, 3  ;;  %v10890_v49 = vld [vmem:[#allocation2 + $0x80] sm:$0xff]  ;;  %vm14679_vm15 = vmmov %vm14648_vm0 }
 0x214   : > { %v2000_v16 = vpop.permute.xlu1 %1999  ;;  %v14120_v14 = vrot.slane %v10890_v49, 2 }
 0x215   : > { %v2327_v62 = vsel %vm14665_vm9, %v10714_v39, %v2000_v16  ;;  %v10836_v35 = vpop.permute.xlu0 %3874  ;;  %v2654_v39 = vsel %vm2610_vm5, %v2649_v37, %v2653_v2  ;;  %v10856_v37 = vsel %vm14647_vm4, %v2286_v12, %v2288_v33  ;;  %v3468_v16 = vld [vmem:[#allocation2 + $0xb8] sm:$0x1]  ;;  %v7909_v12 = vld [vmem:[%s14025_s5 + $0x110] sm:$0xff]   ;;  %vm14680_vm9 = vmmov %vm14648_vm0 }
 0x216   : > { %2116 = vrot.lane.b32.xlu1 %v2077_v55, %s8003_s12  ;;  %14666 = vst [vmem:[#allocation29_spill] sm:$0xff] %v10836_v35  ;;  %2946 = vmatmul.mubr.bf16.gmra.mrb[20].mxu1 %v2654_v39  ;;  %v2371_v55 = vsel %vm2343_vm11, %v2327_v62, %v10754_v7  ;;  %v3856_v26 = vshll.u32 %v3468_v16, 16  ;;  %v3632_v16 = vor.u32 %v3630_v13, %v10851_v20  ;;  %v2663_v15 = vrot.slane %v10856_v37, 5  ;;  %v7911_v13 = vld [vmem:[%s14025_s5 + $0x118] sm:$0xff]  }
 0x217   : > { %2011 = vrot.lane.b32.xlu0 %v1969_v32, %s8004_s13  ;;  %7436 = vmatprep.mubr.msk.bf16.mxu1 %vm14648_vm0, %v2660_v57  ;;  %v3064_v32 = vsel %vm3030_vm2, %v14669_v54, %v3063_v9  ;;  %v4603_v57 = vshll.u32 %v10858_v45, 16  ;;  %v3733_v54 = vsel %vm14673_vm8, %v3730_v42, %v14115_v47 }
 0x218   : > { %v2241_v50 = vpop.permute.xlu1 %2240  ;;  %5486 = vmatpush1.bf16.msra.mxu0 %v7909_v12  ;;  %v10899_v12 = vor.u32 %v3852_v31, %v3851_v10  ;;  %v14119_v10 = vrot.slane %v10622_v43, 3 }
 0x219   : > { %v10864_v7 = vsel %vm2386_vm3, %v2371_v55, %v2241_v50  ;;  %v10872_v39 = vpop.permute.xlu0 %2108  ;;  %5487 = vmatprep.subr.bf16.mxu0 %v14560_v38 }
 0x21a   : > { %v14116_v62 = vrot.slane %v10864_v7, 5  ;;  %2118 = vrot.lane.b32.xlu1 %v2076_v58, %s8003_s12  ;;  %3334 = vmatmul.mubr.bf16.gmra.mrb[84].mxu0 %v3058_v52  ;;  %v14670_v58 = vld [vmem:[#allocation11_spill] sm:$0xff]  ;;  %v3858_v52 = vrot.slane %v3856_v26, 2  ;;  %v10917_v26 = vrot.slane %v4603_v57, 1 }
 0x21b   : > { %v2213_v55 = vsel %vm14671_vm10, %v14670_v58, %v10849_v28  ;;  %7462 = vmatprep.mubr.msk.bf16.mxu0 %vm14672_vm14, %v3064_v32  ;;  %v1970_v32 = vshrl.u32 %v10775_v46, 16  ;;  %v14117_v58 = vrot.slane %v10611_v5, 3  ;;  %v2664_v46 = vsel %vm2610_vm5, %v2659_v25, %v2663_v15  ;;  %vm14686_vm10 = vmmov %vm14673_vm8 }
 0x21c   : > { %v2107_v50 = vpop.permute.xlu1 %2106  ;;  %2252 = vrot.lane.b32.xlu0 %v2213_v55, %s8005_s14  ;;  %v2658_v4 = vsel %vm2610_vm5, %v2653_v2, %v14116_v62  ;;  %v10912_v2 = vld [vmem:[#allocation2 + $0x30] sm:$0xff]  ;;  %v4607_v55 = vshrl.u32 %v10858_v45, 16  ;;  %5488 = vmatpush1.bf16.msra.mxu0 %v7911_v13  ;;  %v10935_v62 = vsel %vm14676_vm7, %v2288_v33, %v14120_v14  ;;  %v14683_v14 = vrot.slane %v10864_v7, 5  ;;  %vm14690_vm14 = vmmov %vm14678_vm13 }
 0x21d   : > { %v2002_v31 = vpop.permute.xlu0 %2001  ;;  %v14118_v13 = vshrl.u32 %v10912_v2, 16  ;;  %5489 = vmatprep.subr.bf16.mxu0 %v14560_v38  ;;  %v1972_v0 = vor.u32 %v1970_v32, %v10827_v40  ;;  %v3068_v33 = vsel %vm3030_vm2, %v3063_v9, %v14117_v58  ;;  %v14122_v32 = vrot.slane %v10935_v62, 5  ;;  %v7943_v58 = vld [vmem:[#allocation2 + $0x78] sm:$0xff]  ;;  %vm14693_vm8 = vmmov %vm14648_vm0 }
 0x21e   : > { %3673 = vrot.lane.b32.xlu1 %v3632_v16, %s8004_s13  ;;  %v4611_v16 = vshll.u32 %v10912_v2, 16  ;;  %v2329_v42 = vsel %vm14674_vm12, %v10761_v3, %v2002_v31  ;;  %2954 = vmatmul.mubr.bf16.gmra.mrb[24].mxu1 %v2658_v4  ;;  %v3859_v3 = vsel %vm14678_vm13, %v10899_v12, %v3858_v52  ;;  %v4609_v25 = vor.u32 %v4607_v55, %v10917_v26  ;;  %v7912_v4 = vld [vmem:[%s14025_s5 + $0x120] sm:$0xff]   ;;  %vm14698_vm12 = vmmov %vm14647_vm4 }
 0x21f   : > { %7437 = vmatprep.mubr.msk.bf16.mxu1 %vm14677_vm1, %v2664_v46  ;;  %v2373_v31 = vsel %vm2343_vm11, %v2329_v42, %v2107_v50  ;;  %v3062_v52 = vsel %vm3030_vm2, %v3057_v17, %v14119_v10  ;;  %v4920_v50 = vrot.slane %v14118_v13, 1  ;;  %v4916_v10 = vrot.slane %v4607_v55, 1  ;;  %vm14699_vm7 = vmmov %vm14648_vm0 }
 0x220   : > { %v10928_v47 = vpop.permute.xlu1 %3876  ;;  %3772 = vrot.lane.b32.xlu0 %v3733_v54, %s8003_s12  ;;  %v10960_v40 = vrot.slane %v4611_v16, 1  ;;  %v4921_v42 = vrot.slane %v4611_v16, 2  ;;  %v10982_v16 = vld [vmem:[#allocation2 + $0x38] sm:$0xff]  ;;  %5490 = vmatpush1.bf16.msra.mxu0 %v7912_v4  ;;  %v14123_v55 = vrot.slane %v10660_v21, 3  ;;  %vm14700_vm1 = vmmov %vm14668_vm6 }
 0x221   : > { %14675 = vst [vmem:[#allocation12_spill] sm:$0xff] %v10928_v47  ;;  %v2243_v54 = vpop.permute.xlu0 %2242  ;;  %14681 = vst [vmem:[#allocation7_spill] sm:$0xff] %v10982_v16  ;;  %5491 = vmatprep.subr.bf16.mxu0 %v14560_v38 }
 0x222   : > { %3900 = vrot.lane.b32.xlu1 %v3859_v3, %s8005_s14  ;;  %v10966_v9 = vsel %vm2386_vm3, %v2373_v31, %v2243_v54  ;;  %3342 = vmatmul.mubr.bf16.gmra.mrb[88].mxu0 %v3062_v52  ;;  %v10970_v3 = vld [vmem:[#allocation2 + $0x88] sm:$0xff]  ;;  %v4614_v31 = vsel %vm14668_vm6, %v4609_v25, %v10960_v40  ;;  %v10980_v52 = vrot.slane %v10912_v2, 1  ;;  %v11007_v13 = vor.u32 %v4921_v42, %v4920_v50  ;;  %vm14701_vm13 = vmmov %vm14700_vm1 }
 0x223   : > { %v14121_v63 = vrot.slane %v10970_v3, 2  ;;  %v2661_v17 = vrot.slane %v10966_v9, 5  ;;  %7463 = vmatprep.mubr.msk.bf16.mxu0 %vm14679_vm15, %v3068_v33  ;;  %v4598_v33 = vshll.u32 %v10963_v30, 16  ;;  %vm14702_vm15 = vmmov %vm14648_vm0 }
 0x224   : > { %v2004_v46 = vpop.permute.xlu1 %2003  ;;  %2013 = vrot.lane.b32.xlu0 %v1972_v0, %s8004_s13  ;;  %v4917_v0 = vrot.slane %v4603_v57, 2  ;;  %v2668_v57 = vsel %vm2610_vm5, %v2663_v15, %v14122_v32  ;;  %v5751_v15 = vshll.u32 %v10982_v16, 16 }
 0x225   : > { %v2331_v54 = vsel %vm14680_vm9, %v7943_v58, %v2004_v46  ;;  %v7913_v58 = vld [vmem:[%s14025_s5 + $0x128] sm:$0xff]   ;;  %v10993_v46 = vpop.permute.xlu0 %3750  ;;  %vm14705_vm9 = vmmov %vm14686_vm10 }
 0x226   : > { %4764 = vrot.lane.b32.xlu1 %v4614_v31, %s8004_s13  ;;  %14682 = vst [vmem:[#allocation9_spill] sm:$0xff] %v10993_v46  ;;  %v2662_v31 = vsel %vm2610_vm5, %v14683_v14, %v2661_v17  ;;  %v2375_v4 = vsel %vm2343_vm11, %v2331_v54, %v10872_v39  ;;  %v14684_v14 = vrot.slane %v10890_v49, 2  ;;  %v14685_v39 = vrot.slane %v10858_v45, 1  ;;  %5492 = vmatpush1.bf16.msra.mxu0 %v7913_v58  ;;  %v11047_v58 = vld [vmem:[#allocation2 + $0x90] sm:$0xff]  ;;  %v5710_v46 = vld [vmem:[#allocation2 + $0x28] sm:$0xf8]  ;;  %vm14711_vm6 = vmmov %vm14705_vm9 }
 0x227   : > { %2962 = vmatmul.mubr.bf16.gmra.mrb[28].mxu1 %v2662_v31  ;;  %v11029_v54 = vor.u32 %v4917_v0, %v4916_v10  ;;  %v14689_v10 = vrot.slane %v10611_v5, 3  ;;  %5493 = vmatprep.subr.bf16.mxu0 %v14560_v38  ;;  %v14691_v5 = vshrl.u32 %v10912_v2, 16 }
 0x228   : > { %v2245_v25 = vpop.permute.xlu1 %2244  ;;  %v11014_v47 = vsel %vm14647_vm4, %v14684_v14, %v14121_v63  ;;  %2254 = vrot.lane.b32.xlu0 %v10849_v28, %s8005_s14  ;;  %7438 = vmatprep.mubr.msk.bf16.mxu1 %vm14648_vm0, %v2668_v57  ;;  %v4829_v50 = vsel %vm14686_vm10, %v14685_v39, %v10980_v52  ;;  %v4600_v14 = vrot.slane %v4598_v33, 1  ;;  %v4592_v63 = vld [vmem:[#allocation2 + $0x20] sm:$0xfc]  ;;  %v7914_v28 = vld [vmem:[%s14025_s5 + $0x130] sm:$0xff]   ;;  %v14687_v57 = vrot.slane %v10647_v24, 3  ;;  %vm14712_vm4 = vmmov %vm14648_vm0 }
 0x229   : > { %v11021_v31 = vsel %vm2386_vm3, %v2375_v4, %v2245_v25  ;;  %v11034_v25 = vpop.permute.xlu0 %2112  ;;  %v14688_v4 = vrot.slane %v10622_v43, 3  ;;  %v3072_v0 = vsel %vm3030_vm2, %v14689_v10, %v14123_v55  ;;  %v4923_v43 = vsel %vm14690_vm14, %v11029_v54, %v11007_v13  ;;  %vm14715_vm10 = vmmov %vm14690_vm14 }
 0x22a   : > { %v14124_v42 = vrot.slane %v11021_v31, 5  ;;  %4868 = vrot.lane.b32.xlu1 %v4829_v50, %s8003_s12  ;;  %v11058_v10 = vrot.slane %v5751_v15, 1  ;;  %v14692_v55 = vrot.slane %v10809_v59, 1  ;;  %v4909_v50 = vshrl.u32 %v4592_v63, 16  ;;  %5494 = vmatpush1.bf16.msra.mxu0 %v7914_v28  ;;  %v7916_v59 = vld [vmem:[%s14025_s5 + $0x138] sm:$0xff]   ;;  %vm14717_vm14 = vmmov %vm14648_vm0 }
 0x22b   : > { %v3066_v39 = vsel %vm3030_vm2, %v14688_v4, %v14687_v57  ;;  %v4596_v57 = vshrl.u32 %v10963_v30, 16  ;;  %v5749_v4 = vor.u32 %v14691_v5, %v10960_v40  ;;  %v4912_v33 = vshll.u32 %v4592_v63, 16  ;;  %5495 = vmatprep.subr.bf16.mxu0 %v14560_v38 }
 0x22c   : > { %3350 = vmatmul.mubr.bf16.gmra.mrb[92].mxu0 %v3066_v39  ;;  %v2111_v32 = vpop.permute.xlu1 %2110  ;;  %3774 = vrot.lane.b32.xlu0 %v14692_v55, %s8003_s12  ;;  %v2666_v39 = vsel %vm2610_vm5, %v2661_v17, %v14124_v42  ;;  %v4825_v5 = vrot.slane %v4592_v63, 1  ;;  %v14694_v17 = vrot.slane %v11014_v47, 5  ;;  %v14695_v42 = vrot.slane %v10935_v62, 5 }
 0x22d   : > { %7464 = vmatprep.mubr.msk.bf16.mxu0 %vm14693_vm8, %v3072_v0  ;;  %v4601_v2 = vor.u32 %v4600_v14, %v4596_v57  ;;  %v2006_v0 = vpop.permute.xlu0 %2005  ;;  %v14696_v63 = vrot.slane %v11047_v58, 2  ;;  %v14697_v14 = vrot.slane %v10970_v3, 2  ;;  %vm14718_vm8 = vmmov %vm14715_vm10 }
 0x22e   : > { %5003 = vrot.lane.b32.xlu1 %v4923_v43, %s8005_s14  ;;  %v2672_v30 = vsel %vm2610_vm5, %v14695_v42, %v14694_v17  ;;  %v2333_v57 = vsel %vm14699_vm7, %v10890_v49, %v2006_v0  ;;  %v11094_v42 = vsel %vm14701_vm13, %v5749_v4, %v11058_v10  ;;  %v5738_v17 = vshll.u32 %v5710_v46, 16  ;;  %5496 = vmatpush1.bf16.msra.mxu0 %v7916_v59  ;;  %vm14723_vm7 = vmmov %vm14700_vm1 }
 0x22f   : > { %v11085_v28 = vsel %vm14698_vm12, %v14697_v14, %v14696_v63  ;;  %2970 = vmatmul.mubr.bf16.gmra.mrb[32].mxu1 %v2666_v39  ;;  %v4606_v8 = vsel %vm14700_vm1, %v4601_v2, %v10917_v26  ;;  %v4911_v63 = vrot.slane %v4909_v50, 1  ;;  %v4914_v14 = vrot.slane %v4912_v33, 2  ;;  %vm14724_vm1 = vmmov %vm14648_vm0 }
 0x230   : > { %v2008_v55 = vpop.permute.xlu1 %2007  ;;  %4762 = vrot.lane.b32.xlu0 %v4606_v8, %s8004_s13  ;;  %7439 = vmatprep.mubr.msk.bf16.mxu1 %vm14702_vm15, %v2672_v30  ;;  %v14703_v43 = vshrl.u32 %v10982_v16, 16  ;;  %v6061_v49 = vrot.slane %v5751_v15, 2  ;;  %v14704_v26 = vrot.slane %v10858_v45, 1  ;;  %v14125_v4 = vrot.slane %v11085_v28, 5  ;;  %vm14726_vm13 = vmmov %vm14711_vm6 }
 0x231   : > { %v2247_v2 = vpop.permute.xlu0 %2246  ;;  %v2377_v8 = vsel %vm2343_vm11, %v2333_v57, %v2111_v32  ;;  %v14706_v50 = vrot.slane %v10710_v44, 3  ;;  %v14707_v33 = vrot.slane %v10647_v24, 3  ;;  %v14708_v15 = vrot.slane %v10700_v6, 3  ;;  %vm14727_vm15 = vmmov %vm14648_vm0 }
 0x232   : > { %v6060_v35 = vrot.slane %v14703_v43, 1  ;;  %5904 = vrot.lane.b32.xlu1 %v11094_v42, %s8004_s13  ;;  %v4827_v39 = vsel %vm14705_vm9, %v4825_v5, %v14704_v26  ;;  %v14709_v0 = vrot.slane %v10660_v21, 3  ;;  %v14710_v5 = vrot.slane %v10982_v16, 1  ;;  %vm14729_vm9 = vmmov %vm14723_vm7 }
 0x233   : > { %v3070_v30 = vsel %vm3030_vm2, %v14707_v33, %v14706_v50  ;;  %v2335_v32 = vsel %vm14712_vm4, %v10970_v3, %v2008_v55  ;;  %v11124_v43 = vsel %vm2386_vm3, %v2377_v8, %v2247_v2  ;;  %v5736_v57 = vshrl.u32 %v5710_v46, 16  ;;  %vm14731_vm4 = vmmov %vm14698_vm12 }
 0x234   : > { %v3076_v45 = vsel %vm3030_vm2, %v14709_v0, %v14708_v15  ;;  %v5969_v59 = vsel %vm14711_vm6, %v10980_v52, %v14710_v5  ;;  %3358 = vmatmul.mubr.bf16.gmra.mrb[96].mxu0 %v3070_v30  ;;  %v2249_v24 = vpop.permute.xlu1 %2248  ;;  %v5740_v26 = vrot.slane %v5738_v17, 1  ;;  %v2669_v50 = vrot.slane %v11124_v43, 5  ;;  %4866 = vrot.lane.b32.xlu0 %v4827_v39, %s8003_s12  ;;  %v5732_v15 = vld [vmem:[#allocation2 + $0x28] sm:$0xf0]  ;;  %v11131_v0 = vld [vmem:[#allocation2 + $0x98] sm:$0xff]  ;;  %vm14730_vm6 = vmmov %vm14648_vm0 }
 0x235   : > { %7465 = vmatprep.mubr.msk.bf16.mxu0 %vm14648_vm0, %v3076_v45  ;;  %v4915_v21 = vor.u32 %v4914_v14, %v4911_v63  ;;  %v11129_v33 = vor.u32 %v6061_v49, %v6060_v35  ;;  %v11134_v3 = vrot.slane %v11131_v0, 2  ;;  %v14713_v46 = vrot.slane %v11014_v47, 5  ;;  %v2115_v14 = vpop.permute.xlu0 %2114  ;;  %v11156_v45 = vld [vmem:[#allocation2 + $0x40] sm:$0xff]  ;;  %vm14733_vm0 = vmmov %vm14718_vm8 }
 0x236   : > { %6008 = vrot.lane.b32.xlu1 %v5969_v59, %s8003_s12  ;;  %v3079_v17 = vrot.slane %v10738_v27, 3  ;;  %v3073_v63 = vrot.slane %v10745_v18, 3  ;;  %v2379_v35 = vsel %vm2343_vm11, %v2335_v32, %v11034_v25  ;;  %v14714_v49 = vrot.slane %v11021_v31, 5 }
 0x237   : > { %v2676_v55 = vsel %vm2610_vm5, %v14713_v46, %v14125_v4  ;;  %v4919_v2 = vsel %vm14715_vm10, %v4915_v21, %v11029_v54  ;;  %v11152_v8 = vsel %vm2386_vm3, %v2379_v35, %v2249_v24  ;;  %v5741_v27 = vor.u32 %v5740_v26, %v5736_v57  ;;  %vm14734_vm10 = vmmov %vm14724_vm1 }
 0x238   : > { %v2670_v39 = vsel %vm2610_vm5, %v14714_v49, %v2669_v50  ;;  %v11154_v30 = vpop.permute.xlu1 %3752  ;;  %v6049_v18 = vshrl.u32 %v5732_v15, 16  ;;  %v6052_v5 = vshll.u32 %v5732_v15, 16  ;;  %5001 = vrot.lane.b32.xlu0 %v4919_v2, %s8005_s14  ;;  %v11163_v25 = vsel %vm14718_vm8, %v11007_v13, %v11129_v33  ;;  %vm14736_vm8 = vmmov %vm14733_vm0 }
 0x239   : > { %2978 = vmatmul.mubr.bf16.gmra.mrb[36].mxu1 %v2670_v39  ;;  %14716 = vst [vmem:[#allocation16_spill] sm:$0xff] %v11154_v30  ;;  %v14719_v54 = vrot.slane %v11047_v58, 2  ;;  %v5965_v57 = vrot.slane %v5732_v15, 1  ;;  %v5759_v26 = vshll.u32 %v11156_v45, 16  ;;  %v2673_v21 = vrot.slane %v11152_v8, 5  ;;  %v11176_v46 = vpop.permute.xlu0 %2499 }
 0x23a   : > { %7440 = vmatprep.mubr.msk.bf16.mxu1 %vm14717_vm14, %v2676_v55  ;;  %6143 = vrot.lane.b32.xlu1 %v11163_v25, %s8005_s14  ;;  %v14720_v55 = vrot.slane %v10710_v44, 3  ;;  %v14721_v49 = vrot.slane %v10700_v6, 3  ;;  %v14722_v2 = vshrl.u32 %v10982_v16, 16  ;;  %v5746_v15 = vsel %vm14723_vm7, %v5741_v27, %v10960_v40  ;;  %vm14735_vm14 = vmmov %vm14724_vm1 }
 0x23b   : > { %v11169_v32 = vsel %vm14698_vm12, %v14719_v54, %v11134_v3  ;;  %v6051_v30 = vrot.slane %v6049_v18, 1  ;;  %v6054_v44 = vrot.slane %v6052_v5, 2  ;;  %v14725_v6 = vshrl.u32 %v11156_v45, 16  ;;  %vm14739_vm12 = vmmov %vm14726_vm13 }
 0x23c   : > { %v3074_v35 = vsel %vm3030_vm2, %v14720_v55, %v3073_v63  ;;  %v3080_v39 = vsel %vm3030_vm2, %v14721_v49, %v3079_v17  ;;  %v5757_v54 = vor.u32 %v14722_v2, %v11058_v10  ;;  %v11189_v4 = vpop.permute.xlu1 %3653  ;;  %v2679_v24 = vrot.slane %v11169_v32, 5  ;;  %5902 = vrot.lane.b32.xlu0 %v5746_v15, %s8004_s13  ;;  %vm14740_vm7 = vmmov %vm14724_vm1 }
 0x23d   : > { %3366 = vmatmul.mubr.bf16.gmra.mrb[100].mxu0 %v3074_v35  ;;  %v6064_v55 = vrot.slane %v14725_v6, 1  ;;  %v6065_v49 = vrot.slane %v5759_v26, 2  ;;  %v2539_v10 = vrot.slane %v11196_v19, 2  ;;  %v5761_v40 = vrot.slane %v5759_v26, 1  ;;  %v2010_v5 = vpop.permute.xlu0 %2009 }
 0x23e   : > { %7466 = vmatprep.mubr.msk.bf16.mxu0 %vm14724_vm1, %v3080_v39  ;;  %4870 = vrot.lane.b32.xlu1 %v5969_v59, %s8003_s12  ;;  %v3083_v27 = vrot.slane %v10791_v1, 3  ;;  %v3077_v18 = vrot.slane %v10818_v23, 3  ;;  %v2674_v35 = vsel %vm2610_vm5, %v2669_v50, %v2673_v21  ;;  %v5967_v39 = vsel %vm14726_vm13, %v5965_v57, %v10980_v52  ;;  %v11220_v50 = vld [vmem:[#allocation2 + $0x48] sm:$0xff]  ;;  %vm14741_vm1 = vmmov %vm14731_vm4 }
 0x23f   : > { %v2337_v2 = vsel %vm14727_vm15, %v11047_v58, %v2010_v5  ;;  %v14728_v15 = vrot.slane %v11085_v28, 5  ;;  %v11211_v26 = vsel %vm14729_vm9, %v5757_v54, %v5761_v40  ;;  %v6055_v1 = vor.u32 %v6054_v44, %v6051_v30  ;;  %14732 = vst [vmem:[#allocation17_spill] sm:$0xff] %v11220_v50  ;;  %vm14743_vm13 = vmmov %vm14730_vm6 }
 0x240   : > { %v2251_v59 = vpop.permute.xlu1 %2250  ;;  %6006 = vrot.lane.b32.xlu0 %v5967_v39, %s8003_s12  ;;  %v2381_v23 = vsel %vm2343_vm11, %v2337_v2, %v2115_v14  ;;  %v11216_v52 = vor.u32 %v6065_v49, %v6064_v55  ;;  %v2540_v58 = vsel %vm14731_vm4, %v11134_v3, %v2539_v10  ;;  %v3084_v30 = vsel %vm3030_vm2, %v3079_v17, %v3083_v27  ;;  %v7947_v2 = vld [vmem:[#allocation2 + $0xa8] sm:$0x7f]  ;;  %vm14744_vm15 = vmmov %vm14729_vm9 }
 0x241   : > { %2986 = vmatmul.mubr.bf16.gmra.mrb[40].mxu1 %v2674_v35  ;;  %v2680_v6 = vsel %vm2610_vm5, %v14728_v15, %v2679_v24  ;;  %v11223_v57 = vsel %vm2386_vm3, %v2381_v23, %v2251_v59  ;;  %v11229_v44 = vpop.permute.xlu0 %3651  ;;  %v3078_v14 = vsel %vm3030_vm2, %v3073_v63, %v3077_v18  ;;  %v14126_v55 = vrot.slane %v11156_v45, 1  ;;  %vm14745_vm9 = vmmov %vm14730_vm6 }
 0x242   : > { %7441 = vmatprep.mubr.msk.bf16.mxu1 %vm14730_vm6, %v2680_v6  ;;  %5906 = vrot.lane.b32.xlu1 %v11211_v26, %s8004_s13  ;;  %v2677_v54 = vrot.slane %v11223_v57, 5  ;;  %v6059_v49 = vsel %vm14733_vm0, %v6055_v1, %v11007_v13  ;;  %v2683_v35 = vrot.slane %v2540_v58, 5  ;;  %v5767_v39 = vshll.u32 %v11220_v50, 16  ;;  %vm14746_vm4 = vmmov %vm14733_vm0 }
 0x243   : > { %v2541_v15 = vrot.slane %v7947_v2, 2  ;;  %v11243_v63 = vsel %vm14736_vm8, %v11129_v33, %v11216_v52  ;;  %v5771_v6 = vshrl.u32 %v11220_v50, 16  ;;  %v3081_v59 = vrot.slane %v10864_v7, 3  ;;  %vm14747_vm0 = vmmov %vm14730_vm6 }
 0x244   : > { %v2483_v5 = vpop.permute.xlu1 %2482  ;;  %6141 = vrot.lane.b32.xlu0 %v6059_v49, %s8005_s14  ;;  %v2678_v13 = vsel %vm2610_vm5, %v2673_v21, %v2677_v54  ;;  %v3087_v23 = vrot.slane %v10856_v37, 3  ;;  %v14737_v58 = vshrl.u32 %v11156_v45, 16  ;;  %v2684_v33 = vsel %vm2610_vm5, %v2679_v24, %v2683_v35  ;;  %vm14752_vm8 = vmmov %vm14741_vm1 }
 0x245   : > { %3374 = vmatmul.mubr.bf16.gmra.mrb[104].mxu0 %v3078_v14  ;;  %v2546_v17 = vsel %vm14735_vm14, %v11131_v0, %v2483_v5  ;;  %v11250_v1 = vpop.permute.xlu0 %3878  ;;  %v14738_v49 = vrot.slane %v10982_v16, 1  ;;  %v5769_v5 = vrot.slane %v5767_v39, 1  ;;  %v11270_v24 = vsel %vm14741_vm1, %v2539_v10, %v2541_v15  ;;  %vm14751_vm14 = vmmov %vm14739_vm12 }
 0x246   : > { %7467 = vmatprep.mubr.msk.bf16.mxu0 %vm14734_vm10, %v3084_v30  ;;  %6145 = vrot.lane.b32.xlu1 %v11243_v63, %s8005_s14  ;;  %v5765_v30 = vor.u32 %v14737_v58, %v5761_v40  ;;  %v2555_v21 = vsel %vm2343_vm11, %v2546_v17, %v11176_v46  ;;  %v6068_v46 = vrot.slane %v5771_v6, 1  ;;  %v6069_v40 = vrot.slane %v5767_v39, 2  ;;  %vm14748_vm10 = vmmov %vm14747_vm0 }
 0x247   : > { %v4833_v7 = vsel %vm14739_vm12, %v14738_v49, %v14126_v55  ;;  %v11292_v49 = vld [vmem:[#allocation2 + $0x50] sm:$0xff]  ;;  %vm14754_vm12 = vmmov %vm14741_vm1 }
 0x248   : > { %v2530_v14 = vpop.permute.xlu1 %2529  ;;  %4766 = vrot.lane.b32.xlu0 %v11094_v42, %s8004_s13  ;;  %v3088_v42 = vsel %vm3030_vm2, %v3083_v27, %v3087_v23  ;;  %v11283_v10 = vsel %vm14744_vm15, %v5765_v30, %v5769_v5  ;;  %v14127_v27 = vrot.slane %v10935_v62, 3  ;;  %v14128_v30 = vshrl.u32 %v11292_v49, 16  ;;  %vm14757_vm1 = vmmov %vm14747_vm0 }
 0x249   : > { %2994 = vmatmul.mubr.bf16.gmra.mrb[44].mxu1 %v2678_v13  ;;  %v11267_v37 = vsel %vm2386_vm3, %v2555_v21, %v2530_v14  ;;  %v11274_v17 = vpop.permute.xlu0 %3754  ;;  %v3082_v13 = vsel %vm3030_vm2, %v3077_v18, %v3081_v59  ;;  %v11286_v21 = vor.u32 %v6069_v40, %v6068_v46  ;;  %v3085_v18 = vrot.slane %v10966_v9, 3 }
 0x24a   : > { %7442 = vmatprep.mubr.msk.bf16.mxu1 %vm14740_vm7, %v2684_v33  ;;  %v2681_v2 = vrot.slane %v11267_v37, 5  ;;  %4872 = vrot.lane.b32.xlu1 %v4833_v7, %s8003_s12  ;;  %14742 = vst [vmem:[#allocation18_spill] sm:$0xff] %v11274_v17  ;;  %v2687_v33 = vrot.slane %v11270_v24, 5  ;;  %v11320_v46 = vrot.slane %v11156_v45, 2  ;;  %vm14756_vm7 = vmmov %vm14744_vm15  ;;  %v14138_v9 = vrot.slane %v11292_v49, 1 }
 0x24b   : > { %v11303_v24 = vsel %vm14746_vm4, %v11216_v52, %v11286_v21  ;;  %v3469_v52 = vld [vmem:[#allocation2 + $0x18] sm:$0xfe]  ;;  %vm14760_vm15 = vmmov %vm14747_vm0 }
 0x24c   : > { %v2504_v58 = vpop.permute.xlu1 %2503  ;;  %5005 = vrot.lane.b32.xlu0 %v11163_v25, %s8005_s14  ;;  %v2682_v39 = vsel %vm2610_vm5, %v2677_v54, %v2681_v2  ;;  %v2688_v25 = vsel %vm2610_vm5, %v2683_v35, %v2687_v33  ;;  %v3092_v35 = vsel %vm3030_vm2, %v3087_v23, %v14127_v27  ;;  %v6072_v23 = vrot.slane %v14128_v30, 1 }
 0x24d   : > { %3382 = vmatmul.mubr.bf16.gmra.mrb[108].mxu0 %v3082_v13  ;;  %v2502_v14 = vpop.permute.xlu0 %2501  ;;  %v5773_v13 = vor.u32 %v5771_v6, %v5769_v5  ;;  %v14749_v6 = vrot.slane %v11220_v50, 1 }
 0x24e   : > { %7468 = vmatprep.mubr.msk.bf16.mxu0 %vm14743_vm13, %v3088_v42  ;;  %5908 = vrot.lane.b32.xlu1 %v11283_v10, %s8004_s13  ;;  %v2691_v42 = vrot.slane %v2541_v15, 5  ;;  %vm14758_vm13 = vmmov %vm14752_vm8 }
 0x250   : > { %v2485_v37 = vpop.permute.xlu1 %2484  ;;  %6010 = vrot.lane.b32.xlu0 %v4833_v7, %s8003_s12  ;;  %v5775_v7 = vshll.u32 %v11292_v49, 16 }
 0x251   : > { %3002 = vmatmul.mubr.bf16.gmra.mrb[48].mxu1 %v2682_v39  ;;  %v2548_v54 = vsel %vm14730_vm6, %v11196_v19, %v2485_v37  ;;  %v2487_v40 = vpop.permute.xlu0 %2486  ;;  %v3086_v19 = vsel %vm3030_vm2, %v3081_v59, %v3085_v18  ;;  %v14130_v39 = vrot.slane %v11220_v50, 2  ;;  %v14750_v59 = vrot.slane %v11156_v45, 1  ;;  %vm14763_vm6 = vmmov %vm14747_vm0 }
 0x252   : > { %7443 = vmatprep.mubr.msk.bf16.mxu1 %vm14745_vm9, %v2688_v25  ;;  %6147 = vrot.lane.b32.xlu1 %v11303_v24, %s8005_s14  ;;  %v2451_v25 = vld [vmem:[#allocation2 + $0xa8] sm:$0x1f]  ;;  %v2557_v37 = vsel %vm2343_vm11, %v2548_v54, %v2502_v14  ;;  %v6073_v27 = vrot.slane %v5775_v7, 2  ;;  %v14129_v14 = vrot.slane %v10982_v16, 2  ;;  %vm14762_vm9 = vmmov %vm14746_vm4  ;;  %vm4114_vm4 = vcmask 1040384  }
 0x253   : > { %v2551_v17 = vsel %vm14747_vm0, %v2451_v25, %v2487_v40  ;;  %v4835_v5 = vsel %vm14751_vm14, %v14750_v59, %v14749_v6  ;;  %v11334_v40 = vld [vmem:[#allocation2 + $0x20] sm:$0xff]  ;;  %v11343_v45 = vsel %vm14752_vm8, %v11320_v46, %v14130_v39 }
 0x254   : > { %v2532_v55 = vpop.permute.xlu1 %2531  ;;  %4768 = vrot.lane.b32.xlu0 %v11211_v26, %s8004_s13  ;;  %v14132_v26 = vrot.slane %v11334_v40, 2  ;;  %14753 = vst [vmem:[#allocation8_spill] sm:$0xff] %v11343_v45  ;;  %v11349_v59 = vor.u32 %v6073_v27, %v6072_v23  ;;  %v11372_v27 = vld [vmem:[#allocation2 + $0x58] sm:$0xff]  ;;  %v7949_v23 = vld [vmem:[#allocation2 + $0x10] sm:$0x80] }
 0x255   : > { %3390 = vmatmul.mubr.bf16.gmra.mrb[112].mxu0 %v3086_v19  ;;  %v2565_v15 = vsel %vm2386_vm3, %v2557_v37, %v2532_v55  ;;  %v3904_v19 = vrot.slane %v3469_v52, 2  ;;  %v2534_v25 = vpop.permute.xlu0 %2533  ;;  %v5777_v55 = vrot.slane %v5775_v7, 1  ;;  %v14131_v37 = vrot.slane %v11014_v47, 3 }
 0x256   : > { %7469 = vmatprep.mubr.msk.bf16.mxu0 %vm14748_vm10, %v3092_v35  ;;  %v2685_v54 = vrot.slane %v2565_v15, 5  ;;  %4874 = vrot.lane.b32.xlu1 %v4835_v5, %s8003_s12  ;;  %v14133_v35 = vrot.slane %v11021_v31, 3  ;;  %v2559_v15 = vsel %vm2343_vm11, %v2551_v17, %v2504_v58  ;;  %v11355_v7 = vsel %vm14754_vm12, %v14129_v14, %v11320_v46  ;;  %vm14769_vm10 = vmmov %vm14751_vm14 }
 0x257   : > { %14755 = vst [vmem:[#allocation31_spill] sm:$0xff] %v11355_v7  ;;  %v2567_v30 = vsel %vm2386_vm3, %v2559_v15, %v2534_v25  ;;  %v11361_v17 = vsel %vm14756_vm7, %v5773_v13, %v5777_v55  ;;  %v2692_v58 = vsel %vm2610_vm5, %v2687_v33, %v2691_v42  ;;  %v14759_v25 = vld [vmem:[#allocation23_spill] sm:$0xff]  ;;  %v14761_v42 = vrot.slane %v10935_v62, 3  ;;  %vm14778_vm14 = vmmov %vm14752_vm8 }
 0x258   : > { %v11346_v6 = vpop.permute.xlu1 %3880  ;;  %v2686_v52 = vsel %vm2610_vm5, %v2681_v2, %v2685_v54  ;;  %5007 = vrot.lane.b32.xlu0 %v11243_v63, %s8005_s14  ;;  %v11370_v2 = vsel %vm14758_vm13, %v3904_v19, %v14132_v26  ;;  %v14134_v63 = vrot.slane %v11343_v45, 3  ;;  %v3946_v13 = vsel %vm14760_vm15, %v7949_v23, %v14759_v25  ;;  %vm14780_vm8 = vmmov %vm14747_vm0 }
 0x259   : > { %3010 = vmatmul.mubr.bf16.gmra.mrb[52].mxu1 %v2686_v52  ;;  %v11377_v15 = vpop.permute.xlu0 %3655  ;;  %v3090_v33 = vsel %vm3030_vm2, %v3085_v18, %v14133_v35  ;;  %v3096_v52 = vsel %vm3030_vm2, %v14761_v42, %v14131_v37  ;;  %v2689_v14 = vrot.slane %v2567_v30, 5  ;;  %v11395_v23 = vsel %vm14762_vm9, %v11286_v21, %v11349_v59  ;;  %v14766_v42 = vld [vmem:[#allocation14_spill] sm:$0xff]  ;;  %v14767_v37 = vld [vmem:[#allocation15_spill] sm:$0xff]  ;;  %vm14782_vm12 = vmmov %vm14747_vm0 }
 0x25a   : > { %5910 = vrot.lane.b32.xlu1 %v11361_v17, %s8004_s13  ;;  %7444 = vmatprep.mubr.msk.bf16.mxu1 %vm14757_vm1, %v2692_v58  ;;  %v14135_v58 = vrot.slane %v11355_v7, 3  ;;  %v4118_v18 = vrot.slane %v3904_v19, 7  ;;  %v5783_v25 = vshll.u32 %v11372_v27, 16  ;;  %v3093_v35 = vrot.slane %v11124_v43, 3  ;;  %vm14785_vm1 = vmmov %vm14762_vm9 }
 0x25b   : > { %v14771_v43 = vrot.slane %v11370_v2, 7  ;;  %vm14788_vm15 = vmmov %vm14747_vm0 }
 0x25c   : > { %v11390_v39 = vpop.permute.xlu1 %3756  ;;  %6012 = vrot.lane.b32.xlu0 %v4835_v5, %s8003_s12  ;;  %v11408_v21 = vsel %vm3030_vm2, %v14135_v58, %v14134_v63  ;;  %v7950_v5 = vld [vmem:[#allocation2 + $0x18] sm:$0xff]  ;;  %v7951_v63 = vld [vmem:[#allocation2 + $0x28] sm:$0xff]  ;;  %v6077_v16 = vrot.slane %v5783_v25, 2  ;;  %vm14790_vm9 = vmmov %vm14747_vm0 }
 0x25d   : > { %3398 = vmatmul.mubr.bf16.gmra.mrb[116].mxu0 %v3090_v33  ;;  %14764 = vst [vmem:[#allocation5_spill] sm:$0xff] %v11408_v21  ;;  %v14765_v33 = vld [vmem:[#allocation13_spill] sm:$0xff]  ;;  %v11419_v30 = vpop.permute.xlu0 %3882  ;;  %v3907_v58 = vrot.slane %v7951_v63, 2 }
 0x25e   : > { %7470 = vmatprep.mubr.msk.bf16.mxu0 %vm14763_vm6, %v3096_v52  ;;  %v3989_v19 = vsel %vm2343_vm11, %v3946_v13, %v14765_v33  ;;  %6149 = vrot.lane.b32.xlu1 %v11395_v23, %s8005_s14  ;;  %v3948_v52 = vsel %vm14747_vm0, %v7950_v5, %v14766_v42  ;;  %v2690_v13 = vsel %vm2610_vm5, %v2685_v54, %v2689_v14  ;;  %v14768_v33 = vrot.slane %v11220_v50, 1  ;;  %vm14774_vm5 = vmmov %vm14747_vm0 }
 0x25f   : > { %v4031_v26 = vsel %vm2386_vm3, %v3989_v19, %v14767_v37  ;;  %v3099_v5 = vrot.slane %v11085_v28, 3  ;;  %v14770_v37 = vshrl.u32 %v11292_v49, 16  ;;  %v4120_v42 = vsel %vm4114_vm4, %v4118_v18, %v14771_v43  ;;  %vm14791_vm6 = vmmov %vm14747_vm0 }
 0x260   : > { %v11421_v62 = vpop.permute.xlu1 %3657  ;;  %v4837_v21 = vsel %vm14769_vm10, %v14768_v33, %v14138_v9  ;;  %4770 = vrot.lane.b32.xlu0 %v11283_v10, %s8004_s13  ;;  %v11437_v14 = vrot.slane %v5783_v25, 1  ;;  %v14772_v54 = vshrl.u32 %v11372_v27, 16  ;;  %v14773_v33 = vld [vmem:[#allocation20_spill] sm:$0xff]  ;;  %v14776_v18 = vrot.slane %v11021_v31, 3  ;;  %vm14793_vm0 = vmmov %vm14769_vm10 }
 0x261   : > { %v5781_v19 = vor.u32 %v14770_v37, %v5777_v55  ;;  %3018 = vmatmul.mubr.bf16.gmra.mrb[56].mxu1 %v2690_v13  ;;  %v3991_v28 = vsel %vm2343_vm11, %v3948_v52, %v14773_v33  ;;  %v14775_v55 = vld [vmem:[#allocation22_spill] sm:$0xff]  ;;  %v11449_v13 = vpop.permute.xlu0 %3758  ;;  %v14777_v43 = vrot.slane %v11334_v40, 2  ;;  %v4115_v52 = vrot.slane %v4031_v26, 7  ;;  %vm14795_vm10 = vmmov %vm14758_vm13 }
 0x262   : > { %v6076_v7 = vrot.slane %v14772_v54, 1  ;;  %4876 = vrot.lane.b32.xlu1 %v4837_v21, %s8003_s12  ;;  %7505 = vmatprep.mubr.msk.bf16.mxu1 %vm14774_vm5, %v4120_v42  ;;  %v11447_v10 = vsel %vm2386_vm3, %v3991_v28, %v14775_v55  ;;  %v3094_v37 = vsel %vm3030_vm2, %v14776_v18, %v3093_v35  ;;  %v14779_v54 = vld [vmem:[#allocation6_spill] sm:$0xff]  ;;  %v14781_v33 = vrot.slane %v11014_v47, 3  ;;  %vm14798_vm5 = vmmov %vm14785_vm1 }
 0x263   : > { %v11457_v25 = vsel %vm14778_vm14, %v14777_v43, %v3907_v58  ;;  %v3950_v42 = vsel %vm14780_vm8, %v11334_v40, %v14779_v54  ;;  %v11472_v31 = vsel %vm14756_vm7, %v5781_v19, %v11437_v14  ;;  %v3622_v40 = vshrl.u32 %v10726_v22, 16  ;;  %v7903_v47 = vld [vmem:[%s14025_s5 + $0x140] sm:$0xff]   ;;  %vm14799_vm14 = vmmov %vm14791_vm6 }
 0x264   : > { %v3100_v28 = vsel %vm3030_vm2, %v14781_v33, %v3099_v5  ;;  %v11465_v55 = vpop.permute.xlu1 %3884  ;;  %5009 = vrot.lane.b32.xlu0 %v11303_v24, %s8005_s14  ;;  %v11474_v26 = vor.u32 %v6077_v16, %v6076_v7  ;;  %v4116_v18 = vrot.slane %v11447_v10, 7  ;;  %v4123_v24 = vrot.slane %v11457_v25, 7  ;;  %v14783_v43 = vld [vmem:[#allocation10_spill] sm:$0xff]  ;;  %vm14800_vm8 = vmmov %vm14795_vm10 }
 0x265   : > { %3406 = vmatmul.mubr.bf16.gmra.mrb[120].mxu0 %v3094_v37  ;;  %v11484_v37 = vld [vmem:[#allocation2 + $0x30] sm:$0xff]  ;;  %v3993_v16 = vsel %vm2343_vm11, %v3950_v42, %v14783_v43  ;;  %v3097_v7 = vrot.slane %v11152_v8, 3  ;;  %v11490_v54 = vpop.permute.xlu0 %3659  ;;  %v14784_v10 = vld [vmem:[#allocation30_spill] sm:$0xff]  ;;  %v3103_v25 = vrot.slane %v11169_v32, 3  ;;  %v14140_v50 = vrot.slane %v11372_v27, 1  ;;  %vm14802_vm7 = vmmov %vm14791_vm6 }
 0x266   : > { %7471 = vmatprep.mubr.msk.bf16.mxu0 %vm14782_vm12, %v3100_v28  ;;  %5912 = vrot.lane.b32.xlu1 %v11472_v31, %s8004_s13  ;;  %v3909_v19 = vrot.slane %v11484_v37, 2  ;;  %v11494_v33 = vsel %vm2386_vm3, %v3993_v16, %v14784_v10  ;;  %v4117_v9 = vsel %vm4114_vm4, %v4115_v52, %v4116_v18  ;;  %v11505_v8 = vsel %vm14785_vm1, %v11349_v59, %v11474_v26  ;;  %v7905_v59 = vld [vmem:[%s14025_s5 + $0x148] sm:$0xff]   ;;  %vm14801_vm12 = vmmov %vm14791_vm6 }
 0x267   : > { %v3847_v42 = vrot.slane %v3622_v40, 1  ;;  %v14786_v43 = vshll.u32 %v10726_v22, 16  ;;  %v14787_v32 = vrot.slane %v11370_v2, 7  ;;  %v3098_v22 = vsel %vm3030_vm2, %v3093_v35, %v3097_v7 }
 0x268   : > { %v11496_v28 = vpop.permute.xlu1 %3760  ;;  %6014 = vrot.lane.b32.xlu0 %v4837_v21, %s8003_s12  ;;  %v14792_v35 = vrot.slane %v11292_v49, 1  ;;  %v14142_v49 = vrot.slane %v11223_v57, 3  ;;  %vm14803_vm1 = vsmask.f32 7424 }
 0x269   : > { %4370 = vmatmul.mubr.bf16.vlgmr.msra.gmra.mrb[60].mxu1 %v4117_v9  ;;  %v3848_v16 = vrot.slane %v14786_v43, 2  ;;  %v4124_v21 = vsel %vm4114_vm4, %v14787_v32, %v4123_v24  ;;  %v11516_v9 = vsel %vm14758_vm13, %v3907_v58, %v3909_v19  ;;  %v11521_v52 = vpop.permute.xlu0 %3886  ;;  %v4121_v43 = vrot.slane %v11494_v33, 7  ;;  %vm14806_vm13 = vmmov %vm14798_vm5 }
 0x26a   : > { %6618 = vmatpush1.bf16.msra.mxu1 %v7903_v47  ;;  %6151 = vrot.lane.b32.xlu1 %v11505_v8, %s8005_s14  ;;  %v14789_v47 = vld [vmem:[#allocation24_spill] sm:$0xff]  ;;  %v3104_v58 = vsel %vm3030_vm2, %v3099_v5, %v3103_v25  ;;  %v14794_v33 = vrot.slane %v10784_v56, 2 }
 0x26b   : > { %7506 = vmatprep.mubr.msk.bf16.mxu1 %vm14788_vm15, %v4124_v21  ;;  %6619 = vmatprep.subr.bf16.mxu1 %v14560_v38  ;;  %v3952_v2 = vsel %vm14790_vm9, %v7951_v63, %v14789_v47  ;;  %v4839_v21 = vsel %vm14793_vm0, %v14792_v35, %v14140_v50  ;;  %v3849_v10 = vor.u32 %v3848_v16, %v3847_v42  ;;  %v4127_v63 = vrot.slane %v11516_v9, 7  ;;  %v14796_v47 = vld [vmem:[#allocation21_spill] sm:$0xff]  ;;  %v7907_v42 = vld [vmem:[%s14025_s5 + $0x150] sm:$0xff]   ;;  %vm14808_vm15 = vmmov %vm14791_vm6 }
 0x26c   : > { %v11530_v32 = vpop.permute.xlu1 %3661  ;;  %4772 = vrot.lane.b32.xlu0 %v11361_v17, %s8004_s13  ;;  %v11545_v5 = vsel %vm14795_vm10, %v11134_v3, %v14794_v33  ;;  %v7953_v17 = vld [vmem:[#allocation2 + $0x38] sm:$0xff]  ;;  %v14797_v3 = vld [vmem:[#allocation32_spill] sm:$0xff]  ;;  %v3624_v50 = vor.u32 %v3622_v40, %v10773_v41  ;;  %v3954_v40 = vsel %vm14801_vm12, %v11484_v37, %v10487_v48  ;;  %vm14809_vm9 = vmmov %vm14800_vm8  ;;  %vm14816_vm10 = vcmask 1046528  }
 0x26d   : > { %3414 = vmatmul.mubr.bf16.gmra.mrb[124].mxu0 %v3098_v22  ;;  %v3911_v22 = vrot.slane %v7953_v17, 2  ;;  %v11551_v35 = vpop.permute.xlu0 %3762  ;;  %v3850_v33 = vsel %vm14798_vm5, %v10444_v53, %v3849_v10  ;;  %v7910_v53 = vld [vmem:[%s14025_s5 + $0x158] sm:$0xff]   ;;  %vm14812_vm0 = vmmov %vm14803_vm1 }
 0x26e   : > { %7472 = vmatprep.mubr.msk.bf16.mxu0 %vm14791_vm6, %v3104_v58  ;;  %4878 = vrot.lane.b32.xlu1 %v4839_v21, %s8003_s12  ;;  %v3995_v58 = vsel %vm2343_vm11, %v3952_v2, %v14796_v47  ;;  %v14141_v2 = vrot.slane %v11545_v5, 3  ;;  %v4128_v47 = vsel %vm4114_vm4, %v4123_v24, %v4127_v63  ;;  %vm14821_vm12 = vmmov %vm14791_vm6 }
 0x26f   : > { %6620 = vmatpush1.bf16.msra.mxu1 %v7905_v59  ;;  %v11559_v16 = vsel %vm2386_vm3, %v3995_v58, %v14797_v3  ;;  %v4122_v59 = vsel %vm4114_vm4, %v4116_v18, %v4121_v43  ;;  %v11574_v58 = vsel %vm14800_vm8, %v3909_v19, %v3911_v22  ;;  %v11593_v3 = vld [vmem:[#allocation2 + $0x60] sm:$0xff] }
 0x270   : > { %6621 = vmatprep.subr.bf16.mxu1 %v14560_v38  ;;  %v11561_v9 = vpop.permute.xlu1 %3888  ;;  %5011 = vrot.lane.b32.xlu0 %v11395_v23, %s8005_s14  ;;  %v3102_v23 = vsel %vm3030_vm2, %v3097_v7, %v14142_v49  ;;  %v4125_v41 = vrot.slane %v11559_v16, 7  ;;  %v3108_v24 = vsel %vm3030_vm2, %v3103_v25, %v14141_v2  ;;  %v3629_v7 = vsel %vm14803_vm1, %v3624_v50, %v10851_v20  ;;  %v11603_v25 = vld [vmem:[#allocation2 + $0x40] sm:$0xff]  ;;  %v14804_v16 = vld [vmem:[#allocation27_spill] sm:$0xff]  ;;  %vm14824_vm1 = vmmov %vm14791_vm6 }
 0x271   : > { %4378 = vmatmul.mubr.bf16.gmra.mrb[64].mxu1 %v4122_v59  ;;  %v11576_v18 = vpop.permute.xlu0 %3663  ;;  %v4131_v48 = vrot.slane %v11574_v58, 7  ;;  %v5795_v37 = vshrl.u32 %v11593_v3, 16  ;;  %v3997_v59 = vsel %vm2343_vm11, %v3954_v40, %v14804_v16  ;;  %v7915_v20 = vld [vmem:[%s14025_s5 + $0x160] sm:$0xff]   ;;  %v14807_v40 = vshrl.u32 %v11372_v27, 16 }
 0x272   : > { %3896 = vrot.lane.b32.xlu1 %v3850_v33, %s8005_s14  ;;  %7507 = vmatprep.mubr.msk.bf16.mxu1 %vm14799_vm14, %v4128_v47  ;;  %v11616_v50 = vsel %vm2386_vm3, %v3997_v59, %v10541_v61  ;;  %v4126_v58 = vsel %vm4114_vm4, %v4121_v43, %v4125_v41  ;;  %v7917_v43 = vld [vmem:[%s14025_s5 + $0x168] sm:$0xff]   ;;  %v14144_v59 = vrot.slane %v11593_v3, 1  ;;  %vm14818_vm14 = vmmov %vm14791_vm6 }
 0x273   : > { %6622 = vmatpush1.bf16.msra.mxu1 %v7907_v42  ;;  %v3913_v42 = vrot.slane %v11603_v25, 2  ;;  %v5789_v61 = vor.u32 %v14807_v40, %v11437_v14  ;;  %v3956_v14 = vsel %vm14791_vm6, %v7953_v17, %v10533_v60  ;;  %v11656_v60 = vld [vmem:[#allocation2 + $0x68] sm:$0xff]  ;;  %vm14829_vm6 = vmmov %vm14816_vm10 }
 0x274   : > { %v11591_v19 = vpop.permute.xlu1 %3764  ;;  %6623 = vmatprep.subr.bf16.mxu1 %v14560_v38  ;;  %6016 = vrot.lane.b32.xlu0 %v4839_v21, %s8003_s12  ;;  %v5791_v21 = vshll.u32 %v11593_v3, 16  ;;  %v7955_v17 = vld [vmem:[#allocation2 + $0x48] sm:$0xff] }
 0x275   : > { %3422 = vmatmul.mubr.bf16.gmra.mrb[128].mxu0 %v3102_v23  ;;  %v11608_v33 = vpop.permute.xlu0 %3890  ;;  %v3854_v23 = vsel %vm14806_vm13, %v3849_v10, %v10899_v12  ;;  %v11635_v12 = vsel %vm14809_vm9, %v3911_v22, %v3913_v42  ;;  %vm14825_vm13 = vmmov %vm14800_vm8 }
 0x276   : > { %7473 = vmatprep.mubr.msk.bf16.mxu0 %vm14802_vm7, %v3108_v24  ;;  %3671 = vrot.lane.b32.xlu1 %v3629_v7, %s8004_s13  ;;  %v6080_v24 = vrot.slane %v5795_v37, 1  ;;  %v6081_v7 = vrot.slane %v5791_v21, 2  ;;  %vm14823_vm7 = vmmov %vm14812_vm0 }
 0x277   : > { %6624 = vmatpush1.bf16.msra.mxu1 %v7910_v53  ;;  %v4132_v53 = vsel %vm4114_vm4, %v4127_v63, %v4131_v48  ;;  %v4129_v63 = vrot.slane %v11616_v50, 7  ;;  %v3915_v50 = vrot.slane %v7955_v17, 2  ;;  %vm14827_vm9 = vmmov %vm14824_vm1 }
 0x278   : > { %v11618_v47 = vpop.permute.xlu1 %3665  ;;  %6625 = vmatprep.subr.bf16.mxu1 %v14560_v38  ;;  %4774 = vrot.lane.b32.xlu0 %v11472_v31, %s8004_s13  ;;  %v5793_v31 = vrot.slane %v5791_v21, 1  ;;  %v11652_v21 = vor.u32 %v6081_v7, %v6080_v24 }
 0x279   : > { %14805 = vst [vmem:[#allocation35_spill] sm:$0xff] %v11618_v47  ;;  %4386 = vmatmul.mubr.bf16.gmra.mrb[68].mxu1 %v4126_v58  ;;  %v11637_v10 = vpop.permute.xlu0 %3766  ;;  %v14813_v58 = vld [vmem:[#allocation33_spill] sm:$0xff] }
 0x27a   : > { %3898 = vrot.lane.b32.xlu1 %v3854_v23, %s8005_s14  ;;  %7508 = vmatprep.mubr.msk.bf16.mxu1 %vm14808_vm15, %v4132_v53  ;;  %14810 = vst [vmem:[#allocation4_spill] sm:$0xff] %v11637_v10  ;;  %v5794_v22 = vsel %vm14812_vm0, %v5789_v61, %v5793_v31  ;;  %v3999_v23 = vsel %vm2343_vm11, %v3956_v14, %v14813_v58  ;;  %v14815_v61 = vrot.slane %v11372_v27, 1  ;;  %v5799_v14 = vshll.u32 %v11656_v60, 16  ;;  %v11708_v2 = vpop.f32.mrb[40].mxu0  ;;  %vm14826_vm15 = vmmov %vm14824_vm1 }
 0x27b   : > { %6626 = vmatpush1.bf16.msra.mxu1 %v7915_v20  ;;  %v4135_v20 = vrot.slane %v11635_v12, 7  ;;  %v11667_v40 = vsel %vm2386_vm3, %v3999_v23, %v10560_v34  ;;  %v4130_v12 = vsel %vm4114_vm4, %v4125_v41, %v4129_v63  ;;  %v6083_v34 = vsel %vm14798_vm5, %v11474_v26, %v11652_v21  ;;  %v7919_v26 = vld [vmem:[%s14025_s5 + $0x178] sm:$0xff]   ;;  %v2869_v49 = vpop.f32.mrb[41].mxu0  ;;  %vm14830_vm0 = vmmov %vm14798_vm5 }
 0x27c   : > { %v11645_v16 = vpop.permute.xlu1 %3892  ;;  %6627 = vmatprep.subr.bf16.mxu1 %v14560_v38  ;;  %5013 = vrot.lane.b32.xlu0 %v11505_v8, %s8005_s14  ;;  %v7918_v8 = vld [vmem:[%s14025_s5 + $0x170] sm:$0xff]   ;;  %v5979_v24 = vsel %vm14816_vm10, %v14815_v61, %v14144_v59  ;;  %v14143_v27 = vshrl.u32 %v11656_v60, 16  ;;  %v11688_v41 = vsel %vm14800_vm8, %v3913_v42, %v3915_v50  ;;  %v5797_v61 = vor.u32 %v5795_v37, %v5793_v31  ;;  %vm14838_vm10 = vmmov %vm14824_vm1 }
 0x27d   : > { %14811 = vst [vmem:[#allocation19_spill] sm:$0xff] %v11645_v16  ;;  %v11660_v53 = vpop.permute.xlu0 %3667  ;;  %v5801_v42 = vrot.slane %v5799_v14, 1  ;;  %v11711_v37 = vld [vmem:[#allocation2 + $0x50] sm:$0xff]  ;;  %v14145_v59 = vrot.slane %v11656_v60, 1  ;;  %vm14840_vm5 = vmmov %vm14800_vm8 }
 0x27e   : > { %5914 = vrot.lane.b32.xlu1 %v5794_v22, %s8004_s13  ;;  %14814 = vst [vmem:[#allocation25_spill] sm:$0xff] %v11660_v53  ;;  %v3917_v31 = vrot.slane %v11711_v37, 2  ;;  %vm14846_vm8 = vmmov %vm14823_vm7 }
 0x27f   : > { %6628 = vmatpush1.bf16.msra.mxu1 %v7917_v43  ;;  %v4136_v43 = vsel %vm4114_vm4, %v4131_v48, %v4135_v20  ;;  %v4133_v48 = vrot.slane %v11667_v40, 7  ;;  %v3958_v40 = vsel %vm14821_vm12, %v11603_v25, %v10584_v11  ;;  %v11725_v25 = vpop.f32.mrb[42].mxu0  ;;  %v5802_v49 = vsel %vm14823_vm7, %v5797_v61, %v5801_v42  ;;  %vm14848_vm12 = vmmov %vm14824_vm1 }
 0x280   : > { %v11674_v7 = vpop.permute.xlu1 %3768  ;;  %6629 = vmatprep.subr.bf16.mxu1 %v14560_v38  ;;  %6018 = vrot.lane.b32.xlu0 %v5979_v24, %s8003_s12  ;;  %v14828_v61 = vrot.slane %v11593_v3, 1  ;;  %v11765_v3 = vld [vmem:[#allocation2 + $0x58] sm:$0xff]  ;;  %vm14852_vm7 = vmmov %vm14829_vm6 }
 0x281   : > { %14817 = vst [vmem:[#allocation26_spill] sm:$0xff] %v11674_v7  ;;  %4394 = vmatmul.mubr.bf16.gmra.mrb[72].mxu1 %v4130_v12  ;;  %v11690_v58 = vpop.permute.xlu0 %3894  ;;  %v4139_v12 = vrot.slane %v11688_v41, 7 }
 0x282   : > { %6153 = vrot.lane.b32.xlu1 %v6083_v34, %s8005_s14  ;;  %7509 = vmatprep.mubr.msk.bf16.mxu1 %vm14818_vm14, %v4136_v43  ;;  %14819 = vst [vmem:[#allocation11_spill] sm:$0xff] %v11690_v58  ;;  %v6085_v43 = vrot.slane %v5799_v14, 2  ;;  %v7920_v14 = vld [vmem:[%s14025_s5 + $0x180] sm:$0xff]   ;;  %vm14845_vm14 = vmmov %vm14824_vm1 }
 0x283   : > { %6630 = vmatpush1.bf16.msra.mxu1 %v7918_v8  ;;  %v6084_v8 = vrot.slane %v14143_v27, 1  ;;  %v4134_v27 = vsel %vm4114_vm4, %v4129_v63, %v4133_v48 }
 0x284   : > { %v11696_v23 = vpop.permute.xlu1 %3669  ;;  %6631 = vmatprep.subr.bf16.mxu1 %v14560_v38  ;;  %4776 = vrot.lane.b32.xlu0 %v5794_v22, %s8004_s13  ;;  %v4001_v22 = vsel %vm2343_vm11, %v3958_v40, %v10638_v36  ;;  %v2872_v36 = vpop.f32.mrb[43].mxu0 }
 0x285   : > { %14820 = vst [vmem:[#allocation23_spill] sm:$0xff] %v11696_v23  ;;  %v11716_v41 = vpop.permute.xlu0 %3770  ;;  %v11723_v11 = vsel %vm2386_vm3, %v4001_v22, %v10652_v29  ;;  %v11733_v40 = vor.u32 %v6085_v43, %v6084_v8  ;;  %v11738_v29 = vsel %vm14825_vm13, %v3915_v50, %v3917_v31  ;;  %v5981_v50 = vsel %vm14829_vm6, %v14828_v61, %v14145_v59  ;;  %v11755_v43 = vld [vmem:[#allocation2 + $0x70] sm:$0xff]  ;;  %v14832_v59 = vld [vmem:[#allocation29_spill] sm:$0xff]  ;;  %vm14855_vm13 = vmmov %vm14840_vm5 }
 0x286   : > { %4880 = vrot.lane.b32.xlu1 %v5979_v24, %s8003_s12  ;;  %14822 = vst [vmem:[#allocation13_spill] sm:$0xff] %v11716_v41  ;;  %v14146_v63 = vrot.slane %v11723_v11, 7  ;;  %v14831_v36 = vld [vmem:[#allocation28_spill] sm:$0xff]  ;;  %v5807_v61 = vshll.u32 %v11755_v43, 16  ;;  %vm14861_vm6 = vmmov %vm14824_vm1  ;;  %v14864_v53 = vshrl.u32 %v11755_v43, 16 }
 0x287   : > { %6632 = vmatpush1.bf16.msra.mxu1 %v7919_v26  ;;  %v4140_v26 = vsel %vm4114_vm4, %v4135_v20, %v4139_v12  ;;  %v3960_v20 = vsel %vm14826_vm15, %v7955_v17, %v10729_v51  ;;  %v6087_v51 = vsel %vm14830_vm0, %v11652_v21, %v11733_v40  ;;  %vm14856_vm15 = vmmov %vm14840_vm5 }
 0x288   : > { %v2117_v24 = vpop.permute.xlu1 %2116  ;;  %6633 = vmatprep.subr.bf16.mxu1 %v14560_v38  ;;  %5015 = vrot.lane.b32.xlu0 %v6083_v34, %s8005_s14  ;;  %v7921_v34 = vld [vmem:[%s14025_s5 + $0x188] sm:$0xff]   ;;  %v4138_v21 = vsel %vm4114_vm4, %v4133_v48, %v14146_v63 }
 0x289   : > { %4402 = vmatmul.mubr.bf16.gmra.mrb[76].mxu1 %v4134_v27  ;;  %v2012_v22 = vpop.permute.xlu0 %2011 }
 0x28a   : > { %5916 = vrot.lane.b32.xlu1 %v5802_v49, %s8004_s13  ;;  %7510 = vmatprep.mubr.msk.bf16.mxu1 %vm14824_vm1, %v4140_v26  ;;  %v2339_v27 = vsel %vm14827_vm9, %v11131_v0, %v2012_v22  ;;  %v4003_v26 = vsel %vm2343_vm11, %v3960_v20, %v14831_v36  ;;  %v14835_v36 = vshrl.u32 %v11656_v60, 16  ;;  %vm14857_vm9 = vmmov %vm14830_vm0 }
 0x28b   : > { %6634 = vmatpush1.bf16.msra.mxu1 %v7920_v14  ;;  %v2383_v22 = vsel %vm2343_vm11, %v2339_v27, %v2117_v24  ;;  %v11777_v17 = vsel %vm2386_vm3, %v4003_v26, %v14832_v59  ;;  %v11782_v14 = vpop.f32.mrb[44].mxu0  ;;  %v14834_v24 = vrot.slane %v10784_v56, 2  ;;  %v14836_v59 = vrot.slane %v11738_v29, 7  ;;  %vm14863_vm0 = vmmov %vm14840_vm5 }
 0x28c   : > { %v11753_v8 = vpop.permute.xlu1 %2118  ;;  %6635 = vmatprep.subr.bf16.mxu1 %v14560_v38  ;;  %6020 = vrot.lane.b32.xlu0 %v5981_v50, %s8003_s12  ;;  %v5805_v48 = vor.u32 %v14835_v36, %v5801_v42  ;;  %v14839_v56 = vrot.slane %v11765_v3, 2 }
 0x28d   : > { %v3111_v27 = vrot.slane %v14834_v24, 3  ;;  %v4144_v26 = vsel %vm4114_vm4, %v4139_v12, %v14836_v59  ;;  %v14842_v12 = vrot.slane %v11223_v57, 3  ;;  %v4594_v59 = vld [vmem:[#allocation2 + $0x20] sm:$0xf8] }
 0x28e   : > { %6155 = vrot.lane.b32.xlu1 %v6087_v51, %s8005_s14  ;;  %v2253_v38 = vpop.permute.xlu0 %2252  ;;  %v11804_v42 = vsel %vm14840_vm5, %v3917_v31, %v14839_v56  ;;  %v11820_v56 = vld [vmem:[#allocation2 + $0x28] sm:$0xff]  ;;  %vm14868_vm5 = vmmov %vm14852_vm7 }
 0x28f   : > { %6636 = vmatpush1.bf16.msra.mxu1 %v7921_v34  ;;  %v11780_v0 = vsel %vm2386_vm3, %v2383_v22, %v2253_v38  ;;  %v2877_v34 = vpop.f32.mrb[45].mxu0  ;;  %v14837_v38 = vshrl.u32 %v11755_v43, 16 }
 0x290   : > { %v11784_v20 = vpop.permute.xlu1 %3673  ;;  %v14147_v63 = vrot.slane %v11780_v0, 3  ;;  %4778 = vrot.lane.b32.xlu0 %v5802_v49, %s8004_s13  ;;  %v11797_v41 = vpop.f32.mrb[46].mxu0  ;;  %v5809_v34 = vrot.slane %v5807_v61, 1  ;;  %v5046_v49 = vrot.slane %v11820_v56, 2 }
 0x291   : > { %14833 = vst [vmem:[#allocation14_spill] sm:$0xff] %v11784_v20  ;;  %4410 = vmatmul.mubr.bf16.gmra.mrb[80].mxu1 %v4138_v21  ;;  %v6088_v22 = vrot.slane %v14837_v38, 1  ;;  %v6089_v20 = vrot.slane %v5807_v61, 2  ;;  %v2880_v36 = vpop.f32.mrb[47].mxu0 }
 0x292   : > { %4882 = vrot.lane.b32.xlu1 %v5981_v50, %s8003_s12  ;;  %7511 = vmatprep.mubr.msk.bf16.mxu1 %vm14838_vm10, %v4144_v26  ;;  %v11807_v21 = vpop.permute.xlu0 %3772  ;;  %v3106_v24 = vsel %vm3030_vm2, %v14842_v12, %v14147_v63  ;;  %v14843_v26 = vrot.slane %v11545_v5, 3  ;;  %v5810_v61 = vsel %vm14846_vm8, %v5805_v48, %v5809_v34  ;;  %v11834_v12 = vld [vmem:[#allocation2 + $0x78] sm:$0xff]  ;;  %v1800_v50 = vld [vmem:[#allocation2 + $0xa0] sm:$0x7]  ;;  %v14850_v48 = vrot.slane %v11755_v43, 1  ;;  %vm14866_vm10 = vmmov %vm14824_vm1 }
 0x293   : > { %14841 = vst [vmem:[#allocation15_spill] sm:$0xff] %v11807_v21  ;;  %3430 = vmatmul.mubr.bf16.gmra.mrb[132].mxu0 %v3106_v24  ;;  %v11823_v21 = vld [vmem:[#allocation2 + $0x30] sm:$0xff]  ;;  %v11831_v5 = vor.u32 %v6089_v20, %v6088_v22  ;;  %v14847_v24 = vld [vmem:[#allocation34_spill] sm:$0xff]  ;;  %v14849_v63 = vld [vmem:[#allocation9_spill] sm:$0xff]  ;;  %v14851_v20 = vrot.slane %v11656_v60, 1  ;;  %v5813_v16 = vor.u32 %v14864_v53, %v5809_v34 }
 0x294   : > { %v3112_v31 = vsel %vm3030_vm2, %v14843_v26, %v3111_v27  ;;  %v11818_v38 = vpop.permute.xlu1 %3900  ;;  %v11826_v57 = vrot.slane %v11823_v21, 2  ;;  %5017 = vrot.lane.b32.xlu0 %v6087_v51, %s8005_s14  ;;  %v3962_v36 = vsel %vm14848_vm12, %v11711_v37, %v14847_v24  ;;  %v5045_v26 = vrot.slane %v4594_v59, 2  ;;  %v11852_v24 = vld [vmem:[#allocation2 + $0x60] sm:$0xff]  ;;  %vm14872_vm12 = vmmov %vm14824_vm1 }
 0x295   : > { %14844 = vst [vmem:[#allocation20_spill] sm:$0xff] %v11818_v38  ;;  %7474 = vmatprep.mubr.msk.bf16.mxu0 %vm14845_vm14, %v3112_v31  ;;  %v4005_v51 = vsel %vm2343_vm11, %v3962_v36, %v14849_v63  ;;  %v5983_v22 = vsel %vm14852_vm7, %v14851_v20, %v14850_v48  ;;  %v14853_v27 = vrot.slane %v11777_v17, 7  ;;  %v14854_v38 = vrot.slane %v11723_v11, 7  ;;  %v11856_v36 = vpop.f32.mrb[48].mxu0  ;;  %vm14869_vm14 = vmmov %vm14846_vm8 }
 0x296   : > { %5918 = vrot.lane.b32.xlu1 %v5810_v61, %s8004_s13  ;;  %v2014_v31 = vpop.permute.xlu0 %2013  ;;  %v3921_v59 = vrot.slane %v11852_v24, 2  ;;  %v5047_v60 = vsel %vm14855_vm13, %v5045_v26, %v5046_v49  ;;  %v11863_v48 = vsel %vm14856_vm15, %v5046_v49, %v11826_v57  ;;  %v5815_v11 = vshll.u32 %v11834_v12, 16  ;;  %v14860_v49 = vld [vmem:[#allocation12_spill] sm:$0xff]  ;;  %vm14870_vm8 = vmmov %vm14863_vm0 }
 0x297   : > { %v4142_v37 = vsel %vm4114_vm4, %v14854_v38, %v14853_v27  ;;  %v2342_v63 = vsel %vm14824_vm1, %v1800_v50, %v2014_v31  ;;  %v2885_v38 = vpop.f32.mrb[49].mxu0  ;;  %v6091_v50 = vsel %vm14857_vm9, %v11733_v40, %v11831_v5  ;;  %v14858_v27 = vrot.slane %v11804_v42, 7  ;;  %vm14875_vm7 = vmmov %vm14824_vm1 }
 0x298   : > { %v11858_v23 = vpop.permute.xlu1 %4764  ;;  %6022 = vrot.lane.b32.xlu0 %v5983_v22, %s8003_s12  ;;  %v14859_v31 = vrot.slane %v11738_v29, 7  ;;  %v11878_v58 = vsel %vm2386_vm3, %v4005_v51, %v14860_v49  ;;  %v11880_v7 = vpop.f32.mrb[50].mxu0  ;;  %v2385_v40 = vsel %vm2343_vm11, %v2342_v63, %v11753_v8  ;;  %v5258_v29 = vrot.slane %v5047_v60, 1  ;;  %vm14877_vm1 = vmmov %vm14868_vm5 }
 0x299   : > { %4418 = vmatmul.mubr.bf16.gmra.mrb[84].mxu1 %v4142_v37  ;;  %v2888_v38 = vpop.f32.mrb[51].mxu0  ;;  %v5817_v10 = vrot.slane %v5815_v11, 1  ;;  %v4145_v8 = vrot.slane %v11878_v58, 7  ;;  %v14865_v60 = vshrl.u32 %v11834_v12, 16  ;;  %vm14878_vm13 = vmmov %vm14857_vm9 }
 0x29a   : > { %v4148_v26 = vsel %vm4114_vm4, %v14859_v31, %v14858_v27  ;;  %6157 = vrot.lane.b32.xlu1 %v6091_v50, %s8005_s14  ;;  %v2255_v37 = vpop.permute.xlu0 %2254  ;;  %v14148_v27 = vrot.slane %v11863_v48, 1  ;;  %v14862_v31 = vrot.slane %v11765_v3, 2  ;;  %vm14880_vm15 = vmmov %vm14861_vm6 }
 0x29b   : > { %7512 = vmatprep.mubr.msk.bf16.mxu1 %vm14861_vm6, %v4148_v26  ;;  %v2428_v51 = vsel %vm2386_vm3, %v2385_v40, %v2255_v37  ;;  %v11893_v26 = vld [vmem:[#allocation2 + $0x68] sm:$0xff]  ;;  %v6092_v38 = vrot.slane %v14865_v60, 1  ;;  %v3964_v37 = vsel %vm14866_vm10, %v11765_v3, %v11229_v44  ;;  %v14867_v40 = vrot.slane %v11780_v0, 3  ;;  %v14871_v0 = vld [vmem:[#allocation16_spill] sm:$0xff]  ;;  %vm14881_vm9 = vmmov %vm14861_vm6 }
 0x29c   : > { %v3922_v20 = vsel %vm14863_vm0, %v14862_v31, %v3921_v59  ;;  %v4869_v49 = vpop.permute.xlu1 %4868  ;;  %v14150_v47 = vrot.slane %v11893_v26, 2  ;;  %v3109_v63 = vrot.slane %v2428_v51, 3  ;;  %4780 = vrot.lane.b32.xlu0 %v5810_v61, %s8004_s13  ;;  %v6093_v31 = vrot.slane %v5815_v11, 2  ;;  %v11912_v51 = vpop.f32.mrb[52].mxu0  ;;  %vm14883_vm6 = vmmov %vm14863_vm0 }
 0x29d   : > { %v4151_v53 = vrot.slane %v3922_v20, 7  ;;  %v5260_v61 = vsel %vm14868_vm5, %v5258_v29, %v14148_v27  ;;  %v5818_v60 = vsel %vm14869_vm14, %v5813_v16, %v5817_v10  ;;  %v14149_v44 = vrot.slane %v11834_v12, 1  ;;  %v2893_v20 = vpop.f32.mrb[53].mxu0  ;;  %v11967_v27 = vld [vmem:[#allocation2 + $0x70] sm:$0xff]  ;;  %vm14885_vm0 = vmmov %vm14875_vm7 }
 0x29e   : > { %4884 = vrot.lane.b32.xlu1 %v5983_v22, %s8003_s12  ;;  %v11904_v34 = vpop.permute.xlu0 %3774  ;;  %v3110_v58 = vsel %vm3030_vm2, %v14867_v40, %v3109_v63  ;;  %v11919_v3 = vsel %vm14870_vm8, %v3921_v59, %v14150_v47  ;;  %v4007_v22 = vsel %vm2343_vm11, %v3964_v37, %v14871_v0  ;;  %v14873_v29 = vrot.slane %v11777_v17, 7  ;;  %v11934_v59 = vpop.f32.mrb[54].mxu0  ;;  %vm14886_vm10 = vmmov %vm14885_vm0 }
 0x29f   : > { %3438 = vmatmul.mubr.bf16.gmra.mrb[136].mxu0 %v3110_v58  ;;  %v11928_v16 = vor.u32 %v6093_v31, %v6092_v38  ;;  %v11932_v40 = vsel %vm2386_vm3, %v4007_v22, %v11250_v1  ;;  %v2896_v17 = vpop.f32.mrb[55].mxu0  ;;  %v14151_v38 = vrot.slane %v11919_v3, 7  ;;  %v11942_v31 = vld [vmem:[#allocation2 + $0x80] sm:$0xff]  ;;  %v14876_v1 = vrot.slane %v11755_v43, 1  ;;  %v11951_v22 = vld [vmem:[#allocation2 + $0x38] sm:$0xff]  ;;  %vm14888_vm5 = vmmov %vm14883_vm6 }
 0x2a0   : > { %v5004_v11 = vpop.permute.xlu1 %5003  ;;  %5019 = vrot.lane.b32.xlu0 %v6091_v50, %s8005_s14  ;;  %7555 = vmatprep.mubr.msk.bf16.mxu0 %vm14872_vm12, %v5260_v61  ;;  %v4146_v63 = vsel %vm4114_vm4, %v14873_v29, %v4145_v8  ;;  %v14874_v50 = vrot.slane %v11804_v42, 7  ;;  %v14152_v42 = vrot.slane %v11951_v22, 2  ;;  %v14153_v20 = vshrl.u32 %v11942_v31, 16  ;;  %vm14889_vm8 = vmmov %vm14885_vm0 }
 0x2a1   : > { %4426 = vmatmul.mubr.bf16.gmra.mrb[88].mxu1 %v4146_v63  ;;  %v5985_v61 = vsel %vm14877_vm1, %v14876_v1, %v14149_v44  ;;  %v4149_v29 = vrot.slane %v11932_v40, 7  ;;  %v6095_v63 = vsel %vm14878_vm13, %v11831_v5, %v11928_v16  ;;  %v5823_v43 = vshll.u32 %v11942_v31, 16  ;;  %vm14890_vm12 = vmmov %vm14877_vm1 }
 0x2a2   : > { %5920 = vrot.lane.b32.xlu1 %v5818_v60, %s8004_s13  ;;  %v4152_v37 = vsel %vm4114_vm4, %v14874_v50, %v4151_v53  ;;  %v4763_v58 = vpop.permute.xlu0 %4762  ;;  %v14879_v17 = vshrl.u32 %v11834_v12, 16  ;;  %v3925_v40 = vrot.slane %v11967_v27, 2  ;;  %v3966_v5 = vsel %vm14880_vm15, %v11852_v24, %v11189_v4  ;;  %vm14894_vm13 = vmmov %vm14885_vm0 }
 0x2a3   : > { %7513 = vmatprep.mubr.msk.bf16.mxu1 %vm14875_vm7, %v4152_v37  ;;  %v4156_v37 = vsel %vm4114_vm4, %v4151_v53, %v14151_v38  ;;  %v5089_v44 = vsel %vm14881_vm9, %v11820_v56, %v11858_v23  ;;  %v11982_v53 = vsel %vm14883_vm6, %v11826_v57, %v14152_v42  ;;  %v4150_v23 = vsel %vm4114_vm4, %v4145_v8, %v4149_v29  ;;  %vm14892_vm7 = vmmov %vm14877_vm1 }
 0x2a4   : > { %v11949_v0 = vpop.permute.xlu1 %5904  ;;  %6024 = vrot.lane.b32.xlu0 %v5985_v61, %s8003_s12  ;;  %v5821_v1 = vor.u32 %v14879_v17, %v5817_v10  ;;  %v6096_v10 = vrot.slane %v14153_v20, 1  ;;  %v14884_v17 = vld [vmem:[#allocation18_spill] sm:$0xff]  ;;  %v5132_v4 = vsel %vm2343_vm11, %v5089_v44, %v4869_v49  ;;  %v6097_v56 = vrot.slane %v5823_v43, 2  ;;  %vm14897_vm9 = vmmov %vm14885_vm0 }
 0x2a5   : > { %v4009_v38 = vsel %vm2343_vm11, %v3966_v5, %v14884_v17  ;;  %v11996_v42 = vsel %vm2386_vm3, %v5132_v4, %v5004_v11  ;;  %v5825_v5 = vrot.slane %v5823_v43, 1  ;;  %v14887_v8 = vrot.slane %v11893_v26, 2  ;;  %v12023_v17 = vld [vmem:[#allocation2 + $0x88] sm:$0xff]  ;;  %vm14898_vm6 = vmmov %vm14888_vm5 }
 0x2a6   : > { %6159 = vrot.lane.b32.xlu1 %v6095_v63, %s8005_s14  ;;  %v4867_v50 = vpop.permute.xlu0 %4866  ;;  %v11993_v24 = vsel %vm2386_vm3, %v4009_v38, %v11346_v6  ;;  %v14154_v38 = vrot.slane %v11982_v53, 1  ;;  %vm14895_vm15 = vsmask.f32 6400 }
 0x2a7   : > { %v12005_v6 = vsel %vm14888_vm5, %v14887_v8, %v3925_v40  ;;  %v5831_v8 = vshll.u32 %v12023_v17, 16  ;;  %vm14901_vm5 = vmmov %vm14885_vm0 }
 0x2a8   : > { %v11976_v47 = vpop.permute.xlu1 %6008  ;;  %4782 = vrot.lane.b32.xlu0 %v5818_v60, %s8004_s13 }
 0x2a9   : > { %14882 = vst [vmem:[#allocation22_spill] sm:$0xff] %v11976_v47  ;;  %v7964_v47 = vld [vmem:[#allocation2 + $0x20] sm:$0xfe]  ;;  %4434 = vmatmul.mubr.bf16.gmra.mrb[92].mxu1 %v4150_v23 }
 0x2aa   : > { %v5087_v20 = vsel %vm14885_vm0, %v7964_v47, %v4763_v58  ;;  %4886 = vrot.lane.b32.xlu1 %v5985_v61, %s8003_s12  ;;  %v5002_v60 = vpop.permute.xlu0 %5001  ;;  %7514 = vmatprep.mubr.msk.bf16.mxu1 %vm14886_vm10, %v4156_v37  ;;  %v5826_v47 = vsel %vm14869_vm14, %v5821_v1, %v5825_v5  ;;  %v5986_v58 = vrot.slane %v11942_v31, 1  ;;  %v4153_v61 = vrot.slane %v11993_v24, 7  ;;  %vm14900_vm10 = vmmov %vm14869_vm14 }
 0x2ab   : > { %v5130_v49 = vsel %vm2343_vm11, %v5087_v20, %v4867_v50  ;;  %v14155_v20 = vrot.slane %v11996_v42, 1  ;;  %v12016_v50 = vor.u32 %v6097_v56, %v6096_v10  ;;  %v3968_v37 = vsel %vm14889_vm8, %v11893_v26, %v11377_v15  ;;  %v12032_v10 = vld [vmem:[#allocation2 + $0x78] sm:$0xff]  ;;  %vm14902_vm14 = vmmov %vm14898_vm6 }
 0x2ac   : > { %v5172_v11 = vsel %vm2386_vm3, %v5130_v49, %v5002_v60  ;;  %v12008_v44 = vpop.permute.xlu1 %6143  ;;  %5021 = vrot.lane.b32.xlu0 %v6095_v63, %s8005_s14  ;;  %v4159_v1 = vrot.slane %v12005_v6, 7  ;;  %v4011_v4 = vsel %vm2343_vm11, %v3968_v37, %v11390_v39  ;;  %v3927_v56 = vrot.slane %v12032_v10, 2  ;;  %vm14903_vm8 = vmmov %vm14885_vm0 }
 0x2ad   : > { %v5255_v43 = vrot.slane %v5172_v11, 1  ;;  %v14891_v15 = vrot.slane %v11834_v12, 1  ;;  %v14893_v39 = vrot.slane %v11863_v48, 1  ;;  %v4154_v60 = vsel %vm4114_vm4, %v4149_v29, %v4153_v61 }
 0x2ae   : > { %5922 = vrot.lane.b32.xlu1 %v5826_v47, %s8004_s13  ;;  %v12027_v23 = vpop.permute.xlu0 %5902  ;;  %v6099_v12 = vsel %vm14895_vm15, %v11928_v16, %v12016_v50  ;;  %v14156_v6 = vshrl.u32 %v12023_v17, 16  ;;  %v12057_v48 = vsel %vm2386_vm3, %v4011_v4, %v11419_v30  ;;  %v14896_v11 = vrot.slane %v11919_v3, 7 }
 0x2af   : > { %v5257_v63 = vsel %vm14890_vm12, %v5255_v43, %v14155_v20  ;;  %v5987_v26 = vsel %vm14892_vm7, %v14891_v15, %v5986_v58  ;;  %v5264_v24 = vsel %vm14877_vm1, %v14893_v39, %v14154_v38  ;;  %v12067_v16 = vsel %vm14898_vm6, %v3925_v40, %v3927_v56  ;;  %vm14904_vm12 = vmmov %vm14877_vm1 }
 0x2b0   : > { %5510 = vmatmul.mubr.bf16.vlgmr.msra.gmra.mrb[140].mxu0 %v5257_v63  ;;  %v12045_v49 = vpop.permute.xlu1 %4870  ;;  %6026 = vrot.lane.b32.xlu0 %v5987_v26, %s8003_s12  ;;  %v4160_v43 = vsel %vm4114_vm4, %v14896_v11, %v4159_v1  ;;  %v14899_v63 = vshrl.u32 %v11942_v31, 16  ;;  %v4157_v4 = vrot.slane %v12057_v48, 7  ;;  %v5833_v3 = vrot.slane %v5831_v8, 1  ;;  %v12086_v48 = vld [vmem:[#allocation2 + $0x80] sm:$0xff]  ;;  %vm14905_vm7 = vmmov %vm14895_vm15 }
 0x2b1   : > { %7556 = vmatprep.mubr.msk.bf16.mxu0 %vm14894_vm13, %v5264_v24  ;;  %4442 = vmatmul.mubr.bf16.gmra.mrb[96].mxu1 %v4154_v60  ;;  %v6100_v15 = vrot.slane %v14156_v6, 1  ;;  %v6101_v39 = vrot.slane %v5831_v8, 2  ;;  %v3970_v24 = vsel %vm14885_vm0, %v11967_v27, %v11421_v62  ;;  %v4163_v40 = vrot.slane %v12067_v16, 7  ;;  %vm14907_vm1 = vmmov %vm14898_vm6 }
 0x2b2   : > { %6161 = vrot.lane.b32.xlu1 %v6099_v12, %s8005_s14  ;;  %v12063_v29 = vpop.permute.xlu0 %6006  ;;  %7515 = vmatprep.mubr.msk.bf16.mxu1 %vm14897_vm9, %v4160_v43  ;;  %v5829_v30 = vor.u32 %v14899_v63, %v5825_v5  ;;  %v14157_v8 = vrot.slane %v12023_v17, 1  ;;  %v4013_v62 = vsel %vm2343_vm11, %v3970_v24, %v11449_v13  ;;  %v4158_v16 = vsel %vm4114_vm4, %v4153_v61, %v4157_v4  ;;  %vm14908_vm13 = vmmov %vm14885_vm0 }
 0x2b3   : > { %v12101_v38 = vor.u32 %v6101_v39, %v6100_v15  ;;  %v4164_v13 = vsel %vm4114_vm4, %v4159_v1, %v4163_v40  ;;  %v3972_v39 = vsel %vm14908_vm13, %v12032_v10, %v11490_v54  ;;  %vm14913_vm15 = vmmov %vm14885_vm0 }
 0x2b4   : > { %v12069_v37 = vpop.permute.xlu1 %5906  ;;  %4784 = vrot.lane.b32.xlu0 %v5826_v47, %s8004_s13  ;;  %v14158_v47 = vrot.slane %v12086_v48, 2  ;;  %v5834_v63 = vsel %vm14900_vm10, %v5829_v30, %v5833_v3  ;;  %vm14915_vm9 = vmmov %vm14904_vm12 }
 0x2b5   : > { %v12084_v5 = vpop.f32.mrb[56].mxu0  ;;  %vm14917_vm6 = vmmov %vm14907_vm1 }
 0x2b6   : > { %4888 = vrot.lane.b32.xlu1 %v5987_v26, %s8003_s12  ;;  %v12082_v60 = vpop.permute.xlu0 %6141  ;;  %v2901_v11 = vpop.f32.mrb[57].mxu0  ;;  %v12115_v61 = vsel %vm14902_vm14, %v3927_v56, %v14158_v47  ;;  %v6103_v56 = vsel %vm14905_vm7, %v12016_v50, %v12101_v38  ;;  %vm14919_vm0 = vmmov %vm14915_vm9 }
 0x2b7   : > { %v12095_v27 = vpop.f32.mrb[58].mxu0  ;;  %v12105_v11 = vsel %vm2386_vm3, %v4013_v62, %v11465_v55  ;;  %vm14920_vm10 = vmmov %vm14901_vm5 }
 0x2b8   : > { %v12089_v43 = vpop.f32.mrb[0].mxu1  ;;  %5023 = vrot.lane.b32.xlu0 %v6099_v12, %s8005_s14  ;;  %v12097_v26 = vpop.permute.xlu1 %6145  ;;  %v4161_v30 = vrot.slane %v12105_v11, 7  ;;  %vm14923_vm14 = vmmov %vm14903_vm8  ;;  %v14928_v11 = vrot.slane %v12115_v61, 7 }
 0x2b9   : > { %v2904_v20 = vpop.f32.mrb[59].mxu0  ;;  %v2909_v6 = vpop.f32.mrb[1].mxu1  ;;  %4450 = vmatmul.mubr.bf16.gmra.mrb[100].mxu1 %v4158_v16  ;;  %v4015_v16 = vsel %vm2343_vm11, %v3972_v39, %v11496_v28  ;;  %v14910_v39 = vshrl.u32 %v12023_v17, 16  ;;  %vm14931_vm13 = vmmov %vm14917_vm6 }
 0x2ba   : > { %5924 = vrot.lane.b32.xlu1 %v5834_v63, %s8004_s13  ;;  %v4767_v12 = vpop.permute.xlu0 %4766  ;;  %v12109_v24 = vpop.f32.mrb[2].mxu1  ;;  %7516 = vmatprep.mubr.msk.bf16.mxu1 %vm14901_vm5, %v4164_v13  ;;  %v5989_v20 = vsel %vm14904_vm12, %v5986_v58, %v14157_v8  ;;  %v12124_v6 = vld [vmem:[#allocation2 + $0x90] sm:$0xff]  ;;  %vm14922_vm5 = vsmask.f32 7424  ;;  %vm14926_vm12 = vmmov %vm14919_vm0 }
 0x2bb   : > { %v5091_v55 = vsel %vm14903_vm8, %v11823_v21, %v4767_v12  ;;  %v2912_v1 = vpop.f32.mrb[3].mxu1  ;;  %v14906_v21 = vrot.slane %v11951_v22, 2  ;;  %v14161_v58 = vshrl.u32 %v12124_v6, 16  ;;  %v5837_v47 = vor.u32 %v14910_v39, %v5833_v3 }
 0x2bc   : > { %6028 = vrot.lane.b32.xlu0 %v5989_v20, %s8003_s12  ;;  %v12128_v15 = vpop.permute.xlu1 %4872  ;;  %v5134_v13 = vsel %vm2343_vm11, %v5091_v55, %v12045_v49  ;;  %v12150_v1 = vld [vmem:[#allocation2 + $0x88] sm:$0xff] }
 0x2bd   : > { %v12137_v31 = vsel %vm14907_vm1, %v14906_v21, %v11320_v46  ;;  %v3287_v12 = vpop.f32.mrb[60].mxu0  ;;  %v5839_v46 = vshll.u32 %v12124_v6, 16  ;;  %v14162_v21 = vrot.slane %v12150_v1, 2  ;;  %vm14929_vm1 = vmmov %vm14903_vm8 }
 0x2be   : > { %6163 = vrot.lane.b32.xlu1 %v6103_v56, %s8005_s14  ;;  %v5006_v50 = vpop.permute.xlu0 %5005  ;;  %v12157_v10 = vadd.f32 %v3287_v12, %v11708_v2  ;;  %v3289_v8 = vpop.f32.mrb[61].mxu0  ;;  %v14159_v28 = vrot.slane %v12137_v31, 1  ;;  %v6104_v2 = vrot.slane %v14161_v58, 1 }
 0x2bf   : > { %v12154_v54 = vsel %vm2386_vm3, %v5134_v13, %v5006_v50  ;;  %v3290_v55 = vpop.f32.mrb[62].mxu0  ;;  %v4162_v50 = vsel %vm4114_vm4, %v4157_v4, %v4161_v30  ;;  %v6105_v8 = vrot.slane %v5839_v46, 2  ;;  %v12173_v13 = vsel %vm2386_vm3, %v4015_v16, %v11521_v52 }
 0x2c0   : > { %14909 = vst [vmem:[#allocation6_spill] sm:$0xff] %v12157_v10  ;;  %v14160_v49 = vrot.slane %v12154_v54, 1  ;;  %4786 = vrot.lane.b32.xlu0 %v5834_v63, %s8004_s13  ;;  %v12164_v62 = vpop.permute.xlu1 %5908  ;;  %v12176_v3 = vadd.f32 %v3290_v55, %v11725_v25  ;;  %v3292_v12 = vpop.f32.mrb[63].mxu0  ;;  %v14912_v63 = vrot.slane %v12115_v61, 7  ;;  %v14914_v52 = vrot.slane %v11996_v42, 1 }
 0x2c1   : > { %4458 = vmatmul.mubr.bf16.gmra.mrb[104].mxu1 %v4162_v50  ;;  %v5841_v25 = vrot.slane %v5839_v46, 1  ;;  %v14916_v55 = vrot.slane %v12086_v48, 2  ;;  %v14163_v12 = vrot.slane %v12124_v6, 1  ;;  %v14165_v42 = vrot.slane %v12173_v13, 7 }
 0x2c2   : > { %14911 = vst [vmem:[#allocation10_spill] sm:$0xff] %v12176_v3  ;;  %v4168_v39 = vsel %vm4114_vm4, %v4163_v40, %v14912_v63  ;;  %4890 = vrot.lane.b32.xlu1 %v5989_v20, %s8003_s12  ;;  %v12182_v4 = vpop.permute.xlu0 %6010  ;;  %v5262_v16 = vsel %vm14915_vm9, %v14914_v52, %v14160_v49  ;;  %v14918_v40 = vrot.slane %v11982_v53, 1  ;;  %v12211_v52 = vld [vmem:[#allocation2 + $0x98] sm:$0xff]  ;;  %v3974_v53 = vsel %vm14923_vm14, %v12086_v48, %v11530_v32  ;;  %vm14935_vm9 = vmmov %vm14919_vm0 }
 0x2c3   : > { %7517 = vmatprep.mubr.msk.bf16.mxu1 %vm14913_vm15, %v4168_v39  ;;  %v12195_v50 = vsel %vm14917_vm6, %v14916_v55, %v14162_v21  ;;  %5518 = vmatmul.mubr.bf16.gmra.mrb[144].mxu0 %v5262_v16  ;;  %v5842_v63 = vsel %vm14922_vm5, %v5837_v47, %v5841_v25  ;;  %v12209_v39 = vor.u32 %v6105_v8, %v6104_v2  ;;  %v14925_v32 = vrot.slane %v12023_v17, 1  ;;  %vm14933_vm15 = vmmov %vm14929_vm1 }
 0x2c4   : > { %v5268_v20 = vsel %vm14919_vm0, %v14918_v40, %v14159_v28  ;;  %5025 = vrot.lane.b32.xlu0 %v6103_v56, %s8005_s14  ;;  %v12206_v46 = vpop.permute.xlu1 %6147  ;;  %v14164_v16 = vrot.slane %v12195_v50, 7  ;;  %v12218_v40 = vld [vmem:[#allocation2 + $0x90] sm:$0xff]  ;;  %v5847_v28 = vshll.u32 %v12211_v52, 16  ;;  %v4017_v49 = vsel %vm2343_vm11, %v3974_v53, %v11551_v35  ;;  %vm14938_vm6 = vmmov %vm14919_vm0 }
 0x2c5   : > { %7557 = vmatprep.mubr.msk.bf16.mxu0 %vm14920_vm10, %v5268_v20  ;;  %14921 = vst [vmem:[#allocation30_spill] sm:$0xff] %v12206_v46  ;;  %v3295_v56 = vpop.f32.mrb[64].mxu0  ;;  %v3933_v20 = vrot.slane %v12218_v40, 2  ;;  %v5991_v48 = vsel %vm14926_vm12, %v14925_v32, %v14163_v12  ;;  %v14166_v17 = vshrl.u32 %v12211_v52, 16  ;;  %v12248_v35 = vsel %vm2386_vm3, %v4017_v49, %v11561_v9  ;;  %vm14939_vm0 = vmmov %vm14931_vm13 }
 0x2c6   : > { %5926 = vrot.lane.b32.xlu1 %v5842_v63, %s8004_s13  ;;  %v4769_v55 = vpop.permute.xlu0 %4768  ;;  %v12224_v2 = vadd.f32 %v3295_v56, %v11782_v14  ;;  %v3297_v8 = vpop.f32.mrb[65].mxu0  ;;  %v4166_v14 = vsel %vm4114_vm4, %v4161_v30, %v14165_v42  ;;  %v4172_v30 = vsel %vm4114_vm4, %v14928_v11, %v14164_v16  ;;  %v14930_v9 = vrot.slane %v12150_v1, 2  ;;  %vm14940_vm10 = vmmov %vm14929_vm1 }
 0x2c7   : > { %v5093_v47 = vsel %vm14903_vm8, %v11951_v22, %v4769_v55  ;;  %v3298_v58 = vpop.f32.mrb[66].mxu0  ;;  %v6107_v22 = vsel %vm14905_vm7, %v12101_v38, %v12209_v39  ;;  %vm14945_vm14 = vmmov %vm14929_vm1 }
 0x2c8   : > { %14924 = vst [vmem:[#allocation24_spill] sm:$0xff] %v12224_v2  ;;  %6030 = vrot.lane.b32.xlu0 %v5991_v48, %s8003_s12  ;;  %v12235_v21 = vpop.permute.xlu1 %4874  ;;  %v12251_v53 = vadd.f32 %v3298_v58, %v11797_v41  ;;  %v3300_v55 = vpop.f32.mrb[67].mxu0  ;;  %v5136_v56 = vsel %vm2343_vm11, %v5093_v47, %v12128_v15  ;;  %v12267_v41 = vsel %vm14931_vm13, %v14930_v9, %v3933_v20  ;;  %v14932_v58 = vshrl.u32 %v12124_v6, 16  ;;  %v12277_v15 = vld [vmem:[#allocation2 + $0x98] sm:$0xff]  ;;  %vm14946_vm8 = vmmov %vm14929_vm1 }
 0x2c9   : > { %4466 = vmatmul.mubr.bf16.gmra.mrb[108].mxu1 %v4166_v14  ;;  %v12261_v8 = vpop.f32.mrb[4].mxu1  ;;  %v14168_v14 = vrot.slane %v11343_v45, 1  ;;  %v12275_v55 = vrot.slane %v5847_v28, 1  ;;  %v14170_v47 = vrot.slane %v12277_v15, 2  ;;  %v4175_v12 = vrot.slane %v12267_v41, 7  ;;  %vm14948_vm12 = vmmov %vm14938_vm6 }
 0x2ca   : > { %14927 = vst [vmem:[#allocation21_spill] sm:$0xff] %v12251_v53  ;;  %6165 = vrot.lane.b32.xlu1 %v6107_v22, %s8005_s14  ;;  %v5008_v38 = vpop.permute.xlu0 %5007  ;;  %7518 = vmatprep.mubr.msk.bf16.mxu1 %vm14929_vm1, %v4172_v30  ;;  %v5845_v61 = vor.u32 %v14932_v58, %v5841_v25  ;;  %v2917_v32 = vpop.f32.mrb[5].mxu1  ;;  %v3976_v58 = vsel %vm14933_vm15, %v12150_v1, %v11576_v18  ;;  %v14937_v1 = vrot.slane %v12137_v31, 1  ;;  %v14942_v31 = vrot.slane %v12173_v13, 7  ;;  %vm14951_vm1 = vmmov %vm14939_vm0  ;;  %v14957_v53 = vld [vmem:[#allocation4_spill] sm:$0xff] }
 0x2cb   : > { %v12272_v49 = vsel %vm2386_vm3, %v5136_v56, %v5008_v38  ;;  %v12283_v9 = vpop.f32.mrb[6].mxu1  ;;  %v6108_v38 = vrot.slane %v14166_v17, 1  ;;  %v6109_v56 = vrot.slane %v5847_v28, 2  ;;  %v14934_v17 = vrot.slane %v12154_v54, 1  ;;  %vm14953_vm13 = vmmov %vm14946_vm8 }
 0x2cc   : > { %v14169_v30 = vrot.slane %v12272_v49, 1  ;;  %4788 = vrot.lane.b32.xlu0 %v5842_v63, %s8004_s13  ;;  %v12285_v25 = vpop.permute.xlu1 %5910  ;;  %v2920_v32 = vpop.f32.mrb[7].mxu1  ;;  %v4019_v63 = vsel %vm2343_vm11, %v3976_v58, %v11591_v19  ;;  %v5272_v19 = vsel %vm14938_vm6, %v14937_v1, %v14168_v14  ;;  %v12315_v41 = vsel %vm14939_vm0, %v3933_v20, %v14170_v47  ;;  %v12330_v20 = vld [vmem:[#allocation2 + $0x50] sm:$0xff]  ;;  %vm14963_vm15 = vmmov %vm14939_vm0 }
 0x2cd   : > { %v3303_v42 = vpop.f32.mrb[68].mxu0  ;;  %v5850_v58 = vsel %vm14922_vm5, %v5845_v61, %v12275_v55  ;;  %v12328_v32 = vor.u32 %v6109_v56, %v6108_v38  ;;  %v14944_v13 = vrot.slane %v12195_v50, 7  ;;  %v14172_v56 = vrot.slane %v12315_v41, 7  ;;  %vm14969_vm0 = vmmov %vm14938_vm6 }
 0x2ce   : > { %4892 = vrot.lane.b32.xlu1 %v5991_v48, %s8003_s12  ;;  %v12296_v16 = vpop.permute.xlu0 %6012  ;;  %v5266_v28 = vsel %vm14935_vm9, %v14934_v17, %v14169_v30  ;;  %v12304_v11 = vadd.f32 %v3303_v42, %v11856_v36  ;;  %v3305_v18 = vpop.f32.mrb[69].mxu0  ;;  %v14167_v48 = vrot.slane %v12211_v52, 1  ;;  %v14941_v42 = vrot.slane %v12248_v35, 7  ;;  %v12380_v30 = vld [vmem:[#allocation2 + $0xa0] sm:$0xff]  ;;  %vm14964_vm9 = vmmov %vm14946_vm8 }
 0x2cf   : > { %5526 = vmatmul.mubr.bf16.gmra.mrb[148].mxu0 %v5266_v28  ;;  %v3306_v54 = vpop.f32.mrb[70].mxu0  ;;  %v12335_v28 = vsel %vm2386_vm3, %v4019_v63, %v11608_v33  ;;  %v12348_v33 = vld [vmem:[#allocation2 + $0xa0] sm:$0xff]  ;;  %v14947_v50 = vrot.slane %v12124_v6, 1  ;;  %v3937_v47 = vrot.slane %v12380_v30, 2 }
 0x2d0   : > { %14936 = vst [vmem:[#allocation32_spill] sm:$0xff] %v12304_v11  ;;  %5027 = vrot.lane.b32.xlu0 %v6107_v22, %s8005_s14  ;;  %7558 = vmatprep.mubr.msk.bf16.mxu0 %vm14940_vm10, %v5272_v19  ;;  %v12319_v36 = vpop.permute.xlu1 %6149  ;;  %v4170_v17 = vsel %vm4114_vm4, %v14942_v31, %v14941_v42  ;;  %v14171_v22 = vrot.slane %v12330_v20, 2  ;;  %v12338_v18 = vadd.f32 %v3306_v54, %v11880_v7  ;;  %v3308_v1 = vpop.f32.mrb[71].mxu0  ;;  %v12350_v63 = vld [vmem:[#allocation2 + $0x40] sm:$0xff]  ;;  %vm14970_vm10 = vmmov %vm14946_vm8 }
 0x2d1   : > { %4474 = vmatmul.mubr.bf16.gmra.mrb[112].mxu1 %v4170_v17  ;;  %v4176_v19 = vsel %vm4114_vm4, %v14944_v13, %v4175_v12  ;;  %v12344_v38 = vpop.f32.mrb[8].mxu1  ;;  %v5993_v42 = vsel %vm14948_vm12, %v14947_v50, %v14167_v48  ;;  %v14952_v50 = vld [vmem:[#allocation35_spill] sm:$0xff]  ;;  %vm14979_vm12 = vmmov %vm14951_vm1 }
 0x2d2   : > { %14943 = vst [vmem:[#allocation27_spill] sm:$0xff] %v12338_v18  ;;  %5928 = vrot.lane.b32.xlu1 %v5850_v58, %s8004_s13  ;;  %v4771_v61 = vpop.permute.xlu0 %4770  ;;  %7519 = vmatprep.mubr.msk.bf16.mxu1 %vm14945_vm14, %v4176_v19  ;;  %v2925_v54 = vpop.f32.mrb[9].mxu1  ;;  %v6111_v19 = vsel %vm14905_vm7, %v12209_v39, %v12328_v32  ;;  %v3978_v48 = vsel %vm14953_vm13, %v12218_v40, %v14952_v50  ;;  %vm14972_vm14 = vmmov %vm14946_vm8  ;;  %vm14987_vm13 = vsmask.f32 6400 }
 0x2d3   : > { %v5095_v7 = vsel %vm14946_vm8, %v12350_v63, %v4771_v61  ;;  %v12362_v1 = vpop.f32.mrb[10].mxu1  ;;  %v14949_v61 = vld [vmem:[#allocation17_spill] sm:$0xff]  ;;  %vm14976_vm8 = vmmov %vm14969_vm0 }
 0x2d4   : > { %6032 = vrot.lane.b32.xlu0 %v5993_v42, %s8003_s12  ;;  %v12364_v13 = vpop.permute.xlu1 %4876  ;;  %v14950_v6 = vrot.slane %v14949_v61, 2  ;;  %v2928_v14 = vpop.f32.mrb[11].mxu1  ;;  %v5138_v39 = vsel %vm2343_vm11, %v5095_v7, %v12235_v21  ;;  %v4180_v61 = vsel %vm4114_vm4, %v4175_v12, %v14172_v56  ;;  %v14956_v7 = vshrl.u32 %v12348_v33, 16  ;;  %vm14980_vm7 = vmmov %vm14964_vm9 }
 0x2d5   : > { %v3311_v31 = vpop.f32.mrb[72].mxu0  ;;  %v5855_v14 = vshll.u32 %v12348_v33, 16  ;;  %v4021_v12 = vsel %vm2343_vm11, %v3978_v48, %v14957_v53 }
 0x2d6   : > { %v12374_v54 = vsel %vm14951_vm1, %v14950_v6, %v14171_v22  ;;  %6167 = vrot.lane.b32.xlu1 %v6111_v19, %s8005_s14  ;;  %v5010_v17 = vpop.permute.xlu0 %5009  ;;  %v14954_v6 = vshrl.u32 %v12211_v52, 16  ;;  %v12396_v22 = vadd.f32 %v3311_v31, %v11912_v51  ;;  %v3313_v18 = vpop.f32.mrb[73].mxu0  ;;  %v6112_v11 = vrot.slane %v14956_v7, 1 }
 0x2d7   : > { %v12393_v50 = vsel %vm2386_vm3, %v5138_v39, %v5010_v17  ;;  %v14958_v17 = vrot.slane %v12335_v28, 7  ;;  %v14959_v51 = vrot.slane %v12248_v35, 7  ;;  %v6113_v31 = vrot.slane %v5855_v14, 2  ;;  %v14960_v39 = vld [vmem:[#allocation19_spill] sm:$0xff] }
 0x2d8   : > { %v5853_v40 = vor.u32 %v14954_v6, %v12275_v55  ;;  %14955 = vst [vmem:[#allocation33_spill] sm:$0xff] %v12396_v22  ;;  %4790 = vrot.lane.b32.xlu0 %v5850_v58, %s8004_s13  ;;  %v3314_v55 = vpop.f32.mrb[74].mxu0  ;;  %v12405_v6 = vpop.permute.xlu1 %5912  ;;  %v12414_v7 = vsel %vm2386_vm3, %v4021_v12, %v14960_v39  ;;  %v14962_v58 = vrot.slane %v12277_v15, 2  ;;  %v14965_v12 = vrot.slane %v12393_v50, 1  ;;  %v12437_v39 = vld [vmem:[#allocation2 + $0xa8] sm:$0xff] }
 0x2d9   : > { %v4174_v18 = vsel %vm4114_vm4, %v14959_v51, %v14958_v17  ;;  %v12417_v53 = vadd.f32 %v3314_v55, %v11934_v59  ;;  %v3316_v48 = vpop.f32.mrb[75].mxu0  ;;  %v12425_v56 = vpop.f32.mrb[12].mxu1  ;;  %v14966_v17 = vrot.slane %v12272_v49, 1  ;;  %v5857_v55 = vrot.slane %v5855_v14, 1  ;;  %v12444_v49 = vld [vmem:[#allocation2 + $0xa8] sm:$0xff] }
 0x2da   : > { %4482 = vmatmul.mubr.bf16.gmra.mrb[116].mxu1 %v4174_v18  ;;  %4894 = vrot.lane.b32.xlu1 %v5993_v42, %s8003_s12  ;;  %v12423_v21 = vsel %vm14963_vm15, %v14962_v58, %v3937_v47  ;;  %v6015_v35 = vpop.permute.xlu0 %6014  ;;  %v12434_v42 = vld [vmem:[#allocation2 + $0x58] sm:$0xff]  ;;  %v2933_v48 = vpop.f32.mrb[13].mxu1  ;;  %v14967_v58 = vrot.slane %v12374_v54, 1  ;;  %v12456_v51 = vor.u32 %v6113_v31, %v6112_v11  ;;  %v14975_v18 = vrot.slane %v12211_v52, 1  ;;  %vm14991_vm15 = vmmov %vm14980_vm7 }
 0x2db   : > { %14961 = vst [vmem:[#allocation28_spill] sm:$0xff] %v12417_v53  ;;  %7520 = vmatprep.mubr.msk.bf16.mxu1 %vm14964_vm9, %v4180_v61  ;;  %v5270_v59 = vsel %vm14938_vm6, %v14966_v17, %v14965_v12  ;;  %v14968_v61 = vrot.slane %v11343_v45, 1  ;;  %v12449_v17 = vpop.f32.mrb[14].mxu1  ;;  %v14973_v12 = vld [vmem:[#allocation26_spill] sm:$0xff]  ;;  %v14977_v31 = vrot.slane %v12434_v42, 2  ;;  %v14982_v10 = vrot.slane %v12444_v49, 2  ;;  %vm14992_vm9 = vmmov %vm14980_vm7 }
 0x2dc   : > { %5534 = vmatmul.mubr.bf16.gmra.mrb[152].mxu0 %v5270_v59  ;;  %5029 = vrot.lane.b32.xlu0 %v6111_v19, %s8005_s14  ;;  %v12452_v48 = vpop.permute.xlu1 %6151  ;;  %v5858_v59 = vsel %vm14922_vm5, %v5853_v40, %v5857_v55  ;;  %v2936_v14 = vpop.f32.mrb[15].mxu1  ;;  %v5863_v19 = vshll.u32 %v12437_v39, 16  ;;  %v14974_v40 = vrot.slane %v12348_v33, 1  ;;  %vm14995_vm6 = vmmov %vm14980_vm7 }
 0x2dd   : > { %v5276_v53 = vsel %vm14969_vm0, %v14968_v61, %v14967_v58  ;;  %v14971_v58 = vld [vmem:[#allocation25_spill] sm:$0xff]  ;;  %v3319_v2 = vpop.f32.mrb[76].mxu0  ;;  %v12484_v52 = vsel %vm14951_vm1, %v3937_v47, %v14982_v10  ;;  %v6115_v47 = vsel %vm14987_vm13, %v12328_v32, %v12456_v51  ;;  %vm15014_vm13 = vmmov %vm14969_vm0 }
 0x2de   : > { %7559 = vmatprep.mubr.msk.bf16.mxu0 %vm14970_vm10, %v5276_v53  ;;  %v3980_v61 = vsel %vm14972_vm14, %v12277_v15, %v14971_v58  ;;  %5930 = vrot.lane.b32.xlu1 %v5858_v59, %s8004_s13  ;;  %v4773_v22 = vpop.permute.xlu0 %4772  ;;  %v5995_v11 = vsel %vm14976_vm8, %v14975_v18, %v14974_v40  ;;  %v14978_v15 = vrot.slane %v12330_v20, 2  ;;  %v7975_v58 = vld [vmem:[#allocation2 + $0x48] sm:$0xff]  ;;  %vm14997_vm10 = vmmov %vm14922_vm5 }
 0x2df   : > { %v4023_v53 = vsel %vm2343_vm11, %v3980_v61, %v14973_v12  ;;  %v5097_v3 = vsel %vm14980_vm7, %v7975_v58, %v4773_v22  ;;  %v12479_v12 = vadd.f32 %v3319_v2, %v12084_v5  ;;  %v3321_v61 = vpop.f32.mrb[77].mxu0  ;;  %v14984_v22 = vrot.slane %v12335_v28, 7  ;;  %vm14998_vm5 = vmmov %vm14995_vm6 }
 0x2e0   : > { %v12475_v14 = vsel %vm14979_vm12, %v14978_v15, %v14977_v31  ;;  %6034 = vrot.lane.b32.xlu0 %v5995_v11, %s8003_s12  ;;  %v3322_v40 = vpop.f32.mrb[78].mxu0  ;;  %v12488_v45 = vpop.permute.xlu1 %4878  ;;  %v14983_v31 = vrot.slane %v12414_v7, 7  ;;  %v14985_v2 = vrot.slane %v12423_v21, 7  ;;  %v14986_v15 = vrot.slane %v12315_v41, 7  ;;  %vm15000_vm14 = vmmov %vm14969_vm0 }
 0x2e1   : > { %14981 = vst [vmem:[#allocation29_spill] sm:$0xff] %v12479_v12  ;;  %v14988_v61 = vshrl.u32 %v12348_v33, 16  ;;  %v14989_v12 = vld [vmem:[#allocation11_spill] sm:$0xff]  ;;  %v12510_v28 = vadd.f32 %v3322_v40, %v12095_v27  ;;  %v14174_v41 = vrot.slane %v12475_v14, 1  ;;  %v6235_v32 = vsel %vm14991_vm15, %v7975_v58, %v12285_v25  ;;  %vm15004_vm8 = vmmov %vm14998_vm5 }
 0x2e2   : > { %v4178_v5 = vsel %vm4114_vm4, %v14984_v22, %v14983_v31  ;;  %v4184_v10 = vsel %vm4114_vm4, %v14986_v15, %v14985_v2  ;;  %v12507_v46 = vsel %vm2386_vm3, %v4023_v53, %v14989_v12  ;;  %v3324_v31 = vpop.f32.mrb[79].mxu0  ;;  %6169 = vrot.lane.b32.xlu1 %v6115_v47, %s8005_s14  ;;  %v12514_v22 = vrot.slane %v5863_v19, 1  ;;  %v5012_v2 = vpop.permute.xlu0 %5011  ;;  %vm15007_vm12 = vmmov %vm14998_vm5 }
 0x2e3   : > { %v5861_v18 = vor.u32 %v14988_v61, %v5857_v55  ;;  %14990 = vst [vmem:[#allocation34_spill] sm:$0xff] %v12510_v28  ;;  %4490 = vmatmul.mubr.bf16.gmra.mrb[120].mxu1 %v4178_v5  ;;  %v5140_v55 = vsel %vm2343_vm11, %v5097_v3, %v12364_v13  ;;  %v12520_v53 = vpop.f32.mrb[16].mxu1  ;;  %v14178_v27 = vrot.slane %v12484_v52, 7  ;;  %v6278_v12 = vsel %vm2343_vm11, %v6235_v32, %v6015_v35  ;;  %v14994_v31 = vld [vmem:[#allocation23_spill] sm:$0xff]  ;;  %vm15010_vm7 = vmmov %vm14951_vm1 }
 0x2e4   : > { %7521 = vmatprep.mubr.msk.bf16.mxu1 %vm14992_vm9, %v4184_v10  ;;  %v12526_v40 = vsel %vm2386_vm3, %v5140_v55, %v5012_v2  ;;  %v2941_v5 = vpop.f32.mrb[17].mxu1  ;;  %v14993_v15 = vshrl.u32 %v12437_v39, 16  ;;  %v6117_v25 = vrot.slane %v5863_v19, 2  ;;  %v14179_v58 = vrot.slane %v12507_v46, 7  ;;  %4792 = vrot.lane.b32.xlu0 %v5858_v59, %s8004_s13  ;;  %v3897_v10 = vpop.permute.xlu1 %3896  ;;  %vm15011_vm1 = vmmov %vm14998_vm5 }
 0x2e5   : > { %v14175_v3 = vrot.slane %v12526_v40, 1  ;;  %v12533_v13 = vpop.f32.mrb[18].mxu1  ;;  %v3982_v35 = vsel %vm14995_vm6, %v12380_v30, %v14994_v31  ;;  %v14996_v19 = vrot.slane %v12374_v54, 1  ;;  %v12546_v55 = vsel %vm14997_vm10, %v5861_v18, %v12514_v22  ;;  %v12561_v18 = vld [vmem:[#allocation2 + $0xb0] sm:$0xff]  ;;  %vm15017_vm9 = vmmov %vm15010_vm7 }
 0x2e6   : > { %v6116_v61 = vrot.slane %v14993_v15, 1  ;;  %v2944_v32 = vpop.f32.mrb[19].mxu1  ;;  %4896 = vrot.lane.b32.xlu1 %v5995_v11, %s8003_s12  ;;  %v6237_v5 = vsel %vm14998_vm5, %v12330_v20, %v12405_v6  ;;  %v12554_v30 = vsel %vm2386_vm3, %v6278_v12, %v12319_v36  ;;  %v6017_v11 = vpop.permute.xlu0 %6016  ;;  %v14999_v31 = vrot.slane %v12393_v50, 1  ;;  %vm15018_vm6 = vmmov %vm15011_vm1 }
 0x2e7   : > { %v5280_v2 = vsel %vm14969_vm0, %v14996_v19, %v14174_v41  ;;  %v3327_v15 = vpop.f32.mrb[80].mxu0  ;;  %v6280_v41 = vsel %vm2343_vm11, %v6237_v5, %v6017_v11  ;;  %v15002_v36 = vrot.slane %v12423_v21, 7  ;;  %v15005_v21 = vrot.slane %v12414_v7, 7  ;;  %v12601_v7 = vld [vmem:[#allocation2 + $0xb0] sm:$0xff]  ;;  %vm15025_vm0 = vmmov %vm15010_vm7 }
 0x2e8   : > { %v5274_v32 = vsel %vm15000_vm14, %v14999_v31, %v14175_v3  ;;  %v12566_v6 = vadd.f32 %v3327_v15, %v12089_v43  ;;  %v3329_v59 = vpop.f32.mrb[81].mxu0  ;;  %v12573_v50 = vor.u32 %v6117_v25, %v6116_v61  ;;  %v15003_v31 = vld [vmem:[#allocation13_spill] sm:$0xff]  ;;  %v12579_v19 = vsel %vm2386_vm3, %v6280_v41, %v12452_v48  ;;  %5031 = vrot.lane.b32.xlu0 %v6115_v47, %s8005_s14  ;;  %v12588_v25 = vld [vmem:[#allocation2 + $0x60] sm:$0xff]  ;;  %vm15029_vm10 = vmmov %vm15011_vm1 }
 0x2e9   : > { %5542 = vmatmul.mubr.bf16.gmra.mrb[156].mxu0 %v5274_v32  ;;  %v4188_v12 = vsel %vm4114_vm4, %v15002_v36, %v14178_v27  ;;  %v4025_v3 = vsel %vm2343_vm11, %v3982_v35, %v15003_v31  ;;  %v3330_v43 = vpop.f32.mrb[82].mxu0  ;;  %v3672_v59 = vpop.permute.xlu1 %3671  ;;  %v4182_v61 = vsel %vm4114_vm4, %v15005_v21, %v14179_v58  ;;  %v14180_v35 = vrot.slane %v12588_v25, 2  ;;  %v7978_v36 = vld [vmem:[#allocation2 + $0xb8] sm:$0x1]  ;;  %vm15031_vm5 = vmmov %vm15014_vm13 }
 0x2ea   : > { %15001 = vst [vmem:[#allocation9_spill] sm:$0xff] %v12566_v6  ;;  %7560 = vmatprep.mubr.msk.bf16.mxu0 %vm15004_vm8, %v5280_v2  ;;  %v14177_v5 = vrot.slane %v12554_v30, 3  ;;  %v12593_v48 = vsel %vm2386_vm3, %v4025_v3, %v3897_v10  ;;  %v14176_v47 = vrot.slane %v12579_v19, 3  ;;  %v12597_v41 = vadd.f32 %v3330_v43, %v12109_v24  ;;  %v3332_v2 = vpop.f32.mrb[83].mxu0  ;;  %5932 = vrot.lane.b32.xlu1 %v12546_v55, %s8004_s13  ;;  %v4775_v11 = vpop.permute.xlu0 %4774  ;;  %v15021_v6 = vld [vmem:[#allocation15_spill] sm:$0xff]  ;;  %vm15034_vm14 = vmmov %vm15031_vm5 }
 0x2eb   : > { %4498 = vmatmul.mubr.bf16.gmra.mrb[124].mxu1 %v4182_v61  ;;  %v12603_v15 = vpop.f32.mrb[20].mxu1  ;;  %v15008_v3 = vrot.slane %v12561_v18, 2  ;;  %v15009_v10 = vrot.slane %v12444_v49, 2  ;;  %v14181_v24 = vshrl.u32 %v12601_v7, 16  ;;  %v3943_v31 = vrot.slane %v7978_v36, 2  ;;  %vm15035_vm8 = vmmov %vm15011_vm1 }
 0x2ec   : > { %15006 = vst [vmem:[#allocation12_spill] sm:$0xff] %v12597_v41  ;;  %7522 = vmatprep.mubr.msk.bf16.mxu1 %vm15007_vm12, %v4188_v12  ;;  %v5099_v43 = vsel %vm15011_vm1, %v12330_v20, %v4775_v11  ;;  %v2949_v21 = vpop.f32.mrb[21].mxu1  ;;  %v15012_v61 = vrot.slane %v12437_v39, 1  ;;  %v15013_v2 = vrot.slane %v12348_v33, 1  ;;  %vm15015_vm15 = vsmask.f32 6400 }
 0x2ed   : > { %v12611_v32 = vsel %vm15010_vm7, %v15009_v10, %v15008_v3  ;;  %v12626_v3 = vsel %vm3030_vm2, %v14177_v5, %v14176_v47  ;;  %v12630_v36 = vpop.f32.mrb[22].mxu1  ;;  %v3899_v20 = vpop.permute.xlu1 %3898  ;;  %v6119_v33 = vsel %vm15015_vm15, %v12456_v51, %v12573_v50  ;;  %v15016_v11 = vrot.slane %v12434_v42, 2  ;;  %vm15038_vm7 = vmmov %vm15031_vm5 }
 0x2ee   : > { %v5997_v12 = vsel %vm15014_vm13, %v15013_v2, %v15012_v61  ;;  %v5871_v61 = vshll.u32 %v12601_v7, 16  ;;  %v3984_v2 = vsel %vm15018_vm6, %v12444_v49, %v3672_v59  ;;  %v2952_v47 = vpop.f32.mrb[23].mxu1  ;;  %6171 = vrot.lane.b32.xlu1 %v6119_v33, %s8005_s14  ;;  %v5014_v27 = vpop.permute.xlu0 %5013  ;;  %v5142_v51 = vsel %vm2343_vm11, %v5099_v43, %v12488_v45  ;;  %vm15039_vm1 = vmmov %vm15015_vm15 }
 0x2ef   : > { %6036 = vrot.lane.b32.xlu0 %v5997_v12, %s8003_s12  ;;  %v12640_v21 = vsel %vm15017_vm9, %v15016_v11, %v14180_v35  ;;  %v3335_v58 = vpop.f32.mrb[84].mxu0  ;;  %v6120_v10 = vrot.slane %v14181_v24, 1  ;;  %v12652_v35 = vsel %vm2386_vm3, %v5142_v51, %v5014_v27  ;;  %v15020_v47 = vshrl.u32 %v12437_v39, 16  ;;  %vm15041_vm13 = vmmov %vm15025_vm0 }
 0x2f0   : > { %v6121_v11 = vrot.slane %v5871_v61, 2  ;;  %v12655_v41 = vadd.f32 %v3335_v58, %v12261_v8  ;;  %v3337_v49 = vpop.f32.mrb[85].mxu0  ;;  %v4027_v45 = vsel %vm2343_vm11, %v3984_v2, %v15021_v6  ;;  %v14182_v43 = vrot.slane %v12652_v35, 1  ;;  %vm15043_vm15 = vmmov %vm15018_vm6 }
 0x2f1   : > { %v5869_v5 = vor.u32 %v15020_v47, %v12514_v22  ;;  %v3338_v27 = vpop.f32.mrb[86].mxu0  ;;  %v12666_v51 = vpop.permute.xlu1 %5914  ;;  %v15022_v8 = vrot.slane %v12593_v48, 7  ;;  %v15023_v58 = vrot.slane %v12507_v46, 7  ;;  %v15024_v24 = vrot.slane %v12561_v18, 2  ;;  %v5734_v47 = vld [vmem:[#allocation2 + $0x28] sm:$0xe0]  ;;  %vm15045_vm9 = vmmov %vm15025_vm0 }
 0x2f2   : > { %15019 = vst [vmem:[#allocation16_spill] sm:$0xff] %v12655_v41  ;;  %v12677_v6 = vsel %vm2386_vm3, %v4027_v45, %v3899_v20  ;;  %v12680_v2 = vadd.f32 %v3338_v27, %v12283_v9  ;;  %4898 = vrot.lane.b32.xlu1 %v5997_v12, %s8003_s12  ;;  %v15027_v59 = vrot.slane %v12611_v32, 7  ;;  %v15028_v46 = vrot.slane %v12484_v52, 7  ;;  %v12701_v52 = vld [vmem:[#allocation2 + $0x68] sm:$0xff]  ;;  %vm15048_vm6 = vmmov %vm15025_vm0 }
 0x2f3   : > { %4794 = vrot.lane.b32.xlu0 %v12546_v55, %s8004_s13  ;;  %v4186_v49 = vsel %vm4114_vm4, %v15023_v58, %v15022_v8  ;;  %v3944_v22 = vsel %vm15025_vm0, %v15024_v24, %v3943_v31  ;;  %v3340_v55 = vpop.f32.mrb[87].mxu0  ;;  %v14183_v18 = vrot.slane %v12601_v7, 1  ;;  %v12689_v24 = vpop.permute.xlu0 %6018  ;;  %v15030_v9 = vrot.slane %v12526_v40, 1  ;;  %vm15049_vm0 = vmmov %vm15035_vm8 }
 0x2f4   : > { %15026 = vst [vmem:[#allocation18_spill] sm:$0xff] %v12680_v2  ;;  %4506 = vmatmul.mubr.bf16.gmra.mrb[128].mxu1 %v4186_v49  ;;  %v4192_v8 = vsel %vm4114_vm4, %v15028_v46, %v15027_v59  ;;  %v12691_v31 = vpop.f32.mrb[24].mxu1  ;;  %v5873_v20 = vrot.slane %v5871_v61, 1  ;;  %v12699_v45 = vor.u32 %v6121_v11, %v6120_v10  ;;  %v14184_v59 = vrot.slane %v12701_v52, 2  ;;  %v12709_v46 = vld [vmem:[#allocation2 + $0xb8] sm:$0xff] }
 0x2f5   : > { %7523 = vmatprep.mubr.msk.bf16.mxu1 %vm15029_vm10, %v4192_v8  ;;  %v5278_v12 = vsel %vm15031_vm5, %v15030_v9, %v14182_v43  ;;  %v2957_v27 = vpop.f32.mrb[25].mxu1  ;;  %v15032_v58 = vrot.slane %v12640_v21, 1  ;;  %v15033_v49 = vrot.slane %v12475_v14, 1  ;;  %v6185_v40 = vrot.slane %v5734_v47, 2  ;;  %v12716_v61 = vpop.permute.xlu1 %6153  ;;  %v15042_v43 = vld [vmem:[#allocation14_spill] sm:$0xff]  ;;  %vm15054_vm10 = vmmov %vm15049_vm0 }
 0x2f6   : > { %5550 = vmatmul.mubr.bf16.gmra.mrb[160].mxu0 %v5278_v12  ;;  %v12713_v10 = vpop.f32.mrb[26].mxu1  ;;  %vm15036_vm12 = vsmask.f32 7424  ;;  %v4195_v12 = vrot.slane %v3944_v22, 7  ;;  %v3466_v27 = vld [vmem:[#allocation2 + $0xb0] sm:$0x7f] }
 0x2f7   : > { %v5284_v55 = vsel %vm15034_vm14, %v15033_v49, %v15032_v58  ;;  %5033 = vrot.lane.b32.xlu0 %v6119_v33, %s8005_s14  ;;  %v5874_v11 = vsel %vm15036_vm12, %v5869_v5, %v5873_v20  ;;  %v2960_v9 = vpop.f32.mrb[27].mxu1  ;;  %v4777_v58 = vpop.permute.xlu0 %4776  ;;  %v15037_v47 = vrot.slane %v12437_v39, 1  ;;  %v15040_v5 = vrot.slane %v12588_v25, 2  ;;  %vm15059_vm14 = vmmov %vm15031_vm5 }
 0x2f8   : > { %7561 = vmatprep.mubr.msk.bf16.mxu0 %vm15035_vm8, %v5284_v55  ;;  %5934 = vrot.lane.b32.xlu1 %v5874_v11, %s8004_s13  ;;  %v3343_v49 = vpop.f32.mrb[88].mxu0  ;;  %v6123_v55 = vsel %vm15039_vm1, %v12573_v50, %v12699_v45  ;;  %v5879_v22 = vshll.u32 %v12709_v46, 16  ;;  %v3987_v8 = vsel %vm15043_vm15, %v3466_v27, %v15042_v43  ;;  %v15046_v50 = vld [vmem:[#allocation7_spill] sm:$0xff]  ;;  %v15050_v27 = vrot.slane %v12677_v6, 7  ;;  %vm15060_vm8 = vmmov %vm15036_vm12 }
 0x2f9   : > { %v5999_v33 = vsel %vm15038_vm7, %v15037_v47, %v14183_v18  ;;  %v12733_v9 = vsel %vm15041_vm13, %v15040_v5, %v14184_v59  ;;  %v12739_v39 = vadd.f32 %v3343_v49, %v12344_v38  ;;  %v3345_v47 = vpop.f32.mrb[89].mxu0  ;;  %v6187_v18 = vsel %vm15045_vm9, %v6185_v40, %v11826_v57  ;;  %v4881_v43 = vpop.permute.xlu1 %4880  ;;  %vm15061_vm12 = vmmov %vm15049_vm0 }
 0x2fa   : > { %v15047_v2 = vrot.slane %v15046_v50, 2  ;;  %v4029_v5 = vsel %vm2343_vm11, %v3987_v8, %v11904_v34  ;;  %v5101_v59 = vsel %vm15049_vm0, %v12434_v42, %v4777_v58  ;;  %v3346_v38 = vpop.f32.mrb[90].mxu0  ;;  %v15051_v40 = vrot.slane %v12593_v48, 7  ;;  %vm15063_vm7 = vmmov %vm15049_vm0 }
 0x2fb   : > { %15044 = vst [vmem:[#allocation17_spill] sm:$0xff] %v12739_v39  ;;  %6038 = vrot.lane.b32.xlu0 %v5999_v33, %s8003_s12  ;;  %v14185_v47 = vshrl.u32 %v12709_v46, 16  ;;  %v5144_v34 = vsel %vm2343_vm11, %v5101_v59, %v4881_v43  ;;  %v15053_v8 = vrot.slane %v12611_v32, 7  ;;  %v5016_v50 = vpop.permute.xlu0 %5015  ;;  %v12768_v39 = vpop.f32.mrb[28].mxu1  ;;  %v14186_v48 = vrot.slane %v12733_v9, 1  ;;  %v15056_v59 = vld [vmem:[#allocation20_spill] sm:$0xff]  ;;  %vm15065_vm1 = vmmov %vm15049_vm0 }
 0x2fc   : > { %v12747_v41 = vsel %vm15048_vm6, %v11826_v57, %v15047_v2  ;;  %v4190_v49 = vsel %vm4114_vm4, %v15051_v40, %v15050_v27  ;;  %v12761_v57 = vadd.f32 %v3346_v38, %v12362_v1  ;;  %v3348_v2 = vpop.f32.mrb[91].mxu0  ;;  %6173 = vrot.lane.b32.xlu1 %v6123_v55, %s8005_s14  ;;  %v15055_v1 = vshrl.u32 %v12601_v7, 16  ;;  %v2965_v32 = vpop.f32.mrb[29].mxu1  ;;  %vm15070_vm13 = vmmov %vm15031_vm5 }
 0x2fd   : > { %4514 = vmatmul.mubr.bf16.gmra.mrb[132].mxu1 %v4190_v49  ;;  %v4196_v58 = vsel %vm4114_vm4, %v15053_v8, %v4195_v12  ;;  %v12774_v27 = vrot.slane %v5879_v22, 1  ;;  %v4071_v43 = vsel %vm2386_vm3, %v4029_v5, %v15056_v59  ;;  %v12779_v40 = vsel %vm2386_vm3, %v5144_v34, %v5016_v50  ;;  %v12784_v8 = vpop.f32.mrb[30].mxu1  ;;  %vm15073_vm15 = vmmov %vm15049_vm0 }
 0x2fe   : > { %15052 = vst [vmem:[#allocation35_spill] sm:$0xff] %v12761_v57  ;;  %7524 = vmatprep.mubr.msk.bf16.mxu1 %vm15054_vm10, %v4196_v58  ;;  %v5877_v38 = vor.u32 %v15055_v1, %v5873_v20  ;;  %v6398_v12 = vrot.slane %v6187_v18, 3  ;;  %v6399_v49 = vrot.slane %v12747_v41, 3  ;;  %v14187_v2 = vrot.slane %v12779_v40, 1  ;;  %v12786_v58 = vpop.permute.xlu1 %5916  ;;  %v2968_v5 = vpop.f32.mrb[31].mxu1  ;;  %vm15082_vm10 = vmmov %vm15031_vm5 }
 0x2ff   : > { %4796 = vrot.lane.b32.xlu0 %v5874_v11, %s8004_s13  ;;  %v6124_v20 = vrot.slane %v14185_v47, 1  ;;  %v6125_v1 = vrot.slane %v5879_v22, 2  ;;  %v4193_v34 = vrot.slane %v4071_v43, 7  ;;  %v12791_v50 = vpop.permute.xlu0 %6020  ;;  %v3351_v18 = vpop.f32.mrb[92].mxu0  ;;  %v15057_v41 = vrot.slane %v12652_v35, 1 }
 0x300   : > { %4900 = vrot.lane.b32.xlu1 %v5999_v33, %s8003_s12  ;;  %v15058_v59 = vrot.slane %v12640_v21, 1  ;;  %v5882_v22 = vsel %vm15060_vm8, %v5877_v38, %v12774_v27  ;;  %v7980_v33 = vld [vmem:[#allocation2 + $0x28] sm:$0xf8]  ;;  %v12808_v5 = vadd.f32 %v3351_v18, %v12425_v56  ;;  %v3353_v47 = vpop.f32.mrb[93].mxu0  ;;  %v6400_v35 = vsel %vm3030_vm2, %v6398_v12, %v6399_v49  ;;  %v12825_v12 = vld [vmem:[#allocation2 + $0x70] sm:$0xff] }
 0x301   : > { %v5282_v11 = vsel %vm15031_vm5, %v15057_v41, %v14187_v2  ;;  %v6227_v43 = vsel %vm15061_vm12, %v7980_v33, %v12027_v23  ;;  %v12812_v41 = vrot.slane %v12709_v46, 1  ;;  %v3354_v38 = vpop.f32.mrb[94].mxu0  ;;  %v15064_v23 = vrot.slane %v12677_v6, 7  ;;  %vm15083_vm5 = vmmov %vm15049_vm0 }
 0x302   : > { %v5288_v32 = vsel %vm15059_vm14, %v15058_v59, %v14186_v48  ;;  %15062 = vst [vmem:[#allocation4_spill] sm:$0xff] %v12808_v5  ;;  %5558 = vmatmul.mubr.bf16.gmra.mrb[164].mxu0 %v5282_v11  ;;  %v6270_v59 = vsel %vm2343_vm11, %v6227_v43, %v12063_v29  ;;  %v12818_v48 = vpop.permute.xlu1 %6155  ;;  %v12823_v47 = vor.u32 %v6125_v1, %v6124_v20  ;;  %v14188_v18 = vrot.slane %v12825_v12, 2  ;;  %v12828_v11 = vld [vmem:[#allocation2 + $0xc0] sm:$0xff]  ;;  %v7982_v29 = vld [vmem:[#allocation2 + $0x30] sm:$0xff]  ;;  %v3356_v6 = vpop.f32.mrb[95].mxu0  ;;  %vm15084_vm14 = vmmov %vm15060_vm8 }
 0x303   : > { %5035 = vrot.lane.b32.xlu0 %v6123_v55, %s8005_s14  ;;  %7562 = vmatprep.mubr.msk.bf16.mxu0 %vm15063_vm7, %v5288_v32  ;;  %v4194_v56 = vsel %vm4114_vm4, %v15064_v23, %v4193_v34  ;;  %v6229_v55 = vsel %vm15065_vm1, %v7982_v29, %v11949_v0  ;;  %v6312_v32 = vsel %vm2386_vm3, %v6270_v59, %v12082_v60  ;;  %v14189_v20 = vshrl.u32 %v12828_v11, 16  ;;  %v15067_v1 = vld [vmem:[#allocation22_spill] sm:$0xff]  ;;  %v4779_v43 = vpop.permute.xlu0 %4778  ;;  %v12841_v23 = vpop.f32.mrb[32].mxu1  ;;  %vm15068_vm4 = vmmov %vm15049_vm0 }
 0x304   : > { %v12835_v33 = vadd.f32 %v3354_v38, %v12449_v17  ;;  %5936 = vrot.lane.b32.xlu1 %v5882_v22, %s8004_s13  ;;  %v6272_v34 = vsel %vm2343_vm11, %v6229_v55, %v15067_v1  ;;  %v5887_v0 = vshll.u32 %v12828_v11, 16  ;;  %v2973_v17 = vpop.f32.mrb[33].mxu1  ;;  %v15069_v59 = vrot.slane %v12601_v7, 1  ;;  %vm15087_vm8 = vmmov %vm15082_vm10 }
 0x305   : > { %4522 = vmatmul.mubr.bf16.gmra.mrb[136].mxu1 %v4194_v56  ;;  %v12847_v60 = vsel %vm2386_vm3, %v6272_v34, %v12008_v44  ;;  %v15071_v56 = vld [vmem:[#allocation31_spill] sm:$0xff]  ;;  %v6395_v6 = vrot.slane %v6312_v32, 3  ;;  %v12859_v1 = vpop.f32.mrb[34].mxu1  ;;  %vm15074_vm9 = vsmask.f32 6400  ;;  %v15075_v7 = vrot.slane %v12701_v52, 2  ;;  %vm15089_vm12 = vmmov %vm15049_vm0 }
 0x306   : > { %15066 = vst [vmem:[#allocation19_spill] sm:$0xff] %v12835_v33  ;;  %7605 = vmatprep.mubr.msk.bf16.mxu1 %vm15068_vm4, %v6400_v35  ;;  %v6001_v38 = vsel %vm15070_vm13, %v15069_v59, %v12812_v41  ;;  %v15072_v29 = vrot.slane %v15071_v56, 3  ;;  %v5103_v35 = vsel %vm15073_vm15, %v12588_v25, %v4779_v43  ;;  %v4883_v44 = vpop.permute.xlu1 %4882  ;;  %v6127_v34 = vsel %vm15074_vm9, %v12699_v45, %v12823_v47  ;;  %v7983_v32 = vld [vmem:[#allocation2 + $0x38] sm:$0xff]  ;;  %v2976_v59 = vpop.f32.mrb[35].mxu1  ;;  %vm15091_vm7 = vmmov %vm15049_vm0 }
 0x307   : > { %6040 = vrot.lane.b32.xlu0 %v6001_v38, %s8003_s12  ;;  %v12869_v17 = vsel %vm15048_vm6, %v15075_v7, %v14188_v18  ;;  %v6231_v43 = vsel %vm15049_vm0, %v7983_v32, %v12069_v37  ;;  %v5146_v56 = vsel %vm2343_vm11, %v5103_v35, %v4883_v44  ;;  %v6128_v45 = vrot.slane %v14189_v20, 1  ;;  %v5018_v18 = vpop.permute.xlu0 %5017  ;;  %v3359_v33 = vpop.f32.mrb[96].mxu0  ;;  %vm15093_vm1 = vmmov %vm15087_vm8 }
 0x308   : > { %v6404_v55 = vsel %vm3030_vm2, %v6399_v49, %v15072_v29  ;;  %v12871_v49 = vld [vmem:[#allocation2 + $0xc0] sm:$0x3]  ;;  %6175 = vrot.lane.b32.xlu1 %v6127_v34, %s8005_s14  ;;  %v6129_v29 = vrot.slane %v5887_v0, 2  ;;  %v6274_v7 = vsel %vm2343_vm11, %v6231_v43, %v12182_v4  ;;  %v15076_v5 = vshrl.u32 %v12709_v46, 16  ;;  %v3361_v59 = vpop.f32.mrb[97].mxu0  ;;  %vm15094_vm4 = vmmov %vm15074_vm9 }
 0x309   : > { %v12885_v32 = vrot.slane %v5887_v0, 1  ;;  %v12888_v35 = vsel %vm2386_vm3, %v5146_v56, %v5018_v18  ;;  %v12891_v44 = vadd.f32 %v3359_v33, %v12520_v53  ;;  %v4755_v2 = vshll.u32 %v12871_v49, 16  ;;  %v12895_v4 = vld [vmem:[#allocation2 + $0xc0] sm:$0x7]  ;;  %v3362_v46 = vpop.f32.mrb[98].mxu0  ;;  %vm15096_vm13 = vmmov %vm15084_vm14 }
 0x30a   : > { %v5885_v37 = vor.u32 %v15076_v5, %v12774_v27  ;;  %15078 = vst [vmem:[#allocation26_spill] sm:$0xff] %v12895_v4  ;;  %v14190_v43 = vrot.slane %v12888_v35, 1  ;;  %v12899_v27 = vpop.permute.xlu1 %5918  ;;  %v15079_v5 = vrot.slane %v12847_v60, 3  ;;  %v4993_v53 = vshrl.u32 %v12895_v4, 16  ;;  %v3364_v59 = vpop.f32.mrb[99].mxu0  ;;  %vm15099_vm15 = vmmov %vm15048_vm6 }
 0x30b   : > { %15077 = vst [vmem:[#allocation25_spill] sm:$0xff] %v12891_v44  ;;  %4798 = vrot.lane.b32.xlu0 %v5882_v22, %s8004_s13  ;;  %v4996_v33 = vshll.u32 %v12895_v4, 16  ;;  %v12908_v0 = vsel %vm2386_vm3, %v6274_v7, %v12097_v26  ;;  %v12911_v56 = vadd.f32 %v3362_v46, %v12533_v13  ;;  %v12915_v20 = vor.u32 %v6129_v29, %v6128_v45  ;;  %vm15100_vm9 = vmmov %vm15049_vm0 }
 0x30c   : > { %v6397_v18 = vsel %vm3030_vm2, %v6395_v6, %v15079_v5  ;;  %4902 = vrot.lane.b32.xlu1 %v6001_v38, %s8003_s12  ;;  %v12917_v6 = vpop.permute.xlu0 %6022  ;;  %v12919_v5 = vpop.f32.mrb[36].mxu1  ;;  %v15081_v26 = vrot.slane %v12779_v40, 1  ;;  %v5890_v13 = vsel %vm15084_vm14, %v5885_v37, %v12885_v32  ;;  %v12929_v38 = vld [vmem:[#allocation2 + $0x78] sm:$0xff]  ;;  %v15085_v46 = vrot.slane %v12869_v17, 1  ;;  %vm15104_vm6 = vmmov %vm15093_vm1 }
 0x30d   : > { %15080 = vst [vmem:[#allocation11_spill] sm:$0xff] %v12911_v56  ;;  %6650 = vmatmul.mubr.bf16.vlgmr.msra.gmra.mrb[140].mxu1 %v6397_v18  ;;  %v2981_v29 = vpop.f32.mrb[37].mxu1  ;;  %v15086_v18 = vrot.slane %v12733_v9, 1  ;;  %v12937_v40 = vrot.slane %v4755_v2, 1  ;;  %v4995_v45 = vrot.slane %v4993_v53, 1  ;;  %v6233_v2 = vsel %vm15091_vm7, %v12350_v63, %v12164_v62  ;;  %vm15111_vm14 = vmmov %vm15096_vm13 }
 0x30e   : > { %v5286_v7 = vsel %vm15082_vm10, %v15081_v26, %v14190_v43  ;;  %7606 = vmatprep.mubr.msk.bf16.mxu1 %vm15083_vm5, %v6404_v55  ;;  %v12939_v26 = vld [vmem:[#allocation2 + $0xc8] sm:$0xf]  ;;  %v12945_v22 = vpop.f32.mrb[38].mxu1  ;;  %v15092_v43 = vrot.slane %v12828_v11, 1  ;;  %v6276_v53 = vsel %vm2343_vm11, %v6233_v2, %v12296_v16  ;;  %v15097_v44 = vrot.slane %v12929_v38, 2  ;;  %vm15108_vm10 = vmmov %vm15094_vm4 }
 0x30f   : > { %5566 = vmatmul.mubr.bf16.gmra.mrb[168].mxu0 %v5286_v7  ;;  %v5292_v59 = vsel %vm15087_vm8, %v15086_v18, %v15085_v46  ;;  %v12941_v55 = vld [vmem:[#allocation2 + $0xc8] sm:$0x1f]  ;;  %5037 = vrot.lane.b32.xlu0 %v6127_v34, %s8005_s14  ;;  %v12948_v7 = vpop.permute.xlu1 %6157  ;;  %v4998_v46 = vrot.slane %v4996_v33, 2  ;;  %v2984_v18 = vpop.f32.mrb[39].mxu1  ;;  %v5895_v56 = vshll.u32 %v12939_v26, 16  ;;  %v15098_v4 = vrot.slane %v12825_v12, 2  ;;  %vm15110_vm5 = vmmov %vm15093_vm1 }
 0x310   : > { %15088 = vst [vmem:[#allocation23_spill] sm:$0xff] %v12941_v55  ;;  %7563 = vmatprep.mubr.msk.bf16.mxu0 %vm15089_vm12, %v5292_v59  ;;  %15090 = vst [vmem:[#allocation13_spill] sm:$0xff] %v12948_v7  ;;  %5938 = vrot.lane.b32.xlu1 %v5890_v13, %s8004_s13  ;;  %v6003_v34 = vsel %vm15093_vm1, %v12812_v41, %v15092_v43  ;;  %v6131_v59 = vsel %vm15094_vm4, %v12823_v47, %v12915_v20  ;;  %v4781_v33 = vpop.permute.xlu0 %4780  ;;  %v3367_v29 = vpop.f32.mrb[100].mxu0  ;;  %v6133_v62 = vshrl.u32 %v12941_v55, 16 }
 0x311   : > { %v6136_v63 = vshll.u32 %v12941_v55, 16  ;;  %v12968_v13 = vadd.f32 %v3367_v29, %v12603_v15  ;;  %v3369_v18 = vpop.f32.mrb[101].mxu0  ;;  %v4758_v43 = vsel %vm15096_vm13, %v5885_v37, %v12937_v40  ;;  %v12977_v16 = vsel %vm15099_vm15, %v15098_v4, %v15097_v44  ;;  %v15105_v4 = vld [vmem:[#allocation30_spill] sm:$0xff]  ;;  %vm15113_vm8 = vmmov %vm15093_vm1 }
 0x312   : > { %v5105_v2 = vsel %vm15100_vm9, %v12701_v52, %v4781_v33  ;;  %v3370_v55 = vpop.f32.mrb[102].mxu0  ;;  %v15101_v15 = vrot.slane %v12908_v0, 3  ;;  %v15102_v29 = vrot.slane %v12847_v60, 3  ;;  %v15103_v18 = vrot.slane %v12871_v49, 1  ;;  %vm15114_vm12 = vmmov %vm15049_vm0 }
 0x313   : > { %15095 = vst [vmem:[#allocation15_spill] sm:$0xff] %v12968_v13  ;;  %6042 = vrot.lane.b32.xlu0 %v6003_v34, %s8003_s12  ;;  %v4885_v57 = vpop.permute.xlu1 %4884  ;;  %v12991_v44 = vor.u32 %v4998_v46, %v4995_v45  ;;  %v12995_v33 = vsel %vm2386_vm3, %v6276_v53, %v15105_v4  ;;  %v12998_v34 = vadd.f32 %v3370_v55, %v12630_v36  ;;  %v3372_v28 = vpop.f32.mrb[103].mxu0  ;;  %v13009_v46 = vrot.slane %v5895_v56, 1  ;;  %vm15119_vm7 = vmmov %vm15093_vm1 }
 0x314   : > { %v6402_v37 = vsel %vm3030_vm2, %v15102_v29, %v15101_v15  ;;  %v4865_v13 = vsel %vm15104_vm6, %v12812_v41, %v15103_v18  ;;  %v5148_v7 = vsel %vm2343_vm11, %v5105_v2, %v4885_v57  ;;  %6177 = vrot.lane.b32.xlu1 %v6131_v59, %s8005_s14  ;;  %v5020_v60 = vpop.permute.xlu0 %5019  ;;  %v13002_v15 = vpop.f32.mrb[40].mxu1  ;;  %v15106_v29 = vld [vmem:[#allocation5_spill] sm:$0xff]  ;;  %v15107_v41 = vshrl.u32 %v12828_v11, 16  ;;  %vm15120_vm1 = vmmov %vm15049_vm0 }
 0x315   : > { %6658 = vmatmul.mubr.bf16.gmra.mrb[144].mxu1 %v6402_v37  ;;  %v6135_v36 = vrot.slane %v6133_v62, 1  ;;  %v6138_v55 = vrot.slane %v6136_v63, 2  ;;  %v13012_v28 = vsel %vm2386_vm3, %v5148_v7, %v5020_v60  ;;  %v2989_v57 = vpop.f32.mrb[41].mxu1  ;;  %v5295_v59 = vrot.slane %v12977_v16, 1  ;;  %vm15121_vm13 = vmmov %vm15049_vm0 }
 0x316   : > { %7607 = vmatprep.mubr.msk.bf16.mxu1 %vm15049_vm0, %v15106_v29  ;;  %v5893_v45 = vor.u32 %v15107_v41, %v12885_v32  ;;  %v6405_v53 = vrot.slane %v12995_v33, 3  ;;  %v5289_v2 = vrot.slane %v13012_v28, 1  ;;  %v13018_v37 = vpop.f32.mrb[42].mxu1  ;;  %v5000_v56 = vsel %vm15108_vm10, %v12823_v47, %v12991_v44  ;;  %vm15125_vm9 = vmmov %vm15110_vm5 }
 0x317   : > { %4800 = vrot.lane.b32.xlu0 %v4758_v43, %s8004_s13  ;;  %v13020_v18 = vpop.permute.xlu1 %5920  ;;  %v2992_v32 = vpop.f32.mrb[43].mxu1  ;;  %v6411_v7 = vrot.slane %v12374_v54, 3  ;;  %v14194_v62 = vrot.slane %v12939_v26, 1  ;;  %v15109_v43 = vrot.slane %v12888_v35, 1  ;;  %v13037_v60 = vor.u32 %v6138_v55, %v6135_v36  ;;  %v13055_v55 = vld [vmem:[#allocation2 + $0x80] sm:$0xff]  ;;  %vm15126_vm6 = vmmov %vm15049_vm0 }
 0x318   : > { %4904 = vrot.lane.b32.xlu1 %v4865_v13, %s8003_s12  ;;  %v13028_v63 = vpop.permute.xlu0 %6024  ;;  %v3375_v4 = vpop.f32.mrb[104].mxu0  ;;  %v5898_v13 = vsel %vm15111_vm14, %v5893_v45, %v13009_v46  ;;  %v15112_v29 = vrot.slane %v12869_v17, 1  ;;  %v15115_v45 = vrot.slane %v12908_v0, 3  ;;  %v4759_v36 = vshrl.u32 %v12871_v49, 16  ;;  %vm15127_vm0 = vmmov %vm15110_vm5 }
 0x319   : > { %v5290_v33 = vsel %vm15110_vm5, %v15109_v43, %v5289_v2  ;;  %v13040_v47 = vadd.f32 %v3375_v4, %v12691_v31  ;;  %v3377_v54 = vpop.f32.mrb[105].mxu0  ;;  %v5068_v32 = vrot.slane %v13055_v55, 2  ;;  %v15118_v0 = vrot.slane %v12828_v11, 1  ;;  %vm15128_vm10 = vmmov %vm15120_vm1 }
 0x31a   : > { %5574 = vmatmul.mubr.bf16.gmra.mrb[172].mxu0 %v5290_v33  ;;  %v5296_v41 = vsel %vm15113_vm8, %v15112_v29, %v5295_v59  ;;  %v3378_v35 = vpop.f32.mrb[106].mxu0  ;;  %v6406_v31 = vsel %vm3030_vm2, %v15115_v45, %v6405_v53  ;;  %vm15129_vm5 = vmmov %vm15120_vm1 }
 0x31b   : > { %5039 = vrot.lane.b32.xlu0 %v5000_v56, %s8005_s14  ;;  %7564 = vmatprep.mubr.msk.bf16.mxu0 %vm15114_vm12, %v5296_v41  ;;  %v13049_v57 = vpop.permute.xlu1 %6159  ;;  %v13059_v4 = vadd.f32 %v3378_v35, %v12713_v10  ;;  %v3380_v43 = vpop.f32.mrb[107].mxu0  ;;  %v15116_v56 = vld [vmem:[#allocation8_spill] sm:$0xff]  ;;  %v6005_v29 = vsel %vm15119_vm7, %v15118_v0, %v14194_v62  ;;  %v6140_v10 = vsel %vm15094_vm4, %v12915_v20, %v13037_v60  ;;  %v6415_v0 = vrot.slane %v12475_v14, 3  ;;  %vm15130_vm14 = vmmov %vm15120_vm1 }
 0x31c   : > { %5940 = vrot.lane.b32.xlu1 %v5898_v13, %s8004_s13  ;;  %v15117_v33 = vrot.slane %v15116_v56, 3  ;;  %v4783_v41 = vpop.permute.xlu0 %4782  ;;  %v13070_v45 = vpop.f32.mrb[44].mxu1  ;;  %v4761_v43 = vor.u32 %v4759_v36, %v12937_v40  ;;  %v15122_v56 = vrot.slane %v12929_v38, 2  ;;  %v15123_v14 = vrot.slane %v12554_v30, 3  ;;  %vm15132_vm8 = vmmov %vm15099_vm15 }
 0x31d   : > { %6666 = vmatmul.mubr.bf16.gmra.mrb[148].mxu1 %v6406_v31  ;;  %v2997_v13 = vpop.f32.mrb[45].mxu1  ;;  %v5107_v35 = vsel %vm15121_vm13, %v12825_v12, %v4783_v41  ;;  %vm15133_vm12 = vmmov %vm15120_vm1 }
 0x31e   : > { %v6412_v54 = vsel %vm3030_vm2, %v15117_v33, %v6411_v7  ;;  %v13079_v31 = vpop.f32.mrb[46].mxu1  ;;  %v13087_v33 = vsel %vm15099_vm15, %v15122_v56, %v5068_v32  ;;  %vm15134_vm7 = vmmov %vm15120_vm1 }
 0x31f   : > { %7608 = vmatprep.mubr.msk.bf16.mxu1 %vm15120_vm1, %v6412_v54  ;;  %6044 = vrot.lane.b32.xlu0 %v6005_v29, %s8003_s12  ;;  %v4887_v11 = vpop.permute.xlu1 %4886  ;;  %v3000_v54 = vpop.f32.mrb[47].mxu1  ;;  %v5899_v29 = vshrl.u32 %v12939_v26, 16  ;;  %v5299_v56 = vrot.slane %v13087_v33, 1  ;;  %vm15135_vm1 = vmmov %vm15127_vm0 }
 0x320   : > { %v5150_v20 = vsel %vm2343_vm11, %v5107_v35, %v4887_v11  ;;  %6179 = vrot.lane.b32.xlu1 %v6140_v10, %s8005_s14  ;;  %v5022_v41 = vpop.permute.xlu0 %5021  ;;  %v3383_v13 = vpop.f32.mrb[108].mxu0  ;;  %v6410_v11 = vsel %vm3030_vm2, %v6405_v53, %v15123_v14  ;;  %v6419_v53 = vrot.slane %v12640_v21, 3  ;;  %vm15136_vm4 = vmmov %vm15127_vm0 }
 0x321   : > { %v13094_v40 = vsel %vm2386_vm3, %v5150_v20, %v5022_v41  ;;  %v13097_v36 = vadd.f32 %v3383_v13, %v12768_v39  ;;  %v3385_v62 = vpop.f32.mrb[109].mxu0  ;;  %v15124_v39 = vrot.slane %v12871_v49, 1  ;;  %v5300_v49 = vsel %vm15127_vm0, %v5295_v59, %v5299_v56  ;;  %vm15137_vm13 = vmmov %vm15129_vm5 }
 0x322   : > { %v5293_v54 = vrot.slane %v13094_v40, 1  ;;  %v3386_v10 = vpop.f32.mrb[110].mxu0  ;;  %v6416_v62 = vsel %vm3030_vm2, %v6411_v7, %v6415_v0  ;;  %vm15139_vm15 = vmmov %vm15129_vm5 }
 0x323   : > { %4802 = vrot.lane.b32.xlu0 %v4761_v43, %s8004_s13  ;;  %v13102_v35 = vpop.permute.xlu1 %5922  ;;  %v13108_v20 = vadd.f32 %v3386_v10, %v12784_v8  ;;  %v3388_v41 = vpop.f32.mrb[111].mxu0  ;;  %v5901_v43 = vor.u32 %v5899_v29, %v13009_v46  ;;  %v6239_v29 = vsel %vm15129_vm5, %v12434_v42, %v12666_v51  ;;  %vm15142_vm0 = vmmov %vm15129_vm5 }
 0x324   : > { %4906 = vrot.lane.b32.xlu1 %v15124_v39, %s8003_s12  ;;  %v13115_v13 = vpop.permute.xlu0 %6026  ;;  %v13117_v40 = vpop.f32.mrb[48].mxu1  ;;  %v5294_v30 = vsel %vm15125_vm9, %v5289_v2, %v5293_v54  ;;  %v13136_v2 = vld [vmem:[#allocation2 + $0x88] sm:$0xff]  ;;  %v6282_v21 = vsel %vm2343_vm11, %v6239_v29, %v12689_v24  ;;  %v15131_v39 = vrot.slane %v12939_v26, 1  ;;  %vm15140_vm9 = vmmov %vm15129_vm5 }
 0x325   : > { %6674 = vmatmul.mubr.bf16.gmra.mrb[152].mxu1 %v6410_v11  ;;  %v3005_v8 = vpop.f32.mrb[49].mxu1  ;;  %5582 = vmatmul.mubr.bf16.gmra.mrb[176].mxu0 %v5294_v30  ;;  %v5070_v7 = vrot.slane %v13136_v2, 2  ;;  %vm15145_vm5 = vmmov %vm15142_vm0 }
 0x326   : > { %7609 = vmatprep.mubr.msk.bf16.mxu1 %vm15126_vm6, %v6416_v62  ;;  %v13130_v46 = vpop.f32.mrb[50].mxu1  ;;  %7565 = vmatprep.mubr.msk.bf16.mxu0 %vm15128_vm10, %v5300_v49  ;;  %v6420_v62 = vsel %vm3030_vm2, %v6415_v0, %v6419_v53  ;;  %vm15141_vm6 = vmmov %vm15132_vm8 }
 0x327   : > { %5041 = vrot.lane.b32.xlu0 %v12991_v44, %s8005_s14  ;;  %v13133_v28 = vpop.permute.xlu1 %6161  ;;  %v3008_v59 = vpop.f32.mrb[51].mxu1  ;;  %vm15144_vm10 = vmmov %vm15135_vm1 }
 0x328   : > { %5942 = vrot.lane.b32.xlu1 %v5901_v43, %s8004_s13  ;;  %v4785_v44 = vpop.permute.xlu0 %4784  ;;  %v3391_v10 = vpop.f32.mrb[112].mxu0  ;;  %v13161_v43 = vsel %vm2386_vm3, %v6282_v21, %v12716_v61 }
 0x329   : > { %v13144_v14 = vadd.f32 %v3391_v10, %v12841_v23  ;;  %v3393_v11 = vpop.f32.mrb[113].mxu0  ;;  %v5109_v41 = vsel %vm15130_vm14, %v12929_v38, %v4785_v44  ;;  %v13157_v23 = vsel %vm15132_vm8, %v5068_v32, %v5070_v7  ;;  %v6423_v44 = vrot.slane %v12733_v9, 3  ;;  %vm15146_vm14 = vmmov %vm15135_vm1 }
 0x32a   : > { %v3394_v42 = vpop.f32.mrb[114].mxu0  ;;  %v5303_v61 = vrot.slane %v13157_v23, 1  ;;  %vm15147_vm8 = vmmov %vm15142_vm0 }
 0x32b   : > { %6046 = vrot.lane.b32.xlu0 %v15131_v39, %s8003_s12  ;;  %v4889_v51 = vpop.permute.xlu1 %4888  ;;  %v13164_v24 = vadd.f32 %v3394_v42, %v12859_v1  ;;  %v3396_v30 = vpop.f32.mrb[115].mxu0  ;;  %v6417_v1 = vrot.slane %v13161_v43, 3 }
 0x32c   : > { %v5152_v26 = vsel %vm2343_vm11, %v5109_v41, %v4889_v51  ;;  %6181 = vrot.lane.b32.xlu1 %v13037_v60, %s8005_s14  ;;  %v5024_v0 = vpop.permute.xlu0 %5023  ;;  %v13172_v8 = vpop.f32.mrb[52].mxu1  ;;  %v5304_v51 = vsel %vm15136_vm4, %v5299_v56, %v5303_v61  ;;  %vm15153_vm4 = vmmov %vm15142_vm0 }
 0x32d   : > { %6682 = vmatmul.mubr.bf16.gmra.mrb[156].mxu1 %v12626_v3  ;;  %v5194_v32 = vsel %vm2386_vm3, %v5152_v26, %v5024_v0  ;;  %v3013_v59 = vpop.f32.mrb[53].mxu1  ;;  %v6241_v3 = vsel %vm15134_vm7, %v12588_v25, %v12786_v58  ;;  %v6424_v26 = vsel %vm3030_vm2, %v6419_v53, %v6423_v44  ;;  %vm15151_vm7 = vmmov %vm15142_vm0 }
 0x32e   : > { %7610 = vmatprep.mubr.msk.bf16.mxu1 %vm15133_vm12, %v6420_v62  ;;  %v5297_v49 = vrot.slane %v5194_v32, 1  ;;  %v13181_v60 = vpop.f32.mrb[54].mxu1  ;;  %v6284_v25 = vsel %vm2343_vm11, %v6241_v3, %v12791_v50  ;;  %v13201_v62 = vld [vmem:[#allocation2 + $0x90] sm:$0xff]  ;;  %vm15149_vm12 = vmmov %vm15142_vm0 }
 0x32f   : > { %v13176_v29 = vpop.permute.xlu1 %5924  ;;  %v3016_v42 = vpop.f32.mrb[55].mxu1  ;;  %v5072_v43 = vrot.slane %v13201_v62, 2  ;;  %v6326_v30 = vsel %vm2386_vm3, %v6284_v25, %v12818_v48 }
 0x330   : > { %v13184_v10 = vpop.permute.xlu0 %6028  ;;  %v3399_v11 = vpop.f32.mrb[116].mxu0  ;;  %v5298_v21 = vsel %vm15135_vm1, %v5293_v54, %v5297_v49  ;;  %v15138_v54 = vrot.slane %v12579_v19, 3  ;;  %v6421_v32 = vrot.slane %v6326_v30, 3  ;;  %vm15152_vm1 = vmmov %vm15141_vm6 }
 0x331   : > { %v13188_v41 = vadd.f32 %v3399_v11, %v12919_v5  ;;  %v3401_v39 = vpop.f32.mrb[117].mxu0  ;;  %5590 = vmatmul.mubr.bf16.gmra.mrb[180].mxu0 %v5298_v21  ;;  %v13218_v48 = vsel %vm15141_vm6, %v5070_v7, %v5072_v43  ;;  %vm15159_vm6 = vmmov %vm15142_vm0 }
 0x332   : > { %v3402_v58 = vpop.f32.mrb[118].mxu0  ;;  %7566 = vmatprep.mubr.msk.bf16.mxu0 %vm15137_vm13, %v5304_v51  ;;  %v6418_v5 = vsel %vm3030_vm2, %v15138_v54, %v6417_v1  ;;  %v6427_v39 = vrot.slane %v12869_v17, 3  ;;  %v6422_v17 = vsel %vm3030_vm2, %v6417_v1, %v6421_v32  ;;  %vm15155_vm13 = vmmov %vm15142_vm0 }
 0x333   : > { %v13196_v9 = vpop.permute.xlu1 %6163  ;;  %v13207_v56 = vadd.f32 %v3402_v58, %v12945_v22  ;;  %v3404_v50 = vpop.f32.mrb[119].mxu0  ;;  %v6243_v22 = vsel %vm15142_vm0, %v12701_v52, %v12899_v27 }
 0x334   : > { %v4787_v0 = vpop.permute.xlu0 %4786  ;;  %v13211_v19 = vpop.f32.mrb[56].mxu1  ;;  %v6286_v52 = vsel %vm2343_vm11, %v6243_v22, %v12917_v6 }
 0x335   : > { %6690 = vmatmul.mubr.bf16.gmra.mrb[160].mxu1 %v6418_v5  ;;  %v5111_v59 = vsel %vm15140_vm9, %v13055_v55, %v4787_v0  ;;  %v3021_v11 = vpop.f32.mrb[57].mxu1  ;;  %v5307_v5 = vrot.slane %v13218_v48, 1  ;;  %vm15158_vm9 = vmmov %vm15144_vm10 }
 0x336   : > { %7611 = vmatprep.mubr.msk.bf16.mxu1 %vm15139_vm15, %v6424_v26  ;;  %v13224_v21 = vpop.f32.mrb[58].mxu1  ;;  %v15143_v26 = vld [vmem:[#allocation13_spill] sm:$0xff]  ;;  %vm15157_vm15 = vmmov %vm15144_vm10 }
 0x337   : > { %v4891_v3 = vpop.permute.xlu1 %4890  ;;  %v3024_v54 = vpop.f32.mrb[59].mxu1  ;;  %v13242_v0 = vsel %vm2386_vm3, %v6286_v52, %v15143_v26  ;;  %v5308_v1 = vsel %vm15146_vm14, %v5303_v61, %v5307_v5  ;;  %vm15163_vm14 = vmmov %vm15142_vm0 }
 0x338   : > { %v5154_v53 = vsel %vm2343_vm11, %v5111_v59, %v4891_v3  ;;  %v5026_v42 = vpop.permute.xlu0 %5025  ;;  %v3407_v51 = vpop.f32.mrb[120].mxu0  ;;  %v6428_v3 = vsel %vm3030_vm2, %v6423_v44, %v6427_v39  ;;  %v6431_v54 = vrot.slane %v12977_v16, 3 }
 0x339   : > { %v13228_v25 = vsel %vm2386_vm3, %v5154_v53, %v5026_v42  ;;  %v13231_v58 = vadd.f32 %v3407_v51, %v13002_v15  ;;  %v3409_v7 = vpop.f32.mrb[121].mxu0  ;;  %v6425_v53 = vrot.slane %v13242_v0, 3 }
 0x33a   : > { %v5301_v27 = vrot.slane %v13228_v25, 1  ;;  %v3410_v30 = vpop.f32.mrb[122].mxu0  ;;  %v13262_v25 = vld [vmem:[#allocation2 + $0x98] sm:$0xff]  ;;  %v6245_v7 = vsel %vm15149_vm12, %v12825_v12, %v13020_v18  ;;  %vm15166_vm12 = vmmov %vm15142_vm0 }
 0x33b   : > { %v13237_v50 = vpop.permute.xlu1 %5926  ;;  %v13245_v15 = vadd.f32 %v3410_v30, %v13018_v37  ;;  %v3412_v59 = vpop.f32.mrb[123].mxu0  ;;  %v15148_v37 = vld [vmem:[#allocation6_spill] sm:$0xff]  ;;  %v6426_v16 = vsel %vm3030_vm2, %v6421_v32, %v6425_v53  ;;  %v6432_v32 = vsel %vm3030_vm2, %v6427_v39, %v6431_v54  ;;  %v6247_v39 = vsel %vm15155_vm13, %v12929_v38, %v13102_v35  ;;  %vm15172_vm13 = vmmov %vm15142_vm0 }
 0x33c   : > { %v13248_v11 = vpop.permute.xlu0 %6030  ;;  %v5302_v6 = vsel %vm15144_vm10, %v5297_v49, %v5301_v27  ;;  %v4371_v22 = vpop.f32.mrb[60].mxu1  ;;  %v5074_v49 = vrot.slane %v13262_v25, 2  ;;  %vm15160_vm10 = vmmov %vm15142_vm0 }
 0x33d   : > { %6698 = vmatmul.mubr.bf16.gmra.mrb[164].mxu1 %v6422_v17  ;;  %5598 = vmatmul.mubr.bf16.gmra.mrb[184].mxu0 %v5302_v6  ;;  %v13258_v42 = vadd.f32 %v4371_v22, %v15148_v37  ;;  %v4373_v51 = vpop.f32.mrb[61].mxu1  ;;  %v15150_v17 = vld [vmem:[#allocation10_spill] sm:$0xff]  ;;  %v6288_v6 = vsel %vm2343_vm11, %v6245_v7, %v13028_v63 }
 0x33e   : > { %7612 = vmatprep.mubr.msk.bf16.mxu1 %vm15145_vm5, %v6428_v3  ;;  %7567 = vmatprep.mubr.msk.bf16.mxu0 %vm15147_vm8, %v5308_v1  ;;  %v4374_v61 = vpop.f32.mrb[62].mxu1  ;;  %v13285_v22 = vsel %vm15152_vm1, %v5072_v43, %v5074_v49  ;;  %vm15162_vm5 = vmmov %vm15152_vm1 }
 0x33f   : > { %v13260_v44 = vpop.permute.xlu1 %6165  ;;  %v13270_v26 = vadd.f32 %v4374_v61, %v15150_v17  ;;  %v4376_v3 = vpop.f32.mrb[63].mxu1  ;;  %v15154_v17 = vld [vmem:[#allocation24_spill] sm:$0xff]  ;;  %vm15165_vm8 = vmmov %vm15158_vm9 }
 0x340   : > { %v4789_v52 = vpop.permute.xlu0 %4788  ;;  %v3415_v30 = vpop.f32.mrb[124].mxu0  ;;  %vm15168_vm1 = vmmov %vm15142_vm0 }
 0x341   : > { %v13273_v0 = vadd.f32 %v3415_v30, %v13070_v45  ;;  %v3417_v59 = vpop.f32.mrb[125].mxu0  ;;  %v5113_v1 = vsel %vm15151_vm7, %v13136_v2, %v4789_v52  ;;  %v13289_v45 = vsel %vm2386_vm3, %v6288_v6, %v13049_v57  ;;  %v5311_v52 = vrot.slane %v13285_v22, 1  ;;  %vm15167_vm7 = vmmov %vm15165_vm8 }
 0x342   : > { %v3418_v12 = vpop.f32.mrb[126].mxu0  ;;  %v6429_v57 = vrot.slane %v13289_v45, 3 }
 0x343   : > { %v4893_v18 = vpop.permute.xlu1 %4892  ;;  %v13292_v63 = vadd.f32 %v3418_v12, %v13079_v31  ;;  %v3420_v37 = vpop.f32.mrb[127].mxu0  ;;  %v5312_v38 = vsel %vm15158_vm9, %v5307_v5, %v5311_v52  ;;  %vm15174_vm9 = vmmov %vm15142_vm0 }
 0x344   : > { %v5156_v51 = vsel %vm2343_vm11, %v5113_v1, %v4893_v18  ;;  %v5028_v7 = vpop.permute.xlu0 %5027  ;;  %v4379_v43 = vpop.f32.mrb[64].mxu1  ;;  %v6435_v1 = vrot.slane %v13087_v33, 3  ;;  %v6290_v33 = vsel %vm2343_vm11, %v6247_v39, %v13115_v13 }
 0x345   : > { %6706 = vmatmul.mubr.bf16.gmra.mrb[168].mxu1 %v6426_v16  ;;  %v5198_v61 = vsel %vm2386_vm3, %v5156_v51, %v5028_v7  ;;  %v13301_v31 = vadd.f32 %v4379_v43, %v15154_v17  ;;  %v4381_v3 = vpop.f32.mrb[65].mxu1  ;;  %v15156_v16 = vld [vmem:[#allocation21_spill] sm:$0xff]  ;;  %v13327_v43 = vld [vmem:[#allocation2 + $0xa0] sm:$0xff]  ;;  %v6332_v17 = vsel %vm2386_vm3, %v6290_v33, %v13133_v28  ;;  %v6439_v33 = vrot.slane %v13157_v23, 3 }
 0x346   : > { %7613 = vmatprep.mubr.msk.bf16.mxu1 %vm15153_vm4, %v6432_v32  ;;  %v5305_v30 = vrot.slane %v5198_v61, 1  ;;  %v4382_v6 = vpop.f32.mrb[66].mxu1  ;;  %v6436_v13 = vsel %vm3030_vm2, %v6431_v54, %v6435_v1  ;;  %v6249_v54 = vsel %vm15163_vm14, %v13055_v55, %v13176_v29  ;;  %vm15170_vm4 = vmmov %vm15142_vm0 }
 0x347   : > { %v13303_v59 = vpop.permute.xlu1 %5928  ;;  %v13312_v37 = vadd.f32 %v4382_v6, %v15156_v16  ;;  %v4384_v7 = vpop.f32.mrb[67].mxu1  ;;  %v15161_v16 = vld [vmem:[#allocation32_spill] sm:$0xff]  ;;  %v6440_v29 = vsel %vm3030_vm2, %v6435_v1, %v6439_v33  ;;  %v13376_v1 = vld [vmem:[#allocation2 + $0xa8] sm:$0xff]  ;;  %vm15181_vm14 = vmmov %vm15168_vm1 }
 0x348   : > { %v13309_v12 = vpop.permute.xlu0 %6032  ;;  %v3423_v18 = vpop.f32.mrb[128].mxu0  ;;  %v5306_v45 = vsel %vm15157_vm15, %v5301_v27, %v5305_v30  ;;  %v6430_v27 = vsel %vm3030_vm2, %v6425_v53, %v6429_v57  ;;  %vm15173_vm15 = vmmov %vm15162_vm5 }
 0x349   : > { %v13316_v51 = vadd.f32 %v3423_v18, %v13117_v40  ;;  %v3425_v32 = vpop.f32.mrb[129].mxu0  ;;  %5606 = vmatmul.mubr.bf16.gmra.mrb[188].mxu0 %v5306_v45  ;;  %v5076_v40 = vrot.slane %v13327_v43, 2  ;;  %v6433_v18 = vrot.slane %v6332_v17, 3 }
 0x34a   : > { %v3426_v35 = vpop.f32.mrb[130].mxu0  ;;  %7568 = vmatprep.mubr.msk.bf16.mxu0 %vm15159_vm6, %v5312_v38  ;;  %vm15176_vm6 = vmmov %vm15142_vm0 }
 0x34b   : > { %v13324_v61 = vpop.permute.xlu1 %6167  ;;  %v13333_v3 = vadd.f32 %v3426_v35, %v13130_v46  ;;  %v3428_v5 = vpop.f32.mrb[131].mxu0  ;;  %v13345_v46 = vsel %vm15162_vm5, %v5074_v49, %v5076_v40  ;;  %v6292_v49 = vsel %vm2343_vm11, %v6249_v54, %v13184_v10  ;;  %v6434_v55 = vsel %vm3030_vm2, %v6429_v57, %v6433_v18  ;;  %v15169_v57 = vld [vmem:[#allocation33_spill] sm:$0xff]  ;;  %vm15180_vm5 = vmmov %vm15168_vm1 }
 0x34c   : > { %v4791_v39 = vpop.permute.xlu0 %4790  ;;  %v4387_v6 = vpop.f32.mrb[68].mxu1  ;;  %v6334_v23 = vsel %vm2386_vm3, %v6292_v49, %v13196_v9 }
 0x34d   : > { %6714 = vmatmul.mubr.bf16.gmra.mrb[172].mxu1 %v6430_v27  ;;  %v5115_v53 = vsel %vm15160_vm10, %v13201_v62, %v4791_v39  ;;  %v13340_v45 = vadd.f32 %v4387_v6, %v15161_v16  ;;  %v4389_v28 = vpop.f32.mrb[69].mxu1  ;;  %v15164_v27 = vld [vmem:[#allocation27_spill] sm:$0xff]  ;;  %v5315_v39 = vrot.slane %v13345_v46, 1  ;;  %v6437_v54 = vrot.slane %v6334_v23, 3 }
 0x34e   : > { %7614 = vmatprep.mubr.msk.bf16.mxu1 %vm15142_vm0, %v6436_v13  ;;  %v4390_v38 = vpop.f32.mrb[70].mxu1  ;;  %vm15178_vm0 = vmmov %vm15167_vm7 }
 0x34f   : > { %v4895_v32 = vpop.permute.xlu1 %4894  ;;  %v13353_v17 = vadd.f32 %v4390_v38, %v15164_v27  ;;  %v4392_v5 = vpop.f32.mrb[71].mxu1  ;;  %v5316_v10 = vsel %vm15167_vm7, %v5311_v52, %v5315_v39  ;;  %v6443_v52 = vrot.slane %v13218_v48, 3  ;;  %vm15179_vm10 = vmmov %vm15178_vm0 }
 0x350   : > { %v5158_v7 = vsel %vm2343_vm11, %v5115_v53, %v4895_v32  ;;  %v5030_v35 = vpop.permute.xlu0 %5029  ;;  %vm15185_vm7 = vmmov %vm15168_vm1 }
 0x351   : > { %v5200_v13 = vsel %vm2386_vm3, %v5158_v7, %v5030_v35  ;;  %v5078_v35 = vrot.slane %v13376_v1, 2 }
 0x352   : > { %v5309_v6 = vrot.slane %v5200_v13, 1  ;;  %v15171_v13 = vld [vmem:[#allocation28_spill] sm:$0xff] }
 0x353   : > { %v13359_v16 = vpop.permute.xlu1 %5930 }
 0x354   : > { %v13365_v53 = vpop.permute.xlu0 %6034  ;;  %v5310_v32 = vsel %vm15165_vm8, %v5305_v30, %v5309_v6  ;;  %v4395_v28 = vpop.f32.mrb[72].mxu1  ;;  %v6251_v30 = vsel %vm15170_vm4, %v13136_v2, %v13237_v50  ;;  %v6444_v50 = vsel %vm3030_vm2, %v6439_v33, %v6443_v52  ;;  %v6253_v33 = vsel %vm15176_vm6, %v13201_v62, %v13303_v59  ;;  %v13423_v59 = vld [vmem:[#allocation2 + $0xb0] sm:$0xff]  ;;  %vm15182_vm8 = vmmov %vm15168_vm1 }
 0x355   : > { %6722 = vmatmul.mubr.bf16.gmra.mrb[176].mxu1 %v6434_v55  ;;  %5614 = vmatmul.mubr.bf16.gmra.mrb[192].mxu0 %v5310_v32  ;;  %v13372_v7 = vadd.f32 %v4395_v28, %v15169_v57  ;;  %v4397_v38 = vpop.f32.mrb[73].mxu1  ;;  %v6294_v23 = vsel %vm2343_vm11, %v6251_v30, %v13248_v11  ;;  %v13392_v28 = vsel %vm15173_vm15, %v5076_v40, %v5078_v35  ;;  %v15175_v40 = vld [vmem:[#allocation29_spill] sm:$0xff]  ;;  %vm15193_vm6 = vmmov %vm15170_vm4 }
 0x356   : > { %7615 = vmatprep.mubr.msk.bf16.mxu1 %vm15166_vm12, %v6440_v29  ;;  %7569 = vmatprep.mubr.msk.bf16.mxu0 %vm15168_vm1, %v5316_v10  ;;  %v4398_v27 = vpop.f32.mrb[74].mxu1  ;;  %v6438_v10 = vsel %vm3030_vm2, %v6433_v18, %v6437_v54  ;;  %v6336_v2 = vsel %vm2386_vm3, %v6294_v23, %v13260_v44  ;;  %v5319_v30 = vrot.slane %v13392_v28, 1  ;;  %v6447_v23 = vrot.slane %v13285_v22, 3  ;;  %vm15184_vm12 = vmmov %vm15173_vm15 }
 0x357   : > { %v13374_v9 = vpop.permute.xlu1 %6169  ;;  %v13384_v49 = vadd.f32 %v4398_v27, %v15171_v13  ;;  %v4400_v55 = vpop.f32.mrb[75].mxu1  ;;  %v6441_v18 = vrot.slane %v6336_v2, 3  ;;  %vm15187_vm1 = vmmov %vm15178_vm0 }
 0x358   : > { %v4793_v5 = vpop.permute.xlu0 %4792  ;;  %vm15189_vm15 = vmmov %vm15170_vm4 }
 0x359   : > { %v5117_v29 = vsel %vm15172_vm13, %v13262_v25, %v4793_v5  ;;  %v6442_v22 = vsel %vm3030_vm2, %v6437_v54, %v6441_v18  ;;  %vm15188_vm13 = vmmov %vm15178_vm0 }
 0x35b   : > { %v4897_v32 = vpop.permute.xlu1 %4896 }
 0x35c   : > { %v5160_v48 = vsel %vm2343_vm11, %v5117_v29, %v4897_v32  ;;  %v5032_v57 = vpop.permute.xlu0 %5031  ;;  %v4403_v38 = vpop.f32.mrb[76].mxu1  ;;  %v15177_v32 = vld [vmem:[#allocation34_spill] sm:$0xff] }
 0x35d   : > { %6730 = vmatmul.mubr.bf16.gmra.mrb[180].mxu1 %v6438_v10  ;;  %v5202_v11 = vsel %vm2386_vm3, %v5160_v48, %v5032_v57  ;;  %v13402_v5 = vadd.f32 %v4403_v38, %v15175_v40  ;;  %v4405_v44 = vpop.f32.mrb[77].mxu1  ;;  %v6296_v57 = vsel %vm2343_vm11, %v6253_v33, %v13309_v12  ;;  %v6448_v38 = vsel %vm3030_vm2, %v6443_v52, %v6447_v23  ;;  %v15183_v33 = vld [vmem:[#allocation9_spill] sm:$0xff] }
 0x35e   : > { %7616 = vmatprep.mubr.msk.bf16.mxu1 %vm15174_vm9, %v6444_v50  ;;  %v5313_v27 = vrot.slane %v5202_v11, 1  ;;  %v4406_v55 = vpop.f32.mrb[78].mxu1  ;;  %v5320_v50 = vsel %vm15179_vm10, %v5315_v39, %v5319_v30  ;;  %v5080_v11 = vrot.slane %v13423_v59, 2  ;;  %vm15191_vm9 = vmmov %vm15170_vm4 }
 0x35f   : > { %v13404_v13 = vpop.permute.xlu1 %5932  ;;  %v13413_v10 = vadd.f32 %v4406_v55, %v15177_v32  ;;  %v4408_v48 = vpop.f32.mrb[79].mxu1  ;;  %vm15195_vm10 = vmmov %vm15170_vm4 }
 0x360   : > { %v5314_v2 = vsel %vm15178_vm0, %v5309_v6, %v5313_v27  ;;  %v6338_v6 = vsel %vm2386_vm3, %v6296_v57, %v13324_v61  ;;  %v6255_v61 = vsel %vm15185_vm7, %v13262_v25, %v13359_v16  ;;  %vm15194_vm0 = vmmov %vm15184_vm12 }
 0x361   : > { %v13410_v29 = vpop.permute.xlu0 %6036  ;;  %5622 = vmatmul.mubr.bf16.gmra.mrb[196].mxu0 %v5314_v2  ;;  %v6445_v40 = vrot.slane %v6338_v6, 3  ;;  %v13436_v2 = vsel %vm15184_vm12, %v5078_v35, %v5080_v11  ;;  %v15186_v6 = vld [vmem:[#allocation12_spill] sm:$0xff]  ;;  %v6298_v16 = vsel %vm2343_vm11, %v6255_v61, %v13365_v53  ;;  %vm15203_vm12 = vmmov %vm15170_vm4 }
 0x362   : > { %7570 = vmatprep.mubr.msk.bf16.mxu0 %vm15180_vm5, %v5320_v50  ;;  %v6451_v50 = vrot.slane %v13345_v46, 3  ;;  %v5323_v25 = vrot.slane %v13436_v2, 1  ;;  %vm15196_vm5 = vmmov %vm15170_vm4 }
 0x363   : > { %v13420_v62 = vpop.permute.xlu1 %6171  ;;  %vm15205_vm7 = vmmov %vm15170_vm4 }
 0x364   : > { %v4411_v12 = vpop.f32.mrb[80].mxu1  ;;  %v5324_v53 = vsel %vm15188_vm13, %v5319_v30, %v5323_v25  ;;  %v6455_v30 = vrot.slane %v13392_v28, 3  ;;  %vm15207_vm13 = vmmov %vm15170_vm4 }
 0x365   : > { %6738 = vmatmul.mubr.bf16.gmra.mrb[184].mxu1 %v6442_v22  ;;  %v4795_v39 = vpop.permute.xlu0 %4794  ;;  %v13433_v54 = vadd.f32 %v4411_v12, %v15183_v33  ;;  %v4413_v32 = vpop.f32.mrb[81].mxu1 }
 0x366   : > { %7617 = vmatprep.mubr.msk.bf16.mxu1 %vm15181_vm14, %v6448_v38  ;;  %v5119_v44 = vsel %vm15182_vm8, %v13327_v43, %v4795_v39  ;;  %v4414_v48 = vpop.f32.mrb[82].mxu1  ;;  %v3431_v22 = vpop.f32.mrb[132].mxu0  ;;  %v6446_v32 = vsel %vm3030_vm2, %v6441_v18, %v6445_v40  ;;  %vm15199_vm14 = vmmov %vm15187_vm1 }
 0x367   : > { %v4899_v55 = vpop.permute.xlu1 %4898  ;;  %v13444_v38 = vadd.f32 %v4414_v48, %v15186_v6  ;;  %v13450_v35 = vadd.f32 %v3431_v22, %v13172_v8  ;;  %v3433_v12 = vpop.f32.mrb[133].mxu0  ;;  %vm15200_vm8 = vmmov %vm15187_vm1 }
 0x368   : > { %v5162_v52 = vsel %vm2343_vm11, %v5119_v44, %v4899_v55  ;;  %v4416_v33 = vpop.f32.mrb[83].mxu1  ;;  %v3434_v44 = vpop.f32.mrb[134].mxu0 }
 0x369   : > { %v5034_v57 = vpop.permute.xlu0 %5033  ;;  %v13460_v48 = vadd.f32 %v3434_v44, %v13181_v60  ;;  %v3436_v8 = vpop.f32.mrb[135].mxu0  ;;  %v13470_v33 = vld [vmem:[#allocation2 + $0xb8] sm:$0xff] }
 0x36a   : > { %v13447_v39 = vsel %vm2386_vm3, %v5162_v52, %v5034_v57  ;;  %v6340_v52 = vsel %vm2386_vm3, %v6298_v16, %v13374_v9  ;;  %v6452_v57 = vsel %vm3030_vm2, %v6447_v23, %v6451_v50  ;;  %v15190_v9 = vld [vmem:[#allocation16_spill] sm:$0xff]  ;;  %v13473_v23 = vrot.slane %v13470_v33, 2 }
 0x36b   : > { %v5317_v46 = vrot.slane %v13447_v39, 1  ;;  %v5935_v55 = vpop.permute.xlu1 %5934  ;;  %v6449_v18 = vrot.slane %v6340_v52, 3 }
 0x36c   : > { %v4419_v61 = vpop.f32.mrb[84].mxu1 }
 0x36d   : > { %6746 = vmatmul.mubr.bf16.gmra.mrb[188].mxu1 %v6446_v32  ;;  %v6039_v22 = vpop.permute.xlu0 %6038  ;;  %v5318_v6 = vsel %vm15187_vm1, %v5313_v27, %v5317_v46  ;;  %v13468_v39 = vadd.f32 %v4419_v61, %v15190_v9  ;;  %v4421_v12 = vpop.f32.mrb[85].mxu1  ;;  %v6257_v27 = vsel %vm15191_vm9, %v13327_v43, %v13404_v13  ;;  %v15192_v32 = vld [vmem:[#allocation18_spill] sm:$0xff]  ;;  %v6450_v61 = vsel %vm3030_vm2, %v6445_v40, %v6449_v18  ;;  %vm15206_vm1 = vmmov %vm15194_vm0 }
 0x36e   : > { %7618 = vmatprep.mubr.msk.bf16.mxu1 %vm15170_vm4, %v6452_v57  ;;  %5630 = vmatmul.mubr.bf16.gmra.mrb[200].mxu0 %v5318_v6  ;;  %v4422_v16 = vpop.f32.mrb[86].mxu1  ;;  %v6300_v57 = vsel %vm2343_vm11, %v6257_v27, %v13410_v29  ;;  %v13489_v43 = vsel %vm15194_vm0, %v5080_v11, %v13473_v23  ;;  %v6456_v9 = vsel %vm3030_vm2, %v6451_v50, %v6455_v30  ;;  %vm15212_vm9 = vmmov %vm15170_vm4 }
 0x36f   : > { %7571 = vmatprep.mubr.msk.bf16.mxu0 %vm15189_vm15, %v5324_v53  ;;  %v6174_v60 = vpop.permute.xlu1 %6173  ;;  %v13480_v52 = vadd.f32 %v4422_v16, %v15192_v32  ;;  %v4424_v8 = vpop.f32.mrb[87].mxu1  ;;  %v6342_v28 = vsel %vm2386_vm3, %v6300_v57, %v13420_v62  ;;  %v14196_v11 = vrot.slane %v13489_v43, 1  ;;  %v6259_v57 = vsel %vm15196_vm5, %v13376_v1, %v5935_v55  ;;  %v15201_v55 = vld [vmem:[#allocation35_spill] sm:$0xff]  ;;  %vm15211_vm15 = vmmov %vm15200_vm8 }
 0x370   : > { %vm15218_vm5 = vmmov %vm15170_vm4 }
 0x371   : > { %v4797_v44 = vpop.permute.xlu0 %4796 }
 0x372   : > { %v5121_v6 = vsel %vm15193_vm6, %v13376_v1, %v4797_v44  ;;  %v3439_v29 = vpop.f32.mrb[136].mxu0  ;;  %v6453_v44 = vrot.slane %v6342_v28, 3  ;;  %v5328_v1 = vsel %vm15200_vm8, %v5323_v25, %v14196_v11  ;;  %v15210_v11 = vld [vmem:[#allocation19_spill] sm:$0xff]  ;;  %vm15213_vm6 = vmmov %vm15194_vm0 }
 0x373   : > { %v4901_v53 = vpop.permute.xlu1 %4900  ;;  %v13498_v40 = vadd.f32 %v3439_v29, %v13211_v19  ;;  %v3441_v16 = vpop.f32.mrb[137].mxu0  ;;  %v6459_v19 = vrot.slane %v13436_v2, 3  ;;  %vm15215_vm0 = vmmov %vm15200_vm8 }
 0x374   : > { %v5164_v13 = vsel %vm2343_vm11, %v5121_v6, %v4901_v53  ;;  %v3442_v62 = vpop.f32.mrb[138].mxu0  ;;  %v4427_v8 = vpop.f32.mrb[88].mxu1  ;;  %v15197_v53 = vld [vmem:[#allocation17_spill] sm:$0xff]  ;;  %v6454_v2 = vsel %vm3030_vm2, %v6449_v18, %v6453_v44  ;;  %vm15222_vm8 = vmmov %vm15206_vm1 }
 0x375   : > { %6754 = vmatmul.mubr.bf16.gmra.mrb[192].mxu1 %v6450_v61  ;;  %v5036_v12 = vpop.permute.xlu0 %5035  ;;  %v13504_v50 = vadd.f32 %v3442_v62, %v13224_v21  ;;  %v3444_v6 = vpop.f32.mrb[139].mxu0  ;;  %v13507_v61 = vadd.f32 %v4427_v8, %v15197_v53  ;;  %v6302_v21 = vsel %vm2343_vm11, %v6259_v57, %v6039_v22  ;;  %v15204_v62 = vld [vmem:[#allocation26_spill] sm:$0xff]  ;;  %v6460_v53 = vsel %vm3030_vm2, %v6455_v30, %v6459_v19 }
 0x376   : > { %7619 = vmatprep.mubr.msk.bf16.mxu1 %vm15195_vm10, %v6456_v9  ;;  %v5206_v27 = vsel %vm2386_vm3, %v5164_v13, %v5036_v12  ;;  %v4429_v12 = vpop.f32.mrb[89].mxu1  ;;  %v14195_v8 = vrot.slane %v15204_v62, 2  ;;  %vm15216_vm10 = vmmov %vm15170_vm4 }
 0x377   : > { %v5321_v32 = vrot.slane %v5206_v27, 1  ;;  %15198 = vst [vmem:[#allocation14_spill] sm:$0xff] %v13507_v61  ;;  %v5937_v13 = vpop.permute.xlu1 %5936  ;;  %v4430_v29 = vpop.f32.mrb[90].mxu1 }
 0x378   : > { %v13516_v27 = vadd.f32 %v4430_v29, %v15201_v55  ;;  %v4432_v16 = vpop.f32.mrb[91].mxu1  ;;  %v13528_v57 = vsel %vm15206_vm1, %v13473_v23, %v14195_v8  ;;  %v6261_v18 = vsel %vm15170_vm4, %v13423_v59, %v5937_v13  ;;  %vm15227_vm1 = vmmov %vm15170_vm4 }
 0x379   : > { %v6041_v9 = vpop.permute.xlu0 %6040  ;;  %v5322_v28 = vsel %vm15199_vm14, %v5317_v46, %v5321_v32  ;;  %v6344_v46 = vsel %vm2386_vm3, %v6302_v21, %v6174_v60  ;;  %v6463_v21 = vrot.slane %v13489_v43, 3  ;;  %vm15220_vm14 = vmmov %vm15170_vm4 }
 0x37a   : > { %5638 = vmatmul.mubr.bf16.gmra.mrb[204].mxu0 %v5322_v28  ;;  %15202 = vst [vmem:[#allocation7_spill] sm:$0xff] %v13516_v27  ;;  %v6457_v25 = vrot.slane %v6344_v46, 3  ;;  %v15208_v28 = vld [vmem:[#allocation4_spill] sm:$0xff]  ;;  %v7993_v46 = vld [vmem:[#allocation2 + $0xc0] sm:$0xff] }
 0x37b   : > { %7572 = vmatprep.mubr.msk.bf16.mxu0 %vm15203_vm12, %v5328_v1  ;;  %v6176_v6 = vpop.permute.xlu1 %6175  ;;  %vm15224_vm12 = vmmov %vm15170_vm4 }
 0x37c   : > { %v4435_v22 = vpop.f32.mrb[92].mxu1  ;;  %vm15228_vm4 = vmmov %vm15215_vm0 }
 0x37d   : > { %6762 = vmatmul.mubr.bf16.gmra.mrb[196].mxu1 %v6454_v2  ;;  %v4799_v12 = vpop.permute.xlu0 %4798  ;;  %v13535_v29 = vadd.f32 %v4435_v22, %v15208_v28  ;;  %v4437_v1 = vpop.f32.mrb[93].mxu1  ;;  %v6458_v28 = vsel %vm3030_vm2, %v6453_v44, %v6457_v25  ;;  %v15214_v44 = vrot.slane %v13489_v43, 1 }
 0x37e   : > { %7620 = vmatprep.mubr.msk.bf16.mxu1 %vm15205_vm7, %v6460_v53  ;;  %v5123_v60 = vsel %vm15207_vm13, %v13423_v59, %v4799_v12  ;;  %v4438_v2 = vpop.f32.mrb[94].mxu1  ;;  %v6222_v53 = vrot.slane %v7993_v46, 2  ;;  %v5331_v59 = vrot.slane %v13528_v57, 1  ;;  %v6304_v12 = vsel %vm2343_vm11, %v6261_v18, %v6041_v9  ;;  %vm15226_vm7 = vmmov %vm15215_vm0 }
 0x37f   : > { %15209 = vst [vmem:[#allocation20_spill] sm:$0xff] %v13535_v29  ;;  %v4903_v30 = vpop.permute.xlu1 %4902  ;;  %v13541_v13 = vadd.f32 %v4438_v2, %v15210_v11  ;;  %v4440_v27 = vpop.f32.mrb[95].mxu1  ;;  %v6346_v1 = vsel %vm2386_vm3, %v6304_v12, %v6176_v6  ;;  %vm15229_vm13 = vmmov %vm15227_vm1 }
 0x380   : > { %v5166_v55 = vsel %vm2343_vm11, %v5123_v60, %v4903_v30  ;;  %v6464_v30 = vsel %vm3030_vm2, %v6459_v19, %v6463_v21  ;;  %v6223_v11 = vsel %vm15213_vm6, %v13473_v23, %v6222_v53  ;;  %v6461_v6 = vrot.slane %v6346_v1, 3  ;;  %vm15232_vm6 = vmmov %vm15227_vm1 }
 0x381   : > { %v5038_v16 = vpop.permute.xlu0 %5037  ;;  %v6467_v12 = vrot.slane %v6223_v11, 3 }
 0x382   : > { %v5208_v8 = vsel %vm2386_vm3, %v5166_v55, %v5038_v16 }
 0x383   : > { %v5325_v22 = vrot.slane %v5208_v8, 1  ;;  %v5939_v60 = vpop.permute.xlu1 %5938  ;;  %v5511_v61 = vpop.f32.mrb[140].mxu0  ;;  %v5332_v8 = vsel %vm15215_vm0, %v15214_v44, %v5331_v59  ;;  %v15221_v44 = vld [vmem:[#allocation11_spill] sm:$0xff]  ;;  %v6468_v11 = vsel %vm3030_vm2, %v6463_v21, %v6467_v12 }
 0x384   : > { %v13553_v9 = vadd.f32 %v5511_v61, %v13258_v42  ;;  %v5513_v27 = vpop.f32.mrb[141].mxu0  ;;  %v4443_v57 = vpop.f32.mrb[96].mxu1  ;;  %v6263_v16 = vsel %vm15218_vm5, %v13470_v33, %v5939_v60  ;;  %v15219_v42 = vld [vmem:[#allocation25_spill] sm:$0xff] }
 0x385   : > { %6770 = vmatmul.mubr.bf16.gmra.mrb[200].mxu1 %v6458_v28  ;;  %v6043_v29 = vpop.permute.xlu0 %6042  ;;  %v5326_v55 = vsel %vm15211_vm15, %v5321_v32, %v5325_v22  ;;  %v5514_v19 = vpop.f32.mrb[142].mxu0  ;;  %v15217_v32 = vld [vmem:[#allocation23_spill] sm:$0xff]  ;;  %v13566_v61 = vadd.f32 %v4443_v57, %v15219_v42  ;;  %v15223_v42 = vrot.slane %v15204_v62, 2  ;;  %vm15230_vm15 = vmmov %vm15227_vm1 }
 0x386   : > { %7621 = vmatprep.mubr.msk.bf16.mxu1 %vm15212_vm9, %v6464_v30  ;;  %5646 = vmatmul.mubr.bf16.gmra.mrb[208].mxu0 %v5326_v55  ;;  %v6224_v18 = vrot.slane %v15217_v32, 2  ;;  %v13563_v23 = vadd.f32 %v5514_v19, %v13270_v26  ;;  %v5516_v2 = vpop.f32.mrb[143].mxu0  ;;  %v4445_v1 = vpop.f32.mrb[97].mxu1  ;;  %v6306_v27 = vsel %vm2343_vm11, %v6263_v16, %v6043_v29  ;;  %v6462_v26 = vsel %vm3030_vm2, %v6457_v25, %v6461_v6  ;;  %vm15231_vm9 = vmmov %vm15227_vm1 }
 0x387   : > { %7573 = vmatprep.mubr.msk.bf16.mxu0 %vm15216_vm10, %v5332_v8  ;;  %v6178_v43 = vpop.permute.xlu1 %6177  ;;  %v4446_v55 = vpop.f32.mrb[98].mxu1  ;;  %vm15233_vm10 = vmmov %vm15227_vm1 }
 0x388   : > { %v13572_v8 = vadd.f32 %v4446_v55, %v15221_v44  ;;  %v4448_v60 = vpop.f32.mrb[99].mxu1  ;;  %v6225_v19 = vsel %vm15222_vm8, %v6222_v53, %v6224_v18  ;;  %v6348_v57 = vsel %vm2386_vm3, %v6306_v27, %v6178_v43  ;;  %v15225_v55 = vld [vmem:[#allocation15_spill] sm:$0xff] }
 0x389   : > { %v4801_v28 = vpop.permute.xlu0 %4800  ;;  %v6465_v25 = vrot.slane %v6348_v57, 3 }
 0x38a   : > { %v5125_v30 = vsel %vm15220_vm14, %v13470_v33, %v4801_v28  ;;  %v5335_v33 = vrot.slane %v15223_v42, 1  ;;  %v6471_v28 = vrot.slane %v6225_v19, 3  ;;  %vm7237_vm14 = vcmask 1043456  }
 0x38b   : > { %v4905_v32 = vpop.permute.xlu1 %4904  ;;  %v6466_v42 = vsel %vm3030_vm2, %v6461_v6, %v6465_v25 }
 0x38c   : > { %v5168_v2 = vsel %vm2343_vm11, %v5125_v30, %v4905_v32  ;;  %v4451_v53 = vpop.f32.mrb[100].mxu1  ;;  %v5336_v21 = vsel %vm15226_vm7, %v5331_v59, %v5335_v33  ;;  %v6472_v57 = vsel %vm3030_vm2, %v6467_v12, %v6471_v28 }
 0x38d   : > { %6778 = vmatmul.mubr.bf16.gmra.mrb[204].mxu1 %v6462_v26  ;;  %v5040_v29 = vpop.permute.xlu0 %5039  ;;  %v13584_v43 = vadd.f32 %v4451_v53, %v15225_v55  ;;  %v4453_v44 = vpop.f32.mrb[101].mxu1 }
 0x38e   : > { %7622 = vmatprep.mubr.msk.bf16.mxu1 %vm15224_vm12, %v6468_v11  ;;  %v5210_v16 = vsel %vm2386_vm3, %v5168_v2, %v5040_v29  ;;  %v4454_v30 = vpop.f32.mrb[102].mxu1  ;;  %v4590_v11 = vld [vmem:[#allocation2 + $0xc0] sm:$0x1] }
 0x38f   : > { %v5329_v1 = vrot.slane %v5210_v16, 1  ;;  %v5941_v27 = vpop.permute.xlu1 %5940  ;;  %v13590_v32 = vadd.f32 %v4454_v30, %v12998_v34  ;;  %v4456_v19 = vpop.f32.mrb[103].mxu1 }
 0x390   : > { %v6265_v62 = vsel %vm15227_vm1, %v7993_v46, %v5941_v27 }
 0x391   : > { %v6045_v60 = vpop.permute.xlu0 %6044  ;;  %v5330_v26 = vsel %vm15228_vm4, %v5325_v22, %v5329_v1  ;;  %v6475_v22 = vrot.slane %v6224_v18, 3 }
 0x392   : > { %5654 = vmatmul.mubr.bf16.gmra.mrb[212].mxu0 %v5330_v26  ;;  %v6308_v59 = vsel %vm2343_vm11, %v6265_v62, %v6045_v60  ;;  %v5730_v26 = vld [vmem:[#allocation2 + $0xc8] sm:$0x7] }
 0x393   : > { %7574 = vmatprep.mubr.msk.bf16.mxu0 %vm15229_vm13, %v5336_v21  ;;  %v6180_v33 = vpop.permute.xlu1 %6179  ;;  %v6476_v18 = vsel %vm3030_vm2, %v6471_v28, %v6475_v22 }
 0x394   : > { %v6350_v46 = vsel %vm2386_vm3, %v6308_v59, %v6180_v33  ;;  %v4459_v16 = vpop.f32.mrb[104].mxu1 }
 0x395   : > { %6786 = vmatmul.mubr.bf16.gmra.mrb[208].mxu1 %v6466_v42  ;;  %v4803_v2 = vpop.permute.xlu0 %4802  ;;  %v6469_v29 = vrot.slane %v6350_v46, 3  ;;  %v13600_v12 = vadd.f32 %v4459_v16, %v13040_v47  ;;  %v4461_v53 = vpop.f32.mrb[105].mxu1 }
 0x396   : > { %7623 = vmatprep.mubr.msk.bf16.mxu1 %vm15230_vm15, %v6472_v57  ;;  %v5128_v34 = vsel %vm15231_vm9, %v4590_v11, %v4803_v2  ;;  %v5519_v44 = vpop.f32.mrb[144].mxu0  ;;  %v4462_v60 = vpop.f32.mrb[106].mxu1 }
 0x397   : > { %v4907_v6 = vpop.permute.xlu1 %4906  ;;  %v13605_v62 = vadd.f32 %v5519_v44, %v13301_v31  ;;  %v5521_v30 = vpop.f32.mrb[145].mxu0  ;;  %v13609_v47 = vadd.f32 %v4462_v60, %v13059_v4  ;;  %v6470_v42 = vsel %vm3030_vm2, %v6465_v25, %v6469_v29 }
 0x398   : > { %v5170_v55 = vsel %vm2343_vm11, %v5128_v34, %v4907_v6  ;;  %v4464_v57 = vpop.f32.mrb[107].mxu1  ;;  %v5522_v11 = vpop.f32.mrb[146].mxu0 }
 0x399   : > { %v5042_v27 = vpop.permute.xlu0 %5041  ;;  %v13613_v59 = vadd.f32 %v5522_v11, %v13312_v37  ;;  %v5524_v33 = vpop.f32.mrb[147].mxu0 }
 0x39a   : > { %v5212_v21 = vsel %vm2386_vm3, %v5170_v55, %v5042_v27 }
 0x39b   : > { %v5333_v19 = vrot.slane %v5212_v21, 1  ;;  %v5943_v46 = vpop.permute.xlu1 %5942 }
 0x39c   : > { %v6268_v31 = vsel %vm15232_vm6, %v5730_v26, %v5943_v46  ;;  %v4467_v4 = vpop.f32.mrb[108].mxu1 }
 0x39d   : > { %6794 = vmatmul.mubr.bf16.gmra.mrb[212].mxu1 %v6470_v42  ;;  %v6047_v2 = vpop.permute.xlu0 %6046  ;;  %v5334_v34 = vsel %vm15215_vm0, %v5329_v1, %v5333_v19  ;;  %v13620_v22 = vadd.f32 %v4467_v4, %v13097_v36  ;;  %v4469_v37 = vpop.f32.mrb[109].mxu1 }
 0x39e   : > { %7624 = vmatprep.mubr.msk.bf16.mxu1 %vm15233_vm10, %v6476_v18  ;;  %5662 = vmatmul.mubr.bf16.gmra.mrb[216].mxu0 %v5334_v34  ;;  %v6310_v28 = vsel %vm2343_vm11, %v6268_v31, %v6047_v2  ;;  %v4470_v6 = vpop.f32.mrb[110].mxu1 }
 0x39f   : > { %v6182_v25 = vpop.permute.xlu1 %6181  ;;  %v13624_v55 = vadd.f32 %v4470_v6, %v13108_v20  ;;  %v4472_v27 = vpop.f32.mrb[111].mxu1 }
 0x3a0   : > { %v6352_v16 = vsel %vm2386_vm3, %v6310_v28, %v6182_v25  ;;  %vm15237_vm3 = vmmov %vm15222_vm8 }
 0x3a1   : > { %v6473_v53 = vrot.slane %v6352_v16, 3  ;;  %vm15238_vm5 = vmmov %vm15237_vm3 }
 0x3a2   : > { %v5527_v44 = vpop.f32.mrb[148].mxu0  ;;  %vm15239_vm8 = vmmov %vm15237_vm3 }
 0x3a3   : > { %v6474_v1 = vsel %vm3030_vm2, %v6469_v29, %v6473_v53  ;;  %v13628_v21 = vadd.f32 %v5527_v44, %v13340_v45  ;;  %v5529_v60 = vpop.f32.mrb[149].mxu0  ;;  %vm7292_vm2 = vcmask 519168   ;;  %vm15240_vm12 = vmmov %vm15237_vm3 }
 0x3a4   : > { %v5530_v36 = vpop.f32.mrb[150].mxu0  ;;  %v4475_v30 = vpop.f32.mrb[112].mxu1  ;;  %vm15241_vm7 = vmmov %vm15237_vm3 }
 0x3a5   : > { %6802 = vmatmul.mubr.bf16.gmra.mrb[216].mxu1 %v6474_v1  ;;  %v13631_v26 = vadd.f32 %v5530_v36, %v13353_v17  ;;  %v13634_v18 = vadd.f32 %v4475_v30, %v13144_v14  ;;  %v5532_v19 = vpop.f32.mrb[151].mxu0  ;;  %v4477_v20 = vpop.f32.mrb[113].mxu1  ;;  %vm15242_vm1 = vmmov %vm15237_vm3 }
 0x3a6   : > { %v4478_v57 = vpop.f32.mrb[114].mxu1  ;;  %vm15243_vm4 = vmmov %vm15242_vm1 }
 0x3a7   : > { %v13637_v11 = vadd.f32 %v4478_v57, %v13164_v24  ;;  %v4480_v29 = vpop.f32.mrb[115].mxu1  ;;  %vm15244_vm13 = vmmov %vm15242_vm1 }
 0x3ad   : > { %v4483_v42 = vpop.f32.mrb[116].mxu1 }
 0x3ae   : > { %v13640_v45 = vadd.f32 %v4483_v42, %v13188_v41  ;;  %v4485_v33 = vpop.f32.mrb[117].mxu1 }
 0x3af   : > { %v5535_v46 = vpop.f32.mrb[152].mxu0  ;;  %v4486_v31 = vpop.f32.mrb[118].mxu1 }
 0x3b0   : > { %v13643_v17 = vadd.f32 %v5535_v46, %v13372_v7  ;;  %v13646_v14 = vadd.f32 %v4486_v31, %v13207_v56  ;;  %v5537_v2 = vpop.f32.mrb[153].mxu0  ;;  %v4488_v34 = vpop.f32.mrb[119].mxu1 }
 0x3b1   : > { %v5538_v4 = vpop.f32.mrb[154].mxu0 }
 0x3b2   : > { %v13649_v24 = vadd.f32 %v5538_v4, %v13384_v49  ;;  %v5540_v28 = vpop.f32.mrb[155].mxu0 }
 0x3b6   : > { %v4491_v25 = vpop.f32.mrb[120].mxu1 }
 0x3b7   : > { %v13652_v41 = vadd.f32 %v4491_v25, %v13231_v58  ;;  %v4493_v37 = vpop.f32.mrb[121].mxu1 }
 0x3b8   : > { %v4494_v16 = vpop.f32.mrb[122].mxu1 }
 0x3b9   : > { %v13655_v6 = vadd.f32 %v4494_v16, %v13245_v15  ;;  %v4496_v7 = vpop.f32.mrb[123].mxu1 }
 0x3bc   : > { %v5543_v53 = vpop.f32.mrb[156].mxu0 }
 0x3bd   : > { %v13658_v56 = vadd.f32 %v5543_v53, %v13402_v5  ;;  %v5545_v27 = vpop.f32.mrb[157].mxu0 }
 0x3be   : > { %v5546_v1 = vpop.f32.mrb[158].mxu0  ;;  %v4499_v44 = vpop.f32.mrb[124].mxu1 }
 0x3bf   : > { %v13661_v49 = vadd.f32 %v5546_v1, %v13413_v10  ;;  %v13664_v60 = vadd.f32 %v4499_v44, %v13273_v0  ;;  %v5548_v58 = vpop.f32.mrb[159].mxu0  ;;  %v4501_v36 = vpop.f32.mrb[125].mxu1 }
 0x3c0   : > { %v4502_v30 = vpop.f32.mrb[126].mxu1 }
 0x3c1   : > { %v13667_v15 = vadd.f32 %v4502_v30, %v13292_v63  ;;  %v4504_v19 = vpop.f32.mrb[127].mxu1 }
 0x3c7   : > { %v4507_v20 = vpop.f32.mrb[128].mxu1 }
 0x3c8   : > { %v13670_v5 = vadd.f32 %v4507_v20, %v13316_v51  ;;  %v4509_v57 = vpop.f32.mrb[129].mxu1 }
 0x3c9   : > { %v5551_v29 = vpop.f32.mrb[160].mxu0  ;;  %v4510_v42 = vpop.f32.mrb[130].mxu1  ;;  %v15234_v57 = vld [vmem:[#allocation14_spill] sm:$0xff] }
 0x3ca   : > { %v13673_v10 = vadd.f32 %v5551_v29, %v13433_v54  ;;  %v13676_v0 = vadd.f32 %v4510_v42, %v13333_v3  ;;  %v5553_v33 = vpop.f32.mrb[161].mxu0  ;;  %v4512_v46 = vpop.f32.mrb[131].mxu1 }
 0x3cb   : > { %v5554_v31 = vpop.f32.mrb[162].mxu0  ;;  %v13713_v46 = vld [vmem:[%s14027_s7] ss:$0 sm:$0xff] }
 0x3cc   : > { %v13679_v63 = vadd.f32 %v5554_v31, %v13444_v38  ;;  %v5556_v2 = vpop.f32.mrb[163].mxu0 }
 0x3d0   : > { %v4515_v34 = vpop.f32.mrb[132].mxu1 }
 0x3d1   : > { %v13682_v51 = vadd.f32 %v4515_v34, %v13450_v35  ;;  %v4517_v4 = vpop.f32.mrb[133].mxu1  ;;  %v15235_v34 = vld [vmem:[#allocation7_spill] sm:$0xff] }
 0x3d2   : > { %v4518_v28 = vpop.f32.mrb[134].mxu1 }
 0x3d3   : > { %v13685_v25 = vadd.f32 %v4518_v28, %v13460_v48  ;;  %v4520_v54 = vpop.f32.mrb[135].mxu1 }
 0x3d4   : > { %v13722_v54 = vld [vmem:[%s14028_s8] ss:$0 sm:$0xff] }
 0x3d5   : > { %v5559_v37 = vpop.f32.mrb[164].mxu0 }
 0x3d6   : > { %v13688_v3 = vadd.f32 %v5559_v37, %v13468_v39  ;;  %v5561_v16 = vpop.f32.mrb[165].mxu0  ;;  %v13702_v39 = vld [vmem:[%s14026_s6] ss:$0 sm:$0xff] }
 0x3d7   : > { %v5562_v7 = vpop.f32.mrb[166].mxu0 }
 0x3d8   : > { %v4523_v53 = vpop.f32.mrb[136].mxu1  ;;  %v13691_v38 = vadd.f32 %v5562_v7, %v13480_v52  ;;  %v5564_v35 = vpop.f32.mrb[167].mxu0 }
 0x3d9   : > { %v13694_v27 = vadd.f32 %v4523_v53, %v13498_v40  ;;  %v4525_v1 = vpop.f32.mrb[137].mxu1 }
 0x3da   : > { %v4526_v44 = vpop.f32.mrb[138].mxu1 }
 0x3db   : > { %v13697_v48 = vadd.f32 %v4526_v44, %v13504_v50  ;;  %v4528_v58 = vpop.f32.mrb[139].mxu1 }
 0x3e0   : > { %v6651_v36 = vpop.f32.mrb[140].mxu1 }
 0x3e1   : > { %v6810_v30 = vadd.f32 %v6651_v36, %v13553_v9  ;;  %v6653_v52 = vpop.f32.mrb[141].mxu1 }
 0x3e2   : > { %v5567_v19 = vpop.f32.mrb[168].mxu0  ;;  %v6654_v20 = vpop.f32.mrb[142].mxu1 }
 0x3e3   : > { %v6857_v40 = vadd.f32 %v13702_v39, %v6810_v30  ;;  %v13707_v29 = vadd.f32 %v5567_v19, %v15234_v57  ;;  %v5569_v42 = vpop.f32.mrb[169].mxu0  ;;  %v6811_v50 = vadd.f32 %v6654_v20, %v13563_v23  ;;  %v6656_v33 = vpop.f32.mrb[143].mxu1 }
 0x3e4   : > { %v5570_v31 = vpop.f32.mrb[170].mxu0  ;;  %v15236_v42 = vld [vmem:[#allocation20_spill] sm:$0xff] }
 0x3e5   : > { %v6897_v2 = vmax.f32 %v6857_v40, 0.0  ;;  %v6858_v9 = vadd.f32 %v13702_v39, %v6811_v50  ;;  %v13717_v4 = vadd.f32 %v5570_v31, %v15235_v34  ;;  %v5572_v28 = vpop.f32.mrb[171].mxu0 }
 0x3e7   : > { %v6944_v23 = vmul.f32 %v13713_v46, %v6897_v2  ;;  %v6898_v37 = vmax.f32 %v6858_v9, 0.0 }
 0x3e8   : > { %v6659_v16 = vpop.f32.mrb[144].mxu1 }
 0x3e9   : > { %v6991_v7 = vadd.f32 %v13722_v54, %v6944_v23  ;;  %v6945_v53 = vmul.f32 %v13713_v46, %v6898_v37  ;;  %v6812_v35 = vadd.f32 %v6659_v16, %v13605_v62  ;;  %v6661_v1 = vpop.f32.mrb[145].mxu1 }
 0x3ea   : > { %v6662_v44 = vpop.f32.mrb[146].mxu1 }
 0x3eb   : > { %7031 = vst.msk [vmem:[#allocation3] sm:$0xff] %vm2343_vm11, %v6991_v7  ;;  %v6992_v58 = vadd.f32 %v13722_v54, %v6945_v53  ;;  %v6859_v36 = vadd.f32 %v13702_v39, %v6812_v35  ;;  %v6813_v30 = vadd.f32 %v6662_v44, %v13613_v59  ;;  %v6664_v52 = vpop.f32.mrb[147].mxu1 }
 0x3ed   : > { %7032 = vst.msk [vmem:[#allocation3 + $0x8] sm:$0xff] %vm2343_vm11, %v6992_v58  ;;  %v6899_v19 = vmax.f32 %v6859_v36, 0.0  ;;  %v6860_v20 = vadd.f32 %v13702_v39, %v6813_v30  ;;  %v5575_v40 = vpop.f32.mrb[172].mxu0 }
 0x3ee   : > { %v13736_v50 = vadd.f32 %v5575_v40, %v15236_v42  ;;  %v5577_v33 = vpop.f32.mrb[173].mxu0 }
 0x3ef   : > { %v6946_v57 = vmul.f32 %v13713_v46, %v6899_v19  ;;  %v6900_v62 = vmax.f32 %v6860_v20, 0.0  ;;  %v5578_v31 = vpop.f32.mrb[174].mxu0 }
 0x3f0   : > { %v6667_v2 = vpop.f32.mrb[148].mxu1  ;;  %v13741_v34 = vadd.f32 %v5578_v31, %v13541_v13  ;;  %v5580_v28 = vpop.f32.mrb[175].mxu0 }
 0x3f1   : > { %v6993_v9 = vadd.f32 %v13722_v54, %v6946_v57  ;;  %v6947_v59 = vmul.f32 %v13713_v46, %v6900_v62  ;;  %v6814_v23 = vadd.f32 %v6667_v2, %v13628_v21  ;;  %v6669_v37 = vpop.f32.mrb[149].mxu1 }
 0x3f2   : > { %v6670_v16 = vpop.f32.mrb[150].mxu1 }
 0x3f3   : > { %7033 = vst.msk [vmem:[#allocation3 + $0x10] sm:$0xff] %vm2343_vm11, %v6993_v9  ;;  %v6994_v7 = vadd.f32 %v13722_v54, %v6947_v59  ;;  %v6861_v53 = vadd.f32 %v13702_v39, %v6814_v23  ;;  %v6815_v35 = vadd.f32 %v6670_v16, %v13631_v26  ;;  %v6672_v1 = vpop.f32.mrb[151].mxu1 }
 0x3f5   : > { %7034 = vst.msk [vmem:[#allocation3 + $0x18] sm:$0xff] %vm2343_vm11, %v6994_v7  ;;  %v6901_v44 = vmax.f32 %v6861_v53, 0.0  ;;  %v6862_v13 = vadd.f32 %v13702_v39, %v6815_v35 }
 0x3f7   : > { %v6948_v58 = vmul.f32 %v13713_v46, %v6901_v44  ;;  %v6902_v36 = vmax.f32 %v6862_v13, 0.0 }
 0x3f8   : > { %v6675_v21 = vpop.f32.mrb[152].mxu1  ;;  %v5583_v40 = vpop.f32.mrb[176].mxu0 }
 0x3f9   : > { %v6995_v30 = vadd.f32 %v13722_v54, %v6948_v58  ;;  %v6949_v52 = vmul.f32 %v13713_v46, %v6902_v36  ;;  %v6816_v19 = vadd.f32 %v6675_v21, %v13643_v17  ;;  %v6677_v20 = vpop.f32.mrb[153].mxu1  ;;  %v13758_v42 = vadd.f32 %v5583_v40, %v13566_v61  ;;  %v5585_v33 = vpop.f32.mrb[177].mxu0  ;;  %v7111_v40 = vld [vmem:[#allocation3 + $0x1] ss:$2 sm:$0xff] }
 0x3fa   : > { %v6678_v57 = vpop.f32.mrb[154].mxu1  ;;  %v5586_v9 = vpop.f32.mrb[178].mxu0  ;;  %v7071_v20 = vld [vmem:[#allocation3] ss:$2 sm:$0xff] }
 0x3fb   : > { %7035 = vst.msk [vmem:[#allocation3 + $0x20] sm:$0xff] %vm2343_vm11, %v6995_v30  ;;  %v6996_v26 = vadd.f32 %v13722_v54, %v6949_v52  ;;  %v6863_v62 = vadd.f32 %v13702_v39, %v6816_v19  ;;  %v6817_v31 = vadd.f32 %v6678_v57, %v13649_v24  ;;  %v6680_v2 = vpop.f32.mrb[155].mxu1  ;;  %v13764_v28 = vadd.f32 %v5586_v9, %v13572_v8  ;;  %v5588_v23 = vpop.f32.mrb[179].mxu0 }
 0x3fc   : > { %v7073_v37 = vld [vmem:[#allocation3 + $0x10] ss:$2 sm:$0xff]  ;;  %v7113_v16 = vld [vmem:[#allocation3 + $0x11] ss:$2 sm:$0xff] }
 0x3fd   : > { %7036 = vst.msk [vmem:[#allocation3 + $0x28] sm:$0xff] %vm2343_vm11, %v6996_v26  ;;  %v6903_v17 = vmax.f32 %v6863_v62, 0.0  ;;  %v6864_v59 = vadd.f32 %v13702_v39, %v6817_v31  ;;  %v7151_v13 = vmax.f32 %v7073_v37, %v7113_v16 }
 0x3ff   : > { %v6950_v7 = vmul.f32 %v13713_v46, %v6903_v17  ;;  %v6904_v61 = vmax.f32 %v6864_v59, 0.0  ;;  %v7173_v62 = vrot.slane %v7151_v13, 2  ;;  %v7150_v59 = vmax.f32 %v7071_v20, %v7111_v40 }
 0x400   : > { %v6683_v53 = vpop.f32.mrb[156].mxu1 }
 0x401   : > { %v6997_v35 = vadd.f32 %v13722_v54, %v6950_v7  ;;  %v6951_v24 = vmul.f32 %v13713_v46, %v6904_v61  ;;  %v6818_v1 = vadd.f32 %v6683_v53, %v13658_v56  ;;  %v6685_v44 = vpop.f32.mrb[157].mxu1 }
 0x402   : > { %v6686_v58 = vpop.f32.mrb[158].mxu1 }
 0x403   : > { %7037 = vst.msk [vmem:[#allocation3 + $0x30] sm:$0xff] %vm2343_vm11, %v6997_v35  ;;  %v6998_v8 = vadd.f32 %v13722_v54, %v6951_v24  ;;  %v6865_v36 = vadd.f32 %v13702_v39, %v6818_v1  ;;  %v6819_v21 = vadd.f32 %v6686_v58, %v13661_v49  ;;  %v6688_v30 = vpop.f32.mrb[159].mxu1 }
 0x404   : > { %v7075_v52 = vld [vmem:[#allocation3 + $0x20] ss:$2 sm:$0xff]  ;;  %v7115_v19 = vld [vmem:[#allocation3 + $0x21] ss:$2 sm:$0xff]  ;;  %v5591_v33 = vpop.f32.mrb[180].mxu0 }
 0x405   : > { %v13774_v57 = vmax.f32 %v7075_v52, %v7115_v19  ;;  %7038 = vst.msk [vmem:[#allocation3 + $0x38] sm:$0xff] %vm2343_vm11, %v6998_v8  ;;  %v6905_v56 = vmax.f32 %v6865_v36, 0.0  ;;  %v6866_v26 = vadd.f32 %v13702_v39, %v6819_v21  ;;  %v13781_v9 = vadd.f32 %v5591_v33, %v13584_v43  ;;  %v5593_v17 = vpop.f32.mrb[181].mxu0 }
 0x406   : > { %v5594_v23 = vpop.f32.mrb[182].mxu0 }
 0x407   : > { %v7174_v31 = vrot.slane %v13774_v57, 2  ;;  %v6952_v2 = vmul.f32 %v13713_v46, %v6905_v56  ;;  %v6906_v49 = vmax.f32 %v6866_v26, 0.0  ;;  %v13788_v53 = vadd.f32 %v5594_v23, %v13590_v32  ;;  %v5596_v35 = vpop.f32.mrb[183].mxu0 }
 0x408   : > { %v6691_v37 = vpop.f32.mrb[160].mxu1 }
 0x409   : > { %v7175_v16 = vsel %vm15237_vm3, %v7173_v62, %v7174_v31  ;;  %v6999_v7 = vadd.f32 %v13722_v54, %v6952_v2  ;;  %v6953_v61 = vmul.f32 %v13713_v46, %v6906_v49  ;;  %v6693_v24 = vpop.f32.mrb[161].mxu1  ;;  %v6820_v43 = vadd.f32 %v6691_v37, %v13673_v10 }
 0x40a   : > { %v7177_v1 = vmax.f32 %v7150_v59, %v7175_v16  ;;  %v6694_v44 = vpop.f32.mrb[162].mxu1 }
 0x40b   : > { %7039 = vst.msk [vmem:[#allocation3 + $0x40] sm:$0xff] %vm2343_vm11, %v6999_v7  ;;  %v7000_v13 = vadd.f32 %v13722_v54, %v6953_v61  ;;  %v6821_v32 = vadd.f32 %v6694_v44, %v13679_v63  ;;  %v6696_v58 = vpop.f32.mrb[163].mxu1  ;;  %v6867_v36 = vadd.f32 %v13702_v39, %v6820_v43 }
 0x40c   : > { %v7639_v8 = vpack.c.bf16 %v7177_v1, %v7177_v1  ;;  %v7077_v30 = vld [vmem:[#allocation3 + $0x30] ss:$2 sm:$0xff]  ;;  %v7117_v52 = vld [vmem:[#allocation3 + $0x31] ss:$2 sm:$0xff] }
 0x40d   : > { %7040 = vst.msk [vmem:[#allocation3 + $0x48] sm:$0xff] %vm2343_vm11, %v7000_v13  ;;  %v6868_v10 = vadd.f32 %v13702_v39, %v6821_v32  ;;  %v6907_v21 = vmax.f32 %v6867_v36, 0.0  ;;  %v7153_v62 = vmax.f32 %v7077_v30, %v7117_v52 }
 0x40e   : > { %7293 = vst.msk [vmem:[%s13794_s10] sm:$0xf] %vm7292_vm2, %v7639_v8 }
 0x40f   : > { %v6908_v19 = vmax.f32 %v6868_v10, 0.0  ;;  %v6954_v20 = vmul.f32 %v13713_v46, %v6907_v21  ;;  %v7180_v44 = vrot.slane %v7153_v62, 2 }
 0x410   : > { %v6699_v40 = vpop.f32.mrb[164].mxu1  ;;  %v5599_v31 = vpop.f32.mrb[184].mxu0 }
 0x411   : > { %v6955_v56 = vmul.f32 %v13713_v46, %v6908_v19  ;;  %v6822_v63 = vadd.f32 %v6699_v40, %v13688_v3  ;;  %v6701_v26 = vpop.f32.mrb[165].mxu1  ;;  %v7001_v33 = vadd.f32 %v13722_v54, %v6954_v20  ;;  %v13811_v59 = vadd.f32 %v5599_v31, %v13600_v12  ;;  %v5601_v23 = vpop.f32.mrb[185].mxu0 }
 0x412   : > { %v6702_v2 = vpop.f32.mrb[166].mxu1  ;;  %v5602_v3 = vpop.f32.mrb[186].mxu0 }
 0x413   : > { %v7002_v49 = vadd.f32 %v13722_v54, %v6955_v56  ;;  %v6869_v17 = vadd.f32 %v13702_v39, %v6822_v63  ;;  %v6823_v37 = vadd.f32 %v6702_v2, %v13691_v38  ;;  %v6704_v16 = vpop.f32.mrb[167].mxu1  ;;  %7041 = vst.msk [vmem:[#allocation3 + $0x50] sm:$0xff] %vm2343_vm11, %v7001_v33  ;;  %v13818_v43 = vadd.f32 %v5602_v3, %v13609_v47  ;;  %v5604_v12 = vpop.f32.mrb[187].mxu0 }
 0x414   : > { %v7079_v7 = vld [vmem:[#allocation3 + $0x40] ss:$2 sm:$0xff]  ;;  %v7119_v61 = vld [vmem:[#allocation3 + $0x41] ss:$2 sm:$0xff] }
 0x415   : > { %v7154_v35 = vmax.f32 %v7079_v7, %v7119_v61  ;;  %7042 = vst.msk [vmem:[#allocation3 + $0x58] sm:$0xff] %vm2343_vm11, %v7002_v49  ;;  %v6909_v24 = vmax.f32 %v6869_v17, 0.0  ;;  %v6870_v1 = vadd.f32 %v13702_v39, %v6823_v37 }
 0x417   : > { %v7181_v13 = vrot.slane %v7154_v35, 2  ;;  %v6956_v38 = vmul.f32 %v13713_v46, %v6909_v24  ;;  %v6910_v32 = vmax.f32 %v6870_v1, 0.0 }
 0x418   : > { %v6707_v58 = vpop.f32.mrb[168].mxu1 }
 0x419   : > { %v7182_v8 = vsel %vm15238_vm5, %v7180_v44, %v7181_v13  ;;  %v7186_v36 = vmax.f32 %v7153_v62, %v7181_v13  ;;  %v7003_v10 = vadd.f32 %v13722_v54, %v6956_v38  ;;  %v6957_v21 = vmul.f32 %v13713_v46, %v6910_v32  ;;  %v6709_v30 = vpop.f32.mrb[169].mxu1 }
 0x41a   : > { %v7185_v52 = vmax.f32 %v13774_v57, %v7182_v8  ;;  %v6824_v47 = vadd.f32 %v6707_v58, %v13707_v29  ;;  %v6710_v19 = vpop.f32.mrb[170].mxu1 }
 0x41b   : > { %v7239_v20 = vrot.slane %v7186_v36, 4  ;;  %7043 = vst.msk [vmem:[#allocation3 + $0x60] sm:$0xff] %vm2343_vm11, %v7003_v10  ;;  %v7004_v40 = vadd.f32 %v13722_v54, %v6957_v21  ;;  %v6825_v56 = vadd.f32 %v6710_v19, %v13717_v4  ;;  %v6712_v63 = vpop.f32.mrb[171].mxu1 }
 0x41c   : > { %v7238_v26 = vrot.slane %v7185_v52, 4  ;;  %v6871_v62 = vadd.f32 %v13702_v39, %v6824_v47  ;;  %v5607_v31 = vpop.f32.mrb[188].mxu0 }
 0x41d   : > { %7044 = vst.msk [vmem:[#allocation3 + $0x68] sm:$0xff] %vm2343_vm11, %v7004_v40  ;;  %v6872_v57 = vadd.f32 %v13702_v39, %v6825_v56  ;;  %v13834_v17 = vadd.f32 %v5607_v31, %v13620_v22  ;;  %v5609_v23 = vpop.f32.mrb[189].mxu0  ;;  %v7081_v31 = vld [vmem:[#allocation3 + $0x50] ss:$2 sm:$0xff] }
 0x41e   : > { %v7240_v29 = vsel %vm7237_vm14, %v7238_v26, %v7239_v20  ;;  %v6911_v33 = vmax.f32 %v6871_v62, 0.0  ;;  %v5610_v37 = vpop.f32.mrb[190].mxu0 }
 0x41f   : > { %v7640_v2 = vpack.c.bf16 %v7240_v29, %v7240_v29  ;;  %v6912_v49 = vmax.f32 %v6872_v57, 0.0  ;;  %v13841_v61 = vadd.f32 %v5610_v37, %v13624_v55  ;;  %v5612_v3 = vpop.f32.mrb[191].mxu0 }
 0x420   : > { %v6958_v4 = vmul.f32 %v13713_v46, %v6911_v33  ;;  %v6715_v16 = vpop.f32.mrb[172].mxu1 }
 0x421   : > { %7294 = vst.msk [vmem:[%s13794_s10 + $0x4] sm:$0xf] %vm7292_vm2, %v7640_v2  ;;  %v6959_v7 = vmul.f32 %v13713_v46, %v6912_v49  ;;  %v6826_v35 = vadd.f32 %v6715_v16, %v13736_v50  ;;  %v6717_v24 = vpop.f32.mrb[173].mxu1  ;;  %v7121_v2 = vld [vmem:[#allocation3 + $0x51] ss:$2 sm:$0xff] }
 0x422   : > { %v7005_v1 = vadd.f32 %v13722_v54, %v6958_v4  ;;  %v6718_v22 = vpop.f32.mrb[174].mxu1 }
 0x423   : > { %v7006_v12 = vadd.f32 %v13722_v54, %v6959_v7  ;;  %v6873_v44 = vadd.f32 %v13702_v39, %v6826_v35  ;;  %v6827_v13 = vadd.f32 %v6718_v22, %v13741_v34  ;;  %v6720_v38 = vpop.f32.mrb[175].mxu1  ;;  %v7155_v35 = vmax.f32 %v7081_v31, %v7121_v2 }
 0x424   : > { %7045 = vst.msk [vmem:[#allocation3 + $0x70] sm:$0xff] %vm2343_vm11, %v7005_v1  ;;  %v7083_v58 = vld [vmem:[#allocation3 + $0x60] ss:$2 sm:$0xff]  ;;  %v7123_v50 = vld [vmem:[#allocation3 + $0x61] ss:$2 sm:$0xff] }
 0x425   : > { %7046 = vst.msk [vmem:[#allocation3 + $0x78] sm:$0xff] %vm2343_vm11, %v7006_v12  ;;  %v6913_v55 = vmax.f32 %v6873_v44, 0.0  ;;  %v6874_v32 = vadd.f32 %v13702_v39, %v6827_v13  ;;  %v7156_v47 = vmax.f32 %v7083_v58, %v7123_v50 }
 0x427   : > { %v6960_v8 = vmul.f32 %v13713_v46, %v6913_v55  ;;  %v6914_v36 = vmax.f32 %v6874_v32, 0.0  ;;  %v7189_v16 = vrot.slane %v7156_v47, 2 }
 0x428   : > { %v6723_v10 = vpop.f32.mrb[176].mxu1  ;;  %v5615_v19 = vpop.f32.mrb[192].mxu0 }
 0x429   : > { %v7007_v21 = vadd.f32 %v13722_v54, %v6960_v8  ;;  %v6961_v30 = vmul.f32 %v13713_v46, %v6914_v36  ;;  %v6828_v34 = vadd.f32 %v6723_v10, %v13758_v42  ;;  %v6725_v52 = vpop.f32.mrb[177].mxu1  ;;  %v13859_v63 = vadd.f32 %v5615_v19, %v13634_v18  ;;  %v5617_v26 = vpop.f32.mrb[193].mxu0 }
 0x42a   : > { %v6726_v20 = vpop.f32.mrb[178].mxu1  ;;  %v5618_v42 = vpop.f32.mrb[194].mxu0 }
 0x42b   : > { %7047 = vst.msk [vmem:[#allocation3 + $0x80] sm:$0xff] %vm2343_vm11, %v7007_v21  ;;  %v7008_v40 = vadd.f32 %v13722_v54, %v6961_v30  ;;  %v6875_v56 = vadd.f32 %v13702_v39, %v6828_v34  ;;  %v6829_v62 = vadd.f32 %v6726_v20, %v13764_v28  ;;  %v6728_v57 = vpop.f32.mrb[179].mxu1  ;;  %v13867_v37 = vadd.f32 %v5618_v42, %v13637_v11  ;;  %v5620_v18 = vpop.f32.mrb[195].mxu0 }
 0x42c   : > { %v7085_v29 = vld [vmem:[#allocation3 + $0x70] ss:$2 sm:$0xff]  ;;  %v7125_v33 = vld [vmem:[#allocation3 + $0x71] ss:$2 sm:$0xff] }
 0x42d   : > { %v13862_v49 = vmax.f32 %v7085_v29, %v7125_v33  ;;  %7048 = vst.msk [vmem:[#allocation3 + $0x88] sm:$0xff] %vm2343_vm11, %v7008_v40  ;;  %v6915_v23 = vmax.f32 %v6875_v56, 0.0  ;;  %v6876_v4 = vadd.f32 %v13702_v39, %v6829_v62 }
 0x42f   : > { %v7190_v28 = vrot.slane %v13862_v49, 2  ;;  %v6962_v7 = vmul.f32 %v13713_v46, %v6915_v23  ;;  %v6916_v3 = vmax.f32 %v6876_v4, 0.0 }
 0x430   : > { %v6731_v24 = vpop.f32.mrb[180].mxu1 }
 0x431   : > { %v7191_v1 = vsel %vm15239_vm8, %v7189_v16, %v7190_v28  ;;  %v7009_v22 = vadd.f32 %v13722_v54, %v6962_v7  ;;  %v6963_v12 = vmul.f32 %v13713_v46, %v6916_v3  ;;  %v6830_v44 = vadd.f32 %v6731_v24, %v13781_v9  ;;  %v6733_v11 = vpop.f32.mrb[181].mxu1 }
 0x432   : > { %v7193_v13 = vmax.f32 %v7155_v35, %v7191_v1  ;;  %v6734_v38 = vpop.f32.mrb[182].mxu1 }
 0x433   : > { %7049 = vst.msk [vmem:[#allocation3 + $0x90] sm:$0xff] %vm2343_vm11, %v7009_v22  ;;  %v7010_v55 = vadd.f32 %v13722_v54, %v6963_v12  ;;  %v6877_v32 = vadd.f32 %v13702_v39, %v6830_v44  ;;  %v6831_v58 = vadd.f32 %v6734_v38, %v13788_v53  ;;  %v6736_v50 = vpop.f32.mrb[183].mxu1 }
 0x434   : > { %v7641_v8 = vpack.c.bf16 %v7193_v13, %v7193_v13  ;;  %v5623_v9 = vpop.f32.mrb[196].mxu0  ;;  %v7087_v47 = vld [vmem:[#allocation3 + $0x80] ss:$2 sm:$0xff]  ;;  %v7127_v19 = vld [vmem:[#allocation3 + $0x81] ss:$2 sm:$0xff] }
 0x435   : > { %7050 = vst.msk [vmem:[#allocation3 + $0x98] sm:$0xff] %vm2343_vm11, %v7010_v55  ;;  %v6917_v36 = vmax.f32 %v6877_v32, 0.0  ;;  %v6878_v10 = vadd.f32 %v13702_v39, %v6831_v58  ;;  %v13885_v34 = vadd.f32 %v5623_v9, %v13640_v45  ;;  %v5625_v52 = vpop.f32.mrb[197].mxu0  ;;  %v7158_v42 = vmax.f32 %v7087_v47, %v7127_v19 }
 0x436   : > { %7295 = vst.msk [vmem:[%s13794_s10 + $0x8] sm:$0xf] %vm7292_vm2, %v7641_v8  ;;  %v5626_v53 = vpop.f32.mrb[198].mxu0 }
 0x437   : > { %v6964_v21 = vmul.f32 %v13713_v46, %v6917_v36  ;;  %v6918_v30 = vmax.f32 %v6878_v10, 0.0  ;;  %v13890_v26 = vadd.f32 %v5626_v53, %v13646_v14  ;;  %v5628_v62 = vpop.f32.mrb[199].mxu0  ;;  %v7196_v28 = vrot.slane %v7158_v42, 2 }
 0x438   : > { %v6739_v20 = vpop.f32.mrb[184].mxu1 }
 0x439   : > { %v7011_v40 = vadd.f32 %v13722_v54, %v6964_v21  ;;  %v6965_v56 = vmul.f32 %v13713_v46, %v6918_v30  ;;  %v6832_v57 = vadd.f32 %v6739_v20, %v13811_v59  ;;  %v6741_v29 = vpop.f32.mrb[185].mxu1 }
 0x43a   : > { %v6742_v33 = vpop.f32.mrb[186].mxu1 }
 0x43b   : > { %7051 = vst.msk [vmem:[#allocation3 + $0xa0] sm:$0xff] %vm2343_vm11, %v7011_v40  ;;  %v7012_v45 = vadd.f32 %v13722_v54, %v6965_v56  ;;  %v6879_v31 = vadd.f32 %v13702_v39, %v6832_v57  ;;  %v6833_v2 = vadd.f32 %v6742_v33, %v13818_v43  ;;  %v6744_v23 = vpop.f32.mrb[187].mxu1 }
 0x43c   : > { %v7089_v4 = vld [vmem:[#allocation3 + $0x90] ss:$2 sm:$0xff]  ;;  %v7129_v18 = vld [vmem:[#allocation3 + $0x91] ss:$2 sm:$0xff] }
 0x43d   : > { %v7159_v16 = vmax.f32 %v7089_v4, %v7129_v18  ;;  %7052 = vst.msk [vmem:[#allocation3 + $0xa8] sm:$0xff] %vm2343_vm11, %v7012_v45  ;;  %v6919_v14 = vmax.f32 %v6879_v31, 0.0  ;;  %v6880_v59 = vadd.f32 %v13702_v39, %v6833_v2 }
 0x43f   : > { %v7197_v7 = vrot.slane %v7159_v16, 2  ;;  %v6966_v3 = vmul.f32 %v13713_v46, %v6919_v14  ;;  %v6920_v35 = vmax.f32 %v6880_v59, 0.0 }
 0x440   : > { %v6747_v24 = vpop.f32.mrb[188].mxu1 }
 0x441   : > { %v7198_v1 = vsel %vm15240_vm12, %v7196_v28, %v7197_v7  ;;  %v7202_v22 = vmax.f32 %v7158_v42, %v7197_v7  ;;  %v7013_v43 = vadd.f32 %v13722_v54, %v6966_v3  ;;  %v6967_v12 = vmul.f32 %v13713_v46, %v6920_v35  ;;  %v6749_v44 = vpop.f32.mrb[189].mxu1  ;;  %v5631_v38 = vpop.f32.mrb[200].mxu0 }
 0x442   : > { %v7201_v11 = vmax.f32 %v13862_v49, %v7198_v1  ;;  %v6834_v13 = vadd.f32 %v6747_v24, %v13834_v17  ;;  %v6750_v55 = vpop.f32.mrb[190].mxu1  ;;  %v13908_v50 = vadd.f32 %v5631_v38, %v13652_v41  ;;  %v5633_v8 = vpop.f32.mrb[201].mxu0 }
 0x443   : > { %v7245_v32 = vrot.slane %v7202_v22, 4  ;;  %7053 = vst.msk [vmem:[#allocation3 + $0xb0] sm:$0xff] %vm2343_vm11, %v7013_v43  ;;  %v7014_v58 = vadd.f32 %v13722_v54, %v6967_v12  ;;  %v6835_v36 = vadd.f32 %v6750_v55, %v13841_v61  ;;  %v6752_v10 = vpop.f32.mrb[191].mxu1  ;;  %v5634_v21 = vpop.f32.mrb[202].mxu0 }
 0x444   : > { %v7244_v9 = vrot.slane %v7201_v11, 4  ;;  %v6881_v49 = vadd.f32 %v13702_v39, %v6834_v13  ;;  %v13915_v30 = vadd.f32 %v5634_v21, %v13655_v6  ;;  %v5636_v52 = vpop.f32.mrb[203].mxu0 }
 0x445   : > { %7054 = vst.msk [vmem:[#allocation3 + $0xb8] sm:$0xff] %vm2343_vm11, %v7014_v58  ;;  %v6882_v17 = vadd.f32 %v13702_v39, %v6835_v36  ;;  %v7131_v58 = vld [vmem:[#allocation3 + $0xa1] ss:$2 sm:$0xff] }
 0x446   : > { %v7246_v41 = vsel %vm7237_vm14, %v7244_v9, %v7245_v32  ;;  %v6921_v47 = vmax.f32 %v6881_v49, 0.0  ;;  %v7091_v32 = vld [vmem:[#allocation3 + $0xa0] ss:$2 sm:$0xff] }
 0x447   : > { %v7642_v19 = vpack.c.bf16 %v7246_v41, %v7246_v41  ;;  %v6922_v53 = vmax.f32 %v6882_v17, 0.0  ;;  %v7160_v21 = vmax.f32 %v7091_v32, %v7131_v58 }
 0x448   : > { %v6968_v61 = vmul.f32 %v13713_v46, %v6921_v47  ;;  %v6755_v20 = vpop.f32.mrb[192].mxu1 }
 0x449   : > { %7296 = vst.msk [vmem:[%s13794_s10 + $0xc] sm:$0xf] %vm7292_vm2, %v7642_v19  ;;  %v6969_v40 = vmul.f32 %v13713_v46, %v6922_v53  ;;  %v6836_v56 = vadd.f32 %v6755_v20, %v13859_v63  ;;  %v6757_v62 = vpop.f32.mrb[193].mxu1 }
 0x44a   : > { %v7015_v57 = vadd.f32 %v13722_v54, %v6968_v61  ;;  %v6758_v6 = vpop.f32.mrb[194].mxu1 }
 0x44b   : > { %v7016_v29 = vadd.f32 %v13722_v54, %v6969_v40  ;;  %v6883_v33 = vadd.f32 %v13702_v39, %v6836_v56  ;;  %v6837_v42 = vadd.f32 %v6758_v6, %v13867_v37  ;;  %v6760_v45 = vpop.f32.mrb[195].mxu1 }
 0x44c   : > { %7055 = vst.msk [vmem:[#allocation3 + $0xc0] sm:$0xff] %vm2343_vm11, %v7015_v57  ;;  %v7093_v14 = vld [vmem:[#allocation3 + $0xb0] ss:$2 sm:$0xff]  ;;  %v7133_v59 = vld [vmem:[#allocation3 + $0xb1] ss:$2 sm:$0xff] }
 0x44d   : > { %7056 = vst.msk [vmem:[#allocation3 + $0xc8] sm:$0xff] %vm2343_vm11, %v7016_v29  ;;  %v6923_v31 = vmax.f32 %v6883_v33, 0.0  ;;  %v6884_v2 = vadd.f32 %v13702_v39, %v6837_v42  ;;  %v5639_v23 = vpop.f32.mrb[204].mxu0  ;;  %v7161_v12 = vmax.f32 %v7093_v14, %v7133_v59 }
 0x44e   : > { %v13932_v18 = vadd.f32 %v5639_v23, %v13664_v60  ;;  %v5641_v16 = vpop.f32.mrb[205].mxu0 }
 0x44f   : > { %v6970_v63 = vmul.f32 %v13713_v46, %v6923_v31  ;;  %v6924_v4 = vmax.f32 %v6884_v2, 0.0  ;;  %v5642_v28 = vpop.f32.mrb[206].mxu0  ;;  %v7205_v36 = vrot.slane %v7161_v12, 2 }
 0x450   : > { %v6763_v37 = vpop.f32.mrb[196].mxu1  ;;  %v5703_v35 = vadd.f32 %v5642_v28, %v13667_v15  ;;  %v5644_v24 = vpop.f32.mrb[207].mxu0 }
 0x451   : > { %v7017_v7 = vadd.f32 %v13722_v54, %v6970_v63  ;;  %v6971_v3 = vmul.f32 %v13713_v46, %v6924_v4  ;;  %v6838_v1 = vadd.f32 %v6763_v37, %v13885_v34  ;;  %v6765_v22 = vpop.f32.mrb[197].mxu1 }
 0x452   : > { %v6766_v43 = vpop.f32.mrb[198].mxu1 }
 0x453   : > { %7057 = vst.msk [vmem:[#allocation3 + $0xd0] sm:$0xff] %vm2343_vm11, %v7017_v7  ;;  %v7018_v60 = vadd.f32 %v13722_v54, %v6971_v3  ;;  %v6885_v44 = vadd.f32 %v13702_v39, %v6838_v1  ;;  %v6839_v11 = vadd.f32 %v6766_v43, %v13890_v26  ;;  %v6768_v13 = vpop.f32.mrb[199].mxu1 }
 0x454   : > { %v7095_v38 = vld [vmem:[#allocation3 + $0xc0] ss:$2 sm:$0xff]  ;;  %v7135_v55 = vld [vmem:[#allocation3 + $0xc1] ss:$2 sm:$0xff] }
 0x455   : > { %v13942_v15 = vmax.f32 %v7095_v38, %v7135_v55  ;;  %7058 = vst.msk [vmem:[#allocation3 + $0xd8] sm:$0xff] %vm2343_vm11, %v7018_v60  ;;  %v6925_v34 = vmax.f32 %v6885_v44, 0.0  ;;  %v6886_v8 = vadd.f32 %v13702_v39, %v6839_v11 }
 0x457   : > { %v7206_v10 = vrot.slane %v13942_v15, 2  ;;  %v6972_v9 = vmul.f32 %v13713_v46, %v6925_v34  ;;  %v6926_v49 = vmax.f32 %v6886_v8, 0.0 }
 0x458   : > { %v6771_v26 = vpop.f32.mrb[200].mxu1 }
 0x459   : > { %v7207_v17 = vsel %vm15241_vm7, %v7205_v36, %v7206_v10  ;;  %v7019_v52 = vadd.f32 %v13722_v54, %v6972_v9  ;;  %v6973_v41 = vmul.f32 %v13713_v46, %v6926_v49  ;;  %v6840_v47 = vadd.f32 %v6771_v26, %v13908_v50  ;;  %v6773_v19 = vpop.f32.mrb[201].mxu1  ;;  %v5647_v61 = vpop.f32.mrb[208].mxu0 }
 0x45a   : > { %v7209_v53 = vmax.f32 %v7160_v21, %v7207_v17  ;;  %v6774_v20 = vpop.f32.mrb[202].mxu1  ;;  %v5704_v62 = vadd.f32 %v5647_v61, %v13670_v5  ;;  %v5649_v57 = vpop.f32.mrb[209].mxu0 }
 0x45b   : > { %7059 = vst.msk [vmem:[#allocation3 + $0xe0] sm:$0xff] %vm2343_vm11, %v7019_v52  ;;  %v7020_v40 = vadd.f32 %v13722_v54, %v6973_v41  ;;  %v6887_v56 = vadd.f32 %v13702_v39, %v6840_v47  ;;  %v6841_v6 = vadd.f32 %v6774_v20, %v13915_v30  ;;  %v6776_v29 = vpop.f32.mrb[203].mxu1  ;;  %v5650_v42 = vpop.f32.mrb[210].mxu0 }
 0x45c   : > { %v7643_v33 = vpack.c.bf16 %v7209_v53, %v7209_v53  ;;  %v5705_v31 = vadd.f32 %v5650_v42, %v13676_v0  ;;  %v5652_v2 = vpop.f32.mrb[211].mxu0  ;;  %v7097_v23 = vld [vmem:[#allocation3 + $0xd0] ss:$2 sm:$0xff]  ;;  %v7137_v63 = vld [vmem:[#allocation3 + $0xd1] ss:$2 sm:$0xff] }
 0x45d   : > { %7060 = vst.msk [vmem:[#allocation3 + $0xe8] sm:$0xff] %vm2343_vm11, %v7020_v40  ;;  %v6927_v50 = vmax.f32 %v6887_v56, 0.0  ;;  %v6888_v45 = vadd.f32 %v13702_v39, %v6841_v6  ;;  %v7163_v37 = vmax.f32 %v7097_v23, %v7137_v63 }
 0x45e   : > { %7297 = vst.msk [vmem:[%s13794_s10 + $0x10] sm:$0xf] %vm7292_vm2, %v7643_v33 }
 0x45f   : > { %v6974_v5 = vmul.f32 %v13713_v46, %v6927_v50  ;;  %v6928_v4 = vmax.f32 %v6888_v45, 0.0 }
 0x460   : > { %v6779_v16 = vpop.f32.mrb[204].mxu1 }
 0x461   : > { %v7021_v30 = vadd.f32 %v13722_v54, %v6974_v5  ;;  %v6975_v14 = vmul.f32 %v13713_v46, %v6928_v4  ;;  %v6842_v59 = vadd.f32 %v6779_v16, %v13932_v18  ;;  %v6781_v28 = vpop.f32.mrb[205].mxu1  ;;  %v7212_v18 = vrot.slane %v7163_v37, 2 }
 0x462   : > { %v6782_v7 = vpop.f32.mrb[206].mxu1 }
 0x463   : > { %7061 = vst.msk [vmem:[#allocation3 + $0xf0] sm:$0xff] %vm2343_vm11, %v7021_v30  ;;  %v7022_v0 = vadd.f32 %v13722_v54, %v6975_v14  ;;  %v6889_v3 = vadd.f32 %v13702_v39, %v6842_v59  ;;  %v6843_v24 = vadd.f32 %v6782_v7, %v5703_v35  ;;  %v6784_v1 = vpop.f32.mrb[207].mxu1 }
 0x464   : > { %v7099_v22 = vld [vmem:[#allocation3 + $0xe0] ss:$2 sm:$0xff]  ;;  %v7139_v43 = vld [vmem:[#allocation3 + $0xe1] ss:$2 sm:$0xff] }
 0x465   : > { %v7164_v12 = vmax.f32 %v7099_v22, %v7139_v43  ;;  %7062 = vst.msk [vmem:[#allocation3 + $0xf8] sm:$0xff] %vm2343_vm11, %v7022_v0  ;;  %v6929_v60 = vmax.f32 %v6889_v3, 0.0  ;;  %v6890_v44 = vadd.f32 %v13702_v39, %v6843_v24  ;;  %v5655_v11 = vpop.f32.mrb[212].mxu0 }
 0x466   : > { %v5706_v32 = vadd.f32 %v5655_v11, %v13682_v51  ;;  %v5657_v58 = vpop.f32.mrb[213].mxu0 }
 0x467   : > { %v7213_v13 = vrot.slane %v7164_v12, 2  ;;  %v6976_v38 = vmul.f32 %v13713_v46, %v6929_v60  ;;  %v6930_v55 = vmax.f32 %v6890_v44, 0.0  ;;  %v5658_v34 = vpop.f32.mrb[214].mxu0 }
 0x468   : > { %v6787_v35 = vpop.f32.mrb[208].mxu1  ;;  %v5660_v49 = vpop.f32.mrb[215].mxu0  ;;  %v5707_v17 = vadd.f32 %v5658_v34, %v13685_v25 }
 0x469   : > { %v7214_v8 = vsel %vm15242_vm1, %v7212_v18, %v7213_v13  ;;  %v7218_v36 = vmax.f32 %v7163_v37, %v7213_v13  ;;  %v7023_v10 = vadd.f32 %v13722_v54, %v6976_v38  ;;  %v6977_v9 = vmul.f32 %v13713_v46, %v6930_v55  ;;  %v6789_v21 = vpop.f32.mrb[209].mxu1 }
 0x46a   : > { %v7217_v26 = vmax.f32 %v13942_v15, %v7214_v8  ;;  %v6844_v52 = vadd.f32 %v6787_v35, %v5704_v62  ;;  %v6790_v41 = vpop.f32.mrb[210].mxu1 }
 0x46b   : > { %v7251_v51 = vrot.slane %v7218_v36, 4  ;;  %7063 = vst.msk [vmem:[#allocation3 + $0x100] sm:$0xff] %vm2343_vm11, %v7023_v10  ;;  %v7024_v47 = vadd.f32 %v13722_v54, %v6977_v9  ;;  %v6845_v19 = vadd.f32 %v6790_v41, %v5705_v31  ;;  %v6792_v53 = vpop.f32.mrb[211].mxu1 }
 0x46c   : > { %v7250_v61 = vrot.slane %v7217_v26, 4  ;;  %v6891_v20 = vadd.f32 %v13702_v39, %v6844_v52  ;;  %v7141_v58 = vld [vmem:[#allocation3 + $0xf1] ss:$2 sm:$0xff] }
 0x46d   : > { %7064 = vst.msk [vmem:[#allocation3 + $0x108] sm:$0xff] %vm2343_vm11, %v7024_v47  ;;  %v6892_v40 = vadd.f32 %v13702_v39, %v6845_v19 }
 0x46e   : > { %v7252_v15 = vsel %vm7237_vm14, %v7250_v61, %v7251_v51  ;;  %v6931_v25 = vmax.f32 %v6891_v20, 0.0 }
 0x46f   : > { %v7644_v56 = vpack.c.bf16 %v7252_v15, %v7252_v15  ;;  %v6932_v62 = vmax.f32 %v6892_v40, 0.0 }
 0x470   : > { %v6978_v57 = vmul.f32 %v13713_v46, %v6931_v25  ;;  %v6795_v6 = vpop.f32.mrb[212].mxu1 }
 0x471   : > { %7298 = vst.msk [vmem:[%s13794_s10 + $0x14] sm:$0xf] %vm7292_vm2, %v7644_v56  ;;  %v6979_v29 = vmul.f32 %v13713_v46, %v6932_v62  ;;  %v6846_v33 = vadd.f32 %v6795_v6, %v5706_v32  ;;  %v6797_v42 = vpop.f32.mrb[213].mxu1  ;;  %v5663_v45 = vpop.f32.mrb[216].mxu0  ;;  %v7101_v32 = vld [vmem:[#allocation3 + $0xf0] ss:$2 sm:$0xff] }
 0x472   : > { %v7025_v50 = vadd.f32 %v13722_v54, %v6978_v57  ;;  %v6798_v31 = vpop.f32.mrb[214].mxu1  ;;  %v5708_v63 = vadd.f32 %v5663_v45, %v13694_v27  ;;  %v5665_v5 = vpop.f32.mrb[217].mxu0  ;;  %v7165_v9 = vmax.f32 %v7101_v32, %v7141_v58 }
 0x473   : > { %v7026_v2 = vadd.f32 %v13722_v54, %v6979_v29  ;;  %v6893_v23 = vadd.f32 %v13702_v39, %v6846_v33  ;;  %v6847_v4 = vadd.f32 %v6798_v31, %v5707_v17  ;;  %v6800_v16 = vpop.f32.mrb[215].mxu1  ;;  %v5666_v30 = vpop.f32.mrb[218].mxu0 }
 0x474   : > { %7065 = vst.msk [vmem:[#allocation3 + $0x110] sm:$0xff] %vm2343_vm11, %v7025_v50  ;;  %v5709_v28 = vadd.f32 %v5666_v30, %v13697_v48  ;;  %v5668_v37 = vpop.f32.mrb[219].mxu0  ;;  %v7103_v3 = vld [vmem:[#allocation3 + $0x100] ss:$2 sm:$0xff]  ;;  %v7143_v24 = vld [vmem:[#allocation3 + $0x101] ss:$2 sm:$0xff] }
 0x475   : > { %7066 = vst.msk [vmem:[#allocation3 + $0x118] sm:$0xff] %vm2343_vm11, %v7026_v2  ;;  %v6933_v14 = vmax.f32 %v6893_v23, 0.0  ;;  %v6894_v59 = vadd.f32 %v13702_v39, %v6847_v4  ;;  %v7166_v60 = vmax.f32 %v7103_v3, %v7143_v24 }
 0x477   : > { %v6980_v7 = vmul.f32 %v13713_v46, %v6933_v14  ;;  %v6934_v0 = vmax.f32 %v6894_v59, 0.0  ;;  %v7221_v36 = vrot.slane %v7166_v60, 2 }
 0x478   : > { %v6803_v22 = vpop.f32.mrb[216].mxu1 }
 0x479   : > { %v7027_v27 = vadd.f32 %v13722_v54, %v6980_v7  ;;  %v6981_v1 = vmul.f32 %v13713_v46, %v6934_v0  ;;  %v6848_v43 = vadd.f32 %v6803_v22, %v5708_v63  ;;  %v6805_v12 = vpop.f32.mrb[217].mxu1 }
 0x47a   : > { %v6806_v18 = vpop.f32.mrb[218].mxu1 }
 0x47b   : > { %7067 = vst.msk [vmem:[#allocation3 + $0x120] sm:$0xff] %vm2343_vm11, %v7027_v27  ;;  %v7028_v44 = vadd.f32 %v13722_v54, %v6981_v1  ;;  %v6895_v13 = vadd.f32 %v13702_v39, %v6848_v43  ;;  %v6849_v38 = vadd.f32 %v6806_v18, %v5709_v28  ;;  %v6808_v55 = vpop.f32.mrb[219].mxu1 }
 0x47c   : > { %v7105_v48 = vld [vmem:[#allocation3 + $0x110] ss:$2 sm:$0xff]  ;;  %v7145_v11 = vld [vmem:[#allocation3 + $0x111] ss:$2 sm:$0xff] }
 0x47d   : > { %v7167_v34 = vmax.f32 %v7105_v48, %v7145_v11  ;;  %7068 = vst.msk [vmem:[#allocation3 + $0x128] sm:$0xff] %vm2343_vm11, %v7028_v44  ;;  %v6935_v35 = vmax.f32 %v6895_v13, 0.0  ;;  %v6896_v8 = vadd.f32 %v13702_v39, %v6849_v38 }
 0x47f   : > { %v7222_v10 = vrot.slane %v7167_v34, 2  ;;  %v6982_v49 = vmul.f32 %v13713_v46, %v6935_v35  ;;  %v6936_v21 = vmax.f32 %v6896_v8, 0.0 }
 0x481   : > { %v7223_v26 = vsel %vm15243_vm4, %v7221_v36, %v7222_v10  ;;  %v7029_v52 = vadd.f32 %v13722_v54, %v6982_v49  ;;  %v6983_v41 = vmul.f32 %v13713_v46, %v6936_v21 }
 0x482   : > { %v7225_v17 = vmax.f32 %v7165_v9, %v7223_v26 }
 0x483   : > { %7069 = vst.msk [vmem:[#allocation3 + $0x130] sm:$0xff] %vm2343_vm11, %v7029_v52  ;;  %v7030_v47 = vadd.f32 %v13722_v54, %v6983_v41 }
 0x484   : > { %v7645_v51 = vpack.c.bf16 %v7225_v17, %v7225_v17  ;;  %v7107_v39 = vld [vmem:[#allocation3 + $0x120] ss:$2 sm:$0xff]  ;;  %v7147_v19 = vld [vmem:[#allocation3 + $0x121] ss:$2 sm:$0xff] }
 0x485   : > { %7070 = vst.msk [vmem:[#allocation3 + $0x138] sm:$0xff] %vm2343_vm11, %v7030_v47  ;;  %v7168_v53 = vmax.f32 %v7107_v39, %v7147_v19 }
 0x486   : > { %7299 = vst.msk [vmem:[%s13794_s10 + $0x18] sm:$0xf] %vm7292_vm2, %v7645_v51 }
 0x487   : > { %v7228_v15 = vrot.slane %v7168_v53, 2 }
 0x48c   : > { %v7109_v61 = vld [vmem:[#allocation3 + $0x130] ss:$2 sm:$0xff]  ;;  %v7149_v20 = vld [vmem:[#allocation3 + $0x131] ss:$2 sm:$0xff] }
 0x48d   : > { %v7169_v40 = vmax.f32 %v7109_v61, %v7149_v20 }
 0x48f   : > { %v7229_v25 = vrot.slane %v7169_v40, 2 }
 0x491   : > { %v7230_v46 = vsel %vm15244_vm13, %v7228_v15, %v7229_v25  ;;  %v7234_v56 = vmax.f32 %v7168_v53, %v7229_v25 }
 0x492   : > { %v7233_v62 = vmax.f32 %v7167_v34, %v7230_v46 }
 0x493   : > { %v7257_v57 = vrot.slane %v7234_v56, 4 }
 0x494   : > { %v7256_v6 = vrot.slane %v7233_v62, 4 }
 0x496   : > { %v7258_v54 = vsel %vm7237_vm14, %v7256_v6, %v7257_v57 }
 0x497   : > { %v7646_v29 = vpack.c.bf16 %v7258_v54, %v7258_v54 }
 0x499   : > { %7300 = vst.msk [vmem:[%s13794_s10 + $0x1c] sm:$0xf] %vm7292_vm2, %v7646_v29 }
 0x49a PF: > { %s19_s30 = sadd.s32 1, %s8000_s30  }
 0x49b   : > { %p16_p4 = scmp.ge.s32.totalorder %s19_s30, 4  }
 0x49d   :  { %18 = sbr.rel (!%p16_p4) target bundleno = 1 (0x1), region = 129 }

</bundles_post_ra>
